<compile_context>
chip_gen: v5e
topology: v5e:2x2
jax: 0.10.0
libtpu: 0.0.40
codegen_flags: <defaults>
</compile_context>

<pallas_src>
import numpy as np
import jax
import jax.numpy as jnp
from jax import lax
from jax.experimental import pallas as pl
from jax.experimental.pallas import tpu as pltpu

NEG_SLOPE = 0.2
BN_EPS = 1e-5
KSIZE = 4                      # both convs: kernel 4, stride 2, padding 1


# ----------------------------- Pallas kernel -------------------------------

def _make_fused_kernel(Nb, H2, W2):
    """Whole discriminator forward in one kernel; static config via closure."""
    M2 = Nb * H2 * W2          # conv2 output rows == rows per conv1 phase block
    WN = W2 * Nb               # row stride of one h2o step
    assert WN & (WN - 1) == 0, "W2 * batch must be a power of two (mask uses &)"

    def kernel(cols1_ref, w1m_ref, b1_ref, w2m_ref, b2_ref, g2_ref, bt2_ref,
               w3_ref, bfc1_ref, g1_ref, bt1_ref, wfc2_ref, bfc2_ref,
               o_ref, flat_ref):
        c1 = w1m_ref.shape[1]          # conv1 out channels (64)
        c2 = w2m_ref.shape[1]          # conv2 out channels (128)
        hw2 = H2 * W2

        def lrelu(v):
            return jnp.where(v >= 0, v, NEG_SLOPE * v)

        # ---- conv1: im2col matmul + bias + LeakyReLU ----------------------
        # cols1 rows are ordered (ph, pw, hh, wh, n); conv1 output spatial is
        # (2*hh + ph, 2*wh + pw), so h1 comes out already split into the 4
        # polyphase blocks that conv2's stride-2 gather needs.
        h1 = jnp.dot(cols1_ref[...], w1m_ref[...],
                     preferred_element_type=jnp.float32) + b1_ref[...]
        h1a = lrelu(h1)                                        # (4*M2, c1) f32
        phase = [h1a[b * M2:(b + 1) * M2, :] for b in range(4)]

        # ---- conv2 as 16 polyphase rotate+mask dots (all VMEM-resident) ---
        # output rows ordered (h2o, w2o, n); columns = conv2 channels.
        row = lax.broadcasted_iota(jnp.int32, (M2, c1), 0)
        rmod = jnp.bitwise_and(row, WN - 1)                    # row % (W2*Nb)
        acc = jnp.zeros((M2, c2), jnp.float32)
        for kh in range(KSIZE):
            qh, ph = divmod(kh - 1, 2)                         # kh-1 = 2*qh+ph
            for kw in range(KSIZE):
                qw, pw = divmod(kw - 1, 2)
                blk = phase[ph * 2 + pw]
                shift = (qh * W2 + qw) * Nb                    # rows, mult of 8
                if shift != 0:      # rotate rows: out[r] = blk[(r+shift) % M2]
                    blk = jnp.concatenate([blk[shift:, :], blk[:shift, :]],
                                          axis=0)
                conds = []
                if qh < 0:
                    conds.append(row >= WN)
                if qh > 0:
                    conds.append(row < (H2 - 1) * WN)
                if qw < 0:
                    conds.append(rmod >= Nb)
                if qw > 0:
                    conds.append(rmod < (W2 - 1) * Nb)
                if conds:
                    m = conds[0]
                    for cnd in conds[1:]:
                        m = jnp.logical_and(m, cnd)
                    blk = jnp.where(m, blk, jnp.zeros_like(blk))
                kk = kh * KSIZE + kw
                acc = acc + jnp.dot(blk.astype(jnp.bfloat16),
                                    w2m_ref[kk * c1:(kk + 1) * c1, :],
                                    preferred_element_type=jnp.float32)

        # ---- conv2 bias + BatchNorm2d (batch stats over N*H*W) + LReLU ----
        h2 = acc + b2_ref[...]
        mu = jnp.mean(h2, axis=0, keepdims=True)
        var = jnp.mean((h2 - mu) ** 2, axis=0, keepdims=True)
        scale = g2_ref[...] * lax.rsqrt(var + BN_EPS)
        h2 = lrelu(h2 * scale + (bt2_ref[...] - mu * scale))
        h2b = h2.astype(jnp.bfloat16)                          # rows (p, n)

        # ---- NCHW flatten folded into w3 layout: flat[n, p*c2 + c] --------
        # 16 lane-aligned (Nb, 128) column-block stores into a VMEM scratch.
        for p in range(hw2):
            flat_ref[:, p * c2:(p + 1) * c2] = h2b[p * Nb:(p + 1) * Nb, :]

        # ---- fc1: single K = hw2*c2 matmul + BatchNorm1d + LReLU ----------
        y = jnp.dot(flat_ref[...], w3_ref[...],
                    preferred_element_type=jnp.float32) + bfc1_ref[...]
        mu1 = jnp.mean(y, axis=0, keepdims=True)
        var1 = jnp.mean((y - mu1) ** 2, axis=0, keepdims=True)
        scale1 = g1_ref[...] * lax.rsqrt(var1 + BN_EPS)
        y = lrelu(y * scale1 + (bt1_ref[...] - mu1 * scale1))

        # ---- fc2: output_dim == 1 -> VPU multiply + lane reduce -----------
        if wfc2_ref.shape[0] == 1:
            out = jnp.sum(y * wfc2_ref[...], axis=-1, keepdims=True)
        else:
            out = lax.dot_general(y, wfc2_ref[...], (((1,), (1,)), ((), ())),
                                  preferred_element_type=jnp.float32)
        o_ref[...] = (out + bfc2_ref[...]).astype(o_ref.dtype)

    return kernel


def fused_forward(cols1, prep, *, Nb, H2, W2):
    c1 = prep['w1m'].shape[1]
    c2 = prep['w2m'].shape[1]
    nfc1 = prep['w3'].shape[1]
    out_dim = prep['fc2_w'].shape[0]
    hw2 = H2 * W2
    M2 = Nb * hw2

    args = (cols1, prep['w1m'], prep['b1'], prep['w2m'], prep['b2'],
            prep['bn2_g'], prep['bn2_b'], prep['w3'], prep['fc1_b'],
            prep['bn1_g'], prep['bn1_b'], prep['fc2_w'], prep['fc2_b'])

    flops = (2 * cols1.shape[0] * cols1.shape[1] * c1            # conv1
             + 2 * M2 * c1 * c2 * KSIZE * KSIZE                  # conv2
             + 2 * Nb * hw2 * c2 * nfc1                          # fc1
             + 2 * Nb * nfc1 * out_dim)                          # fc2
    bytes_accessed = sum(int(np.prod(a.shape)) * a.dtype.itemsize for a in args)
    bytes_accessed += Nb * out_dim * 4

    vmem = pl.BlockSpec(memory_space=pltpu.MemorySpace.VMEM)
    # TODO(synk): on v7x this grid-less call runs on one TensorCore; add a
    # 2-way 'parallel' M-tiling (with split/partial BN2 stats) once the batch
    # or image size grows enough for VMEM / compute to matter.
    return pl.pallas_call(
        _make_fused_kernel(Nb, H2, W2),
        out_shape=jax.ShapeDtypeStruct((Nb, out_dim), jnp.float32),
        in_specs=[vmem] * len(args),
        out_specs=vmem,
        scratch_shapes=[pltpu.VMEM((Nb, hw2 * c2), jnp.bfloat16)],
        compiler_params=pltpu.CompilerParams(
            vmem_limit_bytes=32 * 1024 * 1024),
        cost_estimate=pl.CostEstimate(flops=int(flops),
                                      transcendentals=int(c2 + nfc1),
                                      bytes_accessed=int(bytes_accessed)),
    )(*args)


# ------------------------------ JAX glue -----------------------------------

def discriminator_forward(prep, x_nchw):
    Nb, Cin, H, W = x_nchw.shape
    cp = prep['w1m'].shape[0] // (KSIZE * KSIZE)
    H1, W1 = H // 2, W // 2
    H2, W2 = H1 // 2, W1 // 2

    # Cast + channel-pad BEFORE the im2col glue (half the bytes moved).
    x = x_nchw.astype(jnp.bfloat16).transpose(0, 2, 3, 1)        # NHWC bf16
    x = jnp.pad(x, ((0, 0), (1, 1), (1, 1), (0, cp - Cin)))

    # conv1 im2col (k=4, s=2, p=1) with rows ordered (ph, pw, hh, wh, n),
    # i.e. pre-split into the 4 stride-2 polyphase blocks the fused kernel's
    # conv2 stage consumes with plain aligned slices.
    # TODO(synk): this patch-extraction glue (<=128 KB here) could also move
    # in-kernel with the same polyphase trick if the image size grows.
    patches = [x[:, i:i + 2 * H1:2, j:j + 2 * W1:2, :]
               for i in range(KSIZE) for j in range(KSIZE)]
    cols = jnp.stack(patches, axis=-2)                 # (Nb, H1, W1, 16, cp)
    cols = cols.reshape(Nb, H2, 2, W2, 2, KSIZE * KSIZE, cp)
    cols = cols.transpose(2, 4, 1, 3, 0, 5, 6)         # (ph, pw, hh, wh, n, ..)
    cols1 = cols.reshape(4 * H2 * W2 * Nb, KSIZE * KSIZE * cp)

    return fused_forward(cols1, prep, Nb=Nb, H2=H2, W2=W2)


def init_params(key, input_dim=3, output_dim=1, input_size=16):
    feat = 128 * (input_size // 4) * (input_size // 4)
    ks = jax.random.split(key, 8)

    def rnd(k, shape, fan_in):
        return jax.random.normal(k, shape, jnp.float32) / np.sqrt(fan_in)

    return {
        'w1': rnd(ks[0], (64, input_dim, 4, 4), input_dim * 16),
        'b1': rnd(ks[1], (64,), input_dim * 16),
        'w2': rnd(ks[2], (128, 64, 4, 4), 64 * 16),
        'b2': rnd(ks[3], (128,), 64 * 16),
        'bn2_g': jnp.ones((128,), jnp.float32),
        'bn2_b': jnp.zeros((128,), jnp.float32),
        'fc1_w': rnd(ks[4], (1024, feat), feat),
        'fc1_b': rnd(ks[5], (1024,), feat),
        'bn1_g': jnp.ones((1024,), jnp.float32),
        'bn1_b': jnp.zeros((1024,), jnp.float32),
        'fc2_w': rnd(ks[6], (output_dim, 1024), 1024),
        'fc2_b': rnd(ks[7], (output_dim,), 1024),
    }


def prepare_params(params, input_dim=3, input_size=16):
    """One-time (outside jit) weight relayout: im2col weight matrices, the
    NCHW-flatten permutation folded into the fc1 weight, lane-friendly input
    channel padding, and bf16 casts for every MXU operand."""
    assert input_size % 4 == 0
    cin = input_dim
    cp = ((cin + 7) // 8) * 8                 # conv1 K = 16*cp (=128 for cin=3)
    hw2 = (input_size // 4) ** 2
    n_fc1 = params['fc1_w'].shape[0]

    w1 = jnp.transpose(params['w1'], (2, 3, 1, 0))               # (4,4,cin,64)
    w1 = jnp.pad(w1, ((0, 0), (0, 0), (0, cp - cin), (0, 0)))
    w1m = w1.reshape(KSIZE * KSIZE * cp, 64).astype(jnp.bfloat16)

    w2 = jnp.transpose(params['w2'], (2, 3, 1, 0))               # (4,4,64,128)
    w2m = w2.reshape(KSIZE * KSIZE * 64, 128).astype(jnp.bfloat16)

    # PyTorch flatten index is j = c*hw2 + p; store fc1 weight with row p*128+c.
    w3 = params['fc1_w'].reshape(n_fc1, 128, hw2)                # [k, c, p]
    w3 = jnp.transpose(w3, (2, 1, 0)).reshape(hw2 * 128, n_fc1)
    w3 = w3.astype(jnp.bfloat16)

    return {
        'w1m': w1m, 'b1': params['b1'].reshape(1, 64),
        'w2m': w2m, 'b2': params['b2'].reshape(1, 128),
        'bn2_g': params['bn2_g'].reshape(1, 128),
        'bn2_b': params['bn2_b'].reshape(1, 128),
        'w3': w3, 'fc1_b': params['fc1_b'].reshape(1, n_fc1),
        'bn1_g': params['bn1_g'].reshape(1, n_fc1),
        'bn1_b': params['bn1_b'].reshape(1, n_fc1),
        'fc2_w': params['fc2_w'],                                # (O, n_fc1) f32
        'fc2_b': params['fc2_b'].reshape(1, -1),
    }


# --------------------------- pure-JAX reference ----------------------------

def reference_forward(params, x):
    def lrelu(v):
        return jnp.where(v >= 0, v, NEG_SLOPE * v)

    y = lax.conv_general_dilated(x, params['w1'], (2, 2), ((1, 1), (1, 1)),
                                 dimension_numbers=('NCHW', 'OIHW', 'NCHW'))
    y = lrelu(y + params['b1'][None, :, None, None])
    y = lax.conv_general_dilated(y, params['w2'], (2, 2), ((1, 1), (1, 1)),
                                 dimension_numbers=('NCHW', 'OIHW', 'NCHW'))
    y = y + params['b2'][None, :, None, None]
    mean = y.mean(axis=(0, 2, 3), keepdims=True)
    var = ((y - mean) ** 2).mean(axis=(0, 2, 3), keepdims=True)
    y = (y - mean) * lax.rsqrt(var + BN_EPS)
    y = lrelu(y * params['bn2_g'][None, :, None, None]
              + params['bn2_b'][None, :, None, None])
    y = y.reshape(y.shape[0], -1)
    y = y @ params['fc1_w'].T + params['fc1_b']
    mean = y.mean(axis=0, keepdims=True)
    var = ((y - mean) ** 2).mean(axis=0, keepdims=True)
    y = lrelu((y - mean) * lax.rsqrt(var + BN_EPS) * params['bn1_g']
              + params['bn1_b'])
    return y @ params['fc2_w'].T + params['fc2_b']


if __name__ == "__main__":
    key = jax.random.PRNGKey(0)
    kp, kx = jax.random.split(key)
    input_size = 16
    batch = 8
    params = init_params(kp, input_dim=3, output_dim=1, input_size=input_size)
    prep = prepare_params(params, input_dim=3, input_size=input_size)
    x = jax.random.normal(kx, (batch, 3, input_size, input_size), jnp.float32)

    fwd = jax.jit(discriminator_forward)
    out = jax.block_until_ready(fwd(prep, x))

    ref = reference_forward(params, x)
    np.testing.assert_allclose(np.asarray(out), np.asarray(ref),
                               rtol=5e-2, atol=5e-2)
    print("KERNEL_OK")
</pallas_src>

<mosaic_0001>
module attributes {stable_mosaic.version = 11 : i64} {
  func.func @kernel(%arg0: memref<512x128xbf16, #tpu.memory_space<vmem>>, %arg1: memref<128x64xbf16, #tpu.memory_space<vmem>>, %arg2: memref<1x64xf32, #tpu.memory_space<vmem>>, %arg3: memref<1024x128xbf16, #tpu.memory_space<vmem>>, %arg4: memref<1x128xf32, #tpu.memory_space<vmem>>, %arg5: memref<1x128xf32, #tpu.memory_space<vmem>>, %arg6: memref<1x128xf32, #tpu.memory_space<vmem>>, %arg7: memref<2048x1024xbf16, #tpu.memory_space<vmem>>, %arg8: memref<1x1024xf32, #tpu.memory_space<vmem>>, %arg9: memref<1x1024xf32, #tpu.memory_space<vmem>>, %arg10: memref<1x1024xf32, #tpu.memory_space<vmem>>, %arg11: memref<1x1024xf32, #tpu.memory_space<vmem>>, %arg12: memref<1x1xf32, #tpu.memory_space<vmem>>, %arg13: memref<8x1xf32, #tpu.memory_space<vmem>>, %arg14: memref<8x2048xbf16, #tpu.memory_space<vmem>>) attributes {dimension_semantics = [], scalar_prefetch = 0 : i64, scratch_operands = 1 : i64, tpu.core_type = #tpu.core_type<tc>} {
    %c0 = arith.constant 0 : index
    %c0_0 = arith.constant 0 : index
    %0 = vector.load %arg0[%c0, %c0_0] : memref<512x128xbf16, #tpu.memory_space<vmem>>, vector<512x128xbf16>
    %c0_1 = arith.constant 0 : index
    %c0_2 = arith.constant 0 : index
    %1 = vector.load %arg1[%c0_1, %c0_2] : memref<128x64xbf16, #tpu.memory_space<vmem>>, vector<128x64xbf16>
    %cst = arith.constant dense<0.000000e+00> : vector<512x64xf32>
    %2 = tpu.matmul %0, %1, %cst {dimension_numbers = #tpu.dot_dimension_numbers<[1], [0], [0], [1], [0, 0, 1, 1], [], []>} : vector<512x128xbf16>, vector<128x64xbf16>, vector<512x64xf32> -> vector<512x64xf32>
    %c0_3 = arith.constant 0 : index
    %c0_4 = arith.constant 0 : index
    %3 = vector.load %arg2[%c0_3, %c0_4] : memref<1x64xf32, #tpu.memory_space<vmem>>, vector<1x64xf32>
    %4 = vector.broadcast %3 : vector<1x64xf32> to vector<512x64xf32>
    %5 = arith.addf %2, %4 : vector<512x64xf32>
    %cst_5 = arith.constant 0.000000e+00 : f32
    %6 = vector.broadcast %cst_5 : f32 to vector<512x64xf32>
    %7 = arith.cmpf oge, %5, %6 : vector<512x64xf32>
    %cst_6 = arith.constant 2.000000e-01 : f32
    %8 = vector.broadcast %cst_6 : f32 to vector<512x64xf32>
    %9 = arith.mulf %8, %5 : vector<512x64xf32>
    %10 = arith.select %7, %5, %9 : vector<512x64xi1>, vector<512x64xf32>
    %11 = vector.extract_strided_slice %10 {offsets = [0, 0], sizes = [128, 64], strides = [1, 1]} : vector<512x64xf32> to vector<128x64xf32>
    %12 = vector.extract_strided_slice %10 {offsets = [128, 0], sizes = [128, 64], strides = [1, 1]} : vector<512x64xf32> to vector<128x64xf32>
    %13 = vector.extract_strided_slice %10 {offsets = [256, 0], sizes = [128, 64], strides = [1, 1]} : vector<512x64xf32> to vector<128x64xf32>
    %14 = vector.extract_strided_slice %10 {offsets = [384, 0], sizes = [128, 64], strides = [1, 1]} : vector<512x64xf32> to vector<128x64xf32>
    %15 = tpu.iota {dimensions = array<i32: 0>} : vector<128x64xi32>
    %c31_i32 = arith.constant 31 : i32
    %16 = vector.broadcast %c31_i32 : i32 to vector<128x64xi32>
    %17 = arith.andi %15, %16 : vector<128x64xi32>
    %cst_7 = arith.constant 0.000000e+00 : f32
    %18 = vector.broadcast %cst_7 : f32 to vector<128x128xf32>
    %19 = vector.extract_strided_slice %14 {offsets = [88, 0], sizes = [40, 64], strides = [1, 1]} : vector<128x64xf32> to vector<40x64xf32>
    %20 = vector.extract_strided_slice %14 {offsets = [0, 0], sizes = [88, 64], strides = [1, 1]} : vector<128x64xf32> to vector<88x64xf32>
    %21 = tpu.concatenate %19, %20 in 0 : vector<40x64xf32>, vector<88x64xf32> -> vector<128x64xf32>
    %c32_i32 = arith.constant 32 : i32
    %22 = vector.broadcast %c32_i32 : i32 to vector<128x64xi32>
    %23 = arith.cmpi sge, %15, %22 : vector<128x64xi32>
    %c8_i32 = arith.constant 8 : i32
    %24 = vector.broadcast %c8_i32 : i32 to vector<128x64xi32>
    %25 = arith.cmpi sge, %17, %24 : vector<128x64xi32>
    %26 = arith.andi %23, %25 : vector<128x64xi1>
    %cst_8 = arith.constant 0.000000e+00 : f32
    %27 = vector.broadcast %cst_8 : f32 to vector<128x64xf32>
    %28 = arith.select %26, %21, %27 : vector<128x64xi1>, vector<128x64xf32>
    %29 = arith.truncf %28 : vector<128x64xf32> to vector<128x64xbf16>
    %c0_9 = arith.constant 0 : index
    %c0_10 = arith.constant 0 : index
    %30 = vector.load %arg3[%c0_9, %c0_10] : memref<1024x128xbf16, #tpu.memory_space<vmem>>, vector<64x128xbf16>
    %cst_11 = arith.constant dense<0.000000e+00> : vector<128x128xf32>
    %31 = tpu.matmul %29, %30, %cst_11 {dimension_numbers = #tpu.dot_dimension_numbers<[1], [0], [0], [1], [0, 0, 1, 1], [], []>} : vector<128x64xbf16>, vector<64x128xbf16>, vector<128x128xf32> -> vector<128x128xf32>
    %32 = arith.addf %18, %31 : vector<128x128xf32>
    %33 = vector.extract_strided_slice %13 {offsets = [96, 0], sizes = [32, 64], strides = [1, 1]} : vector<128x64xf32> to vector<32x64xf32>
    %34 = vector.extract_strided_slice %13 {offsets = [0, 0], sizes = [96, 64], strides = [1, 1]} : vector<128x64xf32> to vector<96x64xf32>
    %35 = tpu.concatenate %33, %34 in 0 : vector<32x64xf32>, vector<96x64xf32> -> vector<128x64xf32>
    %c32_i32_12 = arith.constant 32 : i32
    %36 = vector.broadcast %c32_i32_12 : i32 to vector<128x64xi32>
    %37 = arith.cmpi sge, %15, %36 : vector<128x64xi32>
    %cst_13 = arith.constant 0.000000e+00 : f32
    %38 = vector.broadcast %cst_13 : f32 to vector<128x64xf32>
    %39 = arith.select %37, %35, %38 : vector<128x64xi1>, vector<128x64xf32>
    %40 = arith.truncf %39 : vector<128x64xf32> to vector<128x64xbf16>
    %c64 = arith.constant 64 : index
    %c0_14 = arith.constant 0 : index
    %41 = vector.load %arg3[%c64, %c0_14] : memref<1024x128xbf16, #tpu.memory_space<vmem>>, vector<64x128xbf16>
    %cst_15 = arith.constant dense<0.000000e+00> : vector<128x128xf32>
    %42 = tpu.matmul %40, %41, %cst_15 {dimension_numbers = #tpu.dot_dimension_numbers<[1], [0], [0], [1], [0, 0, 1, 1], [], []>} : vector<128x64xbf16>, vector<64x128xbf16>, vector<128x128xf32> -> vector<128x128xf32>
    %43 = arith.addf %32, %42 : vector<128x128xf32>
    %44 = vector.extract_strided_slice %14 {offsets = [96, 0], sizes = [32, 64], strides = [1, 1]} : vector<128x64xf32> to vector<32x64xf32>
    %45 = vector.extract_strided_slice %14 {offsets = [0, 0], sizes = [96, 64], strides = [1, 1]} : vector<128x64xf32> to vector<96x64xf32>
    %46 = tpu.concatenate %44, %45 in 0 : vector<32x64xf32>, vector<96x64xf32> -> vector<128x64xf32>
    %c32_i32_16 = arith.constant 32 : i32
    %47 = vector.broadcast %c32_i32_16 : i32 to vector<128x64xi32>
    %48 = arith.cmpi sge, %15, %47 : vector<128x64xi32>
    %cst_17 = arith.constant 0.000000e+00 : f32
    %49 = vector.broadcast %cst_17 : f32 to vector<128x64xf32>
    %50 = arith.select %48, %46, %49 : vector<128x64xi1>, vector<128x64xf32>
    %51 = arith.truncf %50 : vector<128x64xf32> to vector<128x64xbf16>
    %c128 = arith.constant 128 : index
    %c0_18 = arith.constant 0 : index
    %52 = vector.load %arg3[%c128, %c0_18] : memref<1024x128xbf16, #tpu.memory_space<vmem>>, vector<64x128xbf16>
    %cst_19 = arith.constant dense<0.000000e+00> : vector<128x128xf32>
    %53 = tpu.matmul %51, %52, %cst_19 {dimension_numbers = #tpu.dot_dimension_numbers<[1], [0], [0], [1], [0, 0, 1, 1], [], []>} : vector<128x64xbf16>, vector<64x128xbf16>, vector<128x128xf32> -> vector<128x128xf32>
    %54 = arith.addf %43, %53 : vector<128x128xf32>
    %55 = vector.extract_strided_slice %13 {offsets = [104, 0], sizes = [24, 64], strides = [1, 1]} : vector<128x64xf32> to vector<24x64xf32>
    %56 = vector.extract_strided_slice %13 {offsets = [0, 0], sizes = [104, 64], strides = [1, 1]} : vector<128x64xf32> to vector<104x64xf32>
    %57 = tpu.concatenate %55, %56 in 0 : vector<24x64xf32>, vector<104x64xf32> -> vector<128x64xf32>
    %c32_i32_20 = arith.constant 32 : i32
    %58 = vector.broadcast %c32_i32_20 : i32 to vector<128x64xi32>
    %59 = arith.cmpi sge, %15, %58 : vector<128x64xi32>
    %c24_i32 = arith.constant 24 : i32
    %60 = vector.broadcast %c24_i32 : i32 to vector<128x64xi32>
    %61 = arith.cmpi slt, %17, %60 : vector<128x64xi32>
    %62 = arith.andi %59, %61 : vector<128x64xi1>
    %cst_21 = arith.constant 0.000000e+00 : f32
    %63 = vector.broadcast %cst_21 : f32 to vector<128x64xf32>
    %64 = arith.select %62, %57, %63 : vector<128x64xi1>, vector<128x64xf32>
    %65 = arith.truncf %64 : vector<128x64xf32> to vector<128x64xbf16>
    %c192 = arith.constant 192 : index
    %c0_22 = arith.constant 0 : index
    %66 = vector.load %arg3[%c192, %c0_22] : memref<1024x128xbf16, #tpu.memory_space<vmem>>, vector<64x128xbf16>
    %cst_23 = arith.constant dense<0.000000e+00> : vector<128x128xf32>
    %67 = tpu.matmul %65, %66, %cst_23 {dimension_numbers = #tpu.dot_dimension_numbers<[1], [0], [0], [1], [0, 0, 1, 1], [], []>} : vector<128x64xbf16>, vector<64x128xbf16>, vector<128x128xf32> -> vector<128x128xf32>
    %68 = arith.addf %54, %67 : vector<128x128xf32>
    %69 = vector.extract_strided_slice %12 {offsets = [120, 0], sizes = [8, 64], strides = [1, 1]} : vector<128x64xf32> to vector<8x64xf32>
    %70 = vector.extract_strided_slice %12 {offsets = [0, 0], sizes = [120, 64], strides = [1, 1]} : vector<128x64xf32> to vector<120x64xf32>
    %71 = tpu.concatenate %69, %70 in 0 : vector<8x64xf32>, vector<120x64xf32> -> vector<128x64xf32>
    %c8_i32_24 = arith.constant 8 : i32
    %72 = vector.broadcast %c8_i32_24 : i32 to vector<128x64xi32>
    %73 = arith.cmpi sge, %17, %72 : vector<128x64xi32>
    %cst_25 = arith.constant 0.000000e+00 : f32
    %74 = vector.broadcast %cst_25 : f32 to vector<128x64xf32>
    %75 = arith.select %73, %71, %74 : vector<128x64xi1>, vector<128x64xf32>
    %76 = arith.truncf %75 : vector<128x64xf32> to vector<128x64xbf16>
    %c256 = arith.constant 256 : index
    %c0_26 = arith.constant 0 : index
    %77 = vector.load %arg3[%c256, %c0_26] : memref<1024x128xbf16, #tpu.memory_space<vmem>>, vector<64x128xbf16>
    %cst_27 = arith.constant dense<0.000000e+00> : vector<128x128xf32>
    %78 = tpu.matmul %76, %77, %cst_27 {dimension_numbers = #tpu.dot_dimension_numbers<[1], [0], [0], [1], [0, 0, 1, 1], [], []>} : vector<128x64xbf16>, vector<64x128xbf16>, vector<128x128xf32> -> vector<128x128xf32>
    %79 = arith.addf %68, %78 : vector<128x128xf32>
    %80 = arith.truncf %11 : vector<128x64xf32> to vector<128x64xbf16>
    %c320 = arith.constant 320 : index
    %c0_28 = arith.constant 0 : index
    %81 = vector.load %arg3[%c320, %c0_28] : memref<1024x128xbf16, #tpu.memory_space<vmem>>, vector<64x128xbf16>
    %cst_29 = arith.constant dense<0.000000e+00> : vector<128x128xf32>
    %82 = tpu.matmul %80, %81, %cst_29 {dimension_numbers = #tpu.dot_dimension_numbers<[1], [0], [0], [1], [0, 0, 1, 1], [], []>} : vector<128x64xbf16>, vector<64x128xbf16>, vector<128x128xf32> -> vector<128x128xf32>
    %83 = arith.addf %79, %82 : vector<128x128xf32>
    %84 = arith.truncf %12 : vector<128x64xf32> to vector<128x64xbf16>
    %c384 = arith.constant 384 : index
    %c0_30 = arith.constant 0 : index
    %85 = vector.load %arg3[%c384, %c0_30] : memref<1024x128xbf16, #tpu.memory_space<vmem>>, vector<64x128xbf16>
    %cst_31 = arith.constant dense<0.000000e+00> : vector<128x128xf32>
    %86 = tpu.matmul %84, %85, %cst_31 {dimension_numbers = #tpu.dot_dimension_numbers<[1], [0], [0], [1], [0, 0, 1, 1], [], []>} : vector<128x64xbf16>, vector<64x128xbf16>, vector<128x128xf32> -> vector<128x128xf32>
    %87 = arith.addf %83, %86 : vector<128x128xf32>
    %88 = vector.extract_strided_slice %11 {offsets = [8, 0], sizes = [120, 64], strides = [1, 1]} : vector<128x64xf32> to vector<120x64xf32>
    %89 = vector.extract_strided_slice %11 {offsets = [0, 0], sizes = [8, 64], strides = [1, 1]} : vector<128x64xf32> to vector<8x64xf32>
    %90 = tpu.concatenate %88, %89 in 0 : vector<120x64xf32>, vector<8x64xf32> -> vector<128x64xf32>
    %c24_i32_32 = arith.constant 24 : i32
    %91 = vector.broadcast %c24_i32_32 : i32 to vector<128x64xi32>
    %92 = arith.cmpi slt, %17, %91 : vector<128x64xi32>
    %cst_33 = arith.constant 0.000000e+00 : f32
    %93 = vector.broadcast %cst_33 : f32 to vector<128x64xf32>
    %94 = arith.select %92, %90, %93 : vector<128x64xi1>, vector<128x64xf32>
    %95 = arith.truncf %94 : vector<128x64xf32> to vector<128x64xbf16>
    %c448 = arith.constant 448 : index
    %c0_34 = arith.constant 0 : index
    %96 = vector.load %arg3[%c448, %c0_34] : memref<1024x128xbf16, #tpu.memory_space<vmem>>, vector<64x128xbf16>
    %cst_35 = arith.constant dense<0.000000e+00> : vector<128x128xf32>
    %97 = tpu.matmul %95, %96, %cst_35 {dimension_numbers = #tpu.dot_dimension_numbers<[1], [0], [0], [1], [0, 0, 1, 1], [], []>} : vector<128x64xbf16>, vector<64x128xbf16>, vector<128x128xf32> -> vector<128x128xf32>
    %98 = arith.addf %87, %97 : vector<128x128xf32>
    %99 = vector.extract_strided_slice %14 {offsets = [120, 0], sizes = [8, 64], strides = [1, 1]} : vector<128x64xf32> to vector<8x64xf32>
    %100 = vector.extract_strided_slice %14 {offsets = [0, 0], sizes = [120, 64], strides = [1, 1]} : vector<128x64xf32> to vector<120x64xf32>
    %101 = tpu.concatenate %99, %100 in 0 : vector<8x64xf32>, vector<120x64xf32> -> vector<128x64xf32>
    %c8_i32_36 = arith.constant 8 : i32
    %102 = vector.broadcast %c8_i32_36 : i32 to vector<128x64xi32>
    %103 = arith.cmpi sge, %17, %102 : vector<128x64xi32>
    %cst_37 = arith.constant 0.000000e+00 : f32
    %104 = vector.broadcast %cst_37 : f32 to vector<128x64xf32>
    %105 = arith.select %103, %101, %104 : vector<128x64xi1>, vector<128x64xf32>
    %106 = arith.truncf %105 : vector<128x64xf32> to vector<128x64xbf16>
    %c512 = arith.constant 512 : index
    %c0_38 = arith.constant 0 : index
    %107 = vector.load %arg3[%c512, %c0_38] : memref<1024x128xbf16, #tpu.memory_space<vmem>>, vector<64x128xbf16>
    %cst_39 = arith.constant dense<0.000000e+00> : vector<128x128xf32>
    %108 = tpu.matmul %106, %107, %cst_39 {dimension_numbers = #tpu.dot_dimension_numbers<[1], [0], [0], [1], [0, 0, 1, 1], [], []>} : vector<128x64xbf16>, vector<64x128xbf16>, vector<128x128xf32> -> vector<128x128xf32>
    %109 = arith.addf %98, %108 : vector<128x128xf32>
    %110 = arith.truncf %13 : vector<128x64xf32> to vector<128x64xbf16>
    %c576 = arith.constant 576 : index
    %c0_40 = arith.constant 0 : index
    %111 = vector.load %arg3[%c576, %c0_40] : memref<1024x128xbf16, #tpu.memory_space<vmem>>, vector<64x128xbf16>
    %cst_41 = arith.constant dense<0.000000e+00> : vector<128x128xf32>
    %112 = tpu.matmul %110, %111, %cst_41 {dimension_numbers = #tpu.dot_dimension_numbers<[1], [0], [0], [1], [0, 0, 1, 1], [], []>} : vector<128x64xbf16>, vector<64x128xbf16>, vector<128x128xf32> -> vector<128x128xf32>
    %113 = arith.addf %109, %112 : vector<128x128xf32>
    %114 = arith.truncf %14 : vector<128x64xf32> to vector<128x64xbf16>
    %c640 = arith.constant 640 : index
    %c0_42 = arith.constant 0 : index
    %115 = vector.load %arg3[%c640, %c0_42] : memref<1024x128xbf16, #tpu.memory_space<vmem>>, vector<64x128xbf16>
    %cst_43 = arith.constant dense<0.000000e+00> : vector<128x128xf32>
    %116 = tpu.matmul %114, %115, %cst_43 {dimension_numbers = #tpu.dot_dimension_numbers<[1], [0], [0], [1], [0, 0, 1, 1], [], []>} : vector<128x64xbf16>, vector<64x128xbf16>, vector<128x128xf32> -> vector<128x128xf32>
    %117 = arith.addf %113, %116 : vector<128x128xf32>
    %118 = vector.extract_strided_slice %13 {offsets = [8, 0], sizes = [120, 64], strides = [1, 1]} : vector<128x64xf32> to vector<120x64xf32>
    %119 = vector.extract_strided_slice %13 {offsets = [0, 0], sizes = [8, 64], strides = [1, 1]} : vector<128x64xf32> to vector<8x64xf32>
    %120 = tpu.concatenate %118, %119 in 0 : vector<120x64xf32>, vector<8x64xf32> -> vector<128x64xf32>
    %c24_i32_44 = arith.constant 24 : i32
    %121 = vector.broadcast %c24_i32_44 : i32 to vector<128x64xi32>
    %122 = arith.cmpi slt, %17, %121 : vector<128x64xi32>
    %cst_45 = arith.constant 0.000000e+00 : f32
    %123 = vector.broadcast %cst_45 : f32 to vector<128x64xf32>
    %124 = arith.select %122, %120, %123 : vector<128x64xi1>, vector<128x64xf32>
    %125 = arith.truncf %124 : vector<128x64xf32> to vector<128x64xbf16>
    %c704 = arith.constant 704 : index
    %c0_46 = arith.constant 0 : index
    %126 = vector.load %arg3[%c704, %c0_46] : memref<1024x128xbf16, #tpu.memory_space<vmem>>, vector<64x128xbf16>
    %cst_47 = arith.constant dense<0.000000e+00> : vector<128x128xf32>
    %127 = tpu.matmul %125, %126, %cst_47 {dimension_numbers = #tpu.dot_dimension_numbers<[1], [0], [0], [1], [0, 0, 1, 1], [], []>} : vector<128x64xbf16>, vector<64x128xbf16>, vector<128x128xf32> -> vector<128x128xf32>
    %128 = arith.addf %117, %127 : vector<128x128xf32>
    %129 = vector.extract_strided_slice %12 {offsets = [24, 0], sizes = [104, 64], strides = [1, 1]} : vector<128x64xf32> to vector<104x64xf32>
    %130 = vector.extract_strided_slice %12 {offsets = [0, 0], sizes = [24, 64], strides = [1, 1]} : vector<128x64xf32> to vector<24x64xf32>
    %131 = tpu.concatenate %129, %130 in 0 : vector<104x64xf32>, vector<24x64xf32> -> vector<128x64xf32>
    %c96_i32 = arith.constant 96 : i32
    %132 = vector.broadcast %c96_i32 : i32 to vector<128x64xi32>
    %133 = arith.cmpi slt, %15, %132 : vector<128x64xi32>
    %c8_i32_48 = arith.constant 8 : i32
    %134 = vector.broadcast %c8_i32_48 : i32 to vector<128x64xi32>
    %135 = arith.cmpi sge, %17, %134 : vector<128x64xi32>
    %136 = arith.andi %133, %135 : vector<128x64xi1>
    %cst_49 = arith.constant 0.000000e+00 : f32
    %137 = vector.broadcast %cst_49 : f32 to vector<128x64xf32>
    %138 = arith.select %136, %131, %137 : vector<128x64xi1>, vector<128x64xf32>
    %139 = arith.truncf %138 : vector<128x64xf32> to vector<128x64xbf16>
    %c768 = arith.constant 768 : index
    %c0_50 = arith.constant 0 : index
    %140 = vector.load %arg3[%c768, %c0_50] : memref<1024x128xbf16, #tpu.memory_space<vmem>>, vector<64x128xbf16>
    %cst_51 = arith.constant dense<0.000000e+00> : vector<128x128xf32>
    %141 = tpu.matmul %139, %140, %cst_51 {dimension_numbers = #tpu.dot_dimension_numbers<[1], [0], [0], [1], [0, 0, 1, 1], [], []>} : vector<128x64xbf16>, vector<64x128xbf16>, vector<128x128xf32> -> vector<128x128xf32>
    %142 = arith.addf %128, %141 : vector<128x128xf32>
    %143 = vector.extract_strided_slice %11 {offsets = [32, 0], sizes = [96, 64], strides = [1, 1]} : vector<128x64xf32> to vector<96x64xf32>
    %144 = vector.extract_strided_slice %11 {offsets = [0, 0], sizes = [32, 64], strides = [1, 1]} : vector<128x64xf32> to vector<32x64xf32>
    %145 = tpu.concatenate %143, %144 in 0 : vector<96x64xf32>, vector<32x64xf32> -> vector<128x64xf32>
    %c96_i32_52 = arith.constant 96 : i32
    %146 = vector.broadcast %c96_i32_52 : i32 to vector<128x64xi32>
    %147 = arith.cmpi slt, %15, %146 : vector<128x64xi32>
    %cst_53 = arith.constant 0.000000e+00 : f32
    %148 = vector.broadcast %cst_53 : f32 to vector<128x64xf32>
    %149 = arith.select %147, %145, %148 : vector<128x64xi1>, vector<128x64xf32>
    %150 = arith.truncf %149 : vector<128x64xf32> to vector<128x64xbf16>
    %c832 = arith.constant 832 : index
    %c0_54 = arith.constant 0 : index
    %151 = vector.load %arg3[%c832, %c0_54] : memref<1024x128xbf16, #tpu.memory_space<vmem>>, vector<64x128xbf16>
    %cst_55 = arith.constant dense<0.000000e+00> : vector<128x128xf32>
    %152 = tpu.matmul %150, %151, %cst_55 {dimension_numbers = #tpu.dot_dimension_numbers<[1], [0], [0], [1], [0, 0, 1, 1], [], []>} : vector<128x64xbf16>, vector<64x128xbf16>, vector<128x128xf32> -> vector<128x128xf32>
    %153 = arith.addf %142, %152 : vector<128x128xf32>
    %154 = vector.extract_strided_slice %12 {offsets = [32, 0], sizes = [96, 64], strides = [1, 1]} : vector<128x64xf32> to vector<96x64xf32>
    %155 = vector.extract_strided_slice %12 {offsets = [0, 0], sizes = [32, 64], strides = [1, 1]} : vector<128x64xf32> to vector<32x64xf32>
    %156 = tpu.concatenate %154, %155 in 0 : vector<96x64xf32>, vector<32x64xf32> -> vector<128x64xf32>
    %c96_i32_56 = arith.constant 96 : i32
    %157 = vector.broadcast %c96_i32_56 : i32 to vector<128x64xi32>
    %158 = arith.cmpi slt, %15, %157 : vector<128x64xi32>
    %cst_57 = arith.constant 0.000000e+00 : f32
    %159 = vector.broadcast %cst_57 : f32 to vector<128x64xf32>
    %160 = arith.select %158, %156, %159 : vector<128x64xi1>, vector<128x64xf32>
    %161 = arith.truncf %160 : vector<128x64xf32> to vector<128x64xbf16>
    %c896 = arith.constant 896 : index
    %c0_58 = arith.constant 0 : index
    %162 = vector.load %arg3[%c896, %c0_58] : memref<1024x128xbf16, #tpu.memory_space<vmem>>, vector<64x128xbf16>
    %cst_59 = arith.constant dense<0.000000e+00> : vector<128x128xf32>
    %163 = tpu.matmul %161, %162, %cst_59 {dimension_numbers = #tpu.dot_dimension_numbers<[1], [0], [0], [1], [0, 0, 1, 1], [], []>} : vector<128x64xbf16>, vector<64x128xbf16>, vector<128x128xf32> -> vector<128x128xf32>
    %164 = arith.addf %153, %163 : vector<128x128xf32>
    %165 = vector.extract_strided_slice %11 {offsets = [40, 0], sizes = [88, 64], strides = [1, 1]} : vector<128x64xf32> to vector<88x64xf32>
    %166 = vector.extract_strided_slice %11 {offsets = [0, 0], sizes = [40, 64], strides = [1, 1]} : vector<128x64xf32> to vector<40x64xf32>
    %167 = tpu.concatenate %165, %166 in 0 : vector<88x64xf32>, vector<40x64xf32> -> vector<128x64xf32>
    %c96_i32_60 = arith.constant 96 : i32
    %168 = vector.broadcast %c96_i32_60 : i32 to vector<128x64xi32>
    %169 = arith.cmpi slt, %15, %168 : vector<128x64xi32>
    %c24_i32_61 = arith.constant 24 : i32
    %170 = vector.broadcast %c24_i32_61 : i32 to vector<128x64xi32>
    %171 = arith.cmpi slt, %17, %170 : vector<128x64xi32>
    %172 = arith.andi %169, %171 : vector<128x64xi1>
    %cst_62 = arith.constant 0.000000e+00 : f32
    %173 = vector.broadcast %cst_62 : f32 to vector<128x64xf32>
    %174 = arith.select %172, %167, %173 : vector<128x64xi1>, vector<128x64xf32>
    %175 = arith.truncf %174 : vector<128x64xf32> to vector<128x64xbf16>
    %c960 = arith.constant 960 : index
    %c0_63 = arith.constant 0 : index
    %176 = vector.load %arg3[%c960, %c0_63] : memref<1024x128xbf16, #tpu.memory_space<vmem>>, vector<64x128xbf16>
    %cst_64 = arith.constant dense<0.000000e+00> : vector<128x128xf32>
    %177 = tpu.matmul %175, %176, %cst_64 {dimension_numbers = #tpu.dot_dimension_numbers<[1], [0], [0], [1], [0, 0, 1, 1], [], []>} : vector<128x64xbf16>, vector<64x128xbf16>, vector<128x128xf32> -> vector<128x128xf32>
    %178 = arith.addf %164, %177 : vector<128x128xf32>
    %c0_65 = arith.constant 0 : index
    %c0_66 = arith.constant 0 : index
    %179 = vector.load %arg4[%c0_65, %c0_66] : memref<1x128xf32, #tpu.memory_space<vmem>>, vector<1x128xf32>
    %180 = vector.broadcast %179 : vector<1x128xf32> to vector<128x128xf32>
    %181 = arith.addf %178, %180 : vector<128x128xf32>
    %cst_67 = arith.constant dense<0.000000e+00> : vector<128xf32>
    %182 = vector.multi_reduction <add>, %181, %cst_67 [0] : vector<128x128xf32> to vector<128xf32>
    %183 = vector.shape_cast %182 : vector<128xf32> to vector<1x128xf32>
    %cst_68 = arith.constant 1.280000e+02 : f32
    %184 = vector.broadcast %cst_68 : f32 to vector<1x128xf32>
    %185 = arith.divf %183, %184 : vector<1x128xf32>
    %186 = vector.broadcast %185 : vector<1x128xf32> to vector<128x128xf32>
    %187 = arith.subf %181, %186 : vector<128x128xf32>
    %188 = arith.mulf %187, %187 : vector<128x128xf32>
    %cst_69 = arith.constant dense<0.000000e+00> : vector<128xf32>
    %189 = vector.multi_reduction <add>, %188, %cst_69 [0] : vector<128x128xf32> to vector<128xf32>
    %190 = vector.shape_cast %189 : vector<128xf32> to vector<1x128xf32>
    %cst_70 = arith.constant 1.280000e+02 : f32
    %191 = vector.broadcast %cst_70 : f32 to vector<1x128xf32>
    %192 = arith.divf %190, %191 : vector<1x128xf32>
    %c0_71 = arith.constant 0 : index
    %c0_72 = arith.constant 0 : index
    %193 = vector.load %arg5[%c0_71, %c0_72] : memref<1x128xf32, #tpu.memory_space<vmem>>, vector<1x128xf32>
    %cst_73 = arith.constant 9.99999974E-6 : f32
    %194 = vector.broadcast %cst_73 : f32 to vector<1x128xf32>
    %195 = arith.addf %192, %194 : vector<1x128xf32>
    %196 = math.rsqrt %195 : vector<1x128xf32>
    %197 = arith.mulf %193, %196 : vector<1x128xf32>
    %198 = vector.broadcast %197 : vector<1x128xf32> to vector<128x128xf32>
    %199 = arith.mulf %181, %198 : vector<128x128xf32>
    %c0_74 = arith.constant 0 : index
    %c0_75 = arith.constant 0 : index
    %200 = vector.load %arg6[%c0_74, %c0_75] : memref<1x128xf32, #tpu.memory_space<vmem>>, vector<1x128xf32>
    %201 = arith.mulf %185, %197 : vector<1x128xf32>
    %202 = arith.subf %200, %201 : vector<1x128xf32>
    %203 = vector.broadcast %202 : vector<1x128xf32> to vector<128x128xf32>
    %204 = arith.addf %199, %203 : vector<128x128xf32>
    %cst_76 = arith.constant 0.000000e+00 : f32
    %205 = vector.broadcast %cst_76 : f32 to vector<128x128xf32>
    %206 = arith.cmpf oge, %204, %205 : vector<128x128xf32>
    %cst_77 = arith.constant 2.000000e-01 : f32
    %207 = vector.broadcast %cst_77 : f32 to vector<128x128xf32>
    %208 = arith.mulf %207, %204 : vector<128x128xf32>
    %209 = arith.select %206, %204, %208 : vector<128x128xi1>, vector<128x128xf32>
    %210 = arith.truncf %209 : vector<128x128xf32> to vector<128x128xbf16>
    %211 = vector.extract_strided_slice %210 {offsets = [0, 0], sizes = [8, 128], strides = [1, 1]} : vector<128x128xbf16> to vector<8x128xbf16>
    %c0_78 = arith.constant 0 : index
    %c0_79 = arith.constant 0 : index
    %212 = vector.load %arg14[%c0_78, %c0_79] : memref<8x2048xbf16, #tpu.memory_space<vmem>>, vector<8x128xbf16>
    tpu.vector_store %arg14[%c0_78, %c0_79], %211 {strides = array<i32>} : memref<8x2048xbf16, #tpu.memory_space<vmem>>, vector<8x128xbf16>,
    %213 = vector.extract_strided_slice %210 {offsets = [8, 0], sizes = [8, 128], strides = [1, 1]} : vector<128x128xbf16> to vector<8x128xbf16>
    %c0_80 = arith.constant 0 : index
    %c128_81 = arith.constant 128 : index
    %214 = vector.load %arg14[%c0_80, %c128_81] : memref<8x2048xbf16, #tpu.memory_space<vmem>>, vector<8x128xbf16>
    tpu.vector_store %arg14[%c0_80, %c128_81], %213 {strides = array<i32>} : memref<8x2048xbf16, #tpu.memory_space<vmem>>, vector<8x128xbf16>,
    %215 = vector.extract_strided_slice %210 {offsets = [16, 0], sizes = [8, 128], strides = [1, 1]} : vector<128x128xbf16> to vector<8x128xbf16>
    %c0_82 = arith.constant 0 : index
    %c256_83 = arith.constant 256 : index
    %216 = vector.load %arg14[%c0_82, %c256_83] : memref<8x2048xbf16, #tpu.memory_space<vmem>>, vector<8x128xbf16>
    tpu.vector_store %arg14[%c0_82, %c256_83], %215 {strides = array<i32>} : memref<8x2048xbf16, #tpu.memory_space<vmem>>, vector<8x128xbf16>,
    %217 = vector.extract_strided_slice %210 {offsets = [24, 0], sizes = [8, 128], strides = [1, 1]} : vector<128x128xbf16> to vector<8x128xbf16>
    %c0_84 = arith.constant 0 : index
    %c384_85 = arith.constant 384 : index
    %218 = vector.load %arg14[%c0_84, %c384_85] : memref<8x2048xbf16, #tpu.memory_space<vmem>>, vector<8x128xbf16>
    tpu.vector_store %arg14[%c0_84, %c384_85], %217 {strides = array<i32>} : memref<8x2048xbf16, #tpu.memory_space<vmem>>, vector<8x128xbf16>,
    %219 = vector.extract_strided_slice %210 {offsets = [32, 0], sizes = [8, 128], strides = [1, 1]} : vector<128x128xbf16> to vector<8x128xbf16>
    %c0_86 = arith.constant 0 : index
    %c512_87 = arith.constant 512 : index
    %220 = vector.load %arg14[%c0_86, %c512_87] : memref<8x2048xbf16, #tpu.memory_space<vmem>>, vector<8x128xbf16>
    tpu.vector_store %arg14[%c0_86, %c512_87], %219 {strides = array<i32>} : memref<8x2048xbf16, #tpu.memory_space<vmem>>, vector<8x128xbf16>,
    %221 = vector.extract_strided_slice %210 {offsets = [40, 0], sizes = [8, 128], strides = [1, 1]} : vector<128x128xbf16> to vector<8x128xbf16>
    %c0_88 = arith.constant 0 : index
    %c640_89 = arith.constant 640 : index
    %222 = vector.load %arg14[%c0_88, %c640_89] : memref<8x2048xbf16, #tpu.memory_space<vmem>>, vector<8x128xbf16>
    tpu.vector_store %arg14[%c0_88, %c640_89], %221 {strides = array<i32>} : memref<8x2048xbf16, #tpu.memory_space<vmem>>, vector<8x128xbf16>,
    %223 = vector.extract_strided_slice %210 {offsets = [48, 0], sizes = [8, 128], strides = [1, 1]} : vector<128x128xbf16> to vector<8x128xbf16>
    %c0_90 = arith.constant 0 : index
    %c768_91 = arith.constant 768 : index
    %224 = vector.load %arg14[%c0_90, %c768_91] : memref<8x2048xbf16, #tpu.memory_space<vmem>>, vector<8x128xbf16>
    tpu.vector_store %arg14[%c0_90, %c768_91], %223 {strides = array<i32>} : memref<8x2048xbf16, #tpu.memory_space<vmem>>, vector<8x128xbf16>,
    %225 = vector.extract_strided_slice %210 {offsets = [56, 0], sizes = [8, 128], strides = [1, 1]} : vector<128x128xbf16> to vector<8x128xbf16>
    %c0_92 = arith.constant 0 : index
    %c896_93 = arith.constant 896 : index
    %226 = vector.load %arg14[%c0_92, %c896_93] : memref<8x2048xbf16, #tpu.memory_space<vmem>>, vector<8x128xbf16>
    tpu.vector_store %arg14[%c0_92, %c896_93], %225 {strides = array<i32>} : memref<8x2048xbf16, #tpu.memory_space<vmem>>, vector<8x128xbf16>,
    %227 = vector.extract_strided_slice %210 {offsets = [64, 0], sizes = [8, 128], strides = [1, 1]} : vector<128x128xbf16> to vector<8x128xbf16>
    %c0_94 = arith.constant 0 : index
    %c1024 = arith.constant 1024 : index
    %228 = vector.load %arg14[%c0_94, %c1024] : memref<8x2048xbf16, #tpu.memory_space<vmem>>, vector<8x128xbf16>
    tpu.vector_store %arg14[%c0_94, %c1024], %227 {strides = array<i32>} : memref<8x2048xbf16, #tpu.memory_space<vmem>>, vector<8x128xbf16>,
    %229 = vector.extract_strided_slice %210 {offsets = [72, 0], sizes = [8, 128], strides = [1, 1]} : vector<128x128xbf16> to vector<8x128xbf16>
    %c0_95 = arith.constant 0 : index
    %c1152 = arith.constant 1152 : index
    %230 = vector.load %arg14[%c0_95, %c1152] : memref<8x2048xbf16, #tpu.memory_space<vmem>>, vector<8x128xbf16>
    tpu.vector_store %arg14[%c0_95, %c1152], %229 {strides = array<i32>} : memref<8x2048xbf16, #tpu.memory_space<vmem>>, vector<8x128xbf16>,
    %231 = vector.extract_strided_slice %210 {offsets = [80, 0], sizes = [8, 128], strides = [1, 1]} : vector<128x128xbf16> to vector<8x128xbf16>
    %c0_96 = arith.constant 0 : index
    %c1280 = arith.constant 1280 : index
    %232 = vector.load %arg14[%c0_96, %c1280] : memref<8x2048xbf16, #tpu.memory_space<vmem>>, vector<8x128xbf16>
    tpu.vector_store %arg14[%c0_96, %c1280], %231 {strides = array<i32>} : memref<8x2048xbf16, #tpu.memory_space<vmem>>, vector<8x128xbf16>,
    %233 = vector.extract_strided_slice %210 {offsets = [88, 0], sizes = [8, 128], strides = [1, 1]} : vector<128x128xbf16> to vector<8x128xbf16>
    %c0_97 = arith.constant 0 : index
    %c1408 = arith.constant 1408 : index
    %234 = vector.load %arg14[%c0_97, %c1408] : memref<8x2048xbf16, #tpu.memory_space<vmem>>, vector<8x128xbf16>
    tpu.vector_store %arg14[%c0_97, %c1408], %233 {strides = array<i32>} : memref<8x2048xbf16, #tpu.memory_space<vmem>>, vector<8x128xbf16>,
    %235 = vector.extract_strided_slice %210 {offsets = [96, 0], sizes = [8, 128], strides = [1, 1]} : vector<128x128xbf16> to vector<8x128xbf16>
    %c0_98 = arith.constant 0 : index
    %c1536 = arith.constant 1536 : index
    %236 = vector.load %arg14[%c0_98, %c1536] : memref<8x2048xbf16, #tpu.memory_space<vmem>>, vector<8x128xbf16>
    tpu.vector_store %arg14[%c0_98, %c1536], %235 {strides = array<i32>} : memref<8x2048xbf16, #tpu.memory_space<vmem>>, vector<8x128xbf16>,
    %237 = vector.extract_strided_slice %210 {offsets = [104, 0], sizes = [8, 128], strides = [1, 1]} : vector<128x128xbf16> to vector<8x128xbf16>
    %c0_99 = arith.constant 0 : index
    %c1664 = arith.constant 1664 : index
    %238 = vector.load %arg14[%c0_99, %c1664] : memref<8x2048xbf16, #tpu.memory_space<vmem>>, vector<8x128xbf16>
    tpu.vector_store %arg14[%c0_99, %c1664], %237 {strides = array<i32>} : memref<8x2048xbf16, #tpu.memory_space<vmem>>, vector<8x128xbf16>,
    %239 = vector.extract_strided_slice %210 {offsets = [112, 0], sizes = [8, 128], strides = [1, 1]} : vector<128x128xbf16> to vector<8x128xbf16>
    %c0_100 = arith.constant 0 : index
    %c1792 = arith.constant 1792 : index
    %240 = vector.load %arg14[%c0_100, %c1792] : memref<8x2048xbf16, #tpu.memory_space<vmem>>, vector<8x128xbf16>
    tpu.vector_store %arg14[%c0_100, %c1792], %239 {strides = array<i32>} : memref<8x2048xbf16, #tpu.memory_space<vmem>>, vector<8x128xbf16>,
    %241 = vector.extract_strided_slice %210 {offsets = [120, 0], sizes = [8, 128], strides = [1, 1]} : vector<128x128xbf16> to vector<8x128xbf16>
    %c0_101 = arith.constant 0 : index
    %c1920 = arith.constant 1920 : index
    %242 = vector.load %arg14[%c0_101, %c1920] : memref<8x2048xbf16, #tpu.memory_space<vmem>>, vector<8x128xbf16>
    tpu.vector_store %arg14[%c0_101, %c1920], %241 {strides = array<i32>} : memref<8x2048xbf16, #tpu.memory_space<vmem>>, vector<8x128xbf16>,
    %c0_102 = arith.constant 0 : index
    %c0_103 = arith.constant 0 : index
    %243 = vector.load %arg14[%c0_102, %c0_103] : memref<8x2048xbf16, #tpu.memory_space<vmem>>, vector<8x2048xbf16>
    %c0_104 = arith.constant 0 : index
    %c0_105 = arith.constant 0 : index
    %244 = vector.load %arg7[%c0_104, %c0_105] : memref<2048x1024xbf16, #tpu.memory_space<vmem>>, vector<2048x1024xbf16>
    %cst_106 = arith.constant dense<0.000000e+00> : vector<8x1024xf32>
    %245 = tpu.matmul %243, %244, %cst_106 {dimension_numbers = #tpu.dot_dimension_numbers<[1], [0], [0], [1], [0, 0, 1, 1], [], []>} : vector<8x2048xbf16>, vector<2048x1024xbf16>, vector<8x1024xf32> -> vector<8x1024xf32>
    %c0_107 = arith.constant 0 : index
    %c0_108 = arith.constant 0 : index
    %246 = vector.load %arg8[%c0_107, %c0_108] : memref<1x1024xf32, #tpu.memory_space<vmem>>, vector<1x1024xf32>
    %247 = vector.broadcast %246 : vector<1x1024xf32> to vector<8x1024xf32>
    %248 = arith.addf %245, %247 : vector<8x1024xf32>
    %cst_109 = arith.constant dense<0.000000e+00> : vector<1024xf32>
    %249 = vector.multi_reduction <add>, %248, %cst_109 [0] : vector<8x1024xf32> to vector<1024xf32>
    %250 = vector.shape_cast %249 : vector<1024xf32> to vector<1x1024xf32>
    %cst_110 = arith.constant 8.000000e+00 : f32
    %251 = vector.broadcast %cst_110 : f32 to vector<1x1024xf32>
    %252 = arith.divf %250, %251 : vector<1x1024xf32>
    %253 = vector.broadcast %252 : vector<1x1024xf32> to vector<8x1024xf32>
    %254 = arith.subf %248, %253 : vector<8x1024xf32>
    %255 = arith.mulf %254, %254 : vector<8x1024xf32>
    %cst_111 = arith.constant dense<0.000000e+00> : vector<1024xf32>
    %256 = vector.multi_reduction <add>, %255, %cst_111 [0] : vector<8x1024xf32> to vector<1024xf32>
    %257 = vector.shape_cast %256 : vector<1024xf32> to vector<1x1024xf32>
    %cst_112 = arith.constant 8.000000e+00 : f32
    %258 = vector.broadcast %cst_112 : f32 to vector<1x1024xf32>
    %259 = arith.divf %257, %258 : vector<1x1024xf32>
    %c0_113 = arith.constant 0 : index
    %c0_114 = arith.constant 0 : index
    %260 = vector.load %arg9[%c0_113, %c0_114] : memref<1x1024xf32, #tpu.memory_space<vmem>>, vector<1x1024xf32>
    %cst_115 = arith.constant 9.99999974E-6 : f32
    %261 = vector.broadcast %cst_115 : f32 to vector<1x1024xf32>
    %262 = arith.addf %259, %261 : vector<1x1024xf32>
    %263 = math.rsqrt %262 : vector<1x1024xf32>
    %264 = arith.mulf %260, %263 : vector<1x1024xf32>
    %265 = vector.broadcast %264 : vector<1x1024xf32> to vector<8x1024xf32>
    %266 = arith.mulf %248, %265 : vector<8x1024xf32>
    %c0_116 = arith.constant 0 : index
    %c0_117 = arith.constant 0 : index
    %267 = vector.load %arg10[%c0_116, %c0_117] : memref<1x1024xf32, #tpu.memory_space<vmem>>, vector<1x1024xf32>
    %268 = arith.mulf %252, %264 : vector<1x1024xf32>
    %269 = arith.subf %267, %268 : vector<1x1024xf32>
    %270 = vector.broadcast %269 : vector<1x1024xf32> to vector<8x1024xf32>
    %271 = arith.addf %266, %270 : vector<8x1024xf32>
    %cst_118 = arith.constant 0.000000e+00 : f32
    %272 = vector.broadcast %cst_118 : f32 to vector<8x1024xf32>
    %273 = arith.cmpf oge, %271, %272 : vector<8x1024xf32>
    %cst_119 = arith.constant 2.000000e-01 : f32
    %274 = vector.broadcast %cst_119 : f32 to vector<8x1024xf32>
    %275 = arith.mulf %274, %271 : vector<8x1024xf32>
    %276 = arith.select %273, %271, %275 : vector<8x1024xi1>, vector<8x1024xf32>
    %c0_120 = arith.constant 0 : index
    %c0_121 = arith.constant 0 : index
    %277 = vector.load %arg11[%c0_120, %c0_121] : memref<1x1024xf32, #tpu.memory_space<vmem>>, vector<1x1024xf32>
    %278 = vector.broadcast %277 : vector<1x1024xf32> to vector<8x1024xf32>
    %279 = arith.mulf %276, %278 : vector<8x1024xf32>
    %cst_122 = arith.constant dense<0.000000e+00> : vector<8xf32>
    %280 = vector.multi_reduction <add>, %279, %cst_122 [1] : vector<8x1024xf32> to vector<8xf32>
    %281 = vector.shape_cast %280 : vector<8xf32> to vector<8x1xf32>
    %c0_123 = arith.constant 0 : index
    %c0_124 = arith.constant 0 : index
    %282 = vector.load %arg12[%c0_123, %c0_124] : memref<1x1xf32, #tpu.memory_space<vmem>>, vector<1x1xf32>
    %283 = vector.broadcast %282 : vector<1x1xf32> to vector<8x1xf32>
    %284 = arith.addf %281, %283 : vector<8x1xf32>
    %c0_125 = arith.constant 0 : index
    %c0_126 = arith.constant 0 : index
    %285 = vector.load %arg13[%c0_125, %c0_126] : memref<8x1xf32, #tpu.memory_space<vmem>>, vector<8x1xf32>
    tpu.vector_store %arg13[%c0_125, %c0_126], %284 {strides = array<i32>} : memref<8x1xf32, #tpu.memory_space<vmem>>, vector<8x1xf32>,
    return
  }
}

</mosaic_0001>

<bundles_post_ra>
// kernel: discriminator_forward.1
= control target key start
LH: loop header
LB: loop body
LE: loop exit
PB: predicated region body
PF: predicated region fallthrough
CT: control target
= control target key end

     0   :  { %s25571_s1 = inlined_call_operand.vmem [shape: bf16[128,64], index: 1, kind: input, shape index: {}]   ;;  %s25572_s2 = inlined_call_operand.vmem [shape: f32[1,64], index: 2, kind: input, shape index: {}]   ;;  %s25573_s0 = inlined_call_operand.vmem [shape: bf16[512,128], index: 0, kind: input, shape index: {}]   ;;  %s25574_s3 = inlined_call_operand.vmem [shape: bf16[1024,128], index: 3, kind: input, shape index: {}]   ;;  %s25575_s4 = inlined_call_operand.vmem [shape: f32[1,128], index: 4, kind: input, shape index: {}]   ;;  %s25576_s7 = inlined_call_operand.vmem [shape: bf16[2048,1024], index: 7, kind: input, shape index: {}]   ;;  %s25577_s5 = inlined_call_operand.vmem [shape: f32[1,128], index: 5, kind: input, shape index: {}]   ;;  %s25578_s6 = inlined_call_operand.vmem [shape: f32[1,128], index: 6, kind: input, shape index: {}]   ;;  %s25579_s8 = inlined_call_operand.vmem [shape: f32[1,1024], index: 8, kind: input, shape index: {}]   ;;  %s25580_s9 = inlined_call_operand.vmem [shape: f32[1,1024], index: 9, kind: input, shape index: {}]   ;;  %s25581_s12 = inlined_call_operand.<no memory space> [shape: f32[1,1], index: 12, kind: input, shape index: {}]   ;;  %s25582_s10 = inlined_call_operand.vmem [shape: f32[1,1024], index: 10, kind: input, shape index: {}]   ;;  %s25583_s11 = inlined_call_operand.vmem [shape: f32[1,1024], index: 11, kind: input, shape index: {}]   ;;  %s25584_s13 = inlined_call_operand.vmem [shape: f32[8,1], index: 13, kind: output, shape index: {}]  }
   0x1   :  { %v16316_v0 = vld [vmem:[%s25571_s1 + $0x38] sm:$0xff]  ;;  %v16315_v1 = vld [vmem:[%s25571_s1 + $0x30] sm:$0xff]  ;;  %v16314_v2 = vld [vmem:[%s25571_s1 + $0x28] sm:$0xff] }
   0x2   :  { %371 = vmatpush.bf16.msra.mxu0 %v16316_v0  ;;  %v16313_v3 = vld [vmem:[%s25571_s1 + $0x20] sm:$0xff]  ;;  %v16312_v4 = vld [vmem:[%s25571_s1 + $0x18] sm:$0xff]  ;;  %v16311_v5 = vld [vmem:[%s25571_s1 + $0x10] sm:$0xff] }
   0x3   :  { %v16310_v6 = vld [vmem:[%s25571_s1 + $0x8] sm:$0xff]  ;;  %v16309_v7 = vld [vmem:[%s25571_s1] sm:$0xff]  ;;  %v16279_v10 = vld [vmem:[%s25573_s0 + $0x10] sm:$0xff] }
   0x4   :  { %v16277_v8 = vld [vmem:[%s25573_s0] sm:$0xff]  ;;  %v16278_v9 = vld [vmem:[%s25573_s0 + $0x8] sm:$0xff]  ;;  %v16280_v11 = vld [vmem:[%s25573_s0 + $0x18] sm:$0xff] }
   0x5   :  { %v16281_v12 = vld [vmem:[%s25573_s0 + $0x20] sm:$0xff]  ;;  %v16282_v13 = vld [vmem:[%s25573_s0 + $0x28] sm:$0xff]  ;;  %v16283_v14 = vld [vmem:[%s25573_s0 + $0x30] sm:$0xff] }
   0x6   :  { %372 = vmatpush.bf16.msra.mxu0 %v16315_v1  ;;  %v16284_v15 = vld [vmem:[%s25573_s0 + $0x38] sm:$0xff]  ;;  %v16285_v16 = vld [vmem:[%s25573_s0 + $0x40] sm:$0xff]  ;;  %v16286_v27 = vld [vmem:[%s25573_s0 + $0x48] sm:$0xff] }
   0x7   :  { %v17615_v18 = vld [vmem:[%s25572_s2] ss:$0 sm:$0xff]  ;;  %v16287_v38 = vld [vmem:[%s25573_s0 + $0x50] sm:$0xff]  ;;  %v16288_v48 = vld [vmem:[%s25573_s0 + $0x58] sm:$0xff] }
   0x8   :  { %v16289_v59 = vld [vmem:[%s25573_s0 + $0x60] sm:$0xff] }
   0xa   :  { %373 = vmatpush.bf16.msra.mxu0 %v16314_v2 }
   0xe   :  { %374 = vmatpush.bf16.msra.mxu0 %v16313_v3 }
  0x12   :  { %375 = vmatpush.bf16.msra.mxu0 %v16312_v4 }
  0x16   :  { %376 = vmatpush.bf16.msra.mxu0 %v16311_v5  ;;  %v16290_v5 = vld [vmem:[%s25573_s0 + $0x68] sm:$0xff] }
  0x1a   :  { %377 = vmatpush.bf16.msra.mxu0 %v16310_v6 }
  0x1e   :  { %378 = vmatpush.bf16.msra.mxu0 %v16309_v7 }
  0x21   :  { %379 = vmatmul.bf16.vlgmr.msra.gmra.mxu0 %v16277_v8 }
  0x31   :  { %384 = vmatmul.bf16.gmra.mxu0 %v16278_v9 }
  0x41   :  { %389 = vmatmul.bf16.gmra.mxu0 %v16279_v10 }
  0x51   :  { %394 = vmatmul.bf16.gmra.mxu0 %v16280_v11 }
  0x61   :  { %399 = vmatmul.bf16.gmra.mxu0 %v16281_v12 }
  0x71   :  { %404 = vmatmul.bf16.gmra.mxu0 %v16282_v13 }
  0x81   :  { %409 = vmatmul.bf16.gmra.mxu0 %v16283_v14 }
  0x91   :  { %414 = vmatmul.bf16.gmra.mxu0 %v16284_v15 }
  0x9e   :  { %v380_v17 = vpop.f32.mrf.mxu0 }
  0x9f   :  { %v381_v19 = vadd.f32 %v17615_v18, %v380_v17 }
  0xa1   :  { %419 = vmatmul.bf16.gmra.mxu0 %v16285_v16  ;;  %v604_v21 = vmul.f32 0.2, %v381_v19  ;;  %vm540_vm0 = vcmp.ge.f32.partialorder %v381_v19, 0.0  ;;  %v16291_v16 = vld [vmem:[%s25573_s0 + $0x70] sm:$0xff] }
  0xa3   :  { %v17619_v24 = vsel %vm540_vm0, %v381_v19, %v604_v21 }
  0xa6   :  { %v382_v20 = vpop.f32.mrf.mxu0 }
  0xa7   :  { %v383_v22 = vadd.f32 %v17615_v18, %v382_v20 }
  0xa9   :  { %vm541_vm1 = vcmp.ge.f32.partialorder %v383_v22, 0.0  ;;  %v605_v23 = vmul.f32 0.2, %v383_v22 }
  0xab   :  { %v17621_v25 = vsel %vm541_vm1, %v383_v22, %v605_v23 }
  0xae   :  { %v385_v28 = vpop.f32.mrf.mxu0 }
  0xaf   :  { %v386_v29 = vadd.f32 %v17615_v18, %v385_v28 }
  0xb1   :  { %vm542_vm2 = vcmp.ge.f32.partialorder %v386_v29, 0.0  ;;  %v606_v30 = vmul.f32 0.2, %v386_v29  ;;  %424 = vmatmul.bf16.gmra.mxu0 %v16286_v27 }
  0xb3   :  { %v17629_v31 = vsel %vm542_vm2, %v386_v29, %v606_v30  ;;  %v16292_v30 = vld [vmem:[%s25573_s0 + $0x78] sm:$0xff] }
  0xb6   :  { %v387_v33 = vpop.f32.mrf.mxu0 }
  0xb7   :  { %v388_v34 = vadd.f32 %v17615_v18, %v387_v33 }
  0xb9   :  { %vm543_vm3 = vcmp.ge.f32.partialorder %v388_v34, 0.0  ;;  %v607_v35 = vmul.f32 0.2, %v388_v34 }
  0xbb   :  { %v17634_v36 = vsel %vm543_vm3, %v388_v34, %v607_v35 }
  0xbe   :  { %v390_v39 = vpop.f32.mrf.mxu0 }
  0xbf   :  { %v391_v40 = vadd.f32 %v17615_v18, %v390_v39 }
  0xc1   :  { %429 = vmatmul.bf16.gmra.mxu0 %v16287_v38  ;;  %v608_v42 = vmul.f32 0.2, %v391_v40  ;;  %vm544_vm4 = vcmp.ge.f32.partialorder %v391_v40, 0.0 }
  0xc3   :  { %v672_v46 = vsel %vm544_vm4, %v391_v40, %v608_v42 }
  0xc6   :  { %v392_v41 = vpop.f32.mrf.mxu0 }
  0xc7   :  { %v393_v43 = vadd.f32 %v17615_v18, %v392_v41 }
  0xc9   :  { %vm545_vm5 = vcmp.ge.f32.partialorder %v393_v43, 0.0  ;;  %v609_v44 = vmul.f32 0.2, %v393_v43 }
  0xcb   :  { %v673_v45 = vsel %vm545_vm5, %v393_v43, %v609_v44 }
  0xcc   :  { %v17643_v47 = vpack.c.bf16 %v673_v45, %v672_v46 }
  0xce   :  { %25630 = vst [vmem:[#allocation4_spill] sm:$0xff] %v17643_v47  ;;  %v395_v49 = vpop.f32.mrf.mxu0 }
  0xcf   :  { %v396_v50 = vadd.f32 %v17615_v18, %v395_v49 }
  0xd1   :  { %vm546_vm6 = vcmp.ge.f32.partialorder %v396_v50, 0.0  ;;  %v610_v51 = vmul.f32 0.2, %v396_v50  ;;  %434 = vmatmul.bf16.gmra.mxu0 %v16288_v48 }
  0xd3   :  { %v674_v52 = vsel %vm546_vm6, %v396_v50, %v610_v51 }
  0xd4   :  { %v17649_v53 = vpack.c.bf16 %v674_v52, %v673_v45  ;;  %v16293_v45 = vld [vmem:[%s25573_s0 + $0x80] sm:$0xff] }
  0xd6   :  { %v397_v54 = vpop.f32.mrf.mxu0 }
  0xd7   :  { %v398_v55 = vadd.f32 %v17615_v18, %v397_v54 }
  0xd9   :  { %vm547_vm7 = vcmp.ge.f32.partialorder %v398_v55, 0.0  ;;  %v611_v56 = vmul.f32 0.2, %v398_v55 }
  0xdb   :  { %v17652_v57 = vsel %vm547_vm7, %v398_v55, %v611_v56 }
  0xdc   :  { %25631 = vst [vmem:[#allocation5_spill] sm:$0xff] %v17652_v57  ;;  %v17655_v58 = vpack.c.bf16 %v17652_v57, %v674_v52 }
  0xde   :  { %v400_v60 = vpop.f32.mrf.mxu0 }
  0xdf   :  { %v401_v61 = vadd.f32 %v17615_v18, %v400_v60 }
  0xe1   :  { %439 = vmatmul.bf16.gmra.mxu0 %v16289_v59  ;;  %v612_v63 = vmul.f32 0.2, %v401_v61  ;;  %vm548_vm8 = vcmp.ge.f32.partialorder %v401_v61, 0.0  ;;  %v16294_v59 = vld [vmem:[%s25573_s0 + $0x88] sm:$0xff] }
  0xe3   :  { %v676_v2 = vsel %vm548_vm8, %v401_v61, %v612_v63 }
  0xe6   :  { %v402_v62 = vpop.f32.mrf.mxu0 }
  0xe7   :  { %v403_v0 = vadd.f32 %v17615_v18, %v402_v62 }
  0xe9   :  { %vm549_vm9 = vcmp.ge.f32.partialorder %v403_v0, 0.0  ;;  %v613_v1 = vmul.f32 0.2, %v403_v0 }
  0xeb   :  { %v677_v3 = vsel %vm549_vm9, %v403_v0, %v613_v1 }
  0xec   :  { %v17662_v4 = vpack.c.bf16 %v677_v3, %v676_v2 }
  0xee   :  { %v405_v6 = vpop.f32.mrf.mxu0 }
  0xef   :  { %v406_v7 = vadd.f32 %v17615_v18, %v405_v6 }
  0xf1   :  { %vm550_vm10 = vcmp.ge.f32.partialorder %v406_v7, 0.0  ;;  %v614_v8 = vmul.f32 0.2, %v406_v7  ;;  %444 = vmatmul.bf16.gmra.mxu0 %v16290_v5 }
  0xf3   :  { %v678_v9 = vsel %vm550_vm10, %v406_v7, %v614_v8  ;;  %v16295_v7 = vld [vmem:[%s25573_s0 + $0x90] sm:$0xff] }
  0xf4   :  { %v17668_v10 = vpack.c.bf16 %v678_v9, %v677_v3 }
  0xf6   :  { %25632 = vst [vmem:[#allocation6_spill] sm:$0xff] %v17668_v10  ;;  %v407_v11 = vpop.f32.mrf.mxu0 }
  0xf7   :  { %v408_v12 = vadd.f32 %v17615_v18, %v407_v11 }
  0xf9   :  { %vm551_vm11 = vcmp.ge.f32.partialorder %v408_v12, 0.0  ;;  %v615_v13 = vmul.f32 0.2, %v408_v12 }
  0xfb   :  { %v17671_v14 = vsel %vm551_vm11, %v408_v12, %v615_v13 }
  0xfc   :  { %25633 = vst [vmem:[#allocation7_spill] sm:$0xff] %v17671_v14  ;;  %v17674_v15 = vpack.c.bf16 %v17671_v14, %v678_v9 }
  0xfe   :  { %v410_v17 = vpop.f32.mrf.mxu0 }
  0xff   :  { %v411_v19 = vadd.f32 %v17615_v18, %v410_v17 }
 0x101   :  { %449 = vmatmul.bf16.gmra.mxu0 %v16291_v16  ;;  %v616_v21 = vmul.f32 0.2, %v411_v19  ;;  %vm552_vm12 = vcmp.ge.f32.partialorder %v411_v19, 0.0 }
 0x103   :  { %v680_v27 = vsel %vm552_vm12, %v411_v19, %v616_v21  ;;  %v16296_v21 = vld [vmem:[%s25573_s0 + $0x98] sm:$0xff] }
 0x106   :  { %v412_v20 = vpop.f32.mrf.mxu0 }
 0x107   :  { %v413_v22 = vadd.f32 %v17615_v18, %v412_v20 }
 0x109   :  { %vm553_vm13 = vcmp.ge.f32.partialorder %v413_v22, 0.0  ;;  %v617_v23 = vmul.f32 0.2, %v413_v22 }
 0x10b   :  { %v681_v28 = vsel %vm553_vm13, %v413_v22, %v617_v23 }
 0x10c   :  { %v17681_v29 = vpack.c.bf16 %v681_v28, %v680_v27 }
 0x10e   :  { %v415_v33 = vpop.f32.mrf.mxu0 }
 0x10f   :  { %v416_v34 = vadd.f32 %v17615_v18, %v415_v33 }
 0x111   :  { %vm554_vm14 = vcmp.ge.f32.partialorder %v416_v34, 0.0  ;;  %v618_v35 = vmul.f32 0.2, %v416_v34  ;;  %454 = vmatmul.bf16.gmra.mxu0 %v16292_v30 }
 0x113   :  { %v682_v38 = vsel %vm554_vm14, %v416_v34, %v618_v35 }
 0x114   :  { %v17687_v39 = vpack.c.bf16 %v682_v38, %v681_v28 }
 0x116   :  { %25634 = vst [vmem:[#allocation8_spill] sm:$0xff] %v17687_v39  ;;  %v417_v40 = vpop.f32.mrf.mxu0 }
 0x117   :  { %v418_v41 = vadd.f32 %v17615_v18, %v417_v40 }
 0x119   :  { %vm555_vm15 = vcmp.ge.f32.partialorder %v418_v41, 0.0  ;;  %v619_v42 = vmul.f32 0.2, %v418_v41 }
 0x11b   :  { %v17690_v43 = vsel %vm555_vm15, %v418_v41, %v619_v42  ;;  %v16297_v41 = vld [vmem:[%s25573_s0 + $0xa0] sm:$0xff]  ;;  %v16324_v42 = vld [vmem:[%s25574_s3 + $0x38] sm:$0xff] }
 0x11c   :  { %25635 = vst [vmem:[#allocation9_spill] sm:$0xff] %v17690_v43  ;;  %v17693_v44 = vpack.c.bf16 %v17690_v43, %v682_v38  ;;  %930 = vmatpush.bf16.msra.mxu1 %v16324_v42 }
 0x11e   :  { %v420_v46 = vpop.f32.mrf.mxu0 }
 0x11f   :  { %v421_v48 = vadd.f32 %v17615_v18, %v420_v46  ;;  %v16323_v46 = vld [vmem:[%s25574_s3 + $0x30] sm:$0xff] }
 0x120   :  { %931 = vmatpush.bf16.msra.mxu1 %v16323_v46  ;;  %v16300_v46 = vld [vmem:[%s25573_s0 + $0xb8] sm:$0xff] }
 0x121   :  { %459 = vmatmul.bf16.gmra.mxu0 %v16293_v45  ;;  %v620_v50 = vmul.f32 0.2, %v421_v48  ;;  %vm556_vm0 = vcmp.ge.f32.partialorder %v421_v48, 0.0 }
 0x123   :  { %v17700_v54 = vsel %vm556_vm0, %v421_v48, %v620_v50 }
 0x126   :  { %v422_v49 = vpop.f32.mrf.mxu0 }
 0x127   :  { %v423_v51 = vadd.f32 %v17615_v18, %v422_v49  ;;  %v16322_v49 = vld [vmem:[%s25574_s3 + $0x28] sm:$0xff] }
 0x128   :  { %932 = vmatpush.bf16.msra.mxu1 %v16322_v49 }
 0x129   :  { %vm557_vm1 = vcmp.ge.f32.partialorder %v423_v51, 0.0  ;;  %v621_v52 = vmul.f32 0.2, %v423_v51 }
 0x12b   :  { %v17702_v55 = vsel %vm557_vm1, %v423_v51, %v621_v52 }
 0x12e   :  { %v425_v60 = vpop.f32.mrf.mxu0 }
 0x12f   :  { %v426_v61 = vadd.f32 %v17615_v18, %v425_v60  ;;  %v16321_v60 = vld [vmem:[%s25574_s3 + $0x20] sm:$0xff] }
 0x130   :  { %933 = vmatpush.bf16.msra.mxu1 %v16321_v60 }
 0x131   :  { %vm558_vm2 = vcmp.ge.f32.partialorder %v426_v61, 0.0  ;;  %v622_v62 = vmul.f32 0.2, %v426_v61  ;;  %464 = vmatmul.bf16.gmra.mxu0 %v16294_v59 }
 0x133   :  { %v17710_v63 = vsel %vm558_vm2, %v426_v61, %v622_v62  ;;  %vm901_vm2 = vcmask 523264  }
 0x136   :  { %v427_v1 = vpop.f32.mrf.mxu0 }
 0x137   :  { %v428_v2 = vadd.f32 %v17615_v18, %v427_v1 }
 0x139   :  { %vm559_vm3 = vcmp.ge.f32.partialorder %v428_v2, 0.0  ;;  %v623_v3 = vmul.f32 0.2, %v428_v2 }
 0x13b   :  { %v17715_v5 = vsel %vm559_vm3, %v428_v2, %v623_v3  ;;  %v16298_v2 = vld [vmem:[%s25573_s0 + $0xa8] sm:$0xff] }
 0x13e   :  { %v430_v8 = vpop.f32.mrf.mxu0 }
 0x13f   :  { %v431_v9 = vadd.f32 %v17615_v18, %v430_v8 }
 0x141   :  { %469 = vmatmul.bf16.gmra.mxu0 %v16295_v7  ;;  %v624_v12 = vmul.f32 0.2, %v431_v9  ;;  %vm560_vm4 = vcmp.ge.f32.partialorder %v431_v9, 0.0  ;;  %v25585_v7 = vmov 0.0|0.0  }
 0x142   :  { %934 = vmatmul.bf16.vlgmr.msra.gmra.mxu1 %v25585_v7 }
 0x143   :  { %v17724_v19 = vsel %vm560_vm4, %v431_v9, %v624_v12 }
 0x146   :  { %v432_v11 = vpop.f32.mrf.mxu0 }
 0x147   :  { %v433_v13 = vadd.f32 %v17615_v18, %v432_v11 }
 0x149   :  { %vm561_vm5 = vcmp.ge.f32.partialorder %v433_v13, 0.0  ;;  %v625_v16 = vmul.f32 0.2, %v433_v13 }
 0x14b   :  { %v689_v17 = vsel %vm561_vm5, %v433_v13, %v625_v16 }
 0x14c   :  { %v17727_v20 = vpack.c.bf16 %v689_v17, %v17724_v19 }
 0x14e   :  { %v435_v22 = vpop.f32.mrf.mxu0 }
 0x14f   :  { %v436_v23 = vadd.f32 %v17615_v18, %v435_v22 }
 0x151   :  { %vm562_vm6 = vcmp.ge.f32.partialorder %v436_v23, 0.0  ;;  %v626_v27 = vmul.f32 0.2, %v436_v23  ;;  %474 = vmatmul.bf16.gmra.mxu0 %v16296_v21 }
 0x152   :  { %939 = vmatmul.bf16.gmra.mxu1 %v25585_v7 }
 0x153   :  { %v690_v28 = vsel %vm562_vm6, %v436_v23, %v626_v27  ;;  %v16299_v23 = vld [vmem:[%s25573_s0 + $0xb0] sm:$0xff] }
 0x154   :  { %v17733_v30 = vpack.c.bf16 %v690_v28, %v689_v17 }
 0x156   :  { %v437_v33 = vpop.f32.mrf.mxu0 }
 0x157   :  { %v438_v34 = vadd.f32 %v17615_v18, %v437_v33 }
 0x159   :  { %vm563_vm7 = vcmp.ge.f32.partialorder %v438_v34, 0.0  ;;  %v627_v35 = vmul.f32 0.2, %v438_v34 }
 0x15b   :  { %v691_v38 = vsel %vm563_vm7, %v438_v34, %v627_v35 }
 0x15c   :  { %v17736_v40 = vpack.c.bf16 %v691_v38, %v690_v28 }
 0x15e   :  { %v440_v45 = vpop.f32.mrf.mxu0 }
 0x15f   :  { %v441_v48 = vadd.f32 %v17615_v18, %v440_v45 }
 0x161   :  { %479 = vmatmul.bf16.gmra.mxu0 %v16297_v41  ;;  %v628_v51 = vmul.f32 0.2, %v441_v48  ;;  %vm564_vm8 = vcmp.ge.f32.partialorder %v441_v48, 0.0 }
 0x163   :  { %v17755_v61 = vsel %vm564_vm8, %v441_v48, %v628_v51 }
 0x166   :  { %v442_v50 = vpop.f32.mrf.mxu0 }
 0x167   :  { %v443_v52 = vadd.f32 %v17615_v18, %v442_v50 }
 0x169   :  { %vm565_vm9 = vcmp.ge.f32.partialorder %v443_v52, 0.0  ;;  %v629_v59 = vmul.f32 0.2, %v443_v52 }
 0x16b   :  { %v693_v62 = vsel %vm565_vm9, %v443_v52, %v629_v59 }
 0x16c   :  { %v17758_v1 = vpack.c.bf16 %v693_v62, %v17755_v61 }
 0x16e   :  { %v445_v3 = vpop.f32.mrf.mxu0 }
 0x16f   :  { %v446_v8 = vadd.f32 %v17615_v18, %v445_v3 }
 0x171   :  { %vm566_vm10 = vcmp.ge.f32.partialorder %v446_v8, 0.0  ;;  %v630_v9 = vmul.f32 0.2, %v446_v8  ;;  %484 = vmatmul.bf16.gmra.mxu0 %v16298_v2 }
 0x173   :  { %v694_v11 = vsel %vm566_vm10, %v446_v8, %v630_v9  ;;  %v16301_v8 = vld [vmem:[%s25573_s0 + $0xc0] sm:$0xff] }
 0x174   :  { %v17765_v12 = vpack.c.bf16 %v694_v11, %v693_v62 }
 0x176   :  { %v447_v13 = vpop.f32.mrf.mxu0 }
 0x177   :  { %v448_v16 = vadd.f32 %v17615_v18, %v447_v13 }
 0x179   :  { %vm567_vm11 = vcmp.ge.f32.partialorder %v448_v16, 0.0  ;;  %v631_v17 = vmul.f32 0.2, %v448_v16 }
 0x17b   :  { %v695_v21 = vsel %vm567_vm11, %v448_v16, %v631_v17 }
 0x17c   :  { %v17768_v22 = vpack.c.bf16 %v695_v21, %v694_v11 }
 0x17e   :  { %v450_v27 = vpop.f32.mrf.mxu0 }
 0x17f   :  { %v451_v28 = vadd.f32 %v17615_v18, %v450_v27 }
 0x181   :  { %489 = vmatmul.bf16.gmra.mxu0 %v16299_v23  ;;  %v632_v34 = vmul.f32 0.2, %v451_v28  ;;  %vm568_vm12 = vcmp.ge.f32.partialorder %v451_v28, 0.0 }
 0x183   :  { %v17776_v41 = vsel %vm568_vm12, %v451_v28, %v632_v34 }
 0x186   :  { %v452_v33 = vpop.f32.mrf.mxu0 }
 0x187   :  { %v453_v35 = vadd.f32 %v17615_v18, %v452_v33  ;;  %v16302_v33 = vld [vmem:[%s25573_s0 + $0xc8] sm:$0xff] }
 0x189   :  { %vm569_vm13 = vcmp.ge.f32.partialorder %v453_v35, 0.0  ;;  %v633_v38 = vmul.f32 0.2, %v453_v35 }
 0x18b   :  { %v697_v42 = vsel %vm569_vm13, %v453_v35, %v633_v38 }
 0x18c   :  { %v17779_v45 = vpack.c.bf16 %v697_v42, %v17776_v41 }
 0x18e   :  { %v455_v48 = vpop.f32.mrf.mxu0 }
 0x18f   :  { %v456_v49 = vadd.f32 %v17615_v18, %v455_v48 }
 0x191   :  { %vm570_vm14 = vcmp.ge.f32.partialorder %v456_v49, 0.0  ;;  %v634_v50 = vmul.f32 0.2, %v456_v49  ;;  %494 = vmatmul.bf16.gmra.mxu0 %v16300_v46 }
 0x193   :  { %v698_v51 = vsel %vm570_vm14, %v456_v49, %v634_v50 }
 0x194   :  { %v17785_v52 = vpack.c.bf16 %v698_v51, %v697_v42 }
 0x196   :  { %v457_v59 = vpop.f32.mrf.mxu0 }
 0x197   :  { %v458_v60 = vadd.f32 %v17615_v18, %v457_v59 }
 0x199   :  { %vm571_vm15 = vcmp.ge.f32.partialorder %v458_v60, 0.0  ;;  %v635_v62 = vmul.f32 0.2, %v458_v60 }
 0x19b   :  { %v699_v2 = vsel %vm571_vm15, %v458_v60, %v635_v62  ;;  %v16303_v60 = vld [vmem:[%s25573_s0 + $0xd0] sm:$0xff] }
 0x19c   :  { %v17788_v3 = vpack.c.bf16 %v699_v2, %v698_v51 }
 0x19e   :  { %v460_v9 = vpop.f32.mrf.mxu0 }
 0x19f   :  { %v461_v11 = vadd.f32 %v17615_v18, %v460_v9 }
 0x1a1   :  { %499 = vmatmul.bf16.gmra.mxu0 %v16301_v8  ;;  %v636_v16 = vmul.f32 0.2, %v461_v11  ;;  %vm572_vm0 = vcmp.ge.f32.partialorder %v461_v11, 0.0 }
 0x1a3   :  { %v700_v23 = vsel %vm572_vm0, %v461_v11, %v636_v16 }
 0x1a6   :  { %v462_v13 = vpop.f32.mrf.mxu0 }
 0x1a7   :  { %v463_v17 = vadd.f32 %v17615_v18, %v462_v13 }
 0x1a9   :  { %vm573_vm1 = vcmp.ge.f32.partialorder %v463_v17, 0.0  ;;  %v637_v21 = vmul.f32 0.2, %v463_v17 }
 0x1ab   :  { %v701_v27 = vsel %vm573_vm1, %v463_v17, %v637_v21 }
 0x1ac   :  { %v17795_v28 = vpack.c.bf16 %v701_v27, %v700_v23  ;;  %v16304_v23 = vld [vmem:[%s25573_s0 + $0xd8] sm:$0xff] }
 0x1ae   :  { %v465_v34 = vpop.f32.mrf.mxu0  ;;  %11829 = vmatmul.msk.bf16.gmra.mxu1 %vm901_vm2, %v17795_v28 }
 0x1af   :  { %v466_v35 = vadd.f32 %v17615_v18, %v465_v34 }
 0x1b1   :  { %vm574_vm3 = vcmp.ge.f32.partialorder %v466_v35, 0.0  ;;  %v638_v38 = vmul.f32 0.2, %v466_v35  ;;  %504 = vmatmul.bf16.gmra.mxu0 %v16302_v33 }
 0x1b3   :  { %v702_v42 = vsel %vm574_vm3, %v466_v35, %v638_v38  ;;  %v16320_v35 = vld [vmem:[%s25574_s3 + $0x18] sm:$0xff] }
 0x1b4   :  { %v17803_v46 = vpack.c.bf16 %v702_v42, %v701_v27  ;;  %v16328_v38 = vld [vmem:[%s25574_s3 + $0x58] sm:$0xff]  ;;  %1027 = vmatpush.bf16.msra.mxu2 %v16320_v35 }
 0x1b5   :  { %1156 = vmatpush.bf16.msra.mxu3 %v16328_v38  ;;  %v16330_v38 = vld [vmem:[%s25574_s3 + $0x68] sm:$0xff] }
 0x1b6   :  { %25636 = vst [vmem:[#allocation10_spill] sm:$0xff] %v17803_v46  ;;  %v467_v48 = vpop.f32.mrf.mxu0 }
 0x1b7   :  { %v468_v49 = vadd.f32 %v17615_v18, %v467_v48 }
 0x1b9   :  { %vm575_vm4 = vcmp.ge.f32.partialorder %v468_v49, 0.0  ;;  %v639_v50 = vmul.f32 0.2, %v468_v49 }
 0x1bb   :  { %v17806_v51 = vsel %vm575_vm4, %v468_v49, %v639_v50  ;;  %v16319_v49 = vld [vmem:[%s25574_s3 + $0x10] sm:$0xff] }
 0x1bc   :  { %25637 = vst [vmem:[#allocation11_spill] sm:$0xff] %v17806_v51  ;;  %v17809_v59 = vpack.c.bf16 %v17806_v51, %v702_v42  ;;  %1028 = vmatpush.bf16.msra.mxu2 %v16319_v49 }
 0x1be   :  { %v470_v62 = vpop.f32.mrf.mxu0  ;;  %11830 = vmatmul.msk.bf16.gmra.mxu1 %vm901_vm2, %v17809_v59 }
 0x1bf   :  { %v471_v2 = vadd.f32 %v17615_v18, %v470_v62  ;;  %v16327_v62 = vld [vmem:[%s25574_s3 + $0x50] sm:$0xff] }
 0x1c0   :  { %1157 = vmatpush.bf16.msra.mxu3 %v16327_v62  ;;  %v16329_v62 = vld [vmem:[%s25574_s3 + $0x60] sm:$0xff] }
 0x1c1   :  { %509 = vmatmul.bf16.gmra.mxu0 %v16303_v60  ;;  %v640_v9 = vmul.f32 0.2, %v471_v2  ;;  %vm576_vm5 = vcmp.ge.f32.partialorder %v471_v2, 0.0 }
 0x1c3   :  { %v704_v16 = vsel %vm576_vm5, %v471_v2, %v640_v9  ;;  %v16326_v9 = vld [vmem:[%s25574_s3 + $0x48] sm:$0xff] }
 0x1c4   :  { %1158 = vmatpush.bf16.msra.mxu3 %v16326_v9 }
 0x1c6   :  { %v472_v8 = vpop.f32.mrf.mxu0 }
 0x1c7   :  { %v473_v11 = vadd.f32 %v17615_v18, %v472_v8  ;;  %v16318_v8 = vld [vmem:[%s25574_s3 + $0x8] sm:$0xff] }
 0x1c8   :  { %1029 = vmatpush.bf16.msra.mxu2 %v16318_v8 }
 0x1c9   :  { %vm577_vm6 = vcmp.ge.f32.partialorder %v473_v11, 0.0  ;;  %v641_v13 = vmul.f32 0.2, %v473_v11 }
 0x1cb   :  { %v705_v17 = vsel %vm577_vm6, %v473_v11, %v641_v13 }
 0x1cc   :  { %v17818_v21 = vpack.c.bf16 %v705_v17, %v704_v16  ;;  %v16305_v16 = vld [vmem:[%s25573_s0 + $0xe0] sm:$0xff] }
 0x1ce   :  { %25638 = vst [vmem:[#allocation12_spill] sm:$0xff] %v17818_v21  ;;  %v475_v27 = vpop.f32.mrf.mxu0  ;;  %11831 = vmatmul.msk.bf16.gmra.mxu1 %vm901_vm2, %v17818_v21 }
 0x1cf   :  { %v476_v33 = vadd.f32 %v17615_v18, %v475_v27 }
 0x1d1   :  { %vm578_vm7 = vcmp.ge.f32.partialorder %v476_v33, 0.0  ;;  %v642_v34 = vmul.f32 0.2, %v476_v33  ;;  %514 = vmatmul.bf16.gmra.mxu0 %v16304_v23  ;;  %v16332_v23 = vld [vmem:[%s25574_s3 + $0x78] sm:$0xff] }
 0x1d2   :  { %1333 = vmatpush.bf16.msrb.mxu1 %v16332_v23 }
 0x1d3   :  { %v706_v42 = vsel %vm578_vm7, %v476_v33, %v642_v34  ;;  %v16325_v33 = vld [vmem:[%s25574_s3 + $0x40] sm:$0xff]  ;;  %v16331_v34 = vld [vmem:[%s25574_s3 + $0x70] sm:$0xff] }
 0x1d4   :  { %v17832_v48 = vpack.c.bf16 %v706_v42, %v705_v17  ;;  %v16317_v17 = vld [vmem:[%s25574_s3] sm:$0xff]  ;;  %1159 = vmatpush.bf16.msra.mxu3 %v16325_v33 }
 0x1d5   :  { %1030 = vmatpush.bf16.msra.mxu2 %v16317_v17 }
 0x1d6   :  { %25639 = vst [vmem:[#allocation13_spill] sm:$0xff] %v17832_v48  ;;  %v477_v50 = vpop.f32.mrf.mxu0  ;;  %1334 = vmatpush.bf16.msrb.mxu1 %v16331_v34 }
 0x1d7   :  { %v478_v60 = vadd.f32 %v17615_v18, %v477_v50  ;;  %1160 = vmatmul.bf16.vlgmr.msra.gmra.mxu3 %v25585_v7 }
 0x1d8   :  { %1031 = vmatmul.bf16.vlgmr.msra.gmra.mxu2 %v25585_v7 }
 0x1d9   :  { %vm579_vm8 = vcmp.ge.f32.partialorder %v478_v60, 0.0  ;;  %v643_v2 = vmul.f32 0.2, %v478_v60 }
 0x1da   :  { %1335 = vmatpush.bf16.msrb.mxu1 %v16330_v38  ;;  %v16379_v38 = vld [vmem:[%s25574_s3 + $0x1f0] sm:$0xff] }
 0x1db   :  { %v17847_v11 = vsel %vm579_vm8, %v478_v60, %v643_v2 }
 0x1dc   :  { %25640 = vst [vmem:[#allocation14_spill] sm:$0xff] %v17847_v11  ;;  %v17850_v13 = vpack.c.bf16 %v17847_v11, %v706_v42 }
 0x1de   :  { %25641 = vst [vmem:[#allocation15_spill] sm:$0xff] %v17850_v13  ;;  %v480_v27 = vpop.f32.mrf.mxu0  ;;  %11832 = vmatmul.msk.bf16.gmra.mxu1 %vm901_vm2, %v17850_v13 }
 0x1df   :  { %v481_v35 = vadd.f32 %v17615_v18, %v480_v27  ;;  %1336 = vmatpush.bf16.msrb.mxu1 %v16329_v62  ;;  %v16380_v27 = vld [vmem:[%s25574_s3 + $0x1f8] sm:$0xff] }
 0x1e0   :  { %3057 = vmatpush.bf16.msrb.mxu0 %v16380_v27  ;;  %v17915_v27 = vpop.f32.mrf.mxu1 }
 0x1e1   :  { %519 = vmatmul.bf16.gmra.mxu0 %v16305_v16  ;;  %v644_v49 = vmul.f32 0.2, %v481_v35  ;;  %vm580_vm9 = vcmp.ge.f32.partialorder %v481_v35, 0.0  ;;  %v16306_v16 = vld [vmem:[%s25573_s0 + $0xe8] sm:$0xff] }
 0x1e3   :  { %v708_v2 = vsel %vm580_vm9, %v481_v35, %v644_v49 }
 0x1e4   :  { %3058 = vmatpush.bf16.msrb.mxu0 %v16379_v38 }
 0x1e6   :  { %v482_v42 = vpop.f32.mrf.mxu0 }
 0x1e7   :  { %v483_v50 = vadd.f32 %v17615_v18, %v482_v42  ;;  %1165 = vmatmul.bf16.gmra.mxu3 %v25585_v7 }
 0x1e8   :  { %1036 = vmatmul.bf16.gmra.mxu2 %v25585_v7 }
 0x1e9   :  { %vm581_vm10 = vcmp.ge.f32.partialorder %v483_v50, 0.0  ;;  %v645_v60 = vmul.f32 0.2, %v483_v50 }
 0x1eb   :  { %v709_v8 = vsel %vm581_vm10, %v483_v50, %v645_v60  ;;  %v16378_v50 = vld [vmem:[%s25574_s3 + $0x1e8] sm:$0xff] }
 0x1ec   :  { %v17879_v9 = vpack.c.bf16 %v709_v8, %v708_v2  ;;  %3059 = vmatpush.bf16.msrb.mxu0 %v16378_v50 }
 0x1ee   :  { %25642 = vst [vmem:[#allocation16_spill] sm:$0xff] %v17879_v9  ;;  %v485_v17 = vpop.f32.mrf.mxu0  ;;  %11833 = vmatmul.msk.bf16.gmra.mxu1 %vm901_vm2, %v17879_v9 }
 0x1ef   :  { %v486_v23 = vadd.f32 %v17615_v18, %v485_v17 }
 0x1f1   :  { %vm582_vm11 = vcmp.ge.f32.partialorder %v486_v23, 0.0  ;;  %v646_v33 = vmul.f32 0.2, %v486_v23  ;;  %524 = vmatmul.bf16.gmra.mxu0 %v16306_v16  ;;  %v16307_v16 = vld [vmem:[%s25573_s0 + $0xf0] sm:$0xff] }
 0x1f3   :  { %v710_v34 = vsel %vm582_vm11, %v486_v23, %v646_v33 }
 0x1f4   :  { %v17891_v35 = vpack.c.bf16 %v710_v34, %v709_v8  ;;  %v16377_v8 = vld [vmem:[%s25574_s3 + $0x1e0] sm:$0xff] }
 0x1f5   :  { %3060 = vmatpush.bf16.msrb.mxu0 %v16377_v8  ;;  %v16308_v8 = vld [vmem:[%s25573_s0 + $0xf8] sm:$0xff] }
 0x1f6   :  { %25643 = vst [vmem:[#allocation17_spill] sm:$0xff] %v17891_v35  ;;  %v487_v42 = vpop.f32.mrf.mxu0 }
 0x1f7   :  { %v488_v49 = vadd.f32 %v17615_v18, %v487_v42 }
 0x1f9   :  { %vm583_vm12 = vcmp.ge.f32.partialorder %v488_v49, 0.0  ;;  %v647_v60 = vmul.f32 0.2, %v488_v49 }
 0x1fb   :  { %v17901_v62 = vsel %vm583_vm12, %v488_v49, %v647_v60 }
 0x1fc   :  { %25644 = vst [vmem:[#allocation18_spill] sm:$0xff] %v17901_v62  ;;  %v17904_v2 = vpack.c.bf16 %v17901_v62, %v710_v34 }
 0x1fe   :  { %25645 = vst [vmem:[#allocation19_spill] sm:$0xff] %v17904_v2  ;;  %v490_v17 = vpop.f32.mrf.mxu0  ;;  %11834 = vmatmul.msk.bf16.gmra.mxu1 %vm901_vm2, %v17904_v2 }
 0x1ff   :  { %v491_v23 = vadd.f32 %v17615_v18, %v490_v17 }
 0x201   :  { %529 = vmatmul.bf16.gmra.mxu0 %v16307_v16  ;;  %v648_v34 = vmul.f32 0.2, %v491_v23  ;;  %vm584_vm13 = vcmp.ge.f32.partialorder %v491_v23, 0.0  ;;  %v17927_v16 = vpop.f32.mrf.mxu1 }
 0x203   :  { %v17918_v49 = vsel %vm584_vm13, %v491_v23, %v648_v34  ;;  %v25589_v34 = vmov 0.0  }
 0x204   :  { %25646 = vst [vmem:[#allocation20_spill] sm:$0xff] %v17918_v49 }
 0x206   :  { %v492_v33 = vpop.f32.mrf.mxu0 }
 0x207   :  { %v493_v38 = vadd.f32 %v17615_v18, %v492_v33 }
 0x209   :  { %vm585_vm14 = vcmp.ge.f32.partialorder %v493_v38, 0.0  ;;  %v649_v42 = vmul.f32 0.2, %v493_v38  ;;  %v17936_v60 = vpop.f32.mrf.mxu1 }
 0x20b   :  { %v17920_v50 = vsel %vm585_vm14, %v493_v38, %v649_v42 }
 0x20c   :  { %25647 = vst [vmem:[#allocation21_spill] sm:$0xff] %v17920_v50 }
 0x20e   :  { %v495_v17 = vpop.f32.mrf.mxu0  ;;  %1337 = vmatmul.bf16.vlgmr.msrb.gmra.mxu1 %v25585_v7 }
 0x20f   :  { %v496_v33 = vadd.f32 %v17615_v18, %v495_v17 }
 0x211   :  { %vm586_vm15 = vcmp.ge.f32.partialorder %v496_v33, 0.0  ;;  %v650_v32 = vmul.f32 0.2, %v496_v33  ;;  %534 = vmatmul.bf16.gmra.mxu0 %v16308_v8 }
 0x213   :  { %v17931_v23 = vsel %vm586_vm15, %v496_v33, %v650_v32  ;;  %v17946_v33 = vpop.f32.mrf.mxu1 }
 0x214   :  { %25648 = vst [vmem:[#allocation22_spill] sm:$0xff] %v17931_v23 }
 0x216   :  { %v497_v38 = vpop.f32.mrf.mxu0 }
 0x217   :  { %v498_v42 = vadd.f32 %v17615_v18, %v497_v38 }
 0x219   :  { %vm587_vm0 = vcmp.ge.f32.partialorder %v498_v42, 0.0  ;;  %v651_v6 = vmul.f32 0.2, %v498_v42 }
 0x21b   :  { %v17938_v37 = vsel %vm587_vm0, %v498_v42, %v651_v6 }
 0x21c   :  { %25649 = vst [vmem:[#allocation23_spill] sm:$0xff] %v17938_v37 }
 0x21e   :  { %v500_v0 = vpop.f32.mrf.mxu0  ;;  %1342 = vmatmul.bf16.gmra.mxu1 %v25585_v7 }
 0x21f   :  { %v501_v32 = vadd.f32 %v17615_v18, %v500_v0 }
 0x221   :  { %vm588_vm1 = vcmp.ge.f32.partialorder %v501_v32, 0.0  ;;  %v652_v8 = vmul.f32 0.2, %v501_v32  ;;  %12175 = vmatmul.msk.bf16.vlgmr.msrb.gmra.mxu0 %vm901_vm2, %v17649_v53 }
 0x223   :  { %v716_v38 = vsel %vm588_vm1, %v501_v32, %v652_v8  ;;  %v25596_v32 = vpack.c.bf16 0.0, %v17652_v57 }
 0x224   :  { %v17949_v6 = vpack.c.bf16 %v716_v38, %v25589_v34 }
 0x226   :  { %v502_v42 = vpop.f32.mrf.mxu0  ;;  %11851 = vmatmul.msk.bf16.gmra.mxu2 %vm901_vm2, %v17949_v6 }
 0x227   :  { %v503_v17 = vadd.f32 %v17615_v18, %v502_v42 }
 0x229   :  { %vm589_vm3 = vcmp.ge.f32.partialorder %v503_v17, 0.0  ;;  %v653_v0 = vmul.f32 0.2, %v503_v17 }
 0x22b   :  { %v17954_v56 = vpop.f32.mrf.mxu1  ;;  %v717_v26 = vsel %vm589_vm3, %v503_v17, %v653_v0 }
 0x22c   :  { %v17956_v7 = vpack.c.bf16 %v717_v26, %v716_v38 }
 0x22e   :  { %25650 = vst [vmem:[#allocation24_spill] sm:$0xff] %v17956_v7  ;;  %v505_v23 = vpop.f32.mrf.mxu0  ;;  %11873 = vmatmul.msk.bf16.gmra.mxu3 %vm901_vm2, %v17956_v7  ;;  %11895 = vmatmul.msk.bf16.gmra.mxu1 %vm901_vm2, %v17803_v46 }
 0x22f   :  { %v506_v8 = vadd.f32 %v17615_v18, %v505_v23 }
 0x231   :  { %vm590_vm4 = vcmp.ge.f32.partialorder %v506_v8, 0.0  ;;  %v654_v42 = vmul.f32 0.2, %v506_v8  ;;  %12176 = vmatmul.msk.bf16.gmra.mxu0 %vm901_vm2, %v25596_v32  ;;  %v25599_v32 = vpack.c.bf16 0.0, %v17806_v51 }
 0x233   :  { %v17967_v17 = vpop.f32.mrf.mxu1  ;;  %v718_v38 = vsel %vm590_vm4, %v506_v8, %v654_v42 }
 0x234   :  { %v17969_v0 = vpack.c.bf16 %v718_v38, %v717_v26 }
 0x236   :  { %v507_v34 = vpop.f32.mrf.mxu0  ;;  %11852 = vmatmul.msk.bf16.gmra.mxu2 %vm901_vm2, %v17969_v0 }
 0x237   :  { %v508_v46 = vadd.f32 %v17615_v18, %v507_v34 }
 0x239   :  { %vm591_vm5 = vcmp.ge.f32.partialorder %v508_v46, 0.0  ;;  %v655_v7 = vmul.f32 0.2, %v508_v46 }
 0x23b   :  { %v17974_v23 = vpop.f32.mrf.mxu1  ;;  %v719_v37 = vsel %vm591_vm5, %v508_v46, %v655_v7  ;;  %v25652_v46 = vmov 0.0  }
 0x23c   :  { %v17976_v49 = vpack.c.bf16 %v719_v37, %v718_v38 }
 0x23e   :  { %25651 = vst [vmem:[#allocation25_spill] sm:$0xff] %v17976_v49  ;;  %v510_v50 = vpop.f32.mrf.mxu0  ;;  %11874 = vmatmul.msk.bf16.gmra.mxu3 %vm901_vm2, %v17976_v49  ;;  %11896 = vmatmul.msk.bf16.gmra.mxu1 %vm901_vm2, %v25599_v32 }
 0x23f   :  { %v511_v26 = vadd.f32 %v17615_v18, %v510_v50 }
 0x241   :  { %vm592_vm6 = vcmp.ge.f32.partialorder %v511_v26, 0.0  ;;  %v656_v34 = vmul.f32 0.2, %v511_v26  ;;  %12177 = vmatmul.msk.bf16.gmra.mxu0 %vm901_vm2, %v17668_v10  ;;  %v16334_v10 = vld [vmem:[%s25574_s3 + $0x88] sm:$0xff] }
 0x243   :  { %v17987_v7 = vpop.f32.mrf.mxu1  ;;  %v720_v37 = vsel %vm592_vm6, %v511_v26, %v656_v34  ;;  %v25606_v26 = vpack.c.bf16 0.0, %v17671_v14 }
 0x244   :  { %v17990_v8 = vpack.c.bf16 %v720_v37, %v25652_v46 }
 0x246   :  { %25653 = vst [vmem:[#allocation26_spill] sm:$0xff] %v17990_v8  ;;  %v512_v42 = vpop.f32.mrf.mxu0  ;;  %11853 = vmatmul.msk.bf16.gmra.mxu2 %vm901_vm2, %v17990_v8  ;;  %v25662_v8 = vpack.c.bf16 %v17621_v25, %v17619_v24  ;;  %v25665_v24 = vpack.c.bf16 %v17634_v36, %v17629_v31 }
 0x247   :  { %v513_v38 = vadd.f32 %v17615_v18, %v512_v42 }
 0x249   :  { %vm593_vm7 = vcmp.ge.f32.partialorder %v513_v38, 0.0  ;;  %v657_v32 = vmul.f32 0.2, %v513_v38 }
 0x24b   :  { %v17995_v50 = vpop.f32.mrf.mxu1  ;;  %v721_v51 = vsel %vm593_vm7, %v513_v38, %v657_v32 }
 0x24c   :  { %v17997_v49 = vpack.c.bf16 %v721_v51, %v720_v37 }
 0x24e   :  { %25654 = vst [vmem:[#allocation27_spill] sm:$0xff] %v17997_v49  ;;  %v515_v2 = vpop.f32.mrf.mxu0  ;;  %11875 = vmatmul.msk.bf16.gmra.mxu3 %vm901_vm2, %v17997_v49  ;;  %11897 = vmatmul.msk.bf16.gmra.mxu1 %vm901_vm2, %v17832_v48  ;;  %v16336_v49 = vld [vmem:[%s25574_s3 + $0x98] sm:$0xff] }
 0x24f   :  { %v516_v34 = vadd.f32 %v17615_v18, %v515_v2  ;;  %1478 = vmatpush.bf16.msrb.mxu2 %v16336_v49  ;;  %v16344_v49 = vld [vmem:[%s25574_s3 + $0xd8] sm:$0xff] }
 0x250   :  { %1736 = vmatpush.bf16.msra.mxu1 %v16344_v49 }
 0x251   :  { %vm594_vm8 = vcmp.ge.f32.partialorder %v516_v34, 0.0  ;;  %v658_v42 = vmul.f32 0.2, %v516_v34  ;;  %12178 = vmatmul.msk.bf16.gmra.mxu0 %vm901_vm2, %v25606_v26  ;;  %v16335_v26 = vld [vmem:[%s25574_s3 + $0x90] sm:$0xff] }
 0x253   :  { %v18008_v32 = vpop.f32.mrf.mxu1  ;;  %v722_v37 = vsel %vm594_vm8, %v516_v34, %v658_v42  ;;  %1479 = vmatpush.bf16.msrb.mxu2 %v16335_v26  ;;  %v25610_v42 = vpack.c.bf16 0.0, %v17847_v11  ;;  %v16342_v11 = vld [vmem:[%s25574_s3 + $0xc8] sm:$0xff] }
 0x254   :  { %v18010_v38 = vpack.c.bf16 %v722_v37, %v721_v51 }
 0x256   :  { %25655 = vst [vmem:[#allocation28_spill] sm:$0xff] %v18010_v38  ;;  %v517_v48 = vpop.f32.mrf.mxu0  ;;  %11854 = vmatmul.msk.bf16.gmra.mxu2 %vm901_vm2, %v18010_v38 }
 0x257   :  { %v518_v2 = vadd.f32 %v17615_v18, %v517_v48  ;;  %v16340_v48 = vld [vmem:[%s25574_s3 + $0xb8] sm:$0xff]  ;;  %1480 = vmatpush.bf16.msrb.mxu2 %v16334_v10 }
 0x258   :  { %1607 = vmatpush.bf16.msrb.mxu3 %v16340_v48 }
 0x259   :  { %vm595_vm9 = vcmp.ge.f32.partialorder %v518_v2, 0.0  ;;  %v659_v14 = vmul.f32 0.2, %v518_v2 }
 0x25b   :  { %v18021_v34 = vpop.f32.mrf.mxu1  ;;  %v723_v51 = vsel %vm595_vm9, %v518_v2, %v659_v14  ;;  %v16339_v2 = vld [vmem:[%s25574_s3 + $0xb0] sm:$0xff]  ;;  %v1032_v49 = vpop.f32.mrf.mxu2 }
 0x25c   :  { %v18024_v9 = vpack.c.bf16 %v723_v51, %v722_v37  ;;  %v16333_v37 = vld [vmem:[%s25574_s3 + $0x80] sm:$0xff]  ;;  %1608 = vmatpush.bf16.msrb.mxu3 %v16339_v2 }
 0x25d   :  { %1481 = vmatpush.bf16.msrb.mxu2 %v16333_v37  ;;  %v1033_v37 = vadd.f32 %v1032_v49, %v17915_v27  ;;  %v25617_v49 = vpack.c.bf16 0.0, %v17690_v43 }
 0x25e   :  { %25656 = vst [vmem:[#allocation29_spill] sm:$0xff] %v18024_v9  ;;  %v520_v13 = vpop.f32.mrf.mxu0  ;;  %11876 = vmatmul.msk.bf16.gmra.mxu3 %vm901_vm2, %v18024_v9  ;;  %11898 = vmatmul.msk.bf16.gmra.mxu1 %vm901_vm2, %v25610_v42  ;;  %v16338_v42 = vld [vmem:[%s25574_s3 + $0xa8] sm:$0xff] }
 0x25f   :  { %v521_v14 = vadd.f32 %v17615_v18, %v520_v13  ;;  %v16343_v13 = vld [vmem:[%s25574_s3 + $0xd0] sm:$0xff] }
 0x260   :  { %1737 = vmatpush.bf16.msra.mxu1 %v16343_v13  ;;  %1609 = vmatpush.bf16.msrb.mxu3 %v16338_v42  ;;  %v16337_v13 = vld [vmem:[%s25574_s3 + $0xa0] sm:$0xff] }
 0x261   :  { %vm596_vm10 = vcmp.ge.f32.partialorder %v521_v14, 0.0  ;;  %v660_v26 = vmul.f32 0.2, %v521_v14  ;;  %12179 = vmatmul.msk.bf16.gmra.mxu0 %vm901_vm2, %v17687_v39  ;;  %v16341_v39 = vld [vmem:[%s25574_s3 + $0xc0] sm:$0xff] }
 0x263   :  { %v18052_v10 = vpop.f32.mrf.mxu1  ;;  %v724_v51 = vsel %vm596_vm10, %v521_v14, %v660_v26  ;;  %v1161_v26 = vpop.f32.mrf.mxu3 }
 0x264   :  { %v18055_v48 = vpack.c.bf16 %v724_v51, %v25652_v46  ;;  %1738 = vmatpush.bf16.msra.mxu1 %v16342_v11  ;;  %1610 = vmatpush.bf16.msrb.mxu3 %v16337_v13  ;;  %v1201_v42 = vadd.f32 %v1161_v26, %v1033_v37  ;;  %v18077_v27 = vpop.f32.mrf.mxu2 }
 0x266   :  { %25657 = vst [vmem:[#allocation30_spill] sm:$0xff] %v18055_v48  ;;  %v522_v9 = vpop.f32.mrf.mxu0  ;;  %11855 = vmatmul.msk.bf16.gmra.mxu2 %vm901_vm2, %v18055_v48 }
 0x267   :  { %v523_v14 = vadd.f32 %v17615_v18, %v522_v9 }
 0x268   :  { %1739 = vmatpush.bf16.msra.mxu1 %v16341_v39 }
 0x269   :  { %vm597_vm11 = vcmp.ge.f32.partialorder %v523_v14, 0.0  ;;  %v661_v2 = vmul.f32 0.2, %v523_v14 }
 0x26b   :  { %v18073_v38 = vpop.f32.mrf.mxu1  ;;  %v725_v48 = vsel %vm597_vm11, %v523_v14, %v661_v2  ;;  %v18088_v39 = vpop.f32.mrf.mxu3 }
 0x26c   :  { %v18075_v9 = vpack.c.bf16 %v725_v48, %v724_v51 }
 0x26e   :  { %25658 = vst [vmem:[#allocation31_spill] sm:$0xff] %v18075_v9  ;;  %v525_v11 = vpop.f32.mrf.mxu0  ;;  %11877 = vmatmul.msk.bf16.gmra.mxu3 %vm901_vm2, %v18075_v9  ;;  %11899 = vmatmul.msk.bf16.gmra.mxu1 %vm901_vm2, %v17891_v35 }
 0x26f   :  { %v526_v57 = vadd.f32 %v17615_v18, %v525_v11  ;;  %v18099_v18 = vld [vmem:[%s25572_s2] ss:$0 sm:$0xff]  ;;  %v1037_v11 = vpop.f32.mrf.mxu2 }
 0x271   :  { %vm598_vm12 = vcmp.ge.f32.partialorder %v526_v57, 0.0  ;;  %v662_v14 = vmul.f32 0.2, %v526_v57  ;;  %12180 = vmatmul.msk.bf16.gmra.mxu0 %vm901_vm2, %v25617_v49  ;;  %v1038_v49 = vadd.f32 %v1037_v11, %v17936_v60 }
 0x273   :  { %v18090_v51 = vpop.f32.mrf.mxu1  ;;  %v726_v26 = vsel %vm598_vm12, %v526_v57, %v662_v14  ;;  %v25623_v14 = vpack.c.bf16 0.0, %v17901_v62 }
 0x274   :  { %v18092_v37 = vpack.c.bf16 %v726_v26, %v725_v48  ;;  %v1166_v48 = vpop.f32.mrf.mxu3 }
 0x276   :  { %25659 = vst [vmem:[#allocation32_spill] sm:$0xff] %v18092_v37  ;;  %v527_v2 = vpop.f32.mrf.mxu0  ;;  %11856 = vmatmul.msk.bf16.gmra.mxu2 %vm901_vm2, %v18092_v37  ;;  %v1203_v37 = vadd.f32 %v1166_v48, %v1038_v49 }
 0x277   :  { %v528_v13 = vadd.f32 %v18099_v18, %v527_v2  ;;  %v25661_v2 = vmov 0.0|0.0  }
 0x279   :  { %vm599_vm13 = vcmp.ge.f32.partialorder %v528_v13, 0.0  ;;  %v663_v35 = vmul.f32 0.2, %v528_v13 }
 0x27b   :  { %v18103_v9 = vpop.f32.mrf.mxu1  ;;  %v727_v57 = vsel %vm599_vm13, %v528_v13, %v663_v35  ;;  %v1410_v35 = vpack.c.bf16 %v17700_v54, %v25652_v46 }
 0x27c   :  { %v18106_v43 = vpack.c.bf16 %v727_v57, %v726_v26 }
 0x27e   :  { %25660 = vst [vmem:[#allocation33_spill] sm:$0xff] %v18106_v43  ;;  %v530_v21 = vpop.f32.mrf.mxu0  ;;  %11878 = vmatmul.msk.bf16.gmra.mxu3 %vm901_vm2, %v18106_v43  ;;  %11900 = vmatmul.msk.bf16.gmra.mxu1 %vm901_vm2, %v25623_v14 }
 0x27f   :  { %v531_v60 = vadd.f32 %v18099_v18, %v530_v21 }
 0x281   :  { %3091 = vmatmul.bf16.gmra.mxu0 %v25661_v2  ;;  %v664_v26 = vmul.f32 0.2, %v531_v60  ;;  %vm600_vm14 = vcmp.ge.f32.partialorder %v531_v60, 0.0 }
 0x283   :  { %v18115_v11 = vpop.f32.mrf.mxu1  ;;  %v18121_v57 = vsel %vm600_vm14, %v531_v60, %v664_v26  ;;  %v25664_v26 = vpack.c.bf16 %v17710_v63, %v17702_v55 }
 0x286   :  { %v532_v49 = vpop.f32.mrf.mxu0  ;;  %11917 = vmatmul.msk.bf16.vlgmr.msrb.gmra.mxu2 %vm901_vm2, %v1410_v35  ;;  %v25663_v35 = vpack.c.bf16 %v17702_v55, %v17700_v54  ;;  %v25666_v54 = vpack.c.bf16 %v17715_v5, %v17710_v63  ;;  %v18160_v55 = vpack.c.bf16 %v17724_v19, %v25652_v46 }
 0x287   :  { %v533_v13 = vadd.f32 %v18099_v18, %v532_v49 }
 0x288   :  { %25667 = vst [vmem:[#allocation34_spill] sm:$0xff] %v18160_v55 }
 0x289   :  { %vm601_vm15 = vcmp.ge.f32.partialorder %v533_v13, 0.0  ;;  %v665_v48 = vmul.f32 0.2, %v533_v13 }
 0x28b   :  { %v18123_v14 = vsel %vm601_vm15, %v533_v13, %v665_v48  ;;  %v1338_v21 = vpop.f32.mrf.mxu1 }
 0x28c   :  { %v18127_v43 = vadd.f32 %v1338_v21, %v1201_v42 }
 0x28e   :  { %11941 = vmatmul.msk.bf16.vlgmr.msrb.gmra.mxu3 %vm901_vm2, %v25662_v8  ;;  %11965 = vmatmul.msk.bf16.vlgmr.msra.gmra.mxu1 %vm901_vm2, %v25663_v35  ;;  %v18154_v8 = vpop.f32.mrf.mxu2 }
 0x291   :  { %3096 = vmatmul.bf16.gmra.mxu0 %v25661_v2 }
 0x293   :  { %v18138_v60 = vpop.f32.mrf.mxu1 }
 0x296   :  { %11918 = vmatmul.msk.bf16.gmra.mxu2 %vm901_vm2, %v25664_v26 }
 0x29b   :  { %v1343_v42 = vpop.f32.mrf.mxu1 }
 0x29c   :  { %v18144_v49 = vadd.f32 %v1343_v42, %v1203_v37  ;;  %v18164_v37 = vpop.f32.mrf.mxu3 }
 0x29e   :  { %11942 = vmatmul.msk.bf16.gmra.mxu3 %vm901_vm2, %v25665_v24  ;;  %11966 = vmatmul.msk.bf16.gmra.mxu1 %vm901_vm2, %v25666_v54 }
 0x2a3   :  { %v18156_v13 = vpop.f32.mrf.mxu1 }
 0x2a6   :  { %11919 = vmatmul.msk.bf16.gmra.mxu2 %vm901_vm2, %v18160_v55 }
 0x2a9   :  { %v1042_v48 = vpop.f32.mrf.mxu2 }
 0x2aa   :  { %v1043_v63 = vadd.f32 %v1042_v48, %v17954_v56 }
 0x2ab   :  { %v1348_v21 = vpop.f32.mrf.mxu1 }
 0x2ae   :  { %11943 = vmatmul.msk.bf16.gmra.mxu3 %vm901_vm2, %v17643_v47  ;;  %11967 = vmatmul.msk.bf16.gmra.mxu1 %vm901_vm2, %v17727_v20 }
 0x2b1   :  { %v1044_v5 = vpop.f32.mrf.mxu2  ;;  %v1171_v35 = vpop.f32.mrf.mxu3 }
 0x2b2   :  { %v1205_v26 = vadd.f32 %v1171_v35, %v1043_v63  ;;  %v1045_v24 = vadd.f32 %v1044_v5, %v17967_v17  ;;  %v18185_v17 = vpack.c.bf16 %v17755_v61, %v25652_v46 }
 0x2b3   :  { %v1350_v19 = vpop.f32.mrf.mxu1 }
 0x2b4   :  { %v18171_v42 = vadd.f32 %v1348_v21, %v1205_v26 }
 0x2b6   :  { %11920 = vmatmul.msk.bf16.gmra.mxu2 %vm901_vm2, %v17733_v30 }
 0x2b9   :  { %v1047_v54 = vpop.f32.mrf.mxu2  ;;  %v1173_v62 = vpop.f32.mrf.mxu3 }
 0x2ba   :  { %v1206_v2 = vadd.f32 %v1173_v62, %v1045_v24  ;;  %v1048_v56 = vadd.f32 %v1047_v54, %v17974_v23 }
 0x2bb   :  { %v1353_v47 = vpop.f32.mrf.mxu1 }
 0x2bc   :  { %v18176_v55 = vadd.f32 %v1350_v19, %v1206_v2 }
 0x2be   :  { %11944 = vmatmul.msk.bf16.gmra.mxu3 %vm901_vm2, %v17655_v58  ;;  %11968 = vmatmul.msk.bf16.gmra.mxu1 %vm901_vm2, %v17736_v40 }
 0x2c1   :  { %v1049_v48 = vpop.f32.mrf.mxu2  ;;  %v1176_v21 = vpop.f32.mrf.mxu3 }
 0x2c2   :  { %v1207_v63 = vadd.f32 %v1176_v21, %v1048_v56  ;;  %v1050_v2 = vadd.f32 %v1049_v48, %v17987_v7  ;;  %v16348_v7 = vld [vmem:[%s25574_s3 + $0xf8] sm:$0xff] }
 0x2c3   :  { %v1355_v35 = vpop.f32.mrf.mxu1  ;;  %1881 = vmatpush.bf16.msra.mxu2 %v16348_v7  ;;  %v16351_v7 = vld [vmem:[%s25574_s3 + $0x110] sm:$0xff] }
 0x2c4   :  { %v18187_v62 = vadd.f32 %v1353_v47, %v1207_v63 }
 0x2c6   :  { %11921 = vmatmul.msk.bf16.gmra.mxu2 %vm901_vm2, %v18185_v17 }
 0x2c9   :  { %v1052_v5 = vpop.f32.mrf.mxu2  ;;  %v1178_v26 = vpop.f32.mrf.mxu3 }
 0x2ca   :  { %v1208_v19 = vadd.f32 %v1178_v26, %v1050_v2  ;;  %v1053_v47 = vadd.f32 %v1052_v5, %v17995_v50  ;;  %v16347_v50 = vld [vmem:[%s25574_s3 + $0xf0] sm:$0xff] }
 0x2cb   :  { %v1358_v24 = vpop.f32.mrf.mxu1  ;;  %1882 = vmatpush.bf16.msra.mxu2 %v16347_v50 }
 0x2cc   :  { %v18192_v23 = vadd.f32 %v1355_v35, %v1208_v19 }
 0x2ce   :  { %11945 = vmatmul.msk.bf16.gmra.mxu3 %vm901_vm2, %v17662_v4  ;;  %11969 = vmatmul.msk.bf16.gmra.mxu1 %vm901_vm2, %v17758_v1 }
 0x2d1   :  { %v1054_v61 = vpop.f32.mrf.mxu2  ;;  %v1181_v54 = vpop.f32.mrf.mxu3 }
 0x2d2   :  { %v1209_v56 = vadd.f32 %v1181_v54, %v1053_v47  ;;  %v1055_v48 = vadd.f32 %v1054_v61, %v18008_v32  ;;  %v16352_v47 = vld [vmem:[%s25574_s3 + $0x118] sm:$0xff] }
 0x2d3   :  { %v1360_v21 = vpop.f32.mrf.mxu1  ;;  %v16356_v32 = vld [vmem:[%s25574_s3 + $0x138] sm:$0xff]  ;;  %2026 = vmatpush.bf16.msra.mxu3 %v16352_v47 }
 0x2d4   :  { %v18199_v63 = vadd.f32 %v1358_v24, %v1209_v56  ;;  %v16346_v24 = vld [vmem:[%s25574_s3 + $0xe8] sm:$0xff]  ;;  %2155 = vmatpush.bf16.msrb.mxu1 %v16356_v32 }
 0x2d5   :  { %1883 = vmatpush.bf16.msra.mxu2 %v16346_v24  ;;  %v16354_v24 = vld [vmem:[%s25574_s3 + $0x128] sm:$0xff] }
 0x2d6   :  { %11922 = vmatmul.msk.bf16.gmra.mxu2 %vm901_vm2, %v17765_v12 }
 0x2d7   :  { %2027 = vmatpush.bf16.msra.mxu3 %v16351_v7 }
 0x2d9   :  { %v1057_v35 = vpop.f32.mrf.mxu2  ;;  %v1183_v2 = vpop.f32.mrf.mxu3 }
 0x2da   :  { %v1210_v5 = vadd.f32 %v1183_v2, %v1055_v48  ;;  %v1058_v61 = vadd.f32 %v1057_v35, %v18021_v34  ;;  %v16355_v48 = vld [vmem:[%s25574_s3 + $0x130] sm:$0xff]  ;;  %v18237_v34 = vpack.c.bf16 %v17776_v41, %v25652_v46 }
 0x2db   :  { %v1363_v26 = vpop.f32.mrf.mxu1  ;;  %2156 = vmatpush.bf16.msrb.mxu1 %v16355_v48 }
 0x2dc   :  { %v18210_v19 = vadd.f32 %v1360_v21, %v1210_v5  ;;  %v16345_v21 = vld [vmem:[%s25574_s3 + $0xe0] sm:$0xff]  ;;  %v16350_v5 = vld [vmem:[%s25574_s3 + $0x108] sm:$0xff] }
 0x2dd   :  { %1884 = vmatpush.bf16.msra.mxu2 %v16345_v21  ;;  %2028 = vmatpush.bf16.msra.mxu3 %v16350_v5 }
 0x2de   :  { %11946 = vmatmul.msk.bf16.gmra.mxu3 %vm901_vm2, %v17674_v15  ;;  %11970 = vmatmul.msk.bf16.gmra.mxu1 %vm901_vm2, %v17768_v22 }
 0x2df   :  { %2157 = vmatpush.bf16.msrb.mxu1 %v16354_v24 }
 0x2e1   :  { %v1059_v54 = vpop.f32.mrf.mxu2  ;;  %v1186_v56 = vpop.f32.mrf.mxu3 }
 0x2e2   :  { %v1211_v2 = vadd.f32 %v1186_v56, %v1058_v61  ;;  %v1060_v47 = vadd.f32 %v1059_v54, %v18052_v10  ;;  %v16353_v61 = vld [vmem:[%s25574_s3 + $0x120] sm:$0xff] }
 0x2e3   :  { %v1365_v50 = vpop.f32.mrf.mxu1  ;;  %2158 = vmatpush.bf16.msrb.mxu1 %v16353_v61 }
 0x2e4   :  { %v18239_v35 = vadd.f32 %v1363_v26, %v1211_v2  ;;  %v16349_v26 = vld [vmem:[%s25574_s3 + $0x100] sm:$0xff] }
 0x2e5   :  { %2029 = vmatpush.bf16.msra.mxu3 %v16349_v26 }
 0x2e6   :  { %11923 = vmatmul.msk.bf16.gmra.mxu2 %vm901_vm2, %v18237_v34 }
 0x2e9   :  { %v1062_v41 = vpop.f32.mrf.mxu2  ;;  %v1188_v32 = vpop.f32.mrf.mxu3 }
 0x2ea   :  { %v1212_v56 = vadd.f32 %v1188_v32, %v1060_v47  ;;  %v1063_v10 = vadd.f32 %v1062_v41, %v18073_v38 }
 0x2eb   :  { %v1368_v21 = vpop.f32.mrf.mxu1 }
 0x2ec   :  { %v18256_v7 = vadd.f32 %v1365_v50, %v1212_v56 }
 0x2ee   :  { %11947 = vmatmul.msk.bf16.gmra.mxu3 %vm901_vm2, %v17681_v29  ;;  %11971 = vmatmul.msk.bf16.gmra.mxu1 %vm901_vm2, %v17779_v45 }
 0x2f1   :  { %v1064_v54 = vpop.f32.mrf.mxu2  ;;  %v1191_v48 = vpop.f32.mrf.mxu3 }
 0x2f2   :  { %v1213_v2 = vadd.f32 %v1191_v48, %v1063_v10  ;;  %v1065_v50 = vadd.f32 %v1064_v54, %v18090_v51  ;;  %v25668_v51 = vpack.c.bf16 %v17629_v31, %v17621_v25 }
 0x2f3   :  { %v1370_v5 = vpop.f32.mrf.mxu1 }
 0x2f4   :  { %v18263_v24 = vadd.f32 %v1368_v21, %v1213_v2 }
 0x2f6   :  { %11924 = vmatmul.msk.bf16.gmra.mxu2 %vm901_vm2, %v17785_v52 }
 0x2f9   :  { %v1067_v47 = vpop.f32.mrf.mxu2  ;;  %v1193_v32 = vpop.f32.mrf.mxu3 }
 0x2fa   :  { %v1214_v26 = vadd.f32 %v1193_v32, %v1065_v50  ;;  %v1068_v38 = vadd.f32 %v1067_v47, %v18103_v9  ;;  %v1035_v32 = vadd.f32 %v18077_v27, %v17927_v16 }
 0x2fb   :  { %v1373_v61 = vpop.f32.mrf.mxu1 }
 0x2fc   :  { %v18268_v56 = vadd.f32 %v1370_v5, %v1214_v26 }
 0x2fe   :  { %11948 = vmatmul.msk.bf16.gmra.mxu3 %vm901_vm2, %v17693_v44  ;;  %11972 = vmatmul.msk.bf16.gmra.mxu1 %vm901_vm2, %v17788_v3 }
 0x301   :  { %v1069_v41 = vpop.f32.mrf.mxu2  ;;  %v1196_v21 = vpop.f32.mrf.mxu3 }
 0x302   :  { %v1215_v10 = vadd.f32 %v1196_v21, %v1068_v38  ;;  %v1070_v54 = vadd.f32 %v1069_v41, %v18115_v11 }
 0x303   :  { %v1375_v48 = vpop.f32.mrf.mxu1 }
 0x304   :  { %v18275_v2 = vadd.f32 %v1373_v61, %v1215_v10  ;;  %v1202_v61 = vadd.f32 %v18088_v39, %v1035_v32 }
 0x306   :  { %11989 = vmatmul.msk.bf16.vlgmr.msra.gmra.mxu2 %vm901_vm2, %v25668_v51  ;;  %v1379_v25 = vadd.f32 %v18138_v60, %v1202_v61 }
 0x309   :  { %v1198_v5 = vpop.f32.mrf.mxu3  ;;  %v1483_v50 = vpop.f32.mrf.mxu2 }
 0x30a   :  { %v1216_v26 = vadd.f32 %v1198_v5, %v1070_v54  ;;  %v1523_v9 = vadd.f32 %v1483_v50, %v18127_v43  ;;  %v1814_v43 = vpack.c.bf16 0.0, %v17634_v36 }
 0x30b   :  { %v1741_v47 = vpop.f32.mrf.mxu1 }
 0x30c   :  { %v18285_v38 = vadd.f32 %v1375_v48, %v1216_v26 }
 0x30e   :  { %12013 = vmatmul.msk.bf16.vlgmr.msra.gmra.mxu3 %vm901_vm2, %v17949_v6  ;;  %12037 = vmatmul.msk.bf16.vlgmr.msrb.gmra.mxu1 %vm901_vm2, %v17795_v28  ;;  %v1040_v6 = vadd.f32 %v18154_v8, %v17946_v33 }
 0x310   :  { %v1204_v54 = vadd.f32 %v18164_v37, %v1040_v6 }
 0x311   :  { %v1485_v31 = vpop.f32.mrf.mxu2  ;;  %v1612_v11 = vpop.f32.mrf.mxu3 }
 0x312   :  { %v1524_v41 = vadd.f32 %v1485_v31, %v1379_v25  ;;  %v1652_v16 = vadd.f32 %v1612_v11, %v1523_v9  ;;  %v1381_v36 = vadd.f32 %v18156_v13, %v1204_v54  ;;  %v25670_v13 = vld [vmem:[#allocation12_spill] sm:$0xff] }
 0x313   :  { %v1743_v27 = vpop.f32.mrf.mxu1 }
 0x314   :  { %v18294_v21 = vadd.f32 %v1741_v47, %v1652_v16 }
 0x316   :  { %11990 = vmatmul.msk.bf16.gmra.mxu2 %vm901_vm2, %v1814_v43 }
 0x319   :  { %v1488_v39 = vpop.f32.mrf.mxu2  ;;  %v1614_v10 = vpop.f32.mrf.mxu3 }
 0x31a   :  { %v1525_v28 = vadd.f32 %v1488_v39, %v18144_v49  ;;  %v1653_v48 = vadd.f32 %v1614_v10, %v1524_v41 }
 0x31b   :  { %v1746_v60 = vpop.f32.mrf.mxu1 }
 0x31c   :  { %v18300_v51 = vadd.f32 %v1743_v27, %v1653_v48  ;;  %v25671_v27 = vld [vmem:[#allocation5_spill] sm:$0xff] }
 0x31e   :  { %12014 = vmatmul.msk.bf16.gmra.mxu3 %vm901_vm2, %v17969_v0  ;;  %12038 = vmatmul.msk.bf16.gmra.mxu1 %vm901_vm2, %v17809_v59  ;;  %v25669_v59 = vld [vmem:[#allocation26_spill] sm:$0xff] }
 0x321   :  { %v1490_v5 = vpop.f32.mrf.mxu2  ;;  %v1617_v50 = vpop.f32.mrf.mxu3 }
 0x322   :  { %v1526_v32 = vadd.f32 %v1490_v5, %v1381_v36  ;;  %v1654_v33 = vadd.f32 %v1617_v50, %v1525_v28 }
 0x323   :  { %v1748_v8 = vpop.f32.mrf.mxu1 }
 0x324   :  { %v18308_v49 = vadd.f32 %v1746_v60, %v1654_v33  ;;  %v25673_v60 = vld [vmem:[#allocation28_spill] sm:$0xff] }
 0x326   :  { %11991 = vmatmul.msk.bf16.gmra.mxu2 %vm901_vm2, %v17649_v53 }
 0x329   :  { %v1493_v26 = vpop.f32.mrf.mxu2  ;;  %v1619_v37 = vpop.f32.mrf.mxu3 }
 0x32a   :  { %v1527_v9 = vadd.f32 %v1493_v26, %v18171_v42  ;;  %v1655_v0 = vadd.f32 %v1619_v37, %v1526_v32  ;;  %v25672_v42 = vpack.c.bf16 0.0, %v25671_v27  ;;  %v25678_v27 = vld [vmem:[#allocation7_spill] sm:$0xff] }
 0x32b   :  { %v1751_v47 = vpop.f32.mrf.mxu1 }
 0x32c   :  { %v18313_v61 = vadd.f32 %v1748_v8, %v1655_v0  ;;  %v25675_v8 = vld [vmem:[#allocation6_spill] sm:$0xff] }
 0x32e   :  { %12015 = vmatmul.msk.bf16.gmra.mxu3 %vm901_vm2, %v25669_v59  ;;  %12039 = vmatmul.msk.bf16.gmra.mxu1 %vm901_vm2, %v25670_v13  ;;  %v25676_v59 = vld [vmem:[#allocation30_spill] sm:$0xff]  ;;  %v25677_v13 = vld [vmem:[#allocation16_spill] sm:$0xff] }
 0x331   :  { %v1495_v25 = vpop.f32.mrf.mxu2  ;;  %v1622_v31 = vpop.f32.mrf.mxu3 }
 0x332   :  { %v1528_v11 = vadd.f32 %v1495_v25, %v18176_v55  ;;  %v1656_v41 = vadd.f32 %v1622_v31, %v1527_v9  ;;  %v25674_v55 = vld [vmem:[#allocation15_spill] sm:$0xff] }
 0x333   :  { %v1753_v53 = vpop.f32.mrf.mxu1 }
 0x334   :  { %v18320_v16 = vadd.f32 %v1751_v47, %v1656_v41 }
 0x336   :  { %11992 = vmatmul.msk.bf16.gmra.mxu2 %vm901_vm2, %v25672_v42  ;;  %v25679_v42 = vpack.c.bf16 0.0, %v25678_v27 }
 0x339   :  { %v1498_v43 = vpop.f32.mrf.mxu2  ;;  %v1624_v39 = vpop.f32.mrf.mxu3 }
 0x33a   :  { %v1529_v10 = vadd.f32 %v1498_v43, %v18187_v62  ;;  %v1657_v6 = vadd.f32 %v1624_v39, %v1528_v11 }
 0x33b   :  { %v1756_v28 = vpop.f32.mrf.mxu1 }
 0x33c   :  { %v18326_v48 = vadd.f32 %v1753_v53, %v1657_v6 }
 0x33e   :  { %12016 = vmatmul.msk.bf16.gmra.mxu3 %vm901_vm2, %v25673_v60  ;;  %12040 = vmatmul.msk.bf16.gmra.mxu1 %vm901_vm2, %v25674_v55  ;;  %v16358_v55 = vld [vmem:[%s25574_s3 + $0x148] sm:$0xff] }
 0x341   :  { %v1500_v54 = vpop.f32.mrf.mxu2  ;;  %v1627_v36 = vpop.f32.mrf.mxu3 }
 0x342   :  { %v1530_v5 = vadd.f32 %v1500_v54, %v18192_v23  ;;  %v1658_v50 = vadd.f32 %v1627_v36, %v1529_v10  ;;  %v16359_v10 = vld [vmem:[%s25574_s3 + $0x150] sm:$0xff]  ;;  %v16364_v54 = vld [vmem:[%s25574_s3 + $0x178] sm:$0xff] }
 0x343   :  { %v1758_v32 = vpop.f32.mrf.mxu1  ;;  %v16368_v36 = vld [vmem:[%s25574_s3 + $0x198] sm:$0xff]  ;;  %2429 = vmatpush.bf16.msrb.mxu3 %v16364_v54 }
 0x344   :  { %v18333_v33 = vadd.f32 %v1756_v28, %v1658_v50  ;;  %2606 = vmatpush.bf16.msra.mxu1 %v16368_v36 }
 0x346   :  { %11993 = vmatmul.msk.bf16.gmra.mxu2 %vm901_vm2, %v25675_v8  ;;  %v16357_v8 = vld [vmem:[%s25574_s3 + $0x140] sm:$0xff] }
 0x349   :  { %v1503_v62 = vpop.f32.mrf.mxu2  ;;  %v1629_v26 = vpop.f32.mrf.mxu3 }
 0x34a   :  { %v1531_v37 = vadd.f32 %v1503_v62, %v18199_v63  ;;  %v1659_v9 = vadd.f32 %v1629_v26, %v1530_v5  ;;  %v16360_v63 = vld [vmem:[%s25574_s3 + $0x158] sm:$0xff]  ;;  %v25680_v5 = vld [vmem:[#allocation32_spill] sm:$0xff]  ;;  %v16363_v62 = vld [vmem:[%s25574_s3 + $0x170] sm:$0xff] }
 0x34b   :  { %v1761_v0 = vpop.f32.mrf.mxu1  ;;  %2284 = vmatpush.bf16.msrb.mxu2 %v16360_v63  ;;  %v16367_v26 = vld [vmem:[%s25574_s3 + $0x190] sm:$0xff]  ;;  %2430 = vmatpush.bf16.msrb.mxu3 %v16363_v62 }
 0x34c   :  { %v18338_v47 = vadd.f32 %v1758_v32, %v1659_v9  ;;  %2607 = vmatpush.bf16.msra.mxu1 %v16367_v26 }
 0x34e   :  { %12017 = vmatmul.msk.bf16.gmra.mxu3 %vm901_vm2, %v25676_v59  ;;  %12041 = vmatmul.msk.bf16.gmra.mxu1 %vm901_vm2, %v25677_v13  ;;  %v16362_v13 = vld [vmem:[%s25574_s3 + $0x168] sm:$0xff] }
 0x34f   :  { %2285 = vmatpush.bf16.msrb.mxu2 %v16359_v10  ;;  %2431 = vmatpush.bf16.msrb.mxu3 %v16362_v13  ;;  %v25683_v10 = vld [vmem:[#allocation21_spill] sm:$0xff] }
 0x351   :  { %v1505_v23 = vpop.f32.mrf.mxu2  ;;  %v1632_v25 = vpop.f32.mrf.mxu3 }
 0x352   :  { %v1532_v31 = vadd.f32 %v1505_v23, %v18210_v19  ;;  %v1660_v11 = vadd.f32 %v1632_v25, %v1531_v37  ;;  %v16366_v23 = vld [vmem:[%s25574_s3 + $0x188] sm:$0xff] }
 0x353   :  { %v1763_v41 = vpop.f32.mrf.mxu1  ;;  %2286 = vmatpush.bf16.msrb.mxu2 %v16358_v55  ;;  %v25682_v25 = vld [vmem:[#allocation8_spill] sm:$0xff]  ;;  %2608 = vmatpush.bf16.msra.mxu1 %v16366_v23 }
 0x354   :  { %v18345_v53 = vadd.f32 %v1761_v0, %v1660_v11  ;;  %v16361_v11 = vld [vmem:[%s25574_s3 + $0x160] sm:$0xff] }
 0x355   :  { %2432 = vmatpush.bf16.msrb.mxu3 %v16361_v11 }
 0x356   :  { %11994 = vmatmul.msk.bf16.gmra.mxu2 %vm901_vm2, %v25679_v42 }
 0x357   :  { %2287 = vmatpush.bf16.msrb.mxu2 %v16357_v8 }
 0x359   :  { %v1508_v43 = vpop.f32.mrf.mxu2  ;;  %v1634_v39 = vpop.f32.mrf.mxu3 }
 0x35a   :  { %v1533_v19 = vadd.f32 %v1508_v43, %v18239_v35  ;;  %v1661_v6 = vadd.f32 %v1634_v39, %v1532_v31  ;;  %v25681_v35 = vld [vmem:[#allocation19_spill] sm:$0xff]  ;;  %v1964_v43 = vpack.c.bf16 %v18121_v57, %v25652_v46 }
 0x35b   :  { %v1766_v28 = vpop.f32.mrf.mxu1 }
 0x35c   :  { %v18357_v60 = vadd.f32 %v1763_v41, %v1661_v6  ;;  %v16365_v41 = vld [vmem:[%s25574_s3 + $0x180] sm:$0xff] }
 0x35d   :  { %2609 = vmatpush.bf16.msra.mxu1 %v16365_v41 }
 0x35e   :  { %12018 = vmatmul.msk.bf16.gmra.mxu3 %vm901_vm2, %v25680_v5  ;;  %12042 = vmatmul.msk.bf16.gmra.mxu1 %vm901_vm2, %v25681_v35 }
 0x361   :  { %v1510_v50 = vpop.f32.mrf.mxu2  ;;  %v1637_v32 = vpop.f32.mrf.mxu3 }
 0x362   :  { %v1534_v37 = vadd.f32 %v1510_v50, %v18256_v7  ;;  %v1662_v9 = vadd.f32 %v1637_v32, %v1533_v19  ;;  %v25684_v19 = vld [vmem:[#allocation20_spill] sm:$0xff]  ;;  %v25686_v32 = vld [vmem:[#allocation9_spill] sm:$0xff] }
 0x363   :  { %v1768_v0 = vpop.f32.mrf.mxu1  ;;  %v25685_v6 = vpack.c.bf16 %v25683_v10, %v25684_v19  ;;  %v25687_v8 = vpack.c.bf16 0.0, %v25686_v32 }
 0x364   :  { %v18382_v59 = vadd.f32 %v1766_v28, %v1662_v9  ;;  %v535_v28 = vpop.f32.mrf.mxu0 }
 0x365   :  { %v536_v55 = vadd.f32 %v18099_v18, %v535_v28 }
 0x366   :  { %11995 = vmatmul.msk.bf16.gmra.mxu2 %vm901_vm2, %v25682_v25  ;;  %v25688_v25 = vld [vmem:[#allocation23_spill] sm:$0xff] }
 0x367   :  { %v666_v50 = vmul.f32 0.2, %v536_v55  ;;  %vm602_vm0 = vcmp.ge.f32.partialorder %v536_v55, 0.0 }
 0x369   :  { %v1513_v7 = vpop.f32.mrf.mxu2  ;;  %v1639_v31 = vpop.f32.mrf.mxu3  ;;  %v18415_v62 = vsel %vm602_vm0, %v536_v55, %v666_v50 }
 0x36a   :  { %v1535_v63 = vadd.f32 %v1513_v7, %v18263_v24  ;;  %v1663_v27 = vadd.f32 %v1639_v31, %v1534_v37  ;;  %v25689_v7 = vld [vmem:[#allocation22_spill] sm:$0xff] }
 0x36b   :  { %v1771_v42 = vpop.f32.mrf.mxu1  ;;  %v25690_v31 = vpack.c.bf16 %v25688_v25, %v25689_v7 }
 0x36c   :  { %v18401_v39 = vadd.f32 %v1768_v0, %v1663_v27 }
 0x36e   :  { %12019 = vmatmul.msk.bf16.gmra.mxu3 %vm901_vm2, %v1964_v43  ;;  %12043 = vmatmul.msk.bf16.gmra.mxu1 %vm901_vm2, %v25685_v6  ;;  %v25691_v43 = vld [vmem:[#allocation24_spill] sm:$0xff] }
 0x371   :  { %v1515_v24 = vpop.f32.mrf.mxu2  ;;  %v1642_v54 = vpop.f32.mrf.mxu3 }
 0x372   :  { %v1536_v36 = vadd.f32 %v1515_v24, %v18268_v56  ;;  %v1664_v5 = vadd.f32 %v1642_v54, %v1535_v63  ;;  %v1965_v56 = vpack.c.bf16 %v18415_v62, %v18123_v14 }
 0x373   :  { %v1773_v35 = vpop.f32.mrf.mxu1 }
 0x374   :  { %v18410_v46 = vadd.f32 %v1771_v42, %v1664_v5  ;;  %v25693_v5 = vld [vmem:[#allocation34_spill] sm:$0xff] }
 0x376   :  { %11996 = vmatmul.msk.bf16.gmra.mxu2 %vm901_vm2, %v25687_v8 }
 0x379   :  { %v1518_v26 = vpop.f32.mrf.mxu2  ;;  %v1644_v37 = vpop.f32.mrf.mxu3 }
 0x37a   :  { %v1537_v9 = vadd.f32 %v1518_v26, %v18275_v2  ;;  %v1665_v0 = vadd.f32 %v1644_v37, %v1536_v36  ;;  %v25692_v36 = vld [vmem:[#allocation10_spill] sm:$0xff]  ;;  %v25694_v37 = vld [vmem:[#allocation25_spill] sm:$0xff] }
 0x37b   :  { %v1776_v13 = vpop.f32.mrf.mxu1 }
 0x37c   :  { %v18420_v23 = vadd.f32 %v1773_v35, %v1665_v0 }
 0x37e   :  { %12020 = vmatmul.msk.bf16.gmra.mxu3 %vm901_vm2, %v1965_v56  ;;  %12044 = vmatmul.msk.bf16.gmra.mxu1 %vm901_vm2, %v25690_v31 }
 0x381   :  { %v1520_v11 = vpop.f32.mrf.mxu2  ;;  %v1647_v41 = vpop.f32.mrf.mxu3 }
 0x382   :  { %v1538_v63 = vadd.f32 %v1520_v11, %v18285_v38  ;;  %v1666_v27 = vadd.f32 %v1647_v41, %v1537_v9  ;;  %v25695_v11 = vld [vmem:[#allocation11_spill] sm:$0xff] }
 0x383   :  { %v1778_v2 = vpop.f32.mrf.mxu1  ;;  %v25696_v41 = vpack.c.bf16 0.0, %v25695_v11 }
 0x384   :  { %v18428_v42 = vadd.f32 %v1776_v13, %v1666_v27 }
 0x386   :  { %12061 = vmatmul.msk.bf16.vlgmr.msrb.gmra.mxu2 %vm901_vm2, %v25691_v43 }
 0x389   :  { %v1649_v19 = vpop.f32.mrf.mxu3  ;;  %v1886_v6 = vpop.f32.mrf.mxu2 }
 0x38a   :  { %v1667_v28 = vadd.f32 %v1649_v19, %v1538_v63  ;;  %v1926_v55 = vadd.f32 %v1886_v6, %v18294_v21 }
 0x38b   :  { %v2160_v24 = vpop.f32.mrf.mxu1 }
 0x38c   :  { %v18433_v54 = vadd.f32 %v1778_v2, %v1667_v28 }
 0x38e   :  { %12085 = vmatmul.msk.bf16.vlgmr.msrb.gmra.mxu3 %vm901_vm2, %v25692_v36  ;;  %12109 = vmatmul.msk.bf16.vlgmr.msra.gmra.mxu1 %vm901_vm2, %v25693_v5 }
 0x391   :  { %v1888_v38 = vpop.f32.mrf.mxu2  ;;  %v2031_v35 = vpop.f32.mrf.mxu3 }
 0x392   :  { %v1927_v50 = vadd.f32 %v1888_v38, %v18300_v51  ;;  %v2071_v32 = vadd.f32 %v2031_v35, %v1926_v55 }
 0x393   :  { %v2162_v8 = vpop.f32.mrf.mxu1 }
 0x394   :  { %v18440_v26 = vadd.f32 %v2160_v24, %v2071_v32 }
 0x396   :  { %12062 = vmatmul.msk.bf16.gmra.mxu2 %vm901_vm2, %v25694_v37  ;;  %v25699_v37 = vld [vmem:[#allocation29_spill] sm:$0xff] }
 0x399   :  { %v1891_v21 = vpop.f32.mrf.mxu2  ;;  %v2033_v9 = vpop.f32.mrf.mxu3 }
 0x39a   :  { %v1928_v0 = vadd.f32 %v1891_v21, %v18308_v49  ;;  %v2072_v13 = vadd.f32 %v2033_v9, %v1927_v50  ;;  %v25697_v49 = vld [vmem:[#allocation27_spill] sm:$0xff] }
 0x39b   :  { %v2165_v56 = vpop.f32.mrf.mxu1 }
 0x39c   :  { %v18445_v31 = vadd.f32 %v2162_v8, %v2072_v13 }
 0x39e   :  { %12086 = vmatmul.msk.bf16.gmra.mxu3 %vm901_vm2, %v25696_v41  ;;  %12110 = vmatmul.msk.bf16.gmra.mxu1 %vm901_vm2, %v17733_v30  ;;  %v25698_v30 = vld [vmem:[#allocation13_spill] sm:$0xff] }
 0x3a1   :  { %v1893_v51 = vpop.f32.mrf.mxu2  ;;  %v2036_v63 = vpop.f32.mrf.mxu3 }
 0x3a2   :  { %v1929_v27 = vadd.f32 %v1893_v51, %v18313_v61  ;;  %v2073_v2 = vadd.f32 %v2036_v63, %v1928_v0 }
 0x3a3   :  { %v2167_v43 = vpop.f32.mrf.mxu1 }
 0x3a4   :  { %v18453_v19 = vadd.f32 %v2165_v56, %v2073_v2 }
 0x3a6   :  { %12063 = vmatmul.msk.bf16.gmra.mxu2 %vm901_vm2, %v25697_v49 }
 0x3a9   :  { %v1896_v6 = vpop.f32.mrf.mxu2  ;;  %v2038_v28 = vpop.f32.mrf.mxu3 }
 0x3aa   :  { %v1930_v55 = vadd.f32 %v1896_v6, %v18320_v16  ;;  %v2074_v24 = vadd.f32 %v2038_v28, %v1929_v27 }
 0x3ab   :  { %v2170_v36 = vpop.f32.mrf.mxu1 }
 0x3ac   :  { %v18458_v5 = vadd.f32 %v2167_v43, %v2074_v24 }
 0x3ae   :  { %12087 = vmatmul.msk.bf16.gmra.mxu3 %vm901_vm2, %v25698_v30  ;;  %12111 = vmatmul.msk.bf16.gmra.mxu1 %vm901_vm2, %v18185_v17  ;;  %v25700_v17 = vld [vmem:[#allocation14_spill] sm:$0xff] }
 0x3af   :  { %v25701_v11 = vpack.c.bf16 0.0, %v25700_v17 }
 0x3b1   :  { %v1898_v61 = vpop.f32.mrf.mxu2  ;;  %v2041_v38 = vpop.f32.mrf.mxu3 }
 0x3b2   :  { %v1931_v35 = vadd.f32 %v1898_v61, %v18326_v48  ;;  %v2075_v50 = vadd.f32 %v2041_v38, %v1930_v55 }
 0x3b3   :  { %v2172_v32 = vpop.f32.mrf.mxu1 }
 0x3b4   :  { %v18465_v8 = vadd.f32 %v2170_v36, %v2075_v50  ;;  %v25704_v50 = vld [vmem:[#allocation33_spill] sm:$0xff] }
 0x3b6   :  { %12064 = vmatmul.msk.bf16.gmra.mxu2 %vm901_vm2, %v25699_v37 }
 0x3b9   :  { %v1901_v16 = vpop.f32.mrf.mxu2  ;;  %v2043_v21 = vpop.f32.mrf.mxu3 }
 0x3ba   :  { %v1932_v9 = vadd.f32 %v1901_v16, %v18333_v33  ;;  %v2076_v0 = vadd.f32 %v2043_v21, %v1931_v35  ;;  %v25702_v33 = vld [vmem:[#allocation31_spill] sm:$0xff] }
 0x3bb   :  { %v2175_v13 = vpop.f32.mrf.mxu1 }
 0x3bc   :  { %v18470_v56 = vadd.f32 %v2172_v32, %v2076_v0  ;;  %v16376_v0 = vld [vmem:[%s25574_s3 + $0x1d8] sm:$0xff] }
 0x3bd   :  { %2896 = vmatpush.bf16.msra.mxu3 %v16376_v0  ;;  %v2368_v0 = vpack.c.bf16 0.0, %v25688_v25 }
 0x3be   :  { %12088 = vmatmul.msk.bf16.gmra.mxu3 %vm901_vm2, %v25701_v11  ;;  %12112 = vmatmul.msk.bf16.gmra.mxu1 %vm901_vm2, %v17765_v12  ;;  %v25703_v12 = vld [vmem:[#allocation17_spill] sm:$0xff] }
 0x3c1   :  { %v1903_v48 = vpop.f32.mrf.mxu2  ;;  %v2046_v41 = vpop.f32.mrf.mxu3 }
 0x3c2   :  { %v1933_v51 = vadd.f32 %v1903_v48, %v18338_v47  ;;  %v2077_v63 = vadd.f32 %v2046_v41, %v1932_v9  ;;  %v16370_v9 = vld [vmem:[%s25574_s3 + $0x1a8] sm:$0xff]  ;;  %v16369_v48 = vld [vmem:[%s25574_s3 + $0x1a0] sm:$0xff]  ;;  %v16375_v41 = vld [vmem:[%s25574_s3 + $0x1d0] sm:$0xff] }
 0x3c3   :  { %v2177_v27 = vpop.f32.mrf.mxu1  ;;  %2897 = vmatpush.bf16.msra.mxu3 %v16375_v41 }
 0x3c4   :  { %v18478_v2 = vadd.f32 %v2175_v13, %v2077_v63  ;;  %v25705_v13 = vld [vmem:[#allocation18_spill] sm:$0xff] }
 0x3c5   :  { %v25706_v17 = vpack.c.bf16 0.0, %v25705_v13 }
 0x3c6   :  { %12065 = vmatmul.msk.bf16.gmra.mxu2 %vm901_vm2, %v25702_v33  ;;  %v16374_v33 = vld [vmem:[%s25574_s3 + $0x1c8] sm:$0xff] }
 0x3c7   :  { %2898 = vmatpush.bf16.msra.mxu3 %v16374_v33 }
 0x3c9   :  { %v1906_v43 = vpop.f32.mrf.mxu2  ;;  %v2048_v49 = vpop.f32.mrf.mxu3 }
 0x3ca   :  { %v1934_v6 = vadd.f32 %v1906_v43, %v18345_v53  ;;  %v2078_v28 = vadd.f32 %v2048_v49, %v1933_v51  ;;  %v16372_v53 = vld [vmem:[%s25574_s3 + $0x1b8] sm:$0xff]  ;;  %v25707_v43 = vpack.c.bf16 %v18123_v14, %v18121_v57  ;;  %v537_v49 = vpop.f32.mrf.mxu0  ;;  %v25708_v14 = vpack.c.bf16 %v25689_v7, %v25683_v10 }
 0x3cb   :  { %v2180_v55 = vpop.f32.mrf.mxu1  ;;  %2751 = vmatpush.bf16.msra.mxu2 %v16372_v53 }
 0x3cc   :  { %v18483_v24 = vadd.f32 %v2177_v27, %v2078_v28 }
 0x3ce   :  { %12089 = vmatmul.msk.bf16.gmra.mxu3 %vm901_vm2, %v25703_v12  ;;  %12113 = vmatmul.msk.bf16.gmra.mxu1 %vm901_vm2, %v18237_v34  ;;  %v16371_v34 = vld [vmem:[%s25574_s3 + $0x1b0] sm:$0xff] }
 0x3cf   :  { %2752 = vmatpush.bf16.msra.mxu2 %v16371_v34 }
 0x3d1   :  { %v1908_v47 = vpop.f32.mrf.mxu2  ;;  %v2051_v36 = vpop.f32.mrf.mxu3 }
 0x3d2   :  { %v1935_v30 = vadd.f32 %v1908_v47, %v18357_v60  ;;  %v2079_v61 = vadd.f32 %v2051_v36, %v1934_v6 }
 0x3d3   :  { %v18490_v38 = vpop.f32.mrf.mxu1  ;;  %2753 = vmatpush.bf16.msra.mxu2 %v16370_v9 }
 0x3d4   :  { %v18492_v35 = vadd.f32 %v2180_v55, %v2079_v61  ;;  %v16373_v55 = vld [vmem:[%s25574_s3 + $0x1c0] sm:$0xff] }
 0x3d5   :  { %2899 = vmatpush.bf16.msra.mxu3 %v16373_v55 }
 0x3d6   :  { %12066 = vmatmul.msk.bf16.gmra.mxu2 %vm901_vm2, %v25704_v50 }
 0x3d7   :  { %2754 = vmatpush.bf16.msra.mxu2 %v16369_v48  ;;  %v25711_v48 = vld [vmem:[#allocation4_spill] sm:$0xff] }
 0x3d9   :  { %v1911_v32 = vpop.f32.mrf.mxu2  ;;  %v2053_v37 = vpop.f32.mrf.mxu3 }
 0x3da   :  { %v1936_v60 = vadd.f32 %v1911_v32, %v18382_v59  ;;  %v18503_v16 = vadd.f32 %v2053_v37, %v1935_v30 }
 0x3db   :  { %v2185_v21 = vpop.f32.mrf.mxu1 }
 0x3de   :  { %12090 = vmatmul.msk.bf16.gmra.mxu3 %vm901_vm2, %v25706_v17  ;;  %12114 = vmatmul.msk.bf16.gmra.mxu1 %vm901_vm2, %v17785_v52 }
 0x3e1   :  { %v1913_v59 = vpop.f32.mrf.mxu2  ;;  %v2056_v11 = vpop.f32.mrf.mxu3 }
 0x3e2   :  { %v1937_v51 = vadd.f32 %v1913_v59, %v18401_v39  ;;  %v2081_v63 = vadd.f32 %v2056_v11, %v1936_v60  ;;  %v538_v39 = vadd.f32 %v18099_v18, %v537_v49  ;;  %v25709_v18 = vmov 0.0|0.0  }
 0x3e3   :  { %v18523_v27 = vpop.f32.mrf.mxu1 }
 0x3e4   :  { %v18525_v52 = vadd.f32 %v2185_v21, %v2081_v63  ;;  %v667_v30 = vmul.f32 0.2, %v538_v39  ;;  %vm603_vm1 = vcmp.ge.f32.partialorder %v538_v39, 0.0 }
 0x3e6   :  { %12067 = vmatmul.msk.bf16.gmra.mxu2 %vm901_vm2, %v25707_v43  ;;  %v731_v57 = vsel %vm603_vm1, %v538_v39, %v667_v30 }
 0x3e7   :  { %v2223_v37 = vpack.c.bf16 %v731_v57, %v18415_v62 }
 0x3e9   :  { %v1916_v6 = vpop.f32.mrf.mxu2  ;;  %v2058_v28 = vpop.f32.mrf.mxu3 }
 0x3ea   :  { %v1938_v12 = vadd.f32 %v1916_v6, %v18410_v46  ;;  %v18539_v47 = vadd.f32 %v2058_v28, %v1937_v51 }
 0x3eb   :  { %v2190_v36 = vpop.f32.mrf.mxu1 }
 0x3ee   :  { %12091 = vmatmul.msk.bf16.gmra.mxu3 %vm901_vm2, %v25708_v14  ;;  %2640 = vmatmul.bf16.gmra.mxu1 %v25709_v18 }
 0x3f1   :  { %v1918_v61 = vpop.f32.mrf.mxu2  ;;  %v2061_v53 = vpop.f32.mrf.mxu3 }
 0x3f2   :  { %v1939_v50 = vadd.f32 %v1918_v61, %v18420_v23  ;;  %v2083_v32 = vadd.f32 %v2061_v53, %v1938_v12 }
 0x3f3   :  { %v18547_v46 = vpop.f32.mrf.mxu1 }
 0x3f4   :  { %v18550_v34 = vadd.f32 %v2190_v36, %v2083_v32 }
 0x3f6   :  { %12068 = vmatmul.msk.bf16.gmra.mxu2 %vm901_vm2, %v2223_v37 }
 0x3f9   :  { %v1921_v60 = vpop.f32.mrf.mxu2  ;;  %v2063_v10 = vpop.f32.mrf.mxu3 }
 0x3fa   :  { %v1940_v7 = vadd.f32 %v1921_v60, %v18428_v42  ;;  %v18554_v21 = vadd.f32 %v2063_v10, %v1939_v50 }
 0x3fb   :  { %v2195_v9 = vpop.f32.mrf.mxu1 }
 0x3fe   :  { %12092 = vmatmul.msk.bf16.gmra.mxu3 %vm901_vm2, %v2368_v0  ;;  %2645 = vmatmul.bf16.gmra.mxu1 %v25709_v18 }
 0x401   :  { %v1923_v23 = vpop.f32.mrf.mxu2  ;;  %v2066_v13 = vpop.f32.mrf.mxu3 }
 0x402   :  { %v1941_v62 = vadd.f32 %v1923_v23, %v18433_v54  ;;  %v2085_v17 = vadd.f32 %v2066_v13, %v1940_v7 }
 0x403   :  { %v18560_v59 = vpop.f32.mrf.mxu1 }
 0x404   :  { %25710 = vst [vmem:[#allocation26_spill] sm:$0xff] %v18560_v59  ;;  %v18562_v11 = vadd.f32 %v2195_v9, %v2085_v17 }
 0x406   :  { %12131 = vmatmul.msk.bf16.vlgmr.msra.gmra.mxu2 %vm901_vm2, %v25711_v48 }
 0x409   :  { %v2068_v42 = vpop.f32.mrf.mxu3  ;;  %v2289_v41 = vpop.f32.mrf.mxu2 }
 0x40a   :  { %v18566_v51 = vadd.f32 %v2068_v42, %v1941_v62  ;;  %v2329_v25 = vadd.f32 %v2289_v41, %v18440_v26 }
 0x40b   :  { %v2611_v63 = vpop.f32.mrf.mxu1 }
 0x40c   :  { %25712 = vst [vmem:[#allocation12_spill] sm:$0xff] %v18566_v51 }
 0x40e   :  { %12153 = vmatmul.msk.bf16.vlgmr.msra.gmra.mxu3 %vm901_vm2, %v17727_v20 }
 0x411   :  { %v2291_v33 = vpop.f32.mrf.mxu2  ;;  %v2434_v54 = vpop.f32.mrf.mxu3 }
 0x412   :  { %v2330_v43 = vadd.f32 %v2291_v33, %v18445_v31  ;;  %v2474_v49 = vadd.f32 %v2434_v54, %v2329_v25 }
 0x413   :  { %v18572_v39 = vpop.f32.mrf.mxu1 }
 0x414   :  { %v18574_v6 = vadd.f32 %v2611_v63, %v2474_v49 }
 0x416   :  { %12132 = vmatmul.msk.bf16.gmra.mxu2 %vm901_vm2, %v17655_v58 }
 0x419   :  { %v2294_v28 = vpop.f32.mrf.mxu2  ;;  %v2436_v55 = vpop.f32.mrf.mxu3 }
 0x41a   :  { %v2331_v26 = vadd.f32 %v2294_v28, %v18453_v19  ;;  %v18579_v12 = vadd.f32 %v2436_v55, %v2330_v43 }
 0x41b   :  { %v2616_v36 = vpop.f32.mrf.mxu1 }
 0x41e   :  { %12154 = vmatmul.msk.bf16.gmra.mxu3 %vm901_vm2, %v17736_v40 }
 0x421   :  { %v2296_v20 = vpop.f32.mrf.mxu2  ;;  %v2439_v31 = vpop.f32.mrf.mxu3 }
 0x422   :  { %v2332_v30 = vadd.f32 %v2296_v20, %v18458_v5  ;;  %v2476_v14 = vadd.f32 %v2439_v31, %v2331_v26 }
 0x423   :  { %v18588_v58 = vpop.f32.mrf.mxu1 }
 0x424   :  { %v18584_v57 = vadd.f32 %v2616_v36, %v2476_v14 }
 0x426   :  { %12133 = vmatmul.msk.bf16.gmra.mxu2 %vm901_vm2, %v17662_v4 }
 0x429   :  { %v2299_v61 = vpop.f32.mrf.mxu2  ;;  %v2441_v19 = vpop.f32.mrf.mxu3 }
 0x42a   :  { %v2333_v53 = vadd.f32 %v2299_v61, %v18465_v8  ;;  %v18591_v50 = vadd.f32 %v2441_v19, %v2332_v30 }
 0x42b   :  { %v2621_v60 = vpop.f32.mrf.mxu1 }
 0x42e   :  { %12155 = vmatmul.msk.bf16.gmra.mxu3 %vm901_vm2, %v17758_v1 }
 0x431   :  { %v2301_v40 = vpop.f32.mrf.mxu2  ;;  %v2444_v32 = vpop.f32.mrf.mxu3 }
 0x432   :  { %v2334_v5 = vadd.f32 %v2301_v40, %v18470_v56  ;;  %v2478_v37 = vadd.f32 %v2444_v32, %v2333_v53 }
 0x434   :  { %v18596_v10 = vadd.f32 %v2621_v60, %v2478_v37  ;;  %v2623_v37 = vpop.f32.mrf.mxu1 }
 0x436   :  { %12134 = vmatmul.msk.bf16.gmra.mxu2 %vm901_vm2, %v17674_v15 }
 0x439   :  { %v2304_v4 = vpop.f32.mrf.mxu2  ;;  %v2446_v7 = vpop.f32.mrf.mxu3 }
 0x43a   :  { %v2335_v8 = vadd.f32 %v2304_v4, %v18478_v2  ;;  %v18601_v9 = vadd.f32 %v2446_v7, %v2334_v5 }
 0x43e   :  { %12156 = vmatmul.msk.bf16.gmra.mxu3 %vm901_vm2, %v17768_v22 }
 0x441   :  { %v2306_v1 = vpop.f32.mrf.mxu2  ;;  %v2449_v0 = vpop.f32.mrf.mxu3 }
 0x442   :  { %v2336_v56 = vadd.f32 %v2306_v1, %v18483_v24  ;;  %v18606_v23 = vadd.f32 %v2449_v0, %v2335_v8 }
 0x446   :  { %12135 = vmatmul.msk.bf16.gmra.mxu2 %vm901_vm2, %v17681_v29 }
 0x449   :  { %v2309_v13 = vpop.f32.mrf.mxu2  ;;  %v2451_v15 = vpop.f32.mrf.mxu3 }
 0x44a   :  { %v2337_v62 = vadd.f32 %v2309_v13, %v18492_v35  ;;  %v18611_v17 = vadd.f32 %v2451_v15, %v2336_v56  ;;  %v2626_v56 = vpop.f32.mrf.mxu1 }
 0x44e   :  { %12157 = vmatmul.msk.bf16.gmra.mxu3 %vm901_vm2, %v17779_v45 }
 0x451   :  { %v18615_v2 = vpop.f32.mrf.mxu2  ;;  %v2454_v22 = vpop.f32.mrf.mxu3 }
 0x452   :  { %v18617_v48 = vadd.f32 %v2454_v22, %v2337_v62 }
 0x456   :  { %12136 = vmatmul.msk.bf16.gmra.mxu2 %vm901_vm2, %v17693_v44 }
 0x459   :  { %v2314_v24 = vpop.f32.mrf.mxu2  ;;  %v18621_v42 = vpop.f32.mrf.mxu3 }
 0x45a   :  { %v2339_v29 = vadd.f32 %v2314_v24, %v18525_v52  ;;  %v2628_v24 = vpop.f32.mrf.mxu1 }
 0x45e   :  { %12158 = vmatmul.msk.bf16.gmra.mxu3 %vm901_vm2, %v17788_v3  ;;  %v18639_v3 = vpop.f32.mrf.mxu0 }
 0x461   :  { %v18626_v35 = vpop.f32.mrf.mxu2  ;;  %v2459_v41 = vpop.f32.mrf.mxu3 }
 0x462   :  { %v18628_v45 = vadd.f32 %v2459_v41, %v2339_v29 }
 0x466   :  { %2785 = vmatmul.bf16.gmra.mxu2 %v25709_v18  ;;  %v3064_v55 = vpop.f32.mrf.mxu0 }
 0x469   :  { %v2319_v25 = vpop.f32.mrf.mxu2  ;;  %v18631_v63 = vpop.f32.mrf.mxu3 }
 0x46a   :  { %v2341_v44 = vadd.f32 %v2319_v25, %v18550_v34 }
 0x46e   :  { %2930 = vmatmul.bf16.gmra.mxu3 %v25709_v18  ;;  %v3067_v30 = vpop.f32.mrf.mxu0 }
 0x471   :  { %v18635_v33 = vpop.f32.mrf.mxu2  ;;  %v2464_v52 = vpop.f32.mrf.mxu3 }
 0x472   :  { %v18637_v54 = vadd.f32 %v2464_v52, %v2341_v44  ;;  %v2631_v44 = vpop.f32.mrf.mxu1 }
 0x474   :  { %25713 = vst [vmem:[#allocation5_spill] sm:$0xff] %v18637_v54 }
 0x476   :  { %2790 = vmatmul.bf16.gmra.mxu2 %v25709_v18  ;;  %v3069_v40 = vpop.f32.mrf.mxu0 }
 0x479   :  { %v2324_v43 = vpop.f32.mrf.mxu2  ;;  %v18642_v49 = vpop.f32.mrf.mxu3 }
 0x47a   :  { %25714 = vst [vmem:[#allocation28_spill] sm:$0xff] %v18642_v49  ;;  %v2343_v28 = vadd.f32 %v2324_v43, %v18562_v11 }
 0x47e   :  { %2935 = vmatmul.bf16.gmra.mxu3 %v25709_v18  ;;  %v3072_v5 = vpop.f32.mrf.mxu0 }
 0x481   :  { %v18646_v34 = vpop.f32.mrf.mxu2  ;;  %v2469_v26 = vpop.f32.mrf.mxu3 }
 0x482   :  { %25715 = vst [vmem:[#allocation15_spill] sm:$0xff] %v18646_v34  ;;  %v18648_v36 = vadd.f32 %v2469_v26, %v2343_v28  ;;  %v2633_v26 = vpop.f32.mrf.mxu1 }
 0x484   :  { %25716 = vst [vmem:[#allocation6_spill] sm:$0xff] %v18648_v36 }
 0x486   :  { %v18654_v8 = vpop.f32.mrf.mxu0 }
 0x489   :  { %v18650_v20 = vpop.f32.mrf.mxu3  ;;  %v2756_v31 = vpop.f32.mrf.mxu2 }
 0x48a   :  { %25717 = vst [vmem:[#allocation30_spill] sm:$0xff] %v18650_v20  ;;  %v2796_v14 = vadd.f32 %v2756_v31, %v18574_v6  ;;  %v2652_v20 = vadd.f32 %v18572_v39, %v18579_v12  ;;  %v2209_v39 = vadd.f32 %v18490_v38, %v18503_v16 }
 0x48e   :  { %v18657_v62 = vpop.f32.mrf.mxu0 }
 0x491   :  { %v2758_v61 = vpop.f32.mrf.mxu2  ;;  %v2901_v19 = vpop.f32.mrf.mxu3 }
 0x492   :  { %v2941_v53 = vadd.f32 %v2901_v19, %v2796_v14  ;;  %v2797_v34 = vadd.f32 %v2758_v61, %v2652_v20  ;;  %v2657_v20 = vadd.f32 %v2626_v56, %v18606_v23 }
 0x494   :  { %v3102_v12 = vadd.f32 %v18639_v3, %v2941_v53 }
 0x496   :  { %v18661_v25 = vpop.f32.mrf.mxu0 }
 0x499   :  { %v2761_v32 = vpop.f32.mrf.mxu2  ;;  %v2903_v11 = vpop.f32.mrf.mxu3 }
 0x49a   :  { %v2798_v18 = vadd.f32 %v2761_v32, %v18584_v57  ;;  %v2942_v51 = vadd.f32 %v2903_v11, %v2797_v34  ;;  %v18690_v34 = vld [vmem:[%s25575_s4] ss:$0 sm:$0xff] }
 0x49b   :  { %v18704_v23 = vadd.f32 %v18690_v34, %v3102_v12 }
 0x49c   :  { %v3103_v49 = vadd.f32 %v3064_v55, %v2942_v51  ;;  %v2338_v51 = vadd.f32 %v18615_v2, %v2209_v39  ;;  %v2658_v55 = vadd.f32 %v2628_v24, %v18611_v17 }
 0x49e   :  { %v18663_v28 = vpop.f32.mrf.mxu0  ;;  %v2483_v53 = vadd.f32 %v18621_v42, %v2338_v51 }
 0x49f   :  { %25718 = vst [vmem:[#allocation16_spill] sm:$0xff] %v18663_v28 }
 0x4a1   :  { %v2763_v60 = vpop.f32.mrf.mxu2  ;;  %v2906_v4 = vpop.f32.mrf.mxu3 }
 0x4a2   :  { %v2943_v7 = vadd.f32 %v2906_v4, %v2798_v18  ;;  %v2636_v18 = vpop.f32.mrf.mxu1 }
 0x4a6   :  { %v18665_v14 = vpop.f32.mrf.mxu0 }
 0x4a7   :  { %25719 = vst [vmem:[#allocation7_spill] sm:$0xff] %v18665_v14  ;;  %v2654_v14 = vadd.f32 %v18588_v58, %v18591_v50  ;;  %v3104_v58 = vadd.f32 %v3067_v30, %v2943_v7  ;;  %v2211_v30 = vadd.f32 %v18523_v27, %v18539_v47 }
 0x4a9   :  { %v2766_v1 = vpop.f32.mrf.mxu2  ;;  %v2908_v0 = vpop.f32.mrf.mxu3  ;;  %v2799_v54 = vadd.f32 %v2763_v60, %v2654_v14  ;;  %v18707_v11 = vadd.f32 %v18690_v34, %v3104_v58  ;;  %v2340_v7 = vadd.f32 %v18626_v35, %v2211_v30 }
 0x4aa   :  { %v2800_v6 = vadd.f32 %v2766_v1, %v18596_v10 }
 0x4ab   :  { %v2485_v56 = vadd.f32 %v18631_v63, %v2340_v7 }
 0x4ae   :  { %v18667_v1 = vpop.f32.mrf.mxu0 }
 0x4af   :  { %25720 = vst [vmem:[#allocation32_spill] sm:$0xff] %v18667_v1 }
 0x4b1   :  { %v2768_v13 = vpop.f32.mrf.mxu2  ;;  %v2911_v15 = vpop.f32.mrf.mxu3 }
 0x4b2   :  { %v2945_v22 = vadd.f32 %v2911_v15, %v2800_v6  ;;  %v2638_v6 = vpop.f32.mrf.mxu1 }
 0x4b3   :  { %v2662_v14 = vadd.f32 %v2638_v6, %v2485_v56 }
 0x4b4   :  { %v18659_v29 = vadd.f32 %v3072_v5, %v2945_v22 }
 0x4b6   :  { %v18675_v36 = vpop.f32.mrf.mxu0  ;;  %v18723_v35 = vadd.f32 %v18690_v34, %v18659_v29 }
 0x4b9   :  { %v2771_v57 = vpop.f32.mrf.mxu2  ;;  %v2913_v41 = vpop.f32.mrf.mxu3 }
 0x4ba   :  { %v2641_v59 = vpop.f32.mrf.mxu1  ;;  %v2802_v16 = vadd.f32 %v2771_v57, %v2657_v20  ;;  %v25728_v20 = vld [vmem:[#allocation7_spill] sm:$0xff] }
 0x4be   :  { %v18693_v61 = vpop.f32.mrf.mxu0 }
 0x4c1   :  { %v2773_v52 = vpop.f32.mrf.mxu2  ;;  %v2916_v43 = vpop.f32.mrf.mxu3 }
 0x4c2   :  { %v2803_v2 = vadd.f32 %v2773_v52, %v2658_v55  ;;  %v2661_v52 = vadd.f32 %v2636_v18, %v18628_v45  ;;  %v25724_v45 = vld [vmem:[#allocation16_spill] sm:$0xff]  ;;  %v25730_v55 = vld [vmem:[#allocation26_spill] sm:$0xff] }
 0x4c9   :  { %v2776_v31 = vpop.f32.mrf.mxu2  ;;  %v2918_v10 = vpop.f32.mrf.mxu3 }
 0x4d1   :  { %v2778_v19 = vpop.f32.mrf.mxu2  ;;  %v2921_v32 = vpop.f32.mrf.mxu3 }
 0x4d9   :  { %v2781_v4 = vpop.f32.mrf.mxu2  ;;  %v2923_v5 = vpop.f32.mrf.mxu3 }
 0x4da   :  { %v2806_v29 = vadd.f32 %v2781_v4, %v2661_v52  ;;  %v17489_v52 = vmov 128.0  }
 0x4db   :  { %17459 = vrcp.f32 %v17489_v52 }
 0x4e1   :  { %v18669_v15 = vpop.f32.mrf.mxu2  ;;  %v18671_v22 = vpop.f32.mrf.mxu3 }
 0x4e2   :  { %25721 = vst [vmem:[#allocation19_spill] sm:$0xff] %v18669_v15  ;;  %v2944_v15 = vadd.f32 %v2908_v0, %v2799_v54  ;;  %v2643_v54 = vpop.f32.mrf.mxu1  ;;  %v2948_v0 = vadd.f32 %v2918_v10, %v2803_v2  ;;  %v25731_v2 = vld [vmem:[#allocation6_spill] sm:$0xff] }
 0x4e3   :  { %25722 = vst [vmem:[#allocation8_spill] sm:$0xff] %v18671_v22  ;;  %v2656_v22 = vadd.f32 %v2623_v37, %v18601_v9  ;;  %v18697_v9 = vadd.f32 %v18690_v34, %v3103_v49  ;;  %v2947_v49 = vadd.f32 %v2916_v43, %v2802_v16  ;;  %v2659_v37 = vadd.f32 %v2631_v44, %v18617_v48 }
 0x4e4   :  { %v3105_v38 = vadd.f32 %v3069_v40, %v2944_v15  ;;  %v2660_v48 = vadd.f32 %v2633_v26, %v2483_v53  ;;  %v25723_v26 = vld [vmem:[#allocation28_spill] sm:$0xff]  ;;  %v25725_v15 = vld [vmem:[#allocation5_spill] sm:$0xff] }
 0x4e5   :  { %v2801_v50 = vadd.f32 %v2768_v13, %v2656_v22  ;;  %v3138_v17 = vadd.f32 %v18697_v9, %v18704_v23  ;;  %v2804_v47 = vadd.f32 %v2776_v31, %v2659_v37  ;;  %v2213_v13 = vadd.f32 %v18547_v46, %v18554_v21  ;;  %v3094_v21 = vpop.f32.mrf.mxu0  ;;  %v25732_v37 = vld [vmem:[#allocation32_spill] sm:$0xff] }
 0x4e6   :  { %v18714_v42 = vadd.f32 %v18690_v34, %v3105_v38  ;;  %v3108_v57 = vadd.f32 %v18657_v62, %v2947_v49  ;;  %v3109_v46 = vadd.f32 %v18661_v25, %v2948_v0  ;;  %v2663_v22 = vadd.f32 %v2641_v59, %v25725_v15 }
 0x4e7   :  { %v2946_v3 = vadd.f32 %v2913_v41, %v2801_v50  ;;  %v3139_v24 = vadd.f32 %v3138_v17, %v18707_v11  ;;  %v2949_v41 = vadd.f32 %v2921_v32, %v2804_v47  ;;  %v2342_v44 = vadd.f32 %v18635_v33, %v2213_v13 }
 0x4e8   :  { %v18736_v33 = vadd.f32 %v18690_v34, %v3108_v57  ;;  %v18744_v4 = vadd.f32 %v18690_v34, %v3109_v46 }
 0x4e9   :  { %v18679_v28 = vpop.f32.mrf.mxu2  ;;  %v18681_v1 = vpop.f32.mrf.mxu3  ;;  %v3107_v27 = vadd.f32 %v18654_v8, %v2946_v3  ;;  %v2805_v8 = vadd.f32 %v2778_v19, %v2660_v48  ;;  %v3140_v63 = vadd.f32 %v3139_v24, %v18714_v42  ;;  %v2487_v31 = vadd.f32 %v25723_v26, %v2342_v44  ;;  %v25726_v39 = vld [vmem:[#allocation19_spill] sm:$0xff]  ;;  %v25729_v3 = vld [vmem:[#allocation12_spill] sm:$0xff]  ;;  %v25734_v48 = vld [vmem:[#allocation30_spill] sm:$0xff] }
 0x4ea   :  { %v2646_v62 = vpop.f32.mrf.mxu1  ;;  %v3110_v19 = vadd.f32 %v25724_v45, %v2949_v41  ;;  %v2807_v12 = vadd.f32 %v25726_v39, %v2662_v14  ;;  %v25727_v25 = vld [vmem:[#allocation8_spill] sm:$0xff]  ;;  %v2808_v38 = vadd.f32 %v18679_v28, %v2663_v22  ;;  %v2215_v59 = vadd.f32 %v25730_v55, %v25729_v3 }
 0x4eb   :  { %v18730_v43 = vadd.f32 %v18690_v34, %v3107_v27  ;;  %v2950_v10 = vadd.f32 %v2923_v5, %v2805_v8  ;;  %v3141_v32 = vadd.f32 %v3140_v63, %v18723_v35  ;;  %v2951_v58 = vadd.f32 %v25727_v25, %v2806_v29  ;;  %v25733_v27 = vld [vmem:[#allocation15_spill] sm:$0xff] }
 0x4ec   :  { %v2664_v6 = vadd.f32 %v2643_v54, %v2487_v31  ;;  %v2952_v16 = vadd.f32 %v18681_v1, %v2807_v12  ;;  %v18753_v30 = vadd.f32 %v18690_v34, %v3110_v19  ;;  %v2665_v49 = vadd.f32 %v2646_v62, %v25731_v2 }
 0x4ed   :  { %v3142_v50 = vadd.f32 %v3141_v32, %v18730_v43  ;;  %v3111_v51 = vadd.f32 %v25728_v20, %v2950_v10  ;;  %v3112_v7 = vadd.f32 %v25732_v37, %v2951_v58  ;;  %v2344_v47 = vadd.f32 %v25733_v27, %v2215_v59  ;;  %v3097_v41 = vpop.f32.mrf.mxu0  ;;  %v17460_v32 = vpop.eup %17459 }
 0x4ee   :  { %v3113_v0 = vadd.f32 %v18675_v36, %v2952_v16  ;;  %v3160_v12 = vmul.f32 128.0, %v17460_v32  ;;  %vm3164_vm2 = vweird.f32 %v17460_v32 }
 0x4ef   :  { %v3143_v53 = vadd.f32 %v3142_v50, %v18736_v33  ;;  %v18760_v1 = vadd.f32 %v18690_v34, %v3111_v51  ;;  %v2489_v24 = vadd.f32 %v25734_v48, %v2344_v47  ;;  %v12919_v48 = vld [vmem:[%s25576_s7 + $0x5c0] sm:$0xf] }
 0x4f0   :  { %v18771_v36 = vadd.f32 %v18690_v34, %v3113_v0  ;;  %v12663_v0 = vld [vmem:[%s25576_s7 + $0x3c0] sm:$0xf] }
 0x4f1   :  { %v2788_v40 = vpop.f32.mrf.mxu2  ;;  %v2931_v60 = vpop.f32.mrf.mxu3  ;;  %v3144_v28 = vadd.f32 %v3143_v53, %v18744_v4 }
 0x4f2   :  { %v2809_v17 = vadd.f32 %v2788_v40, %v2664_v6  ;;  %v2953_v54 = vadd.f32 %v2931_v60, %v2808_v38  ;;  %v18766_v40 = vadd.f32 %v18690_v34, %v3112_v7  ;;  %v2648_v63 = vpop.f32.mrf.mxu1  ;;  %v3161_v6 = vsub.f32 1.0, %v3160_v12 }
 0x4f3   :  { %v3145_v57 = vadd.f32 %v3144_v28, %v18753_v30  ;;  %v2666_v29 = vadd.f32 %v2648_v63, %v2489_v24  ;;  %v16441_v28 = vld [vmem:[%s25576_s7 + $0x1dc] sm:$0xf0] }
 0x4f4   :  { %v3114_v60 = vadd.f32 %v18693_v61, %v2953_v54  ;;  %v3162_v38 = vmul.f32 %v17460_v32, %v3161_v6  ;;  %v12407_v54 = vld [vmem:[%s25576_s7 + $0x1c0] sm:$0xf] }
 0x4f5   :  { %v3146_v46 = vadd.f32 %v3145_v57, %v18760_v1  ;;  %v3099_v39 = vpop.f32.mrf.mxu0  ;;  %v16569_v24 = vld [vmem:[%s25576_s7 + $0x5dc] sm:$0xf0] }
 0x4f6   :  { %v18775_v14 = vadd.f32 %v18690_v34, %v3114_v60  ;;  %v3163_v55 = vadd.f32 %v17460_v32, %v3162_v38  ;;  %v13175_v57 = vld [vmem:[%s25576_s7 + $0x7c0] sm:$0xf] }
 0x4f7   :  { %v3147_v10 = vadd.f32 %v3146_v46, %v18766_v40  ;;  %v16433_v60 = vld [vmem:[%s25576_s7 + $0x19c] sm:$0xf0] }
 0x4f8   :  { %v18791_v2 = vsel %vm3164_vm2, %v17460_v32, %v3163_v55  ;;  %v12631_v63 = vld [vmem:[%s25576_s7 + $0x380] sm:$0xf] }
 0x4f9   :  { %v2933_v18 = vpop.f32.mrf.mxu3  ;;  %v2791_v5 = vpop.f32.mrf.mxu2  ;;  %v3148_v61 = vadd.f32 %v3147_v10, %v18771_v36  ;;  %v16497_v46 = vld [vmem:[%s25576_s7 + $0x39c] sm:$0xf0] }
 0x4fa   :  { %v2810_v56 = vadd.f32 %v2791_v5, %v2665_v49  ;;  %v2954_v13 = vadd.f32 %v2933_v18, %v2809_v17  ;;  %v16561_v32 = vld [vmem:[%s25576_s7 + $0x59c] sm:$0xf0] }
 0x4fb   :  { %v3149_v15 = vadd.f32 %v3148_v61, %v18775_v14  ;;  %v13143_v61 = vld [vmem:[%s25576_s7 + $0x780] sm:$0xf] }
 0x4fc   :  { %v3115_v26 = vadd.f32 %v3094_v21, %v2954_v13  ;;  %v16489_v38 = vld [vmem:[%s25576_s7 + $0x35c] sm:$0xf0] }
 0x4fe   :  { %v18779_v45 = vadd.f32 %v18690_v34, %v3115_v26  ;;  %v12887_v26 = vld [vmem:[%s25576_s7 + $0x580] sm:$0xf] }
 0x4ff   :  { %v12888_v6 = vor.u32 %v16561_v32, %v12887_v26  ;;  %v16409_v32 = vld [vmem:[%s25576_s7 + $0xdc] sm:$0xf0] }
 0x500   :  { %v3150_v25 = vadd.f32 %v3149_v15, %v18779_v45 }
 0x501   :  { %v2936_v44 = vpop.f32.mrf.mxu3  ;;  %v2793_v31 = vpop.f32.mrf.mxu2 }
 0x502   :  { %v2955_v8 = vadd.f32 %v2936_v44, %v2810_v56  ;;  %v2811_v19 = vadd.f32 %v2793_v31, %v2666_v29  ;;  %v16505_v56 = vld [vmem:[%s25576_s7 + $0x3dc] sm:$0xf0]  ;;  %v12408_v29 = vor.u32 %v16441_v28, %v12407_v54 }
 0x503   :  { %v12375_v44 = vld [vmem:[%s25576_s7 + $0x180] sm:$0xf]  ;;  %v12664_v10 = vor.u32 %v16505_v56, %v12663_v0 }
 0x504   :  { %v3116_v62 = vadd.f32 %v3097_v41, %v2955_v8  ;;  %v16633_v41 = vld [vmem:[%s25576_s7 + $0x7dc] sm:$0xf0]  ;;  %9581 = vmatpush.bf16.msrb.mxu1 %v12408_v29  ;;  %v12376_v12 = vor.u32 %v16433_v60, %v12375_v44 }
 0x505   :  { %9594 = vmatpush.bf16.msrb.mxu2 %v12664_v10  ;;  %v12311_v28 = vld [vmem:[%s25576_s7 + $0x100] sm:$0xf] }
 0x506   :  { %v18783_v21 = vadd.f32 %v18690_v34, %v3116_v62  ;;  %v12920_v62 = vor.u32 %v16569_v24, %v12919_v48  ;;  %v16417_v0 = vld [vmem:[%s25576_s7 + $0x11c] sm:$0xf0] }
 0x507   :  { %v12567_v48 = vld [vmem:[%s25576_s7 + $0x300] sm:$0xf]  ;;  %v12312_v29 = vor.u32 %v16417_v0, %v12311_v28 }
 0x508   :  { %v3151_v50 = vadd.f32 %v3150_v25, %v18783_v21  ;;  %v12632_v25 = vor.u32 %v16497_v46, %v12631_v63  ;;  %9607 = vmatpush.bf16.msrb.mxu3 %v12920_v62  ;;  %9582 = vmatpush.bf16.msrb.mxu1 %v12376_v12  ;;  %v16481_v24 = vld [vmem:[%s25576_s7 + $0x31c] sm:$0xf0] }
 0x509   :  { %v2938_v18 = vpop.f32.mrf.mxu3  ;;  %v16609_v63 = vld [vmem:[%s25576_s7 + $0x71c] sm:$0xf0]  ;;  %v12568_v10 = vor.u32 %v16481_v24, %v12567_v48 }
 0x50a   :  { %v2956_v22 = vadd.f32 %v2938_v18, %v2811_v19  ;;  %v16625_v19 = vld [vmem:[%s25576_s7 + $0x79c] sm:$0xf0]  ;;  %9595 = vmatpush.bf16.msrb.mxu2 %v12632_v25 }
 0x50b   :  { %v12279_v62 = vld [vmem:[%s25576_s7 + $0xc0] sm:$0xf] }
 0x50c   :  { %v3117_v58 = vadd.f32 %v3099_v39, %v2956_v22  ;;  %v13176_v22 = vor.u32 %v16633_v41, %v13175_v57  ;;  %9608 = vmatpush.bf16.msrb.mxu3 %v12888_v6  ;;  %v12823_v57 = vld [vmem:[%s25576_s7 + $0x500] sm:$0xf] }
 0x50d   :  { %v16601_v6 = vld [vmem:[%s25576_s7 + $0x6dc] sm:$0xf0] }
 0x50e   :  { %v18788_v5 = vadd.f32 %v18690_v34, %v3117_v58  ;;  %v12343_v58 = vld [vmem:[%s25576_s7 + $0x140] sm:$0xf]  ;;  %9620 = vmatpush.bf16.msra.mxu0 %v13176_v22 }
 0x50f   :  { %v12791_v22 = vld [vmem:[%s25576_s7 + $0x4c0] sm:$0xf] }
 0x510   :  { %v3152_v20 = vadd.f32 %v3151_v50, %v18788_v5  ;;  %v16425_v50 = vld [vmem:[%s25576_s7 + $0x15c] sm:$0xf0] }
 0x511   :  { %v16529_v28 = vld [vmem:[%s25576_s7 + $0x49c] sm:$0xf0] }
 0x512   :  { %v3153_v51 = vrot.slane %v3152_v20, 4  ;;  %v13015_v0 = vld [vmem:[%s25576_s7 + $0x680] sm:$0xf] }
 0x514   :  { %v3154_v16 = vadd.f32 %v3153_v51, %v3152_v20  ;;  %v13144_v20 = vor.u32 %v16625_v19, %v13143_v61  ;;  %v12599_v51 = vld [vmem:[%s25576_s7 + $0x340] sm:$0xf] }
 0x516   :  { %v3155_v3 = vrot.slane %v3154_v16, 2  ;;  %9621 = vmatpush.bf16.msra.mxu0 %v13144_v20 }
 0x518   :  { %v3156_v59 = vadd.f32 %v3155_v3, %v3154_v16  ;;  %v12855_v16 = vld [vmem:[%s25576_s7 + $0x540] sm:$0xf] }
 0x51a   :  { %v3157_v53 = vrot.slane %v3156_v59, 1 }
 0x51c   :  { %v3158_v49 = vadd.f32 %v3157_v53, %v3156_v59  ;;  %v16553_v53 = vld [vmem:[%s25576_s7 + $0x55c] sm:$0xf0] }
 0x51d   :  { %v12856_v56 = vor.u32 %v16553_v53, %v12855_v16  ;;  %v12280_v16 = vor.u32 %v16409_v32, %v12279_v62  ;;  %v16521_v62 = vld [vmem:[%s25576_s7 + $0x45c] sm:$0xf0] }
 0x51e   :  { %v18794_v37 = vmul.f32 %v18791_v2, %v3158_v49  ;;  %v13111_v49 = vld [vmem:[%s25576_s7 + $0x740] sm:$0xf] }
 0x51f   :  { %9609 = vmatpush.bf16.msrb.mxu3 %v12856_v56  ;;  %v16593_v56 = vld [vmem:[%s25576_s7 + $0x69c] sm:$0xf0] }
 0x520   :  { %v3167_v34 = vsub.f32 %v18704_v23, %v18794_v37  ;;  %v3168_v7 = vsub.f32 %v18697_v9, %v18794_v37  ;;  %v3169_v17 = vsub.f32 %v18707_v11, %v18794_v37  ;;  %v3170_v13 = vsub.f32 %v18714_v42, %v18794_v37  ;;  %v12983_v32 = vld [vmem:[%s25576_s7 + $0x640] sm:$0xf] }
 0x521   :  { %v3171_v8 = vsub.f32 %v18723_v35, %v18794_v37  ;;  %v3172_v18 = vsub.f32 %v18730_v43, %v18794_v37  ;;  %v3173_v3 = vsub.f32 %v18736_v33, %v18794_v37  ;;  %v3175_v41 = vsub.f32 %v18753_v30, %v18794_v37 }
 0x522   :  { %v3183_v27 = vmul.f32 %v3167_v34, %v3167_v34  ;;  %v3184_v47 = vmul.f32 %v3168_v7, %v3168_v7  ;;  %v3185_v52 = vmul.f32 %v3169_v17, %v3169_v17  ;;  %v3186_v15 = vmul.f32 %v3170_v13, %v3170_v13  ;;  %v16617_v34 = vld [vmem:[%s25576_s7 + $0x75c] sm:$0xf0] }
 0x523   :  { %v3187_v55 = vmul.f32 %v3171_v8, %v3171_v8  ;;  %v3174_v7 = vsub.f32 %v18744_v4, %v18794_v37  ;;  %v3188_v17 = vmul.f32 %v3172_v18, %v3172_v18  ;;  %v13112_v13 = vor.u32 %v16617_v34, %v13111_v49  ;;  %v16545_v8 = vld [vmem:[%s25576_s7 + $0x51c] sm:$0xf0] }
 0x524   :  { %v3199_v31 = vadd.f32 %v3184_v47, %v3183_v27  ;;  %v12344_v27 = vor.u32 %v16425_v50, %v12343_v58  ;;  %v12600_v47 = vor.u32 %v16489_v38, %v12599_v51  ;;  %v3189_v44 = vmul.f32 %v3173_v3, %v3173_v3  ;;  %v12535_v18 = vld [vmem:[%s25576_s7 + $0x2c0] sm:$0xf] }
 0x525   :  { %v3176_v46 = vsub.f32 %v18760_v1, %v18794_v37  ;;  %v3190_v26 = vmul.f32 %v3174_v7, %v3174_v7  ;;  %9622 = vmatpush.bf16.msra.mxu0 %v13112_v13  ;;  %v12824_v61 = vor.u32 %v16545_v8, %v12823_v57  ;;  %v3191_v12 = vmul.f32 %v3175_v41, %v3175_v41  ;;  %v16537_v58 = vld [vmem:[%s25576_s7 + $0x4dc] sm:$0xf0] }
 0x526   :  { %v3200_v39 = vadd.f32 %v3199_v31, %v3185_v52  ;;  %v13079_v52 = vld [vmem:[%s25576_s7 + $0x700] sm:$0xf]  ;;  %9583 = vmatpush.bf16.msrb.mxu1 %v12344_v27  ;;  %9596 = vmatpush.bf16.msrb.mxu2 %v12600_v47  ;;  %v3178_v20 = vsub.f32 %v18771_v36, %v18794_v37  ;;  %v12792_v53 = vor.u32 %v16537_v58, %v12791_v22 }
 0x527   :  { %v13080_v19 = vor.u32 %v16609_v63, %v13079_v52  ;;  %v13047_v50 = vld [vmem:[%s25576_s7 + $0x6c0] sm:$0xf]  ;;  %v3192_v51 = vmul.f32 %v3176_v46, %v3176_v46  ;;  %9610 = vmatpush.bf16.msrb.mxu3 %v12824_v61  ;;  %v3180_v13 = vsub.f32 %v18779_v45, %v18794_v37  ;;  %v13016_v52 = vor.u32 %v16593_v56, %v13015_v0 }
 0x528   :  { %v3201_v59 = vadd.f32 %v3200_v39, %v3186_v15  ;;  %v16473_v15 = vld [vmem:[%s25576_s7 + $0x2dc] sm:$0xf0]  ;;  %v3177_v39 = vsub.f32 %v18766_v40, %v18794_v37  ;;  %v13048_v49 = vor.u32 %v16601_v6, %v13047_v50  ;;  %v3194_v48 = vmul.f32 %v3178_v20, %v3178_v20 }
 0x529   :  { %v12536_v3 = vor.u32 %v16473_v15, %v12535_v18  ;;  %9623 = vmatpush.bf16.msra.mxu0 %v13080_v19  ;;  %v12503_v34 = vld [vmem:[%s25576_s7 + $0x280] sm:$0xf]  ;;  %v3182_v19 = vsub.f32 %v18788_v5, %v18794_v37  ;;  %v3196_v18 = vmul.f32 %v3180_v13, %v3180_v13 }
 0x52a   :  { %v3202_v54 = vadd.f32 %v3201_v59, %v3187_v55  ;;  %9584 = vmatpush.bf16.msrb.mxu1 %v12312_v29  ;;  %9597 = vmatpush.bf16.msrb.mxu2 %v12568_v10  ;;  %v12247_v55 = vld [vmem:[%s25576_s7 + $0x80] sm:$0xf]  ;;  %v3193_v27 = vmul.f32 %v3177_v39, %v3177_v39 }
 0x52b   :  { %v16401_v59 = vld [vmem:[%s25576_s7 + $0x9c] sm:$0xf0]  ;;  %9611 = vmatpush.bf16.msrb.mxu3 %v12792_v53 }
 0x52c   :  { %v3203_v60 = vadd.f32 %v3202_v54, %v3188_v17  ;;  %v16465_v7 = vld [vmem:[%s25576_s7 + $0x29c] sm:$0xf0]  ;;  %v3179_v54 = vsub.f32 %v18775_v14, %v18794_v37  ;;  %v12248_v57 = vor.u32 %v16401_v59, %v12247_v55 }
 0x52d   :  { %v12759_v17 = vld [vmem:[%s25576_s7 + $0x480] sm:$0xf]  ;;  %v12504_v41 = vor.u32 %v16465_v7, %v12503_v34  ;;  %9624 = vmatpush.bf16.msra.mxu0 %v13048_v49  ;;  %v3198_v34 = vmul.f32 %v3182_v19, %v3182_v19 }
 0x52e   :  { %v3204_v31 = vadd.f32 %v3203_v60, %v3189_v44  ;;  %9585 = vmatpush.bf16.msrb.mxu1 %v12280_v16  ;;  %9598 = vmatpush.bf16.msrb.mxu2 %v12536_v3  ;;  %v12215_v44 = vld [vmem:[%s25576_s7 + $0x40] sm:$0xf]  ;;  %v12760_v8 = vor.u32 %v16529_v28, %v12759_v17  ;;  %v3195_v29 = vmul.f32 %v3179_v54, %v3179_v54 }
 0x52f   :  { %v16393_v60 = vld [vmem:[%s25576_s7 + $0x5c] sm:$0xf0] }
 0x530   :  { %v3205_v25 = vadd.f32 %v3204_v31, %v3190_v26  ;;  %v12471_v63 = vld [vmem:[%s25576_s7 + $0x240] sm:$0xf]  ;;  %v3181_v31 = vsub.f32 %v18783_v21, %v18794_v37  ;;  %v12216_v39 = vor.u32 %v16393_v60, %v12215_v44  ;;  %9612 = vmatpush.bf16.msrb.mxu3 %v12760_v8 }
 0x531   :  { %v16457_v46 = vld [vmem:[%s25576_s7 + $0x25c] sm:$0xf0]  ;;  %9625 = vmatpush.bf16.msra.mxu0 %v13016_v52 }
 0x532   :  { %v3206_v38 = vadd.f32 %v3205_v25, %v3191_v12  ;;  %v12727_v26 = vld [vmem:[%s25576_s7 + $0x440] sm:$0xf]  ;;  %9586 = vmatpush.bf16.msrb.mxu1 %v12248_v57  ;;  %9599 = vmatpush.bf16.msrb.mxu2 %v12504_v41  ;;  %v12472_v12 = vor.u32 %v16457_v46, %v12471_v63  ;;  %v3197_v3 = vmul.f32 %v3181_v31, %v3181_v31 }
 0x533   :  { %v16585_v61 = vld [vmem:[%s25576_s7 + $0x65c] sm:$0xf0]  ;;  %v12728_v6 = vor.u32 %v16521_v62, %v12727_v26 }
 0x534   :  { %v3207_v47 = vadd.f32 %v3206_v38, %v3192_v51  ;;  %v12183_v15 = vld [vmem:[%s25576_s7] sm:$0xf]  ;;  %v12984_v20 = vor.u32 %v16585_v61, %v12983_v32 }
 0x535   :  { %v16385_v25 = vld [vmem:[%s25576_s7 + $0x1c] sm:$0xf0]  ;;  %9613 = vmatpush.bf16.msrb.mxu3 %v12728_v6 }
 0x536   :  { %v3208_v24 = vadd.f32 %v3207_v47, %v3193_v27  ;;  %v12439_v58 = vld [vmem:[%s25576_s7 + $0x200] sm:$0xf]  ;;  %9587 = vmatpush.bf16.msrb.mxu1 %v12216_v39  ;;  %9600 = vmatpush.bf16.msrb.mxu2 %v12472_v12  ;;  %v12184_v47 = vor.u32 %v16385_v25, %v12183_v15 }
 0x537   :  { %v16449_v50 = vld [vmem:[%s25576_s7 + $0x21c] sm:$0xf0]  ;;  %9626 = vmatpush.bf16.msra.mxu0 %v12984_v20 }
 0x538   :  { %v3209_v10 = vadd.f32 %v3208_v24, %v3194_v48  ;;  %v12695_v51 = vld [vmem:[%s25576_s7 + $0x400] sm:$0xf]  ;;  %v12440_v28 = vor.u32 %v16449_v50, %v12439_v58 }
 0x539   :  { %v16513_v38 = vld [vmem:[%s25576_s7 + $0x41c] sm:$0xf0] }
 0x53a   :  { %v3210_v22 = vadd.f32 %v3209_v10, %v3195_v29  ;;  %v12951_v16 = vld [vmem:[%s25576_s7 + $0x600] sm:$0xf]  ;;  %v12696_v48 = vor.u32 %v16513_v38, %v12695_v51  ;;  %9588 = vmatpush.bf16.msrb.mxu1 %v12184_v47  ;;  %9601 = vmatpush.bf16.msrb.mxu2 %v12440_v28 }
 0x53b   :  { %v16577_v59 = vld [vmem:[%s25576_s7 + $0x61c] sm:$0xf0] }
 0x53c   :  { %v3211_v55 = vadd.f32 %v3210_v22, %v3196_v18  ;;  %v13431_v53 = vld [vmem:[%s25576_s7 + $0x9c0] sm:$0xf]  ;;  %v12952_v24 = vor.u32 %v16577_v59, %v12951_v16  ;;  %9614 = vmatpush.bf16.msrb.mxu3 %v12696_v48 }
 0x53d   :  { %v16697_v49 = vld [vmem:[%s25576_s7 + $0x9dc] sm:$0xf0] }
 0x53e   :  { %v13687_v7 = vld [vmem:[%s25576_s7 + $0xbc0] sm:$0xf]  ;;  %v3212_v27 = vadd.f32 %v3211_v55, %v3197_v3  ;;  %v13432_v41 = vor.u32 %v16697_v49, %v13431_v53  ;;  %9627 = vmatpush.bf16.msra.mxu0 %v12952_v24 }
 0x53f   :  { %v16761_v17 = vld [vmem:[%s25576_s7 + $0xbdc] sm:$0xf0] }
 0x540   :  { %v13943_v54 = vld [vmem:[%s25576_s7 + $0xdc0] sm:$0xf]  ;;  %v3213_v57 = vadd.f32 %v3212_v27, %v3198_v34  ;;  %v13688_v44 = vor.u32 %v16761_v17, %v13687_v7  ;;  %9633 = vmatpush.bf16.msra.mxu1 %v13432_v41 }
 0x541   :  { %v16825_v0 = vld [vmem:[%s25576_s7 + $0xddc] sm:$0xf0] }
 0x542   :  { %v14199_v56 = vld [vmem:[%s25576_s7 + $0xfc0] sm:$0xf]  ;;  %v13944_v63 = vor.u32 %v16825_v0, %v13943_v54  ;;  %v3214_v10 = vrot.slane %v3213_v57, 4  ;;  %9646 = vmatpush.bf16.msra.mxu2 %v13688_v44 }
 0x543   :  { %v16889_v13 = vld [vmem:[%s25576_s7 + $0xfdc] sm:$0xf0] }
 0x544   :  { %v13399_v60 = vld [vmem:[%s25576_s7 + $0x980] sm:$0xf]  ;;  %v14200_v46 = vor.u32 %v16889_v13, %v14199_v56  ;;  %v3215_v61 = vadd.f32 %v3214_v10, %v3213_v57  ;;  %9659 = vmatpush.bf16.msra.mxu3 %v13944_v63 }
 0x545   :  { %v16689_v8 = vld [vmem:[%s25576_s7 + $0x99c] sm:$0xf0] }
 0x546   :  { %v13655_v52 = vld [vmem:[%s25576_s7 + $0xb80] sm:$0xf]  ;;  %v13400_v19 = vor.u32 %v16689_v8, %v13399_v60  ;;  %9672 = vmatpush.bf16.msrb.mxu0 %v14200_v46  ;;  %v3216_v20 = vrot.slane %v3215_v61, 2 }
 0x547   :  { %v16753_v26 = vld [vmem:[%s25576_s7 + $0xb9c] sm:$0xf0] }
 0x548   :  { %v13911_v31 = vld [vmem:[%s25576_s7 + $0xd80] sm:$0xf]  ;;  %v13656_v18 = vor.u32 %v16753_v26, %v13655_v52  ;;  %v3217_v16 = vadd.f32 %v3216_v20, %v3215_v61  ;;  %9634 = vmatpush.bf16.msra.mxu1 %v13400_v19 }
 0x549   :  { %v16817_v29 = vld [vmem:[%s25576_s7 + $0xd9c] sm:$0xf0] }
 0x54a   :  { %v14167_v62 = vld [vmem:[%s25576_s7 + $0xf80] sm:$0xf]  ;;  %v13912_v12 = vor.u32 %v16817_v29, %v13911_v31  ;;  %9647 = vmatpush.bf16.msra.mxu2 %v13656_v18  ;;  %v3218_v47 = vrot.slane %v3217_v16, 1 }
 0x54b   :  { %v16881_v32 = vld [vmem:[%s25576_s7 + $0xf9c] sm:$0xf0] }
 0x54c   :  { %v13367_v15 = vld [vmem:[%s25576_s7 + $0x940] sm:$0xf]  ;;  %v14168_v25 = vor.u32 %v16881_v32, %v14167_v62  ;;  %9660 = vmatpush.bf16.msra.mxu3 %v13912_v12  ;;  %v3219_v56 = vadd.f32 %v3218_v47, %v3217_v16 }
 0x54d   :  { %v16681_v22 = vld [vmem:[%s25576_s7 + $0x95c] sm:$0xf0] }
 0x54e   :  { %v13623_v39 = vld [vmem:[%s25576_s7 + $0xb40] sm:$0xf]  ;;  %v13368_v3 = vor.u32 %v16681_v22, %v13367_v15  ;;  %9673 = vmatpush.bf16.msrb.mxu0 %v14168_v25  ;;  %v3220_v63 = vmul.f32 %v3219_v56, %v18791_v2 }
 0x54f   :  { %v16745_v58 = vld [vmem:[%s25576_s7 + $0xb5c] sm:$0xf0] }
 0x550   :  { %v13879_v50 = vld [vmem:[%s25576_s7 + $0xd40] sm:$0xf]  ;;  %v13624_v55 = vor.u32 %v16745_v58, %v13623_v39  ;;  %9635 = vmatpush.bf16.msra.mxu1 %v13368_v3  ;;  %v19141_v29 = vadd.f32 1e-05, %v3220_v63 }
 0x551   :  { %v16809_v6 = vld [vmem:[%s25576_s7 + $0xd5c] sm:$0xf0] }
 0x552   :  { %v14135_v51 = vld [vmem:[%s25576_s7 + $0xf40] sm:$0xf]  ;;  %v13880_v34 = vor.u32 %v16809_v6, %v13879_v50  ;;  %9648 = vmatpush.bf16.msra.mxu2 %v13624_v55  ;;  %17461 = vrsqrt.f32 %v19141_v29  ;;  %vm3229_vm4 = vweird.f32 %v19141_v29 }
 0x553   :  { %v16873_v38 = vld [vmem:[%s25576_s7 + $0xf5c] sm:$0xf0] }
 0x554   :  { %v13335_v59 = vld [vmem:[%s25576_s7 + $0x900] sm:$0xf]  ;;  %v14136_v7 = vor.u32 %v16873_v38, %v14135_v51  ;;  %9661 = vmatpush.bf16.msra.mxu3 %v13880_v34 }
 0x555   :  { %v16673_v53 = vld [vmem:[%s25576_s7 + $0x91c] sm:$0xf0] }
 0x556   :  { %v13591_v49 = vld [vmem:[%s25576_s7 + $0xb00] sm:$0xf]  ;;  %v13336_v13 = vor.u32 %v16673_v53, %v13335_v59  ;;  %9674 = vmatpush.bf16.msrb.mxu0 %v14136_v7 }
 0x557   :  { %v16737_v17 = vld [vmem:[%s25576_s7 + $0xb1c] sm:$0xf0] }
 0x558   :  { %v13847_v54 = vld [vmem:[%s25576_s7 + $0xd00] sm:$0xf]  ;;  %v13592_v48 = vor.u32 %v16737_v17, %v13591_v49  ;;  %9636 = vmatpush.bf16.msra.mxu1 %v13336_v13  ;;  %v17462_v34 = vpop.eup %17461 }
 0x559   :  { %v16801_v27 = vld [vmem:[%s25576_s7 + $0xd1c] sm:$0xf0]  ;;  %v3224_v47 = vmul.f32 %v17462_v34, %v19141_v29  ;;  %vm3230_vm3 = vweird.f32 %v17462_v34 }
 0x55a   :  { %v14103_v28 = vld [vmem:[%s25576_s7 + $0xf00] sm:$0xf]  ;;  %v13848_v41 = vor.u32 %v16801_v27, %v13847_v54  ;;  %9649 = vmatpush.bf16.msra.mxu2 %v13592_v48  ;;  %vm3231_vm5 = vmor %vm3229_vm4, %vm3230_vm3 }
 0x55b   :  { %v16865_v0 = vld [vmem:[%s25576_s7 + $0xf1c] sm:$0xf0] }
 0x55c   :  { %v13303_v24 = vld [vmem:[%s25576_s7 + $0x8c0] sm:$0xf]  ;;  %v14104_v44 = vor.u32 %v16865_v0, %v14103_v28  ;;  %9662 = vmatpush.bf16.msra.mxu3 %v13848_v41 }
 0x55d   :  { %v16665_v57 = vld [vmem:[%s25576_s7 + $0x8dc] sm:$0xf0] }
 0x55e   :  { %v13559_v60 = vld [vmem:[%s25576_s7 + $0xac0] sm:$0xf]  ;;  %v13304_v10 = vor.u32 %v16665_v57, %v13303_v24  ;;  %9675 = vmatpush.bf16.msrb.mxu0 %v14104_v44  ;;  %v3225_v44 = vmul.f32 %v17462_v34, %v3224_v47 }
 0x55f   :  { %v16729_v8 = vld [vmem:[%s25576_s7 + $0xadc] sm:$0xf0] }
 0x560   :  { %v13815_v52 = vld [vmem:[%s25576_s7 + $0xcc0] sm:$0xf]  ;;  %v13560_v62 = vor.u32 %v16729_v8, %v13559_v60  ;;  %9637 = vmatpush.bf16.msra.mxu1 %v13304_v10 }
 0x561   :  { %v16793_v46 = vld [vmem:[%s25576_s7 + $0xcdc] sm:$0xf0] }
 0x562   :  { %v14071_v26 = vld [vmem:[%s25576_s7 + $0xec0] sm:$0xf]  ;;  %v13816_v61 = vor.u32 %v16793_v46, %v13815_v52  ;;  %9650 = vmatpush.bf16.msra.mxu2 %v13560_v62  ;;  %v3226_v52 = vmul.f32 0.5, %v3225_v44 }
 0x563   :  { %v16857_v31 = vld [vmem:[%s25576_s7 + $0xedc] sm:$0xf0] }
 0x564   :  { %v13271_v2 = vld [vmem:[%s25576_s7 + $0x880] sm:$0xf]  ;;  %v14072_v19 = vor.u32 %v16857_v31, %v14071_v26  ;;  %9663 = vmatpush.bf16.msra.mxu3 %v13816_v61  ;;  %v3227_v26 = vsub.f32 1.5, %v3226_v52 }
 0x565   :  { %v16657_v32 = vld [vmem:[%s25576_s7 + $0x89c] sm:$0xf0] }
 0x566   :  { %v13527_v18 = vld [vmem:[%s25576_s7 + $0xa80] sm:$0xf]  ;;  %v13272_v58 = vor.u32 %v16657_v32, %v13271_v2  ;;  %9676 = vmatpush.bf16.msrb.mxu0 %v14072_v19  ;;  %v3228_v10 = vmul.f32 %v17462_v34, %v3227_v26 }
 0x567   :  { %v16721_v15 = vld [vmem:[%s25576_s7 + $0xa9c] sm:$0xf0] }
 0x568   :  { %v13783_v22 = vld [vmem:[%s25576_s7 + $0xc80] sm:$0xf]  ;;  %v13528_v50 = vor.u32 %v16721_v15, %v13527_v18  ;;  %9638 = vmatpush.bf16.msra.mxu1 %v13272_v58  ;;  %v3232_v62 = vsel %vm3231_vm5, %v17462_v34, %v3228_v10 }
 0x569   :  { %v16785_v39 = vld [vmem:[%s25576_s7 + $0xc9c] sm:$0xf0] }
 0x56a   :  { %v14039_v12 = vld [vmem:[%s25576_s7 + $0xe80] sm:$0xf]  ;;  %v13784_v51 = vor.u32 %v16785_v39, %v13783_v22  ;;  %9651 = vmatpush.bf16.msra.mxu2 %v13528_v50 }
 0x56b   :  { %v16849_v25 = vld [vmem:[%s25576_s7 + $0xe9c] sm:$0xf0] }
 0x56c   :  { %v13239_v6 = vld [vmem:[%s25576_s7 + $0x840] sm:$0xf]  ;;  %v14040_v38 = vor.u32 %v16849_v25, %v14039_v12  ;;  %9664 = vmatpush.bf16.msra.mxu3 %v13784_v51 }
 0x56d   :  { %v16649_v20 = vld [vmem:[%s25576_s7 + $0x85c] sm:$0xf0] }
 0x56e   :  { %v13495_v16 = vld [vmem:[%s25576_s7 + $0xa40] sm:$0xf]  ;;  %v13240_v7 = vor.u32 %v16649_v20, %v13239_v6  ;;  %9677 = vmatpush.bf16.msrb.mxu0 %v14040_v38 }
 0x56f   :  { %v16713_v3 = vld [vmem:[%s25576_s7 + $0xa5c] sm:$0xf0] }
 0x570   :  { %v13751_v55 = vld [vmem:[%s25576_s7 + $0xc40] sm:$0xf]  ;;  %v13496_v17 = vor.u32 %v16713_v3, %v13495_v16  ;;  %9639 = vmatpush.bf16.msra.mxu1 %v13240_v7 }
 0x571   :  { %v16777_v59 = vld [vmem:[%s25576_s7 + $0xc5c] sm:$0xf0] }
 0x572   :  { %v14007_v53 = vld [vmem:[%s25576_s7 + $0xe40] sm:$0xf]  ;;  %v13752_v28 = vor.u32 %v16777_v59, %v13751_v55  ;;  %9652 = vmatpush.bf16.msra.mxu2 %v13496_v17 }
 0x573   :  { %v16841_v49 = vld [vmem:[%s25576_s7 + $0xe5c] sm:$0xf0] }
 0x574   :  { %v13207_v54 = vld [vmem:[%s25576_s7 + $0x800] sm:$0xf]  ;;  %v14008_v0 = vor.u32 %v16841_v49, %v14007_v53  ;;  %9665 = vmatpush.bf16.msra.mxu3 %v13752_v28 }
 0x575   :  { %v16641_v27 = vld [vmem:[%s25576_s7 + $0x81c] sm:$0xf0] }
 0x576   :  { %v13463_v56 = vld [vmem:[%s25576_s7 + $0xa00] sm:$0xf]  ;;  %v13208_v60 = vor.u32 %v16641_v27, %v13207_v54  ;;  %9678 = vmatpush.bf16.msrb.mxu0 %v14008_v0 }
 0x577   :  { %v16705_v13 = vld [vmem:[%s25576_s7 + $0xa1c] sm:$0xf0] }
 0x578   :  { %v13719_v48 = vld [vmem:[%s25576_s7 + $0xc00] sm:$0xf]  ;;  %v13464_v8 = vor.u32 %v16705_v13, %v13463_v56  ;;  %9640 = vmatpush.bf16.msra.mxu1 %v13208_v60 }
 0x579   :  { %v16769_v24 = vld [vmem:[%s25576_s7 + $0xc1c] sm:$0xf0] }
 0x57a   :  { %v13975_v57 = vld [vmem:[%s25576_s7 + $0xe00] sm:$0xf]  ;;  %v13720_v63 = vor.u32 %v16769_v24, %v13719_v48  ;;  %9653 = vmatpush.bf16.msra.mxu2 %v13464_v8 }
 0x57b   :  { %v16833_v41 = vld [vmem:[%s25576_s7 + $0xe1c] sm:$0xf0] }
 0x57c   :  { %v13976_v46 = vor.u32 %v16833_v41, %v13975_v57  ;;  %v3221_v31 = vld [vmem:[%s25577_s5] sm:$0x1]  ;;  %9666 = vmatpush.bf16.msra.mxu3 %v13720_v63 }
 0x57d   :  { %v3233_v2 = vmul.f32 %v3232_v62, %v3221_v31  ;;  %v3253_v32 = vld [vmem:[%s25578_s6] sm:$0x1] }
 0x57e   :  { %9679 = vmatpush.bf16.msrb.mxu0 %v13976_v46  ;;  %v16953_v49 = vld [vmem:[%s25576_s7 + $0x11dc] sm:$0xf0] }
 0x57f   :  { %v19224_v61 = vperm.slane %v3233_v2, 0  ;;  %v3254_v19 = vmul.f32 %v3233_v2, %v18794_v37  ;;  %v14711_v17 = vld [vmem:[%s25576_s7 + $0x13c0] sm:$0xf] }
 0x580   :  { %v17017_v54 = vld [vmem:[%s25576_s7 + $0x13dc] sm:$0xf0] }
 0x581   :  { %v3255_v18 = vsub.f32 %v3253_v32, %v3254_v19  ;;  %v3251_v15 = vmul.f32 %v19224_v61, %v18783_v21  ;;  %v3252_v29 = vmul.f32 %v19224_v61, %v18788_v5  ;;  %v3237_v39 = vmul.f32 %v19224_v61, %v18704_v23  ;;  %v14967_v28 = vld [vmem:[%s25576_s7 + $0x15c0] sm:$0xf] }
 0x582   :  { %v3238_v12 = vmul.f32 %v19224_v61, %v18697_v9  ;;  %v3239_v25 = vmul.f32 %v19224_v61, %v18707_v11  ;;  %v3240_v37 = vmul.f32 %v19224_v61, %v18714_v42  ;;  %v3241_v9 = vmul.f32 %v19224_v61, %v18723_v35  ;;  %v14455_v35 = vld [vmem:[%s25576_s7 + $0x11c0] sm:$0xf] }
 0x583   :  { %v19231_v22 = vperm.slane %v3255_v18, 0  ;;  %v3242_v27 = vmul.f32 %v19224_v61, %v18730_v43  ;;  %v17081_v0 = vld [vmem:[%s25576_s7 + $0x15dc] sm:$0xf0]  ;;  %v3243_v13 = vmul.f32 %v19224_v61, %v18736_v33  ;;  %v14456_v33 = vor.u32 %v16953_v49, %v14455_v35 }
 0x584   :  { %v15223_v43 = vld [vmem:[%s25576_s7 + $0x17c0] sm:$0xf]  ;;  %v14712_v52 = vor.u32 %v17017_v54, %v14711_v17  ;;  %v3244_v31 = vmul.f32 %v19224_v61, %v18744_v4  ;;  %v14968_v2 = vor.u32 %v17081_v0, %v14967_v28 }
 0x585   :  { %v3273_v58 = vadd.f32 %v19231_v22, %v3251_v15  ;;  %v3274_v21 = vadd.f32 %v19231_v22, %v3252_v29  ;;  %v3259_v5 = vadd.f32 %v19231_v22, %v3237_v39  ;;  %v3260_v50 = vadd.f32 %v19231_v22, %v3238_v12  ;;  %v17145_v41 = vld [vmem:[%s25576_s7 + $0x17dc] sm:$0xf0] }
 0x586   :  { %v3261_v6 = vadd.f32 %v19231_v22, %v3239_v25  ;;  %v3262_v23 = vadd.f32 %v19231_v22, %v3240_v37  ;;  %v3263_v56 = vadd.f32 %v19231_v22, %v3241_v9  ;;  %v14423_v44 = vld [vmem:[%s25576_s7 + $0x1180] sm:$0xf]  ;;  %v3264_v60 = vadd.f32 %v19231_v22, %v3242_v27 }
 0x587   :  { %vm3289_vm6 = vcmp.ge.f32.partialorder %v3273_v58, 0.0  ;;  %vm3290_vm7 = vcmp.ge.f32.partialorder %v3274_v21, 0.0  ;;  %v3305_v11 = vmul.f32 0.2, %v3273_v58  ;;  %v3306_v20 = vmul.f32 0.2, %v3274_v21 }
 0x588   :  { %vm3275_vm8 = vcmp.ge.f32.partialorder %v3259_v5, 0.0  ;;  %vm3276_vm9 = vcmp.ge.f32.partialorder %v3260_v50, 0.0  ;;  %v3291_v42 = vmul.f32 0.2, %v3259_v5  ;;  %v3292_v51 = vmul.f32 0.2, %v3260_v50 }
 0x589   :  { %v3321_v38 = vsel %vm3289_vm6, %v3273_v58, %v3305_v11  ;;  %v3322_v16 = vsel %vm3290_vm7, %v3274_v21, %v3306_v20  ;;  %vm3277_vm10 = vcmp.ge.f32.partialorder %v3261_v6, 0.0  ;;  %vm3278_vm11 = vcmp.ge.f32.partialorder %v3262_v23, 0.0  ;;  %v16945_v63 = vld [vmem:[%s25576_s7 + $0x119c] sm:$0xf0] }
 0x58a   :  { %v19249_v3 = vpack.c.bf16 %v3322_v16, %v3321_v38  ;;  %v3307_v55 = vsel %vm3275_vm8, %v3259_v5, %v3291_v42  ;;  %v3308_v59 = vsel %vm3276_vm9, %v3260_v50, %v3292_v51  ;;  %v3293_v53 = vmul.f32 0.2, %v3261_v6  ;;  %v14679_v46 = vld [vmem:[%s25576_s7 + $0x1380] sm:$0xf] }
 0x58b   :  { %v17408_v34 = vpack.c.bf16 %v3308_v59, %v3307_v55  ;;  %v3294_v7 = vmul.f32 0.2, %v3262_v23  ;;  %v17009_v26 = vld [vmem:[%s25576_s7 + $0x139c] sm:$0xf0]  ;;  %v3265_v19 = vadd.f32 %v19231_v22, %v3243_v13  ;;  %v15224_v29 = vor.u32 %v17145_v41, %v15223_v43 }
 0x58c   :  { %v3309_v47 = vsel %vm3277_vm10, %v3261_v6, %v3293_v53  ;;  %v14935_v32 = vld [vmem:[%s25576_s7 + $0x1580] sm:$0xf]  ;;  %v3266_v25 = vadd.f32 %v19231_v22, %v3244_v31  ;;  %v14424_v37 = vor.u32 %v16945_v63, %v14423_v44  ;;  %v14680_v58 = vor.u32 %v17009_v26, %v14679_v46 }
 0x58d   :  { %v4413_v48 = vunpack.c.l.b16 %v17408_v34  ;;  %v4414_v24 = vunpack.c.h.b16 %v17408_v34  ;;  %v3310_v57 = vsel %vm3278_vm11, %v3262_v23, %v3294_v7  ;;  %v17073_v39 = vld [vmem:[%s25576_s7 + $0x159c] sm:$0xf0]  ;;  %v3295_v5 = vmul.f32 0.2, %v3263_v56 }
 0x58e   :  { %v17413_v8 = vpack.c.bf16 %v3310_v57, %v3309_v47  ;;  %v15191_v4 = vld [vmem:[%s25576_s7 + $0x1780] sm:$0xf]  ;;  %v3296_v50 = vmul.f32 0.2, %v3264_v60  ;;  %vm3279_vm12 = vcmp.ge.f32.partialorder %v3263_v56, 0.0  ;;  %vm3280_vm13 = vcmp.ge.f32.partialorder %v3264_v60, 0.0 }
 0x58f   :  { %v19296_v10 = vpack.c.b16 %v4413_v48, %v4413_v48  ;;  %v19298_v62 = vpack.c.b16 %v4414_v24, %v4414_v24  ;;  %v17137_v12 = vld [vmem:[%s25576_s7 + $0x179c] sm:$0xf0]  ;;  %v3297_v42 = vmul.f32 0.2, %v3265_v19  ;;  %v3298_v51 = vmul.f32 0.2, %v3266_v25 }
 0x590   :  { %v4415_v18 = vunpack.c.l.b16 %v17413_v8  ;;  %v4416_v15 = vunpack.c.h.b16 %v17413_v8  ;;  %v14391_v21 = vld [vmem:[%s25576_s7 + $0x1140] sm:$0xf]  ;;  %v14936_v38 = vor.u32 %v17073_v39, %v14935_v32  ;;  %vm3281_vm14 = vcmp.ge.f32.partialorder %v3265_v19, 0.0 }
 0x591   :  { %9589 = vmatmul.bf16.vlgmr.msrb.gmra.mxu1 %v19296_v10  ;;  %9602 = vmatmul.bf16.vlgmr.msrb.gmra.mxu2 %v19298_v62  ;;  %v16937_v9 = vld [vmem:[%s25576_s7 + $0x115c] sm:$0xf0]  ;;  %vm3282_vm15 = vcmp.ge.f32.partialorder %v3266_v25, 0.0  ;;  %v15192_v16 = vor.u32 %v17137_v12, %v15191_v4  ;;  %v3311_v53 = vsel %vm3279_vm12, %v3263_v56, %v3295_v5  ;;  %v3312_v35 = vsel %vm3280_vm13, %v3264_v60, %v3296_v50 }
 0x592   :  { %v19319_v6 = vpack.c.b16 %v4415_v18, %v4415_v18  ;;  %v19321_v23 = vpack.c.b16 %v4416_v15, %v4416_v15  ;;  %9685 = vmatpush.bf16.msrb.mxu1 %v14456_v33  ;;  %9698 = vmatpush.bf16.msrb.mxu2 %v14712_v52  ;;  %v14647_v11 = vld [vmem:[%s25576_s7 + $0x1340] sm:$0xf]  ;;  %v14392_v49 = vor.u32 %v16937_v9, %v14391_v21 }
 0x593   :  { %v17001_v20 = vld [vmem:[%s25576_s7 + $0x135c] sm:$0xf0]  ;;  %v3313_v0 = vsel %vm3281_vm14, %v3265_v19, %v3297_v42  ;;  %v3314_v56 = vsel %vm3282_vm15, %v3266_v25, %v3298_v51  ;;  %v17418_v24 = vpack.c.bf16 %v3312_v35, %v3311_v53  ;;  %v3245_v15 = vmul.f32 %v19224_v61, %v18753_v30 }
 0x594   :  { %9615 = vmatmul.bf16.vlgmr.msrb.gmra.mxu3 %v19319_v6  ;;  %9628 = vmatmul.bf16.vlgmr.msra.gmra.mxu0 %v19321_v23  ;;  %v14903_v55 = vld [vmem:[%s25576_s7 + $0x1540] sm:$0xf]  ;;  %v14648_v34 = vor.u32 %v17001_v20, %v14647_v11  ;;  %v17423_v33 = vpack.c.bf16 %v3314_v56, %v3313_v0  ;;  %v3247_v30 = vmul.f32 %v19224_v61, %v18766_v40 }
 0x595   :  { %9711 = vmatpush.bf16.msrb.mxu3 %v14968_v2  ;;  %9724 = vmatpush.bf16.msra.mxu0 %v15224_v29  ;;  %v17065_v59 = vld [vmem:[%s25576_s7 + $0x155c] sm:$0xf0]  ;;  %v4417_v31 = vunpack.c.l.b16 %v17418_v24  ;;  %v4418_v2 = vunpack.c.h.b16 %v17418_v24  ;;  %v3246_v29 = vmul.f32 %v19224_v61, %v18760_v1  ;;  %v3248_v1 = vmul.f32 %v19224_v61, %v18771_v36 }
 0x596   :  { %9686 = vmatpush.bf16.msrb.mxu1 %v14424_v37  ;;  %9699 = vmatpush.bf16.msrb.mxu2 %v14680_v58  ;;  %v15159_v7 = vld [vmem:[%s25576_s7 + $0x1740] sm:$0xf]  ;;  %v14904_v57 = vor.u32 %v17065_v59, %v14903_v55  ;;  %v4419_v37 = vunpack.c.l.b16 %v17423_v33  ;;  %v4420_v58 = vunpack.c.h.b16 %v17423_v33  ;;  %v3267_v40 = vadd.f32 %v19231_v22, %v3245_v15 }
 0x597   :  { %v17129_v17 = vld [vmem:[%s25576_s7 + $0x175c] sm:$0xf0]  ;;  %v3268_v36 = vadd.f32 %v19231_v22, %v3246_v29  ;;  %v3269_v20 = vadd.f32 %v19231_v22, %v3247_v30  ;;  %v3270_v42 = vadd.f32 %v19231_v22, %v3248_v1  ;;  %v19422_v51 = vpack.c.b16 %v4417_v31, %v4417_v31 }
 0x598   :  { %v14359_v54 = vld [vmem:[%s25576_s7 + $0x1100] sm:$0xf]  ;;  %v15160_v43 = vor.u32 %v17129_v17, %v15159_v7  ;;  %v3299_v0 = vmul.f32 0.2, %v3267_v40  ;;  %vm3283_vm0 = vcmp.ge.f32.partialorder %v3267_v40, 0.0  ;;  %v3250_v30 = vmul.f32 %v19224_v61, %v18779_v45 }
 0x599   :  { %v16929_v27 = vld [vmem:[%s25576_s7 + $0x111c] sm:$0xf0]  ;;  %9712 = vmatpush.bf16.msrb.mxu3 %v14936_v38  ;;  %9725 = vmatpush.bf16.msra.mxu0 %v15192_v16  ;;  %v19424_v38 = vpack.c.b16 %v4418_v2, %v4418_v2  ;;  %v3300_v56 = vmul.f32 0.2, %v3268_v36  ;;  %vm3284_vm1 = vcmp.ge.f32.partialorder %v3268_v36, 0.0  ;;  %vm3285_vm2 = vcmp.ge.f32.partialorder %v3269_v20, 0.0 }
 0x59a   :  { %v14615_v47 = vld [vmem:[%s25576_s7 + $0x1300] sm:$0xf]  ;;  %9687 = vmatpush.bf16.msrb.mxu1 %v14392_v49  ;;  %9700 = vmatpush.bf16.msrb.mxu2 %v14648_v34  ;;  %v14360_v41 = vor.u32 %v16929_v27, %v14359_v54  ;;  %v19447_v27 = vpack.c.b16 %v4419_v37, %v4419_v37  ;;  %vm3286_vm3 = vcmp.ge.f32.partialorder %v3270_v42, 0.0 }
 0x59b   :  { %v16993_v28 = vld [vmem:[%s25576_s7 + $0x131c] sm:$0xf0]  ;;  %v3316_v31 = vsel %vm3284_vm1, %v3268_v36, %v3300_v56  ;;  %v3272_v36 = vadd.f32 %v19231_v22, %v3250_v30 }
 0x59c   :  { %v14871_v13 = vld [vmem:[%s25576_s7 + $0x1500] sm:$0xf]  ;;  %v14616_v44 = vor.u32 %v16993_v28, %v14615_v47  ;;  %v19449_v47 = vpack.c.b16 %v4420_v58, %v4420_v58 }
 0x59d   :  { %v17057_v48 = vld [vmem:[%s25576_s7 + $0x151c] sm:$0xf0]  ;;  %9713 = vmatpush.bf16.msrb.mxu3 %v14904_v57  ;;  %9726 = vmatpush.bf16.msra.mxu0 %v15160_v43  ;;  %vm3288_vm5 = vcmp.ge.f32.partialorder %v3272_v36, 0.0 }
 0x59e   :  { %v15127_v60 = vld [vmem:[%s25576_s7 + $0x1700] sm:$0xf]  ;;  %v14872_v52 = vor.u32 %v17057_v48, %v14871_v13  ;;  %9688 = vmatpush.bf16.msrb.mxu1 %v14360_v41  ;;  %9701 = vmatpush.bf16.msrb.mxu2 %v14616_v44  ;;  %v3301_v13 = vmul.f32 0.2, %v3269_v20  ;;  %v3302_v48 = vmul.f32 0.2, %v3270_v42 }
 0x59f   :  { %v17121_v8 = vld [vmem:[%s25576_s7 + $0x171c] sm:$0xf0] }
 0x5a0   :  { %v14327_v63 = vld [vmem:[%s25576_s7 + $0x10c0] sm:$0xf]  ;;  %v15128_v39 = vor.u32 %v17121_v8, %v15127_v60  ;;  %v3317_v15 = vsel %vm3285_vm2, %v3269_v20, %v3301_v13  ;;  %v3318_v29 = vsel %vm3286_vm3, %v3270_v42, %v3302_v48 }
 0x5a1   :  { %v16921_v46 = vld [vmem:[%s25576_s7 + $0x10dc] sm:$0xf0]  ;;  %9714 = vmatpush.bf16.msrb.mxu3 %v14872_v52  ;;  %9641 = vmatmul.bf16.vlgmr.msra.gmra.mxu1 %v19422_v51 }
 0x5a2   :  { %v14583_v26 = vld [vmem:[%s25576_s7 + $0x12c0] sm:$0xf]  ;;  %v14328_v9 = vor.u32 %v16921_v46, %v14327_v63  ;;  %9727 = vmatpush.bf16.msra.mxu0 %v15128_v39  ;;  %9654 = vmatmul.bf16.vlgmr.msra.gmra.mxu2 %v19424_v38 }
 0x5a3   :  { %v16985_v32 = vld [vmem:[%s25576_s7 + $0x12dc] sm:$0xf0] }
 0x5a4   :  { %v14839_v19 = vld [vmem:[%s25576_s7 + $0x14c0] sm:$0xf]  ;;  %v14584_v11 = vor.u32 %v16985_v32, %v14583_v26  ;;  %9689 = vmatpush.bf16.msrb.mxu1 %v14328_v9  ;;  %9667 = vmatmul.bf16.vlgmr.msra.gmra.mxu3 %v19447_v27  ;;  %v3315_v26 = vsel %vm3283_vm0, %v3267_v40, %v3299_v0 }
 0x5a5   :  { %v17049_v18 = vld [vmem:[%s25576_s7 + $0x14dc] sm:$0xf0]  ;;  %9680 = vmatmul.bf16.vlgmr.msrb.gmra.mxu0 %v19449_v47 }
 0x5a6   :  { %v15095_v4 = vld [vmem:[%s25576_s7 + $0x16c0] sm:$0xf]  ;;  %v14840_v16 = vor.u32 %v17049_v18, %v14839_v19  ;;  %9702 = vmatpush.bf16.msrb.mxu2 %v14584_v11 }
 0x5a7   :  { %v17113_v12 = vld [vmem:[%s25576_s7 + $0x16dc] sm:$0xf0] }
 0x5a8   :  { %v19403_v25 = vld [vmem:[%s25576_s7 + $0x1080] sm:$0xf]  ;;  %v15096_v35 = vor.u32 %v17113_v12, %v15095_v4  ;;  %9715 = vmatpush.bf16.msrb.mxu3 %v14840_v16 }
 0x5a9   :  { %v16913_v21 = vld [vmem:[%s25576_s7 + $0x109c] sm:$0xf0] }
 0x5aa   :  { %v14551_v5 = vld [vmem:[%s25576_s7 + $0x1280] sm:$0xf]  ;;  %v14296_v49 = vor.u32 %v16913_v21, %v19403_v25  ;;  %9728 = vmatpush.bf16.msra.mxu0 %v15096_v35  ;;  %v3249_v25 = vmul.f32 %v19224_v61, %v18775_v14  ;;  %v17428_v14 = vpack.c.bf16 %v3316_v31, %v3315_v26 }
 0x5ab   :  { %v16977_v50 = vld [vmem:[%s25576_s7 + $0x129c] sm:$0xf0] }
 0x5ac   :  { %v14807_v55 = vld [vmem:[%s25576_s7 + $0x1480] sm:$0xf]  ;;  %v14552_v34 = vor.u32 %v16977_v50, %v14551_v5  ;;  %9690 = vmatpush.bf16.msrb.mxu1 %v14296_v49  ;;  %v17433_v50 = vpack.c.bf16 %v3318_v29, %v3317_v15  ;;  %v3271_v40 = vadd.f32 %v19231_v22, %v3249_v25 }
 0x5ad   :  { %v17041_v59 = vld [vmem:[%s25576_s7 + $0x149c] sm:$0xf0] }
 0x5ae   :  { %v15063_v53 = vld [vmem:[%s25576_s7 + $0x1680] sm:$0xf]  ;;  %v14808_v43 = vor.u32 %v17041_v59, %v14807_v55  ;;  %9703 = vmatpush.bf16.msrb.mxu2 %v14552_v34  ;;  %v3303_v56 = vmul.f32 0.2, %v3271_v40  ;;  %v4423_v48 = vunpack.c.l.b16 %v17433_v50  ;;  %vm3287_vm4 = vcmp.ge.f32.partialorder %v3271_v40, 0.0 }
 0x5af   :  { %v17105_v7 = vld [vmem:[%s25576_s7 + $0x169c] sm:$0xf0] }
 0x5b0   :  { %v14263_v17 = vld [vmem:[%s25576_s7 + $0x1040] sm:$0xf]  ;;  %v15064_v41 = vor.u32 %v17105_v7, %v15063_v53  ;;  %9716 = vmatpush.bf16.msrb.mxu3 %v14808_v43  ;;  %v3319_v26 = vsel %vm3287_vm4, %v3271_v40, %v3303_v56  ;;  %v19564_v31 = vpack.c.b16 %v4423_v48, %v4423_v48 }
 0x5b1   :  { %v16905_v54 = vld [vmem:[%s25576_s7 + $0x105c] sm:$0xf0] }
 0x5b2   :  { %v14519_v28 = vld [vmem:[%s25576_s7 + $0x1240] sm:$0xf]  ;;  %v14264_v33 = vor.u32 %v16905_v54, %v14263_v17  ;;  %9729 = vmatpush.bf16.msra.mxu0 %v15064_v41  ;;  %v4421_v17 = vunpack.c.l.b16 %v17428_v14  ;;  %v4422_v54 = vunpack.c.h.b16 %v17428_v14 }
 0x5b3   :  { %v16969_v24 = vld [vmem:[%s25576_s7 + $0x125c] sm:$0xf0] }
 0x5b4   :  { %v14775_v57 = vld [vmem:[%s25576_s7 + $0x1440] sm:$0xf]  ;;  %v14520_v2 = vor.u32 %v16969_v24, %v14519_v28  ;;  %9691 = vmatpush.bf16.msrb.mxu1 %v14264_v33  ;;  %v4424_v24 = vunpack.c.h.b16 %v17433_v50  ;;  %v19555_v33 = vpack.c.b16 %v4422_v54, %v4422_v54 }
 0x5b5   :  { %v17033_v44 = vld [vmem:[%s25576_s7 + $0x145c] sm:$0xf0] }
 0x5b6   :  { %v15031_v60 = vld [vmem:[%s25576_s7 + $0x1640] sm:$0xf]  ;;  %v14776_v1 = vor.u32 %v17033_v44, %v14775_v57  ;;  %9704 = vmatpush.bf16.msrb.mxu2 %v14520_v2  ;;  %v19566_v2 = vpack.c.b16 %v4424_v24, %v4424_v24 }
 0x5b7   :  { %v17097_v8 = vld [vmem:[%s25576_s7 + $0x165c] sm:$0xf0] }
 0x5b8   :  { %v14231_v52 = vld [vmem:[%s25576_s7 + $0x1000] sm:$0xf]  ;;  %v15032_v37 = vor.u32 %v17097_v8, %v15031_v60  ;;  %9717 = vmatpush.bf16.msrb.mxu3 %v14776_v1  ;;  %v19553_v8 = vpack.c.b16 %v4421_v17, %v4421_v17 }
 0x5b9   :  { %v16897_v63 = vld [vmem:[%s25576_s7 + $0x101c] sm:$0xf0] }
 0x5ba   :  { %v14487_v46 = vld [vmem:[%s25576_s7 + $0x1200] sm:$0xf]  ;;  %v14232_v9 = vor.u32 %v16897_v63, %v14231_v52  ;;  %9730 = vmatpush.bf16.msra.mxu0 %v15032_v37 }
 0x5bb   :  { %v16961_v32 = vld [vmem:[%s25576_s7 + $0x121c] sm:$0xf0] }
 0x5bc   :  { %v14743_v19 = vld [vmem:[%s25576_s7 + $0x1400] sm:$0xf]  ;;  %v14488_v11 = vor.u32 %v16961_v32, %v14487_v46  ;;  %9692 = vmatpush.bf16.msrb.mxu1 %v14232_v9  ;;  %v3304_v46 = vmul.f32 0.2, %v3272_v36 }
 0x5bd   :  { %v17025_v18 = vld [vmem:[%s25576_s7 + $0x141c] sm:$0xf0] }
 0x5be   :  { %v14999_v39 = vld [vmem:[%s25576_s7 + $0x1600] sm:$0xf]  ;;  %v14744_v55 = vor.u32 %v17025_v18, %v14743_v19  ;;  %9705 = vmatpush.bf16.msrb.mxu2 %v14488_v11 }
 0x5bf   :  { %v17089_v4 = vld [vmem:[%s25576_s7 + $0x161c] sm:$0xf0]  ;;  %9693 = vmatmul.bf16.vlgmr.msrb.gmra.mxu1 %v19553_v8 }
 0x5c0   :  { %v15479_v12 = vld [vmem:[%s25576_s7 + $0x19c0] sm:$0xf]  ;;  %v15000_v59 = vor.u32 %v17089_v4, %v14999_v39  ;;  %9718 = vmatpush.bf16.msrb.mxu3 %v14744_v55 }
 0x5c1   :  { %v17209_v58 = vld [vmem:[%s25576_s7 + $0x19dc] sm:$0xf0]  ;;  %9706 = vmatmul.bf16.vlgmr.msrb.gmra.mxu2 %v19555_v33 }
 0x5c2   :  { %v15735_v21 = vld [vmem:[%s25576_s7 + $0x1bc0] sm:$0xf]  ;;  %v15480_v53 = vor.u32 %v17209_v58, %v15479_v12  ;;  %9731 = vmatpush.bf16.msra.mxu0 %v15000_v59  ;;  %v3320_v12 = vsel %vm3288_vm5, %v3272_v36, %v3304_v46 }
 0x5c3   :  { %v17273_v5 = vld [vmem:[%s25576_s7 + $0x1bdc] sm:$0xf0]  ;;  %9719 = vmatmul.bf16.vlgmr.msrb.gmra.mxu3 %v19564_v31  ;;  %v19591_v25 = vpack.c.bf16 %v3320_v12, %v3319_v26 }
 0x5c4   :  { %v15991_v45 = vld [vmem:[%s25576_s7 + $0x1dc0] sm:$0xf]  ;;  %v15736_v22 = vor.u32 %v17273_v5, %v15735_v21  ;;  %9737 = vmatpush.bf16.msra.mxu1 %v15480_v53 }
 0x5c5   :  { %v17337_v61 = vld [vmem:[%s25576_s7 + $0x1ddc] sm:$0xf0]  ;;  %9732 = vmatmul.bf16.vlgmr.msra.gmra.mxu0 %v19566_v2 }
 0x5c6   :  { %v16247_v20 = vld [vmem:[%s25576_s7 + $0x1fc0] sm:$0xf]  ;;  %v15992_v7 = vor.u32 %v17337_v61, %v15991_v45  ;;  %9750 = vmatpush.bf16.msra.mxu2 %v15736_v22 }
 0x5c7   :  { %v17401_v42 = vld [vmem:[%s25576_s7 + $0x1fdc] sm:$0xf0] }
 0x5c8   :  { %v15447_v16 = vld [vmem:[%s25576_s7 + $0x1980] sm:$0xf]  ;;  %v16248_v13 = vor.u32 %v17401_v42, %v16247_v20  ;;  %9763 = vmatpush.bf16.msra.mxu3 %v15992_v7 }
 0x5c9   :  { %v17201_v35 = vld [vmem:[%s25576_s7 + $0x199c] sm:$0xf0] }
 0x5ca   :  { %v15703_v49 = vld [vmem:[%s25576_s7 + $0x1b80] sm:$0xf]  ;;  %v15448_v41 = vor.u32 %v17201_v35, %v15447_v16  ;;  %9776 = vmatpush.bf16.msrb.mxu0 %v16248_v13 }
 0x5cb   :  { %v17265_v34 = vld [vmem:[%s25576_s7 + $0x1b9c] sm:$0xf0] }
 0x5cc   :  { %v15959_v28 = vld [vmem:[%s25576_s7 + $0x1d80] sm:$0xf]  ;;  %v15704_v44 = vor.u32 %v17265_v34, %v15703_v49  ;;  %9738 = vmatpush.bf16.msra.mxu1 %v15448_v41 }
 0x5cd   :  { %v17329_v0 = vld [vmem:[%s25576_s7 + $0x1d9c] sm:$0xf0] }
 0x5ce   :  { %v16215_v57 = vld [vmem:[%s25576_s7 + $0x1f80] sm:$0xf]  ;;  %v15960_v60 = vor.u32 %v17329_v0, %v15959_v28  ;;  %9751 = vmatpush.bf16.msra.mxu2 %v15704_v44 }
 0x5cf   :  { %v17393_v43 = vld [vmem:[%s25576_s7 + $0x1f9c] sm:$0xf0] }
 0x5d0   :  { %v15415_v52 = vld [vmem:[%s25576_s7 + $0x1940] sm:$0xf]  ;;  %v16216_v32 = vor.u32 %v17393_v43, %v16215_v57  ;;  %9764 = vmatpush.bf16.msra.mxu3 %v15960_v60 }
 0x5d1   :  { %v17193_v63 = vld [vmem:[%s25576_s7 + $0x195c] sm:$0xf0] }
 0x5d2   :  { %v15671_v19 = vld [vmem:[%s25576_s7 + $0x1b40] sm:$0xf]  ;;  %v15416_v30 = vor.u32 %v17193_v63, %v15415_v52  ;;  %9777 = vmatpush.bf16.msrb.mxu0 %v16216_v32 }
 0x5d3   :  { %v17257_v18 = vld [vmem:[%s25576_s7 + $0x1b5c] sm:$0xf0] }
 0x5d4   :  { %v15927_v15 = vld [vmem:[%s25576_s7 + $0x1d40] sm:$0xf]  ;;  %v15672_v1 = vor.u32 %v17257_v18, %v15671_v19  ;;  %9739 = vmatpush.bf16.msra.mxu1 %v15416_v30 }
 0x5d5   :  { %v17321_v29 = vld [vmem:[%s25576_s7 + $0x1d5c] sm:$0xf0] }
 0x5d6   :  { %v16183_v39 = vld [vmem:[%s25576_s7 + $0x1f40] sm:$0xf]  ;;  %v15928_v21 = vor.u32 %v17321_v29, %v15927_v15  ;;  %9752 = vmatpush.bf16.msra.mxu2 %v15672_v1 }
 0x5d7   :  { %v17385_v4 = vld [vmem:[%s25576_s7 + $0x1f5c] sm:$0xf0] }
 0x5d8   :  { %v15383_v37 = vld [vmem:[%s25576_s7 + $0x1900] sm:$0xf]  ;;  %v16184_v5 = vor.u32 %v17385_v4, %v16183_v39  ;;  %9765 = vmatpush.bf16.msra.mxu3 %v15928_v21 }
 0x5d9   :  { %v17185_v58 = vld [vmem:[%s25576_s7 + $0x191c] sm:$0xf0] }
 0x5da   :  { %v15639_v14 = vld [vmem:[%s25576_s7 + $0x1b00] sm:$0xf]  ;;  %v15384_v9 = vor.u32 %v17185_v58, %v15383_v37  ;;  %9778 = vmatpush.bf16.msrb.mxu0 %v16184_v5 }
 0x5db   :  { %v17249_v45 = vld [vmem:[%s25576_s7 + $0x1b1c] sm:$0xf0] }
 0x5dc   :  { %v15895_v61 = vld [vmem:[%s25576_s7 + $0x1d00] sm:$0xf]  ;;  %v15640_v11 = vor.u32 %v17249_v45, %v15639_v14  ;;  %9740 = vmatpush.bf16.msra.mxu1 %v15384_v9  ;;  %v16501_v9 = vld [vmem:[%s25576_s7 + $0x3c4] sm:$0xf] }
 0x5dd   :  { %v17313_v50 = vld [vmem:[%s25576_s7 + $0x1d1c] sm:$0xf0] }
 0x5de   :  { %v16151_v40 = vld [vmem:[%s25576_s7 + $0x1f00] sm:$0xf]  ;;  %v15896_v16 = vor.u32 %v17313_v50, %v15895_v61  ;;  %9753 = vmatpush.bf16.msra.mxu2 %v15640_v11  ;;  %v12665_v11 = vld [vmem:[%s25576_s7 + $0x3e0] sm:$0xf0] }
 0x5df   :  { %v17377_v36 = vld [vmem:[%s25576_s7 + $0x1f1c] sm:$0xf0] }
 0x5e0   :  { %v15351_v20 = vld [vmem:[%s25576_s7 + $0x18c0] sm:$0xf]  ;;  %v16152_v55 = vor.u32 %v17377_v36, %v16151_v40  ;;  %9766 = vmatpush.bf16.msra.mxu3 %v15896_v16  ;;  %v16437_v40 = vld [vmem:[%s25576_s7 + $0x1c4] sm:$0xf] }
 0x5e1   :  { %v17177_v42 = vld [vmem:[%s25576_s7 + $0x18dc] sm:$0xf0]  ;;  %v12409_v36 = vld [vmem:[%s25576_s7 + $0x1e0] sm:$0xf0] }
 0x5e2   :  { %v15607_v59 = vld [vmem:[%s25576_s7 + $0x1ac0] sm:$0xf]  ;;  %v15352_v7 = vor.u32 %v17177_v42, %v15351_v20  ;;  %9779 = vmatpush.bf16.msrb.mxu0 %v16152_v55  ;;  %v16565_v20 = vld [vmem:[%s25576_s7 + $0x5c4] sm:$0xf] }
 0x5e3   :  { %v17241_v53 = vld [vmem:[%s25576_s7 + $0x1adc] sm:$0xf0]  ;;  %v12921_v55 = vld [vmem:[%s25576_s7 + $0x5e0] sm:$0xf0] }
 0x5e4   :  { %v15863_v22 = vld [vmem:[%s25576_s7 + $0x1cc0] sm:$0xf]  ;;  %v15608_v17 = vor.u32 %v17241_v53, %v15607_v59  ;;  %9741 = vmatpush.bf16.msra.mxu1 %v15352_v7  ;;  %v16629_v59 = vld [vmem:[%s25576_s7 + $0x7c4] sm:$0xf]  ;;  %v12668_v7 = vor.u32 %v16501_v9, %v12665_v11 }
 0x5e5   :  { %v17305_v35 = vld [vmem:[%s25576_s7 + $0x1cdc] sm:$0xf0]  ;;  %v13177_v53 = vld [vmem:[%s25576_s7 + $0x7e0] sm:$0xf0] }
 0x5e6   :  { %v16119_v49 = vld [vmem:[%s25576_s7 + $0x1ec0] sm:$0xf]  ;;  %v15864_v0 = vor.u32 %v17305_v35, %v15863_v22  ;;  %9754 = vmatpush.bf16.msra.mxu2 %v15608_v17  ;;  %v4427_v22 = vunpack.c.l.b16 %v19249_v3  ;;  %v4425_v17 = vunpack.c.l.b16 %v19591_v25  ;;  %v16605_v9 = vld [vmem:[%s25576_s7 + $0x704] sm:$0xf] }
 0x5e7   :  { %v17369_v34 = vld [vmem:[%s25576_s7 + $0x1edc] sm:$0xf0]  ;;  %v13081_v11 = vld [vmem:[%s25576_s7 + $0x720] sm:$0xf0] }
 0x5e8   :  { %v15319_v54 = vld [vmem:[%s25576_s7 + $0x1880] sm:$0xf]  ;;  %v16120_v56 = vor.u32 %v17369_v34, %v16119_v49  ;;  %9767 = vmatpush.bf16.msra.mxu3 %v15864_v0  ;;  %v12412_v34 = vor.u32 %v16437_v40, %v12409_v36  ;;  %v12377_v0 = vld [vmem:[%s25576_s7 + $0x1a0] sm:$0xf0] }
 0x5e9   :  { %v17169_v28 = vld [vmem:[%s25576_s7 + $0x189c] sm:$0xf0]  ;;  %v16541_v40 = vld [vmem:[%s25576_s7 + $0x504] sm:$0xf] }
 0x5ea   :  { %v15575_v13 = vld [vmem:[%s25576_s7 + $0x1a80] sm:$0xf]  ;;  %v15320_v44 = vor.u32 %v17169_v28, %v15319_v54  ;;  %9780 = vmatpush.bf16.msrb.mxu0 %v16120_v56  ;;  %v4426_v54 = vunpack.c.h.b16 %v19591_v25  ;;  %v16429_v28 = vld [vmem:[%s25576_s7 + $0x184] sm:$0xf]  ;;  %v4428_v56 = vunpack.c.h.b16 %v19249_v3 }
 0x5eb   :  { %v17233_v48 = vld [vmem:[%s25576_s7 + $0x1a9c] sm:$0xf0]  ;;  %v12633_v25 = vld [vmem:[%s25576_s7 + $0x3a0] sm:$0xf0] }
 0x5ec   :  { %v15831_v24 = vld [vmem:[%s25576_s7 + $0x1c80] sm:$0xf]  ;;  %v15576_v60 = vor.u32 %v17233_v48, %v15575_v13  ;;  %9742 = vmatpush.bf16.msra.mxu1 %v15320_v44  ;;  %v12924_v13 = vor.u32 %v16565_v20, %v12921_v55  ;;  %v13180_v48 = vor.u32 %v16629_v59, %v13177_v53  ;;  %v12889_v3 = vld [vmem:[%s25576_s7 + $0x5a0] sm:$0xf0]  ;;  %v19765_v44 = vpack.c.b16 %v4427_v22, %v4427_v22 }
 0x5ed   :  { %v17297_v57 = vld [vmem:[%s25576_s7 + $0x1c9c] sm:$0xf0]  ;;  %v12825_v36 = vld [vmem:[%s25576_s7 + $0x520] sm:$0xf0]  ;;  %v13084_v53 = vor.u32 %v16605_v9, %v13081_v11 }
 0x5ee   :  { %v16087_v43 = vld [vmem:[%s25576_s7 + $0x1e80] sm:$0xf]  ;;  %v15832_v46 = vor.u32 %v17297_v57, %v15831_v24  ;;  %9755 = vmatpush.bf16.msra.mxu2 %v15576_v60  ;;  %v16493_v24 = vld [vmem:[%s25576_s7 + $0x384] sm:$0xf]  ;;  %v12380_v60 = vor.u32 %v16429_v28, %v12377_v0  ;;  %v12828_v59 = vor.u32 %v16541_v40, %v12825_v36 }
 0x5ef   :  { %v17361_v41 = vld [vmem:[%s25576_s7 + $0x1e9c] sm:$0xf0]  ;;  %v16557_v57 = vld [vmem:[%s25576_s7 + $0x584] sm:$0xf] }
 0x5f0   :  { %v15287_v52 = vld [vmem:[%s25576_s7 + $0x1840] sm:$0xf]  ;;  %v16088_v26 = vor.u32 %v17361_v41, %v16087_v43  ;;  %9768 = vmatpush.bf16.msra.mxu3 %v15832_v46  ;;  %v16621_v43 = vld [vmem:[%s25576_s7 + $0x784] sm:$0xf]  ;;  %v12636_v46 = vor.u32 %v16493_v24, %v12633_v25 }
 0x5f1   :  { %v17161_v63 = vld [vmem:[%s25576_s7 + $0x185c] sm:$0xf0]  ;;  %v13145_v41 = vld [vmem:[%s25576_s7 + $0x7a0] sm:$0xf0] }
 0x5f2   :  { %v15543_v32 = vld [vmem:[%s25576_s7 + $0x1a40] sm:$0xf]  ;;  %v15288_v12 = vor.u32 %v17161_v63, %v15287_v52  ;;  %9781 = vmatpush.bf16.msrb.mxu0 %v16088_v26  ;;  %v19767_v52 = vpack.c.b16 %v4425_v17, %v4425_v17  ;;  %v19769_v63 = vpack.c.b16 %v4426_v54, %v4426_v54  ;;  %v16421_v26 = vld [vmem:[%s25576_s7 + $0x144] sm:$0xf] }
 0x5f3   :  { %v17225_v19 = vld [vmem:[%s25576_s7 + $0x1a5c] sm:$0xf0]  ;;  %v12281_v55 = vld [vmem:[%s25576_s7 + $0xe0] sm:$0xf0] }
 0x5f4   :  { %v15799_v18 = vld [vmem:[%s25576_s7 + $0x1c40] sm:$0xf]  ;;  %v15544_v30 = vor.u32 %v17225_v19, %v15543_v32  ;;  %9743 = vmatpush.bf16.msra.mxu1 %v15288_v12  ;;  %v12345_v32 = vld [vmem:[%s25576_s7 + $0x160] sm:$0xf0]  ;;  %v19777_v19 = vpack.c.b16 %v4428_v56, %v4428_v56 }
 0x5f5   :  { %v17289_v15 = vld [vmem:[%s25576_s7 + $0x1c5c] sm:$0xf0]  ;;  %v12857_v12 = vld [vmem:[%s25576_s7 + $0x560] sm:$0xf0] }
 0x5f6   :  { %v16055_v29 = vld [vmem:[%s25576_s7 + $0x1e40] sm:$0xf]  ;;  %v15800_v21 = vor.u32 %v17289_v15, %v15799_v18  ;;  %9756 = vmatpush.bf16.msra.mxu2 %v15544_v30  ;;  %v12892_v18 = vor.u32 %v16557_v57, %v12889_v3  ;;  %v13148_v15 = vor.u32 %v16621_v43, %v13145_v41  ;;  %v16613_v30 = vld [vmem:[%s25576_s7 + $0x744] sm:$0xf] }
 0x5f7   :  { %v17353_v39 = vld [vmem:[%s25576_s7 + $0x1e5c] sm:$0xf0]  ;;  %v16469_v22 = vld [vmem:[%s25576_s7 + $0x2c4] sm:$0xf] }
 0x5f8   :  { %v15255_v4 = vld [vmem:[%s25576_s7 + $0x1800] sm:$0xf]  ;;  %v16056_v5 = vor.u32 %v17353_v39, %v16055_v29  ;;  %9769 = vmatpush.bf16.msra.mxu3 %v15800_v21  ;;  %v16485_v29 = vld [vmem:[%s25576_s7 + $0x344] sm:$0xf] }
 0x5f9   :  { %v17153_v1 = vld [vmem:[%s25576_s7 + $0x181c] sm:$0xf0]  ;;  %v12601_v39 = vld [vmem:[%s25576_s7 + $0x360] sm:$0xf0] }
 0x5fa   :  { %v15511_v37 = vld [vmem:[%s25576_s7 + $0x1a00] sm:$0xf]  ;;  %v15256_v42 = vor.u32 %v17153_v1, %v15255_v4  ;;  %9782 = vmatpush.bf16.msrb.mxu0 %v16056_v5  ;;  %v16549_v4 = vld [vmem:[%s25576_s7 + $0x544] sm:$0xf] }
 0x5fb   :  { %v17217_v58 = vld [vmem:[%s25576_s7 + $0x1a1c] sm:$0xf0]  ;;  %v13113_v1 = vld [vmem:[%s25576_s7 + $0x760] sm:$0xf0] }
 0x5fc   :  { %v15767_v14 = vld [vmem:[%s25576_s7 + $0x1c00] sm:$0xf]  ;;  %v15512_v16 = vor.u32 %v17217_v58, %v15511_v37  ;;  %9744 = vmatpush.bf16.msra.mxu1 %v15256_v42  ;;  %v12348_v37 = vor.u32 %v16421_v26, %v12345_v32  ;;  %v12604_v58 = vor.u32 %v16485_v29, %v12601_v39  ;;  %v16413_v21 = vld [vmem:[%s25576_s7 + $0x104] sm:$0xf] }
 0x5fd   :  { %v17281_v45 = vld [vmem:[%s25576_s7 + $0x1c1c] sm:$0xf0]  ;;  %v12313_v5 = vld [vmem:[%s25576_s7 + $0x120] sm:$0xf0] }
 0x5fe   :  { %v16023_v61 = vld [vmem:[%s25576_s7 + $0x1e00] sm:$0xf]  ;;  %v15768_v35 = vor.u32 %v17281_v45, %v15767_v14  ;;  %9757 = vmatpush.bf16.msra.mxu2 %v15512_v16  ;;  %v12860_v14 = vor.u32 %v16549_v4, %v12857_v12  ;;  %v13116_v45 = vor.u32 %v16613_v30, %v13113_v1  ;;  %v12316_v20 = vor.u32 %v16413_v21, %v12313_v5  ;;  %v16405_v16 = vld [vmem:[%s25576_s7 + $0xc4] sm:$0xf] }
 0x5ff   :  { %v17345_v50 = vld [vmem:[%s25576_s7 + $0x1e1c] sm:$0xf0]  ;;  %9745 = vmatmul.bf16.vlgmr.msra.gmra.mxu1 %v19767_v52  ;;  %v13049_v17 = vld [vmem:[%s25576_s7 + $0x6e0] sm:$0xf0]  ;;  %v12284_v54 = vor.u32 %v16405_v16, %v12281_v55 }
 0x600   :  { %v16024_v49 = vor.u32 %v17345_v50, %v16023_v61  ;;  %9770 = vmatpush.bf16.msra.mxu3 %v15768_v35  ;;  %9789 = vmatpush.bf16.msrb.mxu1 %v12412_v34  ;;  %v16477_v61 = vld [vmem:[%s25576_s7 + $0x304] sm:$0xf] }
 0x601   :  { %9758 = vmatmul.bf16.vlgmr.msra.gmra.mxu2 %v19769_v63  ;;  %v12569_v50 = vld [vmem:[%s25576_s7 + $0x320] sm:$0xf0] }
 0x602   :  { %9783 = vmatpush.bf16.msrb.mxu0 %v16024_v49  ;;  %9802 = vmatpush.bf16.msrb.mxu2 %v12668_v7  ;;  %v12572_v42 = vor.u32 %v16477_v61, %v12569_v50  ;;  %v12537_v35 = vld [vmem:[%s25576_s7 + $0x2e0] sm:$0xf0] }
 0x603   :  { %9771 = vmatmul.bf16.vlgmr.msra.gmra.mxu3 %v19765_v44  ;;  %v16533_v49 = vld [vmem:[%s25576_s7 + $0x4c4] sm:$0xf]  ;;  %v12540_v28 = vor.u32 %v16469_v22, %v12537_v35 }
 0x604   :  { %9815 = vmatpush.bf16.msrb.mxu3 %v12924_v13  ;;  %9790 = vmatpush.bf16.msrb.mxu1 %v12380_v60  ;;  %v12793_v34 = vld [vmem:[%s25576_s7 + $0x4e0] sm:$0xf0] }
 0x605   :  { %9784 = vmatmul.bf16.vlgmr.msrb.gmra.mxu0 %v19777_v19  ;;  %v16597_v7 = vld [vmem:[%s25576_s7 + $0x6c4] sm:$0xf]  ;;  %v12796_v13 = vor.u32 %v16533_v49, %v12793_v34 }
 0x606   :  { %9828 = vmatpush.bf16.msra.mxu0 %v13180_v48  ;;  %9803 = vmatpush.bf16.msrb.mxu2 %v12636_v46  ;;  %v16397_v0 = vld [vmem:[%s25576_s7 + $0x84] sm:$0xf]  ;;  %v13052_v48 = vor.u32 %v16597_v7, %v13049_v17 }
 0x607   :  { %v12249_v56 = vld [vmem:[%s25576_s7 + $0xa0] sm:$0xf0] }
 0x608   :  { %9816 = vmatpush.bf16.msrb.mxu3 %v12892_v18  ;;  %9791 = vmatpush.bf16.msrb.mxu1 %v12348_v37  ;;  %v16461_v24 = vld [vmem:[%s25576_s7 + $0x284] sm:$0xf]  ;;  %v12252_v60 = vor.u32 %v16397_v0, %v12249_v56 }
 0x609   :  { %v12505_v25 = vld [vmem:[%s25576_s7 + $0x2a0] sm:$0xf0] }
 0x60a   :  { %9829 = vmatpush.bf16.msra.mxu0 %v13148_v15  ;;  %9804 = vmatpush.bf16.msrb.mxu2 %v12604_v58  ;;  %v16525_v57 = vld [vmem:[%s25576_s7 + $0x484] sm:$0xf]  ;;  %v12508_v46 = vor.u32 %v16461_v24, %v12505_v25 }
 0x60b   :  { %v12761_v3 = vld [vmem:[%s25576_s7 + $0x4a0] sm:$0xf0] }
 0x60c   :  { %9817 = vmatpush.bf16.msrb.mxu3 %v12860_v14  ;;  %9792 = vmatpush.bf16.msrb.mxu1 %v12316_v20  ;;  %v16589_v43 = vld [vmem:[%s25576_s7 + $0x684] sm:$0xf]  ;;  %v12764_v18 = vor.u32 %v16525_v57, %v12761_v3 }
 0x60d   :  { %v13017_v41 = vld [vmem:[%s25576_s7 + $0x6a0] sm:$0xf0] }
 0x60e   :  { %9830 = vmatpush.bf16.msra.mxu0 %v13116_v45  ;;  %9805 = vmatpush.bf16.msrb.mxu2 %v12572_v42  ;;  %v16389_v26 = vld [vmem:[%s25576_s7 + $0x44] sm:$0xf]  ;;  %v13020_v15 = vor.u32 %v16589_v43, %v13017_v41 }
 0x60f   :  { %v12217_v32 = vld [vmem:[%s25576_s7 + $0x60] sm:$0xf0] }
 0x610   :  { %9818 = vmatpush.bf16.msrb.mxu3 %v12828_v59  ;;  %9793 = vmatpush.bf16.msrb.mxu1 %v12284_v54  ;;  %v16453_v29 = vld [vmem:[%s25576_s7 + $0x244] sm:$0xf]  ;;  %v12220_v58 = vor.u32 %v16389_v26, %v12217_v32 }
 0x611   :  { %v12473_v39 = vld [vmem:[%s25576_s7 + $0x260] sm:$0xf0] }
 0x612   :  { %9831 = vmatpush.bf16.msra.mxu0 %v13084_v53  ;;  %9806 = vmatpush.bf16.msrb.mxu2 %v12540_v28  ;;  %v16517_v4 = vld [vmem:[%s25576_s7 + $0x444] sm:$0xf]  ;;  %v12476_v21 = vor.u32 %v16453_v29, %v12473_v39 }
 0x613   :  { %v12729_v12 = vld [vmem:[%s25576_s7 + $0x460] sm:$0xf0] }
 0x614   :  { %9819 = vmatpush.bf16.msrb.mxu3 %v12796_v13  ;;  %v16581_v30 = vld [vmem:[%s25576_s7 + $0x644] sm:$0xf]  ;;  %9794 = vmatpush.bf16.msrb.mxu1 %v12252_v60  ;;  %v12732_v61 = vor.u32 %v16517_v4, %v12729_v12 }
 0x615   :  { %v12985_v1 = vld [vmem:[%s25576_s7 + $0x660] sm:$0xf0] }
 0x616   :  { %9832 = vmatpush.bf16.msra.mxu0 %v13052_v48  ;;  %v16381_v37 = vld [vmem:[%s25576_s7 + $0x4] sm:$0xf]  ;;  %9807 = vmatpush.bf16.msrb.mxu2 %v12508_v46  ;;  %v12988_v50 = vor.u32 %v16581_v30, %v12985_v1 }
 0x617   :  { %v12185_v5 = vld [vmem:[%s25576_s7 + $0x20] sm:$0xf0] }
 0x618   :  { %v16445_v14 = vld [vmem:[%s25576_s7 + $0x204] sm:$0xf]  ;;  %9820 = vmatpush.bf16.msrb.mxu3 %v12764_v18  ;;  %9795 = vmatpush.bf16.msrb.mxu1 %v12220_v58  ;;  %v12188_v53 = vor.u32 %v16381_v37, %v12185_v5 }
 0x619   :  { %v12441_v45 = vld [vmem:[%s25576_s7 + $0x220] sm:$0xf0] }
 0x61a   :  { %9833 = vmatpush.bf16.msra.mxu0 %v13020_v15  ;;  %v16509_v40 = vld [vmem:[%s25576_s7 + $0x404] sm:$0xf]  ;;  %9808 = vmatpush.bf16.msrb.mxu2 %v12476_v21  ;;  %v12444_v22 = vor.u32 %v16445_v14, %v12441_v45 }
 0x61b   :  { %v12697_v36 = vld [vmem:[%s25576_s7 + $0x420] sm:$0xf0] }
 0x61c   :  { %v16573_v9 = vld [vmem:[%s25576_s7 + $0x604] sm:$0xf]  ;;  %9821 = vmatpush.bf16.msrb.mxu3 %v12732_v61  ;;  %v12700_v7 = vor.u32 %v16509_v40, %v12697_v36  ;;  %9796 = vmatpush.bf16.msrb.mxu1 %v12188_v53 }
 0x61d   :  { %v12953_v11 = vld [vmem:[%s25576_s7 + $0x620] sm:$0xf0] }
 0x61e   :  { %v16693_v20 = vld [vmem:[%s25576_s7 + $0x9c4] sm:$0xf]  ;;  %9834 = vmatpush.bf16.msra.mxu0 %v12988_v50  ;;  %v12956_v17 = vor.u32 %v16573_v9, %v12953_v11  ;;  %9809 = vmatpush.bf16.msrb.mxu2 %v12444_v22 }
 0x61f   :  { %v13433_v42 = vld [vmem:[%s25576_s7 + $0x9e0] sm:$0xf0]  ;;  %9797 = vmatmul.bf16.vlgmr.msrb.gmra.mxu1 %v19296_v10 }
 0x620   :  { %v16757_v16 = vld [vmem:[%s25576_s7 + $0xbc4] sm:$0xf]  ;;  %v13436_v54 = vor.u32 %v16693_v20, %v13433_v42  ;;  %9822 = vmatpush.bf16.msrb.mxu3 %v12700_v7 }
 0x621   :  { %v13689_v55 = vld [vmem:[%s25576_s7 + $0xbe0] sm:$0xf0]  ;;  %9810 = vmatmul.bf16.vlgmr.msrb.gmra.mxu2 %v19298_v62 }
 0x622   :  { %v16821_v59 = vld [vmem:[%s25576_s7 + $0xdc4] sm:$0xf]  ;;  %v13692_v28 = vor.u32 %v16757_v16, %v13689_v55  ;;  %9835 = vmatpush.bf16.msra.mxu0 %v12956_v17  ;;  %9841 = vmatpush.bf16.msra.mxu1 %v13436_v54 }
 0x623   :  { %v13945_v35 = vld [vmem:[%s25576_s7 + $0xde0] sm:$0xf0]  ;;  %9823 = vmatmul.bf16.vlgmr.msrb.gmra.mxu3 %v19319_v6 }
 0x624   :  { %v16885_v49 = vld [vmem:[%s25576_s7 + $0xfc4] sm:$0xf]  ;;  %v13948_v13 = vor.u32 %v16821_v59, %v13945_v35  ;;  %9854 = vmatpush.bf16.msra.mxu2 %v13692_v28 }
 0x625   :  { %v14201_v34 = vld [vmem:[%s25576_s7 + $0xfe0] sm:$0xf0]  ;;  %9836 = vmatmul.bf16.vlgmr.msra.gmra.mxu0 %v19321_v23 }
 0x626   :  { %v16685_v0 = vld [vmem:[%s25576_s7 + $0x984] sm:$0xf]  ;;  %v14204_v48 = vor.u32 %v16885_v49, %v14201_v34  ;;  %9867 = vmatpush.bf16.msra.mxu3 %v13948_v13 }
 0x627   :  { %v13401_v56 = vld [vmem:[%s25576_s7 + $0x9a0] sm:$0xf0] }
 0x628   :  { %v16749_v24 = vld [vmem:[%s25576_s7 + $0xb84] sm:$0xf]  ;;  %v13404_v60 = vor.u32 %v16685_v0, %v13401_v56  ;;  %9880 = vmatpush.bf16.msrb.mxu0 %v14204_v48 }
 0x629   :  { %v13657_v25 = vld [vmem:[%s25576_s7 + $0xba0] sm:$0xf0] }
 0x62a   :  { %v16813_v57 = vld [vmem:[%s25576_s7 + $0xd84] sm:$0xf]  ;;  %v13660_v46 = vor.u32 %v16749_v24, %v13657_v25  ;;  %9842 = vmatpush.bf16.msra.mxu1 %v13404_v60 }
 0x62b   :  { %v13913_v3 = vld [vmem:[%s25576_s7 + $0xda0] sm:$0xf0] }
 0x62c   :  { %v16877_v43 = vld [vmem:[%s25576_s7 + $0xf84] sm:$0xf]  ;;  %v13916_v18 = vor.u32 %v16813_v57, %v13913_v3  ;;  %9855 = vmatpush.bf16.msra.mxu2 %v13660_v46 }
 0x62d   :  { %v14169_v41 = vld [vmem:[%s25576_s7 + $0xfa0] sm:$0xf0] }
 0x62e   :  { %v16677_v26 = vld [vmem:[%s25576_s7 + $0x944] sm:$0xf]  ;;  %v14172_v15 = vor.u32 %v16877_v43, %v14169_v41  ;;  %9868 = vmatpush.bf16.msra.mxu3 %v13916_v18 }
 0x62f   :  { %v13369_v32 = vld [vmem:[%s25576_s7 + $0x960] sm:$0xf0] }
 0x630   :  { %v16741_v29 = vld [vmem:[%s25576_s7 + $0xb44] sm:$0xf]  ;;  %v13372_v37 = vor.u32 %v16677_v26, %v13369_v32  ;;  %9881 = vmatpush.bf16.msrb.mxu0 %v14172_v15 }
 0x631   :  { %v13625_v39 = vld [vmem:[%s25576_s7 + $0xb60] sm:$0xf0] }
 0x632   :  { %v16805_v4 = vld [vmem:[%s25576_s7 + $0xd44] sm:$0xf]  ;;  %v13628_v58 = vor.u32 %v16741_v29, %v13625_v39  ;;  %9843 = vmatpush.bf16.msra.mxu1 %v13372_v37 }
 0x633   :  { %v13881_v12 = vld [vmem:[%s25576_s7 + $0xd60] sm:$0xf0] }
 0x634   :  { %v16869_v30 = vld [vmem:[%s25576_s7 + $0xf44] sm:$0xf]  ;;  %v13884_v14 = vor.u32 %v16805_v4, %v13881_v12  ;;  %9856 = vmatpush.bf16.msra.mxu2 %v13628_v58 }
 0x635   :  { %v14137_v1 = vld [vmem:[%s25576_s7 + $0xf60] sm:$0xf0] }
 0x636   :  { %v16669_v21 = vld [vmem:[%s25576_s7 + $0x904] sm:$0xf]  ;;  %v14140_v45 = vor.u32 %v16869_v30, %v14137_v1  ;;  %9869 = vmatpush.bf16.msra.mxu3 %v13884_v14 }
 0x637   :  { %v13337_v5 = vld [vmem:[%s25576_s7 + $0x920] sm:$0xf0] }
 0x638   :  { %v16733_v61 = vld [vmem:[%s25576_s7 + $0xb04] sm:$0xf]  ;;  %v13340_v20 = vor.u32 %v16669_v21, %v13337_v5  ;;  %9882 = vmatpush.bf16.msrb.mxu0 %v14140_v45 }
 0x639   :  { %v13593_v50 = vld [vmem:[%s25576_s7 + $0xb20] sm:$0xf0] }
 0x63a   :  { %v16797_v40 = vld [vmem:[%s25576_s7 + $0xd04] sm:$0xf]  ;;  %v13596_v42 = vor.u32 %v16733_v61, %v13593_v50  ;;  %9844 = vmatpush.bf16.msra.mxu1 %v13340_v20 }
 0x63b   :  { %v13849_v36 = vld [vmem:[%s25576_s7 + $0xd20] sm:$0xf0] }
 0x63c   :  { %v16861_v9 = vld [vmem:[%s25576_s7 + $0xf04] sm:$0xf]  ;;  %v13852_v59 = vor.u32 %v16797_v40, %v13849_v36  ;;  %9857 = vmatpush.bf16.msra.mxu2 %v13596_v42 }
 0x63d   :  { %v14105_v11 = vld [vmem:[%s25576_s7 + $0xf20] sm:$0xf0] }
 0x63e   :  { %v16661_v16 = vld [vmem:[%s25576_s7 + $0x8c4] sm:$0xf]  ;;  %v14108_v53 = vor.u32 %v16861_v9, %v14105_v11  ;;  %9870 = vmatpush.bf16.msra.mxu3 %v13852_v59 }
 0x63f   :  { %v13305_v55 = vld [vmem:[%s25576_s7 + $0x8e0] sm:$0xf0] }
 0x640   :  { %v16725_v22 = vld [vmem:[%s25576_s7 + $0xac4] sm:$0xf]  ;;  %v13308_v54 = vor.u32 %v16661_v16, %v13305_v55  ;;  %9883 = vmatpush.bf16.msrb.mxu0 %v14108_v53 }
 0x641   :  { %v13561_v35 = vld [vmem:[%s25576_s7 + $0xae0] sm:$0xf0] }
 0x642   :  { %v16789_v49 = vld [vmem:[%s25576_s7 + $0xcc4] sm:$0xf]  ;;  %v13564_v28 = vor.u32 %v16725_v22, %v13561_v35  ;;  %9845 = vmatpush.bf16.msra.mxu1 %v13308_v54 }
 0x643   :  { %v13817_v34 = vld [vmem:[%s25576_s7 + $0xce0] sm:$0xf0] }
 0x644   :  { %v16853_v7 = vld [vmem:[%s25576_s7 + $0xec4] sm:$0xf]  ;;  %v13820_v13 = vor.u32 %v16789_v49, %v13817_v34  ;;  %9858 = vmatpush.bf16.msra.mxu2 %v13564_v28 }
 0x645   :  { %v14073_v17 = vld [vmem:[%s25576_s7 + $0xee0] sm:$0xf0] }
 0x646   :  { %v16653_v0 = vld [vmem:[%s25576_s7 + $0x884] sm:$0xf]  ;;  %v14076_v48 = vor.u32 %v16853_v7, %v14073_v17  ;;  %9871 = vmatpush.bf16.msra.mxu3 %v13820_v13 }
 0x647   :  { %v13273_v56 = vld [vmem:[%s25576_s7 + $0x8a0] sm:$0xf0] }
 0x648   :  { %v16717_v24 = vld [vmem:[%s25576_s7 + $0xa84] sm:$0xf]  ;;  %v13276_v60 = vor.u32 %v16653_v0, %v13273_v56  ;;  %9884 = vmatpush.bf16.msrb.mxu0 %v14076_v48 }
 0x649   :  { %v13529_v25 = vld [vmem:[%s25576_s7 + $0xaa0] sm:$0xf0] }
 0x64a   :  { %v16781_v57 = vld [vmem:[%s25576_s7 + $0xc84] sm:$0xf]  ;;  %v13532_v46 = vor.u32 %v16717_v24, %v13529_v25  ;;  %9846 = vmatpush.bf16.msra.mxu1 %v13276_v60 }
 0x64b   :  { %v13785_v3 = vld [vmem:[%s25576_s7 + $0xca0] sm:$0xf0] }
 0x64c   :  { %v16845_v43 = vld [vmem:[%s25576_s7 + $0xe84] sm:$0xf]  ;;  %v13788_v18 = vor.u32 %v16781_v57, %v13785_v3  ;;  %9859 = vmatpush.bf16.msra.mxu2 %v13532_v46 }
 0x64d   :  { %v14041_v41 = vld [vmem:[%s25576_s7 + $0xea0] sm:$0xf0] }
 0x64e   :  { %v16645_v26 = vld [vmem:[%s25576_s7 + $0x844] sm:$0xf]  ;;  %v14044_v15 = vor.u32 %v16845_v43, %v14041_v41  ;;  %9872 = vmatpush.bf16.msra.mxu3 %v13788_v18 }
 0x64f   :  { %v13241_v32 = vld [vmem:[%s25576_s7 + $0x860] sm:$0xf0] }
 0x650   :  { %v16709_v29 = vld [vmem:[%s25576_s7 + $0xa44] sm:$0xf]  ;;  %v13244_v58 = vor.u32 %v16645_v26, %v13241_v32  ;;  %9885 = vmatpush.bf16.msrb.mxu0 %v14044_v15 }
 0x651   :  { %v13497_v39 = vld [vmem:[%s25576_s7 + $0xa60] sm:$0xf0] }
 0x652   :  { %v16773_v4 = vld [vmem:[%s25576_s7 + $0xc44] sm:$0xf]  ;;  %v13500_v21 = vor.u32 %v16709_v29, %v13497_v39  ;;  %9847 = vmatpush.bf16.msra.mxu1 %v13244_v58  ;;  %v9590_v58 = vpop.f32.mrf.mxu1 }
 0x653   :  { %v13753_v12 = vld [vmem:[%s25576_s7 + $0xc60] sm:$0xf0] }
 0x654   :  { %v16837_v30 = vld [vmem:[%s25576_s7 + $0xe44] sm:$0xf]  ;;  %v13756_v61 = vor.u32 %v16773_v4, %v13753_v12  ;;  %9860 = vmatpush.bf16.msra.mxu2 %v13500_v21 }
 0x655   :  { %v14009_v1 = vld [vmem:[%s25576_s7 + $0xe60] sm:$0xf0] }
 0x656   :  { %v16637_v37 = vld [vmem:[%s25576_s7 + $0x804] sm:$0xf]  ;;  %v14012_v50 = vor.u32 %v16837_v30, %v14009_v1  ;;  %9873 = vmatpush.bf16.msra.mxu3 %v13756_v61 }
 0x657   :  { %v13209_v5 = vld [vmem:[%s25576_s7 + $0x820] sm:$0xf0] }
 0x658   :  { %v16701_v14 = vld [vmem:[%s25576_s7 + $0xa04] sm:$0xf]  ;;  %v13212_v53 = vor.u32 %v16637_v37, %v13209_v5  ;;  %9886 = vmatpush.bf16.msrb.mxu0 %v14012_v50 }
 0x659   :  { %v13465_v45 = vld [vmem:[%s25576_s7 + $0xa20] sm:$0xf0] }
 0x65a   :  { %v16765_v40 = vld [vmem:[%s25576_s7 + $0xc04] sm:$0xf]  ;;  %v13468_v22 = vor.u32 %v16701_v14, %v13465_v45  ;;  %9848 = vmatpush.bf16.msra.mxu1 %v13212_v53 }
 0x65b   :  { %v13721_v36 = vld [vmem:[%s25576_s7 + $0xc20] sm:$0xf0] }
 0x65c   :  { %v16829_v9 = vld [vmem:[%s25576_s7 + $0xe04] sm:$0xf]  ;;  %v13724_v7 = vor.u32 %v16765_v40, %v13721_v36  ;;  %9861 = vmatpush.bf16.msra.mxu2 %v13468_v22 }
 0x65d   :  { %v13977_v11 = vld [vmem:[%s25576_s7 + $0xe20] sm:$0xf0]  ;;  %9849 = vmatmul.bf16.vlgmr.msra.gmra.mxu1 %v19422_v51 }
 0x65e   :  { %v16949_v20 = vld [vmem:[%s25576_s7 + $0x11c4] sm:$0xf]  ;;  %v13980_v17 = vor.u32 %v16829_v9, %v13977_v11  ;;  %9874 = vmatpush.bf16.msra.mxu3 %v13724_v7 }
 0x65f   :  { %v14457_v42 = vld [vmem:[%s25576_s7 + $0x11e0] sm:$0xf0]  ;;  %9862 = vmatmul.bf16.vlgmr.msra.gmra.mxu2 %v19424_v38 }
 0x660   :  { %v17013_v16 = vld [vmem:[%s25576_s7 + $0x13c4] sm:$0xf]  ;;  %v14460_v54 = vor.u32 %v16949_v20, %v14457_v42  ;;  %9887 = vmatpush.bf16.msrb.mxu0 %v13980_v17  ;;  %v9629_v20 = vpop.f32.mrf.mxu0  ;;  %v9603_v17 = vpop.f32.mrf.mxu2 }
 0x661   :  { %v14713_v55 = vld [vmem:[%s25576_s7 + $0x13e0] sm:$0xf0]  ;;  %9875 = vmatmul.bf16.vlgmr.msra.gmra.mxu3 %v19447_v27 }
 0x662   :  { %v17077_v59 = vld [vmem:[%s25576_s7 + $0x15c4] sm:$0xf]  ;;  %v14716_v28 = vor.u32 %v17013_v16, %v14713_v55  ;;  %9893 = vmatpush.bf16.msrb.mxu1 %v14460_v54 }
 0x663   :  { %v14969_v35 = vld [vmem:[%s25576_s7 + $0x15e0] sm:$0xf0]  ;;  %9888 = vmatmul.bf16.vlgmr.msrb.gmra.mxu0 %v19449_v47 }
 0x664   :  { %v17141_v49 = vld [vmem:[%s25576_s7 + $0x17c4] sm:$0xf]  ;;  %v14972_v13 = vor.u32 %v17077_v59, %v14969_v35  ;;  %9906 = vmatpush.bf16.msrb.mxu2 %v14716_v28 }
 0x665   :  { %v15225_v34 = vld [vmem:[%s25576_s7 + $0x17e0] sm:$0xf0] }
 0x666   :  { %v16941_v0 = vld [vmem:[%s25576_s7 + $0x1184] sm:$0xf]  ;;  %v15228_v48 = vor.u32 %v17141_v49, %v15225_v34  ;;  %9919 = vmatpush.bf16.msrb.mxu3 %v14972_v13 }
 0x667   :  { %v14425_v56 = vld [vmem:[%s25576_s7 + $0x11a0] sm:$0xf0] }
 0x668   :  { %v17005_v24 = vld [vmem:[%s25576_s7 + $0x1384] sm:$0xf]  ;;  %v14428_v60 = vor.u32 %v16941_v0, %v14425_v56  ;;  %9932 = vmatpush.bf16.msra.mxu0 %v15228_v48 }
 0x669   :  { %v14681_v25 = vld [vmem:[%s25576_s7 + $0x13a0] sm:$0xf0] }
 0x66a   :  { %v17069_v57 = vld [vmem:[%s25576_s7 + $0x1584] sm:$0xf]  ;;  %v14684_v46 = vor.u32 %v17005_v24, %v14681_v25  ;;  %9894 = vmatpush.bf16.msrb.mxu1 %v14428_v60  ;;  %v9592_v25 = vpop.f32.mrf.mxu1 }
 0x66b   :  { %v14937_v3 = vld [vmem:[%s25576_s7 + $0x15a0] sm:$0xf0] }
 0x66c   :  { %v17133_v43 = vld [vmem:[%s25576_s7 + $0x1784] sm:$0xf]  ;;  %v14940_v15 = vor.u32 %v17069_v57, %v14937_v3  ;;  %9907 = vmatpush.bf16.msrb.mxu2 %v14684_v46  ;;  %v9616_v57 = vpop.f32.mrf.mxu3 }
 0x66d   :  { %v15193_v41 = vld [vmem:[%s25576_s7 + $0x17a0] sm:$0xf0] }
 0x66e   :  { %v16933_v26 = vld [vmem:[%s25576_s7 + $0x1144] sm:$0xf]  ;;  %v15196_v29 = vor.u32 %v17133_v43, %v15193_v41  ;;  %9920 = vmatpush.bf16.msrb.mxu3 %v14940_v15 }
 0x66f   :  { %v14393_v32 = vld [vmem:[%s25576_s7 + $0x1160] sm:$0xf0] }
 0x670   :  { %v16997_v18 = vld [vmem:[%s25576_s7 + $0x1344] sm:$0xf]  ;;  %v14396_v21 = vor.u32 %v16933_v26, %v14393_v32  ;;  %9933 = vmatpush.bf16.msra.mxu0 %v15196_v29 }
 0x671   :  { %v14649_v39 = vld [vmem:[%s25576_s7 + $0x1360] sm:$0xf0] }
 0x672   :  { %v17061_v4 = vld [vmem:[%s25576_s7 + $0x1544] sm:$0xf]  ;;  %v14652_v5 = vor.u32 %v16997_v18, %v14649_v39  ;;  %9895 = vmatpush.bf16.msrb.mxu1 %v14396_v21  ;;  %v9631_v39 = vpop.f32.mrf.mxu0 }
 0x673   :  { %v20183_v12 = vld [vmem:[%s25579_s8] sm:$0xff] }
 0x674   :  { %v14905_v30 = vld [vmem:[%s25576_s7 + $0x1560] sm:$0xf0]  ;;  %v4389_v14 = vperm.slane %v20183_v12, 0  ;;  %9908 = vmatpush.bf16.msrb.mxu2 %v14652_v5 }
 0x675   :  { %v17125_v1 = vld [vmem:[%s25576_s7 + $0x1744] sm:$0xf]  ;;  %v14908_v50 = vor.u32 %v17061_v4, %v14905_v30 }
 0x676   :  { %v15161_v37 = vld [vmem:[%s25576_s7 + $0x1760] sm:$0xf0]  ;;  %v9591_v59 = vadd.f32 %v9590_v58, %v4389_v14 }
 0x677   :  { %v16925_v45 = vld [vmem:[%s25576_s7 + $0x1104] sm:$0xf]  ;;  %v15164_v40 = vor.u32 %v17125_v1, %v15161_v37  ;;  %9921 = vmatpush.bf16.msrb.mxu3 %v14908_v50  ;;  %v9605_v50 = vpop.f32.mrf.mxu2 }
 0x678   :  { %v14361_v61 = vld [vmem:[%s25576_s7 + $0x1120] sm:$0xf0]  ;;  %v9604_v56 = vadd.f32 %v9603_v17, %v9591_v59 }
 0x679   :  { %v16989_v36 = vld [vmem:[%s25576_s7 + $0x1304] sm:$0xf]  ;;  %v14364_v53 = vor.u32 %v16925_v45, %v14361_v61  ;;  %9934 = vmatpush.bf16.msra.mxu0 %v15164_v40 }
 0x67a   :  { %v14617_v9 = vld [vmem:[%s25576_s7 + $0x1320] sm:$0xf0]  ;;  %v9617_v46 = vadd.f32 %v9616_v57, %v9604_v56 }
 0x67b   :  { %v17053_v11 = vld [vmem:[%s25576_s7 + $0x1504] sm:$0xf]  ;;  %v14620_v22 = vor.u32 %v16989_v36, %v14617_v9  ;;  %9896 = vmatpush.bf16.msrb.mxu1 %v14364_v53 }
 0x67c   :  { %v14873_v42 = vld [vmem:[%s25576_s7 + $0x1520] sm:$0xf0]  ;;  %v9630_v37 = vadd.f32 %v9629_v20, %v9617_v46 }
 0x67d   :  { %v17117_v16 = vld [vmem:[%s25576_s7 + $0x1704] sm:$0xf]  ;;  %v14876_v34 = vor.u32 %v17053_v11, %v14873_v42  ;;  %9909 = vmatpush.bf16.msrb.mxu2 %v14620_v22  ;;  %v9642_v22 = vpop.f32.mrf.mxu1 }
 0x67e   :  { %v15129_v55 = vld [vmem:[%s25576_s7 + $0x1720] sm:$0xf0] }
 0x67f   :  { %v16917_v35 = vld [vmem:[%s25576_s7 + $0x10c4] sm:$0xf]  ;;  %v15132_v7 = vor.u32 %v17117_v16, %v15129_v55  ;;  %9922 = vmatpush.bf16.msrb.mxu3 %v14876_v34  ;;  %v9618_v55 = vpop.f32.mrf.mxu3 }
 0x680   :  { %v14329_v49 = vld [vmem:[%s25576_s7 + $0x10e0] sm:$0xf0] }
 0x681   :  { %v16981_v54 = vld [vmem:[%s25576_s7 + $0x12c4] sm:$0xf]  ;;  %v14332_v3 = vor.u32 %v16917_v35, %v14329_v49  ;;  %9935 = vmatpush.bf16.msra.mxu0 %v15132_v7 }
 0x682   :  { %v14585_v28 = vld [vmem:[%s25576_s7 + $0x12e0] sm:$0xf0] }
 0x683   :  { %v17045_v0 = vld [vmem:[%s25576_s7 + $0x14c4] sm:$0xf]  ;;  %v14588_v43 = vor.u32 %v16981_v54, %v14585_v28  ;;  %9897 = vmatpush.bf16.msrb.mxu1 %v14332_v3  ;;  %v9643_v54 = vadd.f32 %v9642_v22, %v9630_v37 }
 0x684   :  { %v14841_v13 = vld [vmem:[%s25576_s7 + $0x14e0] sm:$0xf0] }
 0x685   :  { %v17109_v48 = vld [vmem:[%s25576_s7 + $0x16c4] sm:$0xf]  ;;  %v14844_v26 = vor.u32 %v17045_v0, %v14841_v13  ;;  %9910 = vmatpush.bf16.msrb.mxu2 %v14588_v43  ;;  %v9681_v13 = vpop.f32.mrf.mxu0  ;;  %v9644_v50 = vpop.f32.mrf.mxu1 }
 0x686   :  { %v15097_v24 = vld [vmem:[%s25576_s7 + $0x16e0] sm:$0xf0] }
 0x687   :  { %v16909_v41 = vld [vmem:[%s25576_s7 + $0x1084] sm:$0xf]  ;;  %v15100_v32 = vor.u32 %v17109_v48, %v15097_v24  ;;  %9923 = vmatpush.bf16.msrb.mxu3 %v14844_v26 }
 0x688   :  { %v14297_v60 = vld [vmem:[%s25576_s7 + $0x10a0] sm:$0xf0] }
 0x689   :  { %v16973_v18 = vld [vmem:[%s25576_s7 + $0x1284] sm:$0xf]  ;;  %v14300_v58 = vor.u32 %v16909_v41, %v14297_v60  ;;  %9936 = vmatpush.bf16.msra.mxu0 %v15100_v32 }
 0x68a   :  { %v14553_v15 = vld [vmem:[%s25576_s7 + $0x12a0] sm:$0xf0] }
 0x68b   :  { %v17037_v29 = vld [vmem:[%s25576_s7 + $0x1484] sm:$0xf]  ;;  %v14556_v21 = vor.u32 %v16973_v18, %v14553_v15  ;;  %9898 = vmatpush.bf16.msrb.mxu1 %v14300_v58 }
 0x68c   :  { %v14809_v4 = vld [vmem:[%s25576_s7 + $0x14a0] sm:$0xf0] }
 0x68d   :  { %v17101_v30 = vld [vmem:[%s25576_s7 + $0x1684] sm:$0xf]  ;;  %v14812_v45 = vor.u32 %v17037_v29, %v14809_v4  ;;  %9911 = vmatpush.bf16.msrb.mxu2 %v14556_v21  ;;  %v9655_v4 = vpop.f32.mrf.mxu2 }
 0x68e   :  { %v15065_v1 = vld [vmem:[%s25576_s7 + $0x16a0] sm:$0xf0]  ;;  %v9656_v21 = vadd.f32 %v9655_v4, %v9643_v54 }
 0x68f   :  { %v16901_v5 = vld [vmem:[%s25576_s7 + $0x1044] sm:$0xf]  ;;  %v15068_v61 = vor.u32 %v17101_v30, %v15065_v1  ;;  %9924 = vmatpush.bf16.msrb.mxu3 %v14812_v45 }
 0x690   :  { %v14265_v14 = vld [vmem:[%s25576_s7 + $0x1060] sm:$0xf0] }
 0x691   :  { %v16965_v40 = vld [vmem:[%s25576_s7 + $0x1244] sm:$0xf]  ;;  %v14268_v59 = vor.u32 %v16901_v5, %v14265_v14  ;;  %9937 = vmatpush.bf16.msra.mxu0 %v15068_v61  ;;  %v9668_v61 = vpop.f32.mrf.mxu3 }
 0x692   :  { %v14521_v36 = vld [vmem:[%s25576_s7 + $0x1260] sm:$0xf0] }
 0x693   :  { %v17029_v9 = vld [vmem:[%s25576_s7 + $0x1444] sm:$0xf]  ;;  %v14524_v53 = vor.u32 %v16965_v40, %v14521_v36  ;;  %9899 = vmatpush.bf16.msrb.mxu1 %v14268_v59 }
 0x694   :  { %v14777_v11 = vld [vmem:[%s25576_s7 + $0x1460] sm:$0xf0] }
 0x695   :  { %v17093_v20 = vld [vmem:[%s25576_s7 + $0x1644] sm:$0xf]  ;;  %v14780_v7 = vor.u32 %v17029_v9, %v14777_v11  ;;  %9912 = vmatpush.bf16.msrb.mxu2 %v14524_v53  ;;  %v9669_v11 = vadd.f32 %v9668_v61, %v9656_v21 }
 0x696   :  { %v15033_v42 = vld [vmem:[%s25576_s7 + $0x1660] sm:$0xf0] }
 0x697   :  { %v16893_v16 = vld [vmem:[%s25576_s7 + $0x1004] sm:$0xf]  ;;  %v15036_v17 = vor.u32 %v17093_v20, %v15033_v42  ;;  %9925 = vmatpush.bf16.msrb.mxu3 %v14780_v7  ;;  %v9683_v20 = vpop.f32.mrf.mxu0  ;;  %v9682_v7 = vadd.f32 %v9681_v13, %v9669_v11  ;;  %v9657_v13 = vpop.f32.mrf.mxu2 }
 0x698   :  { %v14233_v35 = vld [vmem:[%s25576_s7 + $0x1020] sm:$0xf0] }
 0x699   :  { %v16957_v49 = vld [vmem:[%s25576_s7 + $0x1204] sm:$0xf]  ;;  %v14236_v41 = vor.u32 %v16893_v16, %v14233_v35  ;;  %9938 = vmatpush.bf16.msra.mxu0 %v15036_v17 }
 0x69a   :  { %v14489_v34 = vld [vmem:[%s25576_s7 + $0x1220] sm:$0xf0] }
 0x69b   :  { %v17021_v28 = vld [vmem:[%s25576_s7 + $0x1404] sm:$0xf]  ;;  %v14492_v60 = vor.u32 %v16957_v49, %v14489_v34  ;;  %9900 = vmatpush.bf16.msrb.mxu1 %v14236_v41 }
 0x69c   :  { %v14745_v0 = vld [vmem:[%s25576_s7 + $0x1420] sm:$0xf0] }
 0x69d   :  { %v17085_v56 = vld [vmem:[%s25576_s7 + $0x1604] sm:$0xf]  ;;  %v14748_v18 = vor.u32 %v17021_v28, %v14745_v0  ;;  %9913 = vmatpush.bf16.msrb.mxu2 %v14492_v60  ;;  %v9670_v60 = vpop.f32.mrf.mxu3 }
 0x69e   :  { %v15001_v48 = vld [vmem:[%s25576_s7 + $0x1620] sm:$0xf0]  ;;  %9901 = vmatmul.bf16.vlgmr.msrb.gmra.mxu1 %v19553_v8 }
 0x69f   :  { %v17205_v24 = vld [vmem:[%s25576_s7 + $0x19c4] sm:$0xf]  ;;  %v15004_v15 = vor.u32 %v17085_v56, %v15001_v48  ;;  %9926 = vmatpush.bf16.msrb.mxu3 %v14748_v18  ;;  %v9694_v18 = vpop.f32.mrf.mxu1 }
 0x6a0   :  { %v15481_v25 = vld [vmem:[%s25576_s7 + $0x19e0] sm:$0xf0]  ;;  %9914 = vmatmul.bf16.vlgmr.msrb.gmra.mxu2 %v19555_v33 }
 0x6a1   :  { %v17269_v57 = vld [vmem:[%s25576_s7 + $0x1bc4] sm:$0xf]  ;;  %v15484_v29 = vor.u32 %v17205_v24, %v15481_v25  ;;  %9939 = vmatpush.bf16.msra.mxu0 %v15004_v15  ;;  %v9695_v15 = vadd.f32 %v9694_v18, %v9682_v7 }
 0x6a2   :  { %v15737_v3 = vld [vmem:[%s25576_s7 + $0x1be0] sm:$0xf0]  ;;  %9927 = vmatmul.bf16.vlgmr.msrb.gmra.mxu3 %v19564_v31 }
 0x6a3   :  { %v17333_v43 = vld [vmem:[%s25576_s7 + $0x1dc4] sm:$0xf]  ;;  %v15740_v39 = vor.u32 %v17269_v57, %v15737_v3  ;;  %9945 = vmatpush.bf16.msra.mxu1 %v15484_v29  ;;  %v9733_v29 = vpop.f32.mrf.mxu0 }
 0x6a4   :  { %v15993_v46 = vld [vmem:[%s25576_s7 + $0x1de0] sm:$0xf0]  ;;  %9940 = vmatmul.bf16.vlgmr.msra.gmra.mxu0 %v19566_v2 }
 0x6a5   :  { %v17397_v26 = vld [vmem:[%s25576_s7 + $0x1fc4] sm:$0xf]  ;;  %v15996_v37 = vor.u32 %v17333_v43, %v15993_v46  ;;  %9958 = vmatpush.bf16.msra.mxu2 %v15740_v39 }
 0x6a6   :  { %v16249_v32 = vld [vmem:[%s25576_s7 + $0x1fe0] sm:$0xf0] }
 0x6a7   :  { %v17197_v30 = vld [vmem:[%s25576_s7 + $0x1984] sm:$0xf]  ;;  %v16252_v58 = vor.u32 %v17397_v26, %v16249_v32  ;;  %9971 = vmatpush.bf16.msra.mxu3 %v15996_v37 }
 0x6a8   :  { %v15449_v1 = vld [vmem:[%s25576_s7 + $0x19a0] sm:$0xf0] }
 0x6a9   :  { %v17261_v5 = vld [vmem:[%s25576_s7 + $0x1b84] sm:$0xf]  ;;  %v15452_v42 = vor.u32 %v17197_v30, %v15449_v1  ;;  %9984 = vmatpush.bf16.msrb.mxu0 %v16252_v58 }
 0x6aa   :  { %v15705_v14 = vld [vmem:[%s25576_s7 + $0x1ba0] sm:$0xf0] }
 0x6ab   :  { %v17325_v45 = vld [vmem:[%s25576_s7 + $0x1d84] sm:$0xf]  ;;  %v15708_v16 = vor.u32 %v17261_v5, %v15705_v14  ;;  %9946 = vmatpush.bf16.msra.mxu1 %v15452_v42 }
 0x6ac   :  { %v15961_v40 = vld [vmem:[%s25576_s7 + $0x1da0] sm:$0xf0] }
 0x6ad   :  { %v17389_v36 = vld [vmem:[%s25576_s7 + $0x1f84] sm:$0xf]  ;;  %v15964_v53 = vor.u32 %v17325_v45, %v15961_v40  ;;  %9959 = vmatpush.bf16.msra.mxu2 %v15708_v16  ;;  %v9707_v16 = vpop.f32.mrf.mxu2 }
 0x6ae   :  { %v16217_v9 = vld [vmem:[%s25576_s7 + $0x1fa0] sm:$0xf0] }
 0x6af   :  { %v17189_v55 = vld [vmem:[%s25576_s7 + $0x1944] sm:$0xf]  ;;  %v16220_v22 = vor.u32 %v17389_v36, %v16217_v9  ;;  %9972 = vmatpush.bf16.msra.mxu3 %v15964_v53 }
 0x6b0   :  { %v15417_v59 = vld [vmem:[%s25576_s7 + $0x1960] sm:$0xf0] }
 0x6b1   :  { %v17253_v35 = vld [vmem:[%s25576_s7 + $0x1b44] sm:$0xf]  ;;  %v15420_v0 = vor.u32 %v17189_v55, %v15417_v59  ;;  %9985 = vmatpush.bf16.msrb.mxu0 %v16220_v22  ;;  %v9708_v22 = vadd.f32 %v9707_v16, %v9695_v15  ;;  %v13183_v16 = vld [vmem:[%s25576_s7 + $0x7c8] sm:$0xf] }
 0x6b2   :  { %v15673_v49 = vld [vmem:[%s25576_s7 + $0x1b60] sm:$0xf0] }
 0x6b3   :  { %v17317_v34 = vld [vmem:[%s25576_s7 + $0x1d44] sm:$0xf]  ;;  %v15676_v56 = vor.u32 %v17253_v35, %v15673_v49  ;;  %9947 = vmatpush.bf16.msra.mxu1 %v15420_v0  ;;  %v9720_v35 = vpop.f32.mrf.mxu3 }
 0x6b4   :  { %v15929_v17 = vld [vmem:[%s25576_s7 + $0x1d60] sm:$0xf0] }
 0x6b5   :  { %v17381_v54 = vld [vmem:[%s25576_s7 + $0x1f44] sm:$0xf]  ;;  %v15932_v25 = vor.u32 %v17317_v34, %v15929_v17  ;;  %9960 = vmatpush.bf16.msra.mxu2 %v15676_v56  ;;  %v9696_v17 = vpop.f32.mrf.mxu1 }
 0x6b6   :  { %v16185_v28 = vld [vmem:[%s25576_s7 + $0x1f60] sm:$0xf0] }
 0x6b7   :  { %v17181_v48 = vld [vmem:[%s25576_s7 + $0x1904] sm:$0xf]  ;;  %v16188_v57 = vor.u32 %v17381_v54, %v16185_v28  ;;  %9973 = vmatpush.bf16.msra.mxu3 %v15932_v25  ;;  %v9721_v54 = vadd.f32 %v9720_v35, %v9708_v22  ;;  %v9735_v28 = vpop.f32.mrf.mxu0 }
 0x6b8   :  { %v15385_v24 = vld [vmem:[%s25576_s7 + $0x1920] sm:$0xf0]  ;;  %v16498_v28 = vld [vmem:[%s25576_s7 + $0x3a4] sm:$0xf0] }
 0x6b9   :  { %v17245_v3 = vld [vmem:[%s25576_s7 + $0x1b04] sm:$0xf]  ;;  %v15388_v39 = vor.u32 %v17181_v48, %v15385_v24  ;;  %9986 = vmatpush.bf16.msrb.mxu0 %v16188_v57 }
 0x6ba   :  { %v15641_v43 = vld [vmem:[%s25576_s7 + $0x1b20] sm:$0xf0] }
 0x6bb   :  { %v17309_v41 = vld [vmem:[%s25576_s7 + $0x1d04] sm:$0xf]  ;;  %v15644_v4 = vor.u32 %v17245_v3, %v15641_v43  ;;  %9948 = vmatpush.bf16.msra.mxu1 %v15388_v39 }
 0x6bc   :  { %v15897_v46 = vld [vmem:[%s25576_s7 + $0x1d20] sm:$0xf0] }
 0x6bd   :  { %v17373_v26 = vld [vmem:[%s25576_s7 + $0x1f04] sm:$0xf]  ;;  %v15900_v37 = vor.u32 %v17309_v41, %v15897_v46  ;;  %9961 = vmatpush.bf16.msra.mxu2 %v15644_v4 }
 0x6be   :  { %v16153_v32 = vld [vmem:[%s25576_s7 + $0x1f20] sm:$0xf0] }
 0x6bf   :  { %v17173_v30 = vld [vmem:[%s25576_s7 + $0x18c4] sm:$0xf]  ;;  %v16156_v58 = vor.u32 %v17373_v26, %v16153_v32  ;;  %9974 = vmatpush.bf16.msra.mxu3 %v15900_v37  ;;  %v20491_v26 = vadd.f32 %v9733_v29, %v9721_v54  ;;  %v9709_v37 = vpop.f32.mrf.mxu2  ;;  %v12639_v54 = vld [vmem:[%s25576_s7 + $0x388] sm:$0xf] }
 0x6c0   :  { %v15353_v1 = vld [vmem:[%s25576_s7 + $0x18e0] sm:$0xf0] }
 0x6c1   :  { %v17237_v21 = vld [vmem:[%s25576_s7 + $0x1ac4] sm:$0xf]  ;;  %v15356_v40 = vor.u32 %v17173_v30, %v15353_v1  ;;  %9987 = vmatpush.bf16.msrb.mxu0 %v16156_v58 }
 0x6c2   :  { %v15609_v5 = vld [vmem:[%s25576_s7 + $0x1ae0] sm:$0xf0] }
 0x6c3   :  { %v17301_v14 = vld [vmem:[%s25576_s7 + $0x1cc4] sm:$0xf]  ;;  %v15612_v36 = vor.u32 %v17237_v21, %v15609_v5  ;;  %9949 = vmatpush.bf16.msra.mxu1 %v15356_v40  ;;  %v12671_v40 = vld [vmem:[%s25576_s7 + $0x3c8] sm:$0xf] }
 0x6c4   :  { %v15865_v45 = vld [vmem:[%s25576_s7 + $0x1ce0] sm:$0xf0] }
 0x6c5   :  { %v17365_v61 = vld [vmem:[%s25576_s7 + $0x1ec4] sm:$0xf]  ;;  %v15868_v20 = vor.u32 %v17301_v14, %v15865_v45  ;;  %9962 = vmatpush.bf16.msra.mxu2 %v15612_v36  ;;  %v9722_v14 = vpop.f32.mrf.mxu3  ;;  %v16506_v36 = vld [vmem:[%s25576_s7 + $0x3e4] sm:$0xf0] }
 0x6c6   :  { %v16121_v50 = vld [vmem:[%s25576_s7 + $0x1ee0] sm:$0xf0]  ;;  %v12672_v35 = vor.u32 %v16506_v36, %v12671_v40  ;;  %v12831_v14 = vld [vmem:[%s25576_s7 + $0x508] sm:$0xf]  ;;  %v9746_v40 = vpop.f32.mrf.mxu1 }
 0x6c7   :  { %v17165_v9 = vld [vmem:[%s25576_s7 + $0x1884] sm:$0xf]  ;;  %v16124_v42 = vor.u32 %v17365_v61, %v16121_v50  ;;  %9975 = vmatpush.bf16.msra.mxu3 %v15868_v20  ;;  %v12415_v61 = vld [vmem:[%s25576_s7 + $0x1c8] sm:$0xf]  ;;  %v9747_v36 = vadd.f32 %v9746_v40, %v20491_v26 }
 0x6c8   :  { %v15321_v11 = vld [vmem:[%s25576_s7 + $0x18a0] sm:$0xf0]  ;;  %v16442_v50 = vld [vmem:[%s25576_s7 + $0x1e4] sm:$0xf0] }
 0x6c9   :  { %v17229_v55 = vld [vmem:[%s25576_s7 + $0x1a84] sm:$0xf]  ;;  %v15324_v0 = vor.u32 %v17165_v9, %v15321_v11  ;;  %9988 = vmatpush.bf16.msrb.mxu0 %v16124_v42  ;;  %v12927_v9 = vld [vmem:[%s25576_s7 + $0x5c8] sm:$0xf]  ;;  %v12416_v22 = vor.u32 %v16442_v50, %v12415_v61 }
 0x6ca   :  { %v15577_v59 = vld [vmem:[%s25576_s7 + $0x1aa0] sm:$0xf0]  ;;  %v16570_v42 = vld [vmem:[%s25576_s7 + $0x5e4] sm:$0xf0] }
 0x6cb   :  { %v17293_v53 = vld [vmem:[%s25576_s7 + $0x1c84] sm:$0xf]  ;;  %v15580_v56 = vor.u32 %v17229_v55, %v15577_v59  ;;  %9950 = vmatpush.bf16.msra.mxu1 %v15324_v0  ;;  %v16634_v55 = vld [vmem:[%s25576_s7 + $0x7e4] sm:$0xf0] }
 0x6cc   :  { %v15833_v49 = vld [vmem:[%s25576_s7 + $0x1ca0] sm:$0xf0]  ;;  %v13184_v17 = vor.u32 %v16634_v55, %v13183_v16  ;;  %v12895_v0 = vld [vmem:[%s25576_s7 + $0x588] sm:$0xf] }
 0x6cd   :  { %v17357_v34 = vld [vmem:[%s25576_s7 + $0x1e84] sm:$0xf]  ;;  %v15836_v24 = vor.u32 %v17293_v53, %v15833_v49  ;;  %9963 = vmatpush.bf16.msra.mxu2 %v15580_v56  ;;  %v12383_v49 = vld [vmem:[%s25576_s7 + $0x188] sm:$0xf] }
 0x6ce   :  { %v16089_v7 = vld [vmem:[%s25576_s7 + $0x1ea0] sm:$0xf0]  ;;  %v16562_v56 = vld [vmem:[%s25576_s7 + $0x5a4] sm:$0xf0] }
 0x6cf   :  { %v17157_v13 = vld [vmem:[%s25576_s7 + $0x1844] sm:$0xf]  ;;  %v16092_v25 = vor.u32 %v17357_v34, %v16089_v7  ;;  %9976 = vmatpush.bf16.msra.mxu3 %v15836_v24  ;;  %v16434_v34 = vld [vmem:[%s25576_s7 + $0x1a4] sm:$0xf0]  ;;  %v12928_v7 = vor.u32 %v16570_v42, %v12927_v9  ;;  %v9785_v9 = vpop.f32.mrf.mxu0 }
 0x6d0   :  { %v15289_v48 = vld [vmem:[%s25576_s7 + $0x1860] sm:$0xf0]  ;;  %v12384_v24 = vor.u32 %v16434_v34, %v12383_v49  ;;  %v13087_v61 = vld [vmem:[%s25576_s7 + $0x708] sm:$0xf] }
 0x6d1   :  { %v17221_v57 = vld [vmem:[%s25576_s7 + $0x1a44] sm:$0xf]  ;;  %v15292_v18 = vor.u32 %v17157_v13, %v15289_v48  ;;  %9989 = vmatpush.bf16.msrb.mxu0 %v16092_v25  ;;  %v13151_v13 = vld [vmem:[%s25576_s7 + $0x788] sm:$0xf]  ;;  %v12640_v25 = vor.u32 %v16498_v28, %v12639_v54 }
 0x6d2   :  { %v15545_v3 = vld [vmem:[%s25576_s7 + $0x1a60] sm:$0xf0]  ;;  %v16626_v48 = vld [vmem:[%s25576_s7 + $0x7a4] sm:$0xf0] }
 0x6d3   :  { %v17285_v43 = vld [vmem:[%s25576_s7 + $0x1c44] sm:$0xf]  ;;  %v15548_v15 = vor.u32 %v17221_v57, %v15545_v3  ;;  %9951 = vmatpush.bf16.msra.mxu1 %v15292_v18  ;;  %v12351_v57 = vld [vmem:[%s25576_s7 + $0x148] sm:$0xf] }
 0x6d4   :  { %v15801_v41 = vld [vmem:[%s25576_s7 + $0x1c60] sm:$0xf0]  ;;  %v16426_v3 = vld [vmem:[%s25576_s7 + $0x164] sm:$0xf0] }
 0x6d5   :  { %v17349_v60 = vld [vmem:[%s25576_s7 + $0x1e44] sm:$0xf]  ;;  %v15804_v30 = vor.u32 %v17285_v43, %v15801_v41  ;;  %9964 = vmatpush.bf16.msra.mxu2 %v15548_v15  ;;  %v12896_v43 = vor.u32 %v16562_v56, %v12895_v0  ;;  %v13152_v41 = vor.u32 %v16626_v48, %v13151_v13  ;;  %v16554_v18 = vld [vmem:[%s25576_s7 + $0x564] sm:$0xf0]  ;;  %v9759_v0 = vpop.f32.mrf.mxu2  ;;  %v9772_v13 = vpop.f32.mrf.mxu3 }
 0x6d6   :  { %v16057_v46 = vld [vmem:[%s25576_s7 + $0x1e60] sm:$0xf0]  ;;  %v13119_v15 = vld [vmem:[%s25576_s7 + $0x748] sm:$0xf]  ;;  %v9760_v56 = vadd.f32 %v9759_v0, %v9747_v36  ;;  %v9748_v48 = vpop.f32.mrf.mxu1 }
 0x6d7   :  { %v17149_v32 = vld [vmem:[%s25576_s7 + $0x1804] sm:$0xf]  ;;  %v16060_v1 = vor.u32 %v17349_v60, %v16057_v46  ;;  %9977 = vmatpush.bf16.msra.mxu3 %v15804_v30  ;;  %v12607_v60 = vld [vmem:[%s25576_s7 + $0x348] sm:$0xf] }
 0x6d8   :  { %v15257_v39 = vld [vmem:[%s25576_s7 + $0x1820] sm:$0xf0]  ;;  %v16490_v46 = vld [vmem:[%s25576_s7 + $0x364] sm:$0xf0] }
 0x6d9   :  { %v17213_v4 = vld [vmem:[%s25576_s7 + $0x1a04] sm:$0xf]  ;;  %v15260_v11 = vor.u32 %v17149_v32, %v15257_v39  ;;  %9990 = vmatpush.bf16.msrb.mxu0 %v16060_v1  ;;  %v12863_v32 = vld [vmem:[%s25576_s7 + $0x548] sm:$0xf] }
 0x6da   :  { %v15513_v29 = vld [vmem:[%s25576_s7 + $0x1a20] sm:$0xf0]  ;;  %v16618_v39 = vld [vmem:[%s25576_s7 + $0x764] sm:$0xf0]  ;;  %v12864_v37 = vor.u32 %v16554_v18, %v12863_v32 }
 0x6db   :  { %v17277_v58 = vld [vmem:[%s25576_s7 + $0x1c04] sm:$0xf]  ;;  %v15516_v20 = vor.u32 %v17213_v4, %v15513_v29  ;;  %9952 = vmatpush.bf16.msra.mxu1 %v15260_v11  ;;  %v12352_v4 = vor.u32 %v16426_v3, %v12351_v57  ;;  %v12608_v29 = vor.u32 %v16490_v46, %v12607_v60  ;;  %v12319_v30 = vld [vmem:[%s25576_s7 + $0x108] sm:$0xf] }
 0x6dc   :  { %v15769_v21 = vld [vmem:[%s25576_s7 + $0x1c20] sm:$0xf0]  ;;  %v16418_v1 = vld [vmem:[%s25576_s7 + $0x124] sm:$0xf0] }
 0x6dd   :  { %v17341_v5 = vld [vmem:[%s25576_s7 + $0x1e04] sm:$0xf]  ;;  %v15772_v59 = vor.u32 %v17277_v58, %v15769_v21  ;;  %9965 = vmatpush.bf16.msra.mxu2 %v15516_v20  ;;  %v13120_v58 = vor.u32 %v16618_v39, %v13119_v15  ;;  %v12575_v21 = vld [vmem:[%s25576_s7 + $0x308] sm:$0xf]  ;;  %v12320_v11 = vor.u32 %v16418_v1, %v12319_v30  ;;  %v9761_v1 = vpop.f32.mrf.mxu2 }
 0x6de   :  { %v16025_v45 = vld [vmem:[%s25576_s7 + $0x1e20] sm:$0xf0]  ;;  %9953 = vmatmul.bf16.vlgmr.msra.gmra.mxu1 %v19767_v52  ;;  %v16610_v50 = vld [vmem:[%s25576_s7 + $0x724] sm:$0xf0] }
 0x6df   :  { %v16028_v53 = vor.u32 %v17341_v5, %v16025_v45  ;;  %9978 = vmatpush.bf16.msra.mxu3 %v15772_v59  ;;  %9997 = vmatpush.bf16.msrb.mxu1 %v12416_v22  ;;  %v16482_v5 = vld [vmem:[%s25576_s7 + $0x324] sm:$0xf0]  ;;  %v13088_v59 = vor.u32 %v16610_v50, %v13087_v61 }
 0x6e0   :  { %9966 = vmatmul.bf16.vlgmr.msra.gmra.mxu2 %v19769_v63  ;;  %v16546_v45 = vld [vmem:[%s25576_s7 + $0x524] sm:$0xf0]  ;;  %v12576_v20 = vor.u32 %v16482_v5, %v12575_v21  ;;  %v9774_v5 = vpop.f32.mrf.mxu3 }
 0x6e1   :  { %9991 = vmatpush.bf16.msrb.mxu0 %v16028_v53  ;;  %10010 = vmatpush.bf16.msrb.mxu2 %v12672_v35  ;;  %v12287_v42 = vld [vmem:[%s25576_s7 + $0xc8] sm:$0xf]  ;;  %v12832_v55 = vor.u32 %v16546_v45, %v12831_v14 }
 0x6e2   :  { %9979 = vmatmul.bf16.vlgmr.msra.gmra.mxu3 %v19765_v44  ;;  %v16410_v16 = vld [vmem:[%s25576_s7 + $0xe4] sm:$0xf0] }
 0x6e3   :  { %10023 = vmatpush.bf16.msrb.mxu3 %v12928_v7  ;;  %9998 = vmatpush.bf16.msrb.mxu1 %v12384_v24  ;;  %v12543_v53 = vld [vmem:[%s25576_s7 + $0x2c8] sm:$0xf]  ;;  %v12288_v7 = vor.u32 %v16410_v16, %v12287_v42  ;;  %v9773_v24 = vadd.f32 %v9772_v13, %v9760_v56 }
 0x6e4   :  { %9992 = vmatmul.bf16.vlgmr.msrb.gmra.mxu0 %v19777_v19  ;;  %v16474_v26 = vld [vmem:[%s25576_s7 + $0x2e4] sm:$0xf0] }
 0x6e5   :  { %10036 = vmatpush.bf16.msra.mxu0 %v13184_v17  ;;  %10011 = vmatpush.bf16.msrb.mxu2 %v12640_v25  ;;  %v12799_v22 = vld [vmem:[%s25576_s7 + $0x4c8] sm:$0xf]  ;;  %v12544_v17 = vor.u32 %v16474_v26, %v12543_v53  ;;  %v9787_v25 = vpop.f32.mrf.mxu0  ;;  %v20642_v57 = vadd.f32 %v9785_v9, %v9773_v24 }
 0x6e6   :  { %v16538_v35 = vld [vmem:[%s25576_s7 + $0x4e4] sm:$0xf0] }
 0x6e7   :  { %10024 = vmatpush.bf16.msrb.mxu3 %v12896_v43  ;;  %9999 = vmatpush.bf16.msrb.mxu1 %v12352_v4  ;;  %v13055_v49 = vld [vmem:[%s25576_s7 + $0x6c8] sm:$0xf]  ;;  %v12800_v54 = vor.u32 %v16538_v35, %v12799_v22 }
 0x6e8   :  { %v16602_v34 = vld [vmem:[%s25576_s7 + $0x6e4] sm:$0xf0] }
 0x6e9   :  { %10037 = vmatpush.bf16.msra.mxu0 %v13152_v41  ;;  %10012 = vmatpush.bf16.msrb.mxu2 %v12608_v29  ;;  %v13056_v28 = vor.u32 %v16602_v34, %v13055_v49  ;;  %v12255_v3 = vld [vmem:[%s25576_s7 + $0x88] sm:$0xf] }
 0x6ea   :  { %v16402_v43 = vld [vmem:[%s25576_s7 + $0xa4] sm:$0xf0] }
 0x6eb   :  { %10025 = vmatpush.bf16.msrb.mxu3 %v12864_v37  ;;  %10000 = vmatpush.bf16.msrb.mxu1 %v12320_v11  ;;  %v12511_v41 = vld [vmem:[%s25576_s7 + $0x288] sm:$0xf]  ;;  %v12256_v60 = vor.u32 %v16402_v43, %v12255_v3 }
 0x6ec   :  { %v16466_v46 = vld [vmem:[%s25576_s7 + $0x2a4] sm:$0xf0] }
 0x6ed   :  { %10038 = vmatpush.bf16.msra.mxu0 %v13120_v58  ;;  %10013 = vmatpush.bf16.msrb.mxu2 %v12576_v20  ;;  %v12767_v32 = vld [vmem:[%s25576_s7 + $0x488] sm:$0xf]  ;;  %v12512_v15 = vor.u32 %v16466_v46, %v12511_v41 }
 0x6ee   :  { %v16530_v18 = vld [vmem:[%s25576_s7 + $0x4a4] sm:$0xf0] }
 0x6ef   :  { %10026 = vmatpush.bf16.msrb.mxu3 %v12832_v55  ;;  %10001 = vmatpush.bf16.msrb.mxu1 %v12288_v7  ;;  %v12768_v39 = vor.u32 %v16530_v18, %v12767_v32  ;;  %v13023_v4 = vld [vmem:[%s25576_s7 + $0x688] sm:$0xf] }
 0x6f0   :  { %v16594_v29 = vld [vmem:[%s25576_s7 + $0x6a4] sm:$0xf0] }
 0x6f1   :  { %10039 = vmatpush.bf16.msra.mxu0 %v13088_v59  ;;  %10014 = vmatpush.bf16.msrb.mxu2 %v12544_v17  ;;  %v13024_v30 = vor.u32 %v16594_v29, %v13023_v4  ;;  %v12223_v37 = vld [vmem:[%s25576_s7 + $0x48] sm:$0xf] }
 0x6f2   :  { %v16394_v58 = vld [vmem:[%s25576_s7 + $0x64] sm:$0xf0] }
 0x6f3   :  { %10027 = vmatpush.bf16.msrb.mxu3 %v12800_v54  ;;  %10002 = vmatpush.bf16.msrb.mxu1 %v12256_v60  ;;  %v12479_v21 = vld [vmem:[%s25576_s7 + $0x248] sm:$0xf]  ;;  %v12224_v14 = vor.u32 %v16394_v58, %v12223_v37 }
 0x6f4   :  { %v16458_v45 = vld [vmem:[%s25576_s7 + $0x264] sm:$0xf0] }
 0x6f5   :  { %10040 = vmatpush.bf16.msra.mxu0 %v13056_v28  ;;  %10015 = vmatpush.bf16.msrb.mxu2 %v12512_v15  ;;  %v12735_v61 = vld [vmem:[%s25576_s7 + $0x448] sm:$0xf]  ;;  %v12480_v40 = vor.u32 %v16458_v45, %v12479_v21 }
 0x6f6   :  { %v16522_v50 = vld [vmem:[%s25576_s7 + $0x464] sm:$0xf0] }
 0x6f7   :  { %10028 = vmatpush.bf16.msrb.mxu3 %v12768_v39  ;;  %v12736_v36 = vor.u32 %v16522_v50, %v12735_v61  ;;  %v12991_v9 = vld [vmem:[%s25576_s7 + $0x648] sm:$0xf]  ;;  %10003 = vmatpush.bf16.msrb.mxu1 %v12224_v14 }
 0x6f8   :  { %v16586_v11 = vld [vmem:[%s25576_s7 + $0x664] sm:$0xf0] }
 0x6f9   :  { %10041 = vmatpush.bf16.msra.mxu0 %v13024_v30  ;;  %v12992_v20 = vor.u32 %v16586_v11, %v12991_v9  ;;  %10016 = vmatpush.bf16.msrb.mxu2 %v12480_v40  ;;  %v12191_v42 = vld [vmem:[%s25576_s7 + $0x8] sm:$0xf] }
 0x6fa   :  { %v16386_v16 = vld [vmem:[%s25576_s7 + $0x24] sm:$0xf0] }
 0x6fb   :  { %10029 = vmatpush.bf16.msrb.mxu3 %v12736_v36  ;;  %v12447_v55 = vld [vmem:[%s25576_s7 + $0x208] sm:$0xf]  ;;  %v12192_v59 = vor.u32 %v16386_v16, %v12191_v42 }
 0x6fc   :  { %v16450_v53 = vld [vmem:[%s25576_s7 + $0x224] sm:$0xf0] }
 0x6fd   :  { %10042 = vmatpush.bf16.msra.mxu0 %v12992_v20  ;;  %v12703_v26 = vld [vmem:[%s25576_s7 + $0x408] sm:$0xf]  ;;  %v12448_v35 = vor.u32 %v16450_v53, %v12447_v55  ;;  %10004 = vmatpush.bf16.msrb.mxu1 %v12192_v59  ;;  %v4390_v55 = vperm.slane %v20183_v12, 1  ;;  %v9798_v59 = vpop.f32.mrf.mxu1  ;;  %v9837_v53 = vpop.f32.mrf.mxu0 }
 0x6fe   :  { %v16514_v22 = vld [vmem:[%s25576_s7 + $0x424] sm:$0xf0] }
 0x6ff   :  { %v12704_v49 = vor.u32 %v16514_v22, %v12703_v26  ;;  %v12959_v34 = vld [vmem:[%s25576_s7 + $0x608] sm:$0xf]  ;;  %10017 = vmatpush.bf16.msrb.mxu2 %v12448_v35 }
 0x700   :  { %v16578_v7 = vld [vmem:[%s25576_s7 + $0x624] sm:$0xf0]  ;;  %10005 = vmatmul.bf16.vlgmr.msrb.gmra.mxu1 %v19296_v10 }
 0x701   :  { %v12960_v17 = vor.u32 %v16578_v7, %v12959_v34  ;;  %v13439_v54 = vld [vmem:[%s25576_s7 + $0x9c8] sm:$0xf]  ;;  %10030 = vmatpush.bf16.msrb.mxu3 %v12704_v49 }
 0x702   :  { %v16698_v28 = vld [vmem:[%s25576_s7 + $0x9e4] sm:$0xf0]  ;;  %10018 = vmatmul.bf16.vlgmr.msrb.gmra.mxu2 %v19298_v62 }
 0x703   :  { %v13695_v0 = vld [vmem:[%s25576_s7 + $0xbc8] sm:$0xf]  ;;  %v13440_v56 = vor.u32 %v16698_v28, %v13439_v54  ;;  %10043 = vmatpush.bf16.msra.mxu0 %v12960_v17 }
 0x704   :  { %v16762_v13 = vld [vmem:[%s25576_s7 + $0xbe4] sm:$0xf0]  ;;  %10031 = vmatmul.bf16.vlgmr.msrb.gmra.mxu3 %v19319_v6 }
 0x705   :  { %v13951_v48 = vld [vmem:[%s25576_s7 + $0xdc8] sm:$0xf]  ;;  %v13696_v25 = vor.u32 %v16762_v13, %v13695_v0  ;;  %10049 = vmatpush.bf16.msra.mxu1 %v13440_v56  ;;  %v9799_v0 = vadd.f32 %v9798_v59, %v4390_v55 }
 0x706   :  { %v16826_v24 = vld [vmem:[%s25576_s7 + $0xde4] sm:$0xf0]  ;;  %10044 = vmatmul.bf16.vlgmr.msra.gmra.mxu0 %v19321_v23 }
 0x707   :  { %v13952_v3 = vor.u32 %v16826_v24, %v13951_v48  ;;  %v14207_v43 = vld [vmem:[%s25576_s7 + $0xfc8] sm:$0xf]  ;;  %10062 = vmatpush.bf16.msra.mxu2 %v13696_v25 }
 0x708   :  { %v16890_v41 = vld [vmem:[%s25576_s7 + $0xfe4] sm:$0xf0] }
 0x709   :  { %v13407_v60 = vld [vmem:[%s25576_s7 + $0x988] sm:$0xf]  ;;  %v14208_v46 = vor.u32 %v16890_v41, %v14207_v43  ;;  %10075 = vmatpush.bf16.msra.mxu3 %v13952_v3  ;;  %v9811_v41 = vpop.f32.mrf.mxu2 }
 0x70a   :  { %v16690_v32 = vld [vmem:[%s25576_s7 + $0x9a4] sm:$0xf0] }
 0x70b   :  { %v13663_v18 = vld [vmem:[%s25576_s7 + $0xb88] sm:$0xf]  ;;  %v13408_v39 = vor.u32 %v16690_v32, %v13407_v60  ;;  %10088 = vmatpush.bf16.msrb.mxu0 %v14208_v46 }
 0x70c   :  { %v16754_v15 = vld [vmem:[%s25576_s7 + $0xba4] sm:$0xf0] }
 0x70d   :  { %v13664_v4 = vor.u32 %v16754_v15, %v13663_v18  ;;  %v13919_v29 = vld [vmem:[%s25576_s7 + $0xd88] sm:$0xf]  ;;  %10050 = vmatpush.bf16.msra.mxu1 %v13408_v39  ;;  %v9812_v15 = vadd.f32 %v9811_v41, %v9799_v0  ;;  %v9824_v39 = vpop.f32.mrf.mxu3 }
 0x70e   :  { %v16818_v30 = vld [vmem:[%s25576_s7 + $0xda4] sm:$0xf0] }
 0x70f   :  { %v14175_v1 = vld [vmem:[%s25576_s7 + $0xf88] sm:$0xf]  ;;  %v13920_v37 = vor.u32 %v16818_v30, %v13919_v29  ;;  %10063 = vmatpush.bf16.msra.mxu2 %v13664_v4 }
 0x710   :  { %v16882_v58 = vld [vmem:[%s25576_s7 + $0xfa4] sm:$0xf0] }
 0x711   :  { %v14176_v21 = vor.u32 %v16882_v58, %v14175_v1  ;;  %v13375_v5 = vld [vmem:[%s25576_s7 + $0x948] sm:$0xf]  ;;  %10076 = vmatpush.bf16.msra.mxu3 %v13920_v37  ;;  %v9825_v58 = vadd.f32 %v9824_v39, %v9812_v15 }
 0x712   :  { %v16682_v14 = vld [vmem:[%s25576_s7 + $0x964] sm:$0xf0] }
 0x713   :  { %v13631_v45 = vld [vmem:[%s25576_s7 + $0xb48] sm:$0xf]  ;;  %v13376_v61 = vor.u32 %v16682_v14, %v13375_v5  ;;  %10089 = vmatpush.bf16.msrb.mxu0 %v14176_v21 }
 0x714   :  { %v16746_v50 = vld [vmem:[%s25576_s7 + $0xb64] sm:$0xf0] }
 0x715   :  { %v13887_v40 = vld [vmem:[%s25576_s7 + $0xd48] sm:$0xf]  ;;  %v13632_v9 = vor.u32 %v16746_v50, %v13631_v45  ;;  %10051 = vmatpush.bf16.msra.mxu1 %v13376_v61  ;;  %v9800_v45 = vpop.f32.mrf.mxu1  ;;  %v9839_v61 = vpop.f32.mrf.mxu0 }
 0x716   :  { %v16810_v36 = vld [vmem:[%s25576_s7 + $0xd64] sm:$0xf0] }
 0x717   :  { %v13888_v11 = vor.u32 %v16810_v36, %v13887_v40  ;;  %v14143_v20 = vld [vmem:[%s25576_s7 + $0xf48] sm:$0xf]  ;;  %10064 = vmatpush.bf16.msra.mxu2 %v13632_v9 }
 0x718   :  { %v16874_v42 = vld [vmem:[%s25576_s7 + $0xf64] sm:$0xf0] }
 0x719   :  { %v14144_v16 = vor.u32 %v16874_v42, %v14143_v20  ;;  %v13343_v26 = vld [vmem:[%s25576_s7 + $0x908] sm:$0xf]  ;;  %10077 = vmatpush.bf16.msra.mxu3 %v13888_v11  ;;  %v20865_v11 = vadd.f32 %v9837_v53, %v9825_v58 }
 0x71a   :  { %v16674_v22 = vld [vmem:[%s25576_s7 + $0x924] sm:$0xf0] }
 0x71b   :  { %v13344_v35 = vor.u32 %v16674_v22, %v13343_v26  ;;  %v13599_v49 = vld [vmem:[%s25576_s7 + $0xb08] sm:$0xf]  ;;  %10090 = vmatpush.bf16.msrb.mxu0 %v14144_v16 }
 0x71c   :  { %v16738_v12 = vld [vmem:[%s25576_s7 + $0xb24] sm:$0xf0] }
 0x71d   :  { %v13855_v34 = vld [vmem:[%s25576_s7 + $0xd08] sm:$0xf]  ;;  %v13600_v7 = vor.u32 %v16738_v12, %v13599_v49  ;;  %10052 = vmatpush.bf16.msra.mxu1 %v13344_v35 }
 0x71e   :  { %v16802_v17 = vld [vmem:[%s25576_s7 + $0xd24] sm:$0xf0] }
 0x71f   :  { %v14111_v54 = vld [vmem:[%s25576_s7 + $0xf08] sm:$0xf]  ;;  %v13856_v56 = vor.u32 %v16802_v17, %v13855_v34  ;;  %10065 = vmatpush.bf16.msra.mxu2 %v13600_v7  ;;  %v9813_v34 = vpop.f32.mrf.mxu2  ;;  %v9826_v17 = vpop.f32.mrf.mxu3 }
 0x720   :  { %v16866_v28 = vld [vmem:[%s25576_s7 + $0xf24] sm:$0xf0] }
 0x721   :  { %v14112_v13 = vor.u32 %v16866_v28, %v14111_v54  ;;  %v13311_v48 = vld [vmem:[%s25576_s7 + $0x8c8] sm:$0xf]  ;;  %10078 = vmatpush.bf16.msra.mxu3 %v13856_v56 }
 0x722   :  { %v16666_v24 = vld [vmem:[%s25576_s7 + $0x8e4] sm:$0xf0] }
 0x723   :  { %v13567_v25 = vld [vmem:[%s25576_s7 + $0xac8] sm:$0xf]  ;;  %v13312_v60 = vor.u32 %v16666_v24, %v13311_v48  ;;  %10091 = vmatpush.bf16.msrb.mxu0 %v14112_v13 }
 0x724   :  { %v16730_v3 = vld [vmem:[%s25576_s7 + $0xae4] sm:$0xf0] }
 0x725   :  { %v13823_v43 = vld [vmem:[%s25576_s7 + $0xcc8] sm:$0xf]  ;;  %v13568_v4 = vor.u32 %v16730_v3, %v13567_v25  ;;  %10053 = vmatpush.bf16.msra.mxu1 %v13312_v60 }
 0x726   :  { %v16794_v46 = vld [vmem:[%s25576_s7 + $0xce4] sm:$0xf0] }
 0x727   :  { %v14079_v32 = vld [vmem:[%s25576_s7 + $0xec8] sm:$0xf]  ;;  %v13824_v29 = vor.u32 %v16794_v46, %v13823_v43  ;;  %10066 = vmatpush.bf16.msra.mxu2 %v13568_v4 }
 0x728   :  { %v16858_v18 = vld [vmem:[%s25576_s7 + $0xee4] sm:$0xf0] }
 0x729   :  { %v13279_v30 = vld [vmem:[%s25576_s7 + $0x888] sm:$0xf]  ;;  %v14080_v37 = vor.u32 %v16858_v18, %v14079_v32  ;;  %10079 = vmatpush.bf16.msra.mxu3 %v13824_v29 }
 0x72a   :  { %v16658_v1 = vld [vmem:[%s25576_s7 + $0x8a4] sm:$0xf0] }
 0x72b   :  { %v13535_v21 = vld [vmem:[%s25576_s7 + $0xa88] sm:$0xf]  ;;  %v13280_v9 = vor.u32 %v16658_v1, %v13279_v30  ;;  %10092 = vmatpush.bf16.msrb.mxu0 %v14080_v37 }
 0x72c   :  { %v16722_v5 = vld [vmem:[%s25576_s7 + $0xaa4] sm:$0xf0] }
 0x72d   :  { %v13791_v14 = vld [vmem:[%s25576_s7 + $0xc88] sm:$0xf]  ;;  %v13536_v20 = vor.u32 %v16722_v5, %v13535_v21  ;;  %10054 = vmatpush.bf16.msra.mxu1 %v13280_v9 }
 0x72e   :  { %v16786_v50 = vld [vmem:[%s25576_s7 + $0xca4] sm:$0xf0] }
 0x72f   :  { %v14047_v40 = vld [vmem:[%s25576_s7 + $0xe88] sm:$0xf]  ;;  %v13792_v42 = vor.u32 %v16786_v50, %v13791_v14  ;;  %10067 = vmatpush.bf16.msra.mxu2 %v13536_v20 }
 0x730   :  { %v16850_v36 = vld [vmem:[%s25576_s7 + $0xea4] sm:$0xf0] }
 0x731   :  { %v13247_v16 = vld [vmem:[%s25576_s7 + $0x848] sm:$0xf]  ;;  %v14048_v26 = vor.u32 %v16850_v36, %v14047_v40  ;;  %10080 = vmatpush.bf16.msra.mxu3 %v13792_v42 }
 0x732   :  { %v16650_v55 = vld [vmem:[%s25576_s7 + $0x864] sm:$0xf0] }
 0x733   :  { %v13503_v59 = vld [vmem:[%s25576_s7 + $0xa48] sm:$0xf]  ;;  %v13248_v7 = vor.u32 %v16650_v55, %v13247_v16  ;;  %10093 = vmatpush.bf16.msrb.mxu0 %v14048_v26 }
 0x734   :  { %v16714_v53 = vld [vmem:[%s25576_s7 + $0xa64] sm:$0xf0] }
 0x735   :  { %v13759_v22 = vld [vmem:[%s25576_s7 + $0xc48] sm:$0xf]  ;;  %v13504_v0 = vor.u32 %v16714_v53, %v13503_v59  ;;  %10055 = vmatpush.bf16.msra.mxu1 %v13248_v7 }
 0x736   :  { %v16778_v35 = vld [vmem:[%s25576_s7 + $0xc64] sm:$0xf0] }
 0x737   :  { %v14015_v49 = vld [vmem:[%s25576_s7 + $0xe48] sm:$0xf]  ;;  %v13760_v56 = vor.u32 %v16778_v35, %v13759_v22  ;;  %10068 = vmatpush.bf16.msra.mxu2 %v13504_v0 }
 0x738   :  { %v16842_v12 = vld [vmem:[%s25576_s7 + $0xe64] sm:$0xf0] }
 0x739   :  { %v13215_v54 = vld [vmem:[%s25576_s7 + $0x808] sm:$0xf]  ;;  %v14016_v25 = vor.u32 %v16842_v12, %v14015_v49  ;;  %10081 = vmatpush.bf16.msra.mxu3 %v13760_v56 }
 0x73a   :  { %v16642_v28 = vld [vmem:[%s25576_s7 + $0x824] sm:$0xf0] }
 0x73b   :  { %v13471_v13 = vld [vmem:[%s25576_s7 + $0xa08] sm:$0xf]  ;;  %v13216_v18 = vor.u32 %v16642_v28, %v13215_v54  ;;  %10094 = vmatpush.bf16.msrb.mxu0 %v14016_v25 }
 0x73c   :  { %v16706_v48 = vld [vmem:[%s25576_s7 + $0xa24] sm:$0xf0] }
 0x73d   :  { %v13727_v24 = vld [vmem:[%s25576_s7 + $0xc08] sm:$0xf]  ;;  %v13472_v29 = vor.u32 %v16706_v48, %v13471_v13  ;;  %10056 = vmatpush.bf16.msra.mxu1 %v13216_v18  ;;  %v9850_v13 = vpop.f32.mrf.mxu1 }
 0x73e   :  { %v16770_v3 = vld [vmem:[%s25576_s7 + $0xc24] sm:$0xf0] }
 0x73f   :  { %v13983_v43 = vld [vmem:[%s25576_s7 + $0xe08] sm:$0xf]  ;;  %v13728_v30 = vor.u32 %v16770_v3, %v13727_v24  ;;  %10069 = vmatpush.bf16.msra.mxu2 %v13472_v29 }
 0x740   :  { %v16834_v41 = vld [vmem:[%s25576_s7 + $0xe24] sm:$0xf0]  ;;  %10057 = vmatmul.bf16.vlgmr.msra.gmra.mxu1 %v19422_v51 }
 0x741   :  { %v14463_v60 = vld [vmem:[%s25576_s7 + $0x11c8] sm:$0xf]  ;;  %v13984_v58 = vor.u32 %v16834_v41, %v13983_v43  ;;  %10082 = vmatpush.bf16.msra.mxu3 %v13728_v30  ;;  %v9851_v43 = vadd.f32 %v9850_v13, %v20865_v11  ;;  %v9889_v41 = vpop.f32.mrf.mxu0 }
 0x742   :  { %v16954_v46 = vld [vmem:[%s25576_s7 + $0x11e4] sm:$0xf0]  ;;  %10070 = vmatmul.bf16.vlgmr.msra.gmra.mxu2 %v19424_v38 }
 0x743   :  { %v14719_v32 = vld [vmem:[%s25576_s7 + $0x13c8] sm:$0xf]  ;;  %v14464_v21 = vor.u32 %v16954_v46, %v14463_v60  ;;  %10095 = vmatpush.bf16.msrb.mxu0 %v13984_v58 }
 0x744   :  { %v17018_v15 = vld [vmem:[%s25576_s7 + $0x13e4] sm:$0xf0]  ;;  %10083 = vmatmul.bf16.vlgmr.msra.gmra.mxu3 %v19447_v27 }
 0x745   :  { %v14975_v39 = vld [vmem:[%s25576_s7 + $0x15c8] sm:$0xf]  ;;  %v14720_v5 = vor.u32 %v17018_v15, %v14719_v32  ;;  %10101 = vmatpush.bf16.msrb.mxu1 %v14464_v21 }
 0x746   :  { %v17082_v4 = vld [vmem:[%s25576_s7 + $0x15e4] sm:$0xf0]  ;;  %10096 = vmatmul.bf16.vlgmr.msrb.gmra.mxu0 %v19449_v47 }
 0x747   :  { %v15231_v1 = vld [vmem:[%s25576_s7 + $0x17c8] sm:$0xf]  ;;  %v14976_v14 = vor.u32 %v17082_v4, %v14975_v39  ;;  %10114 = vmatpush.bf16.msrb.mxu2 %v14720_v5 }
 0x748   :  { %v17146_v37 = vld [vmem:[%s25576_s7 + $0x17e4] sm:$0xf0] }
 0x749   :  { %v14431_v45 = vld [vmem:[%s25576_s7 + $0x1188] sm:$0xf]  ;;  %v15232_v40 = vor.u32 %v17146_v37, %v15231_v1  ;;  %10127 = vmatpush.bf16.msrb.mxu3 %v14976_v14 }
 0x74a   :  { %v16946_v61 = vld [vmem:[%s25576_s7 + $0x11a4] sm:$0xf0] }
 0x74b   :  { %v14687_v50 = vld [vmem:[%s25576_s7 + $0x1388] sm:$0xf]  ;;  %v14432_v55 = vor.u32 %v16946_v61, %v14431_v45  ;;  %10140 = vmatpush.bf16.msra.mxu0 %v15232_v40  ;;  %v9863_v61 = vpop.f32.mrf.mxu2 }
 0x74c   :  { %v17010_v36 = vld [vmem:[%s25576_s7 + $0x13a4] sm:$0xf0]  ;;  %v9864_v40 = vadd.f32 %v9863_v61, %v9851_v43 }
 0x74d   :  { %v14943_v9 = vld [vmem:[%s25576_s7 + $0x1588] sm:$0xf]  ;;  %v14688_v59 = vor.u32 %v17010_v36, %v14687_v50  ;;  %10102 = vmatpush.bf16.msrb.mxu1 %v14432_v55  ;;  %v9876_v36 = vpop.f32.mrf.mxu3 }
 0x74e   :  { %v17074_v20 = vld [vmem:[%s25576_s7 + $0x15a4] sm:$0xf0] }
 0x74f   :  { %v15199_v42 = vld [vmem:[%s25576_s7 + $0x1788] sm:$0xf]  ;;  %v14944_v26 = vor.u32 %v17074_v20, %v14943_v9  ;;  %10115 = vmatpush.bf16.msrb.mxu2 %v14688_v59 }
 0x750   :  { %v17138_v16 = vld [vmem:[%s25576_s7 + $0x17a4] sm:$0xf0] }
 0x751   :  { %v14399_v53 = vld [vmem:[%s25576_s7 + $0x1148] sm:$0xf]  ;;  %v15200_v49 = vor.u32 %v17138_v16, %v15199_v42  ;;  %10128 = vmatpush.bf16.msrb.mxu3 %v14944_v26  ;;  %v9852_v42 = vpop.f32.mrf.mxu1 }
 0x752   :  { %v16938_v22 = vld [vmem:[%s25576_s7 + $0x1164] sm:$0xf0] }
 0x753   :  { %v14655_v35 = vld [vmem:[%s25576_s7 + $0x1348] sm:$0xf]  ;;  %v14400_v28 = vor.u32 %v16938_v22, %v14399_v53  ;;  %10141 = vmatpush.bf16.msra.mxu0 %v15200_v49  ;;  %v9877_v53 = vadd.f32 %v9876_v36, %v9864_v40  ;;  %v9891_v22 = vpop.f32.mrf.mxu0 }
 0x754   :  { %v17002_v12 = vld [vmem:[%s25576_s7 + $0x1364] sm:$0xf0] }
 0x755   :  { %v14911_v34 = vld [vmem:[%s25576_s7 + $0x1548] sm:$0xf]  ;;  %v14656_v0 = vor.u32 %v17002_v12, %v14655_v35  ;;  %10103 = vmatpush.bf16.msrb.mxu1 %v14400_v28 }
 0x756   :  { %v17066_v7 = vld [vmem:[%s25576_s7 + $0x1564] sm:$0xf0] }
 0x757   :  { %v15167_v17 = vld [vmem:[%s25576_s7 + $0x1748] sm:$0xf]  ;;  %v14912_v56 = vor.u32 %v17066_v7, %v14911_v34  ;;  %10116 = vmatpush.bf16.msrb.mxu2 %v14656_v0 }
 0x758   :  { %v17130_v54 = vld [vmem:[%s25576_s7 + $0x1764] sm:$0xf0] }
 0x759   :  { %v14367_v48 = vld [vmem:[%s25576_s7 + $0x1108] sm:$0xf]  ;;  %v15168_v3 = vor.u32 %v17130_v54, %v15167_v17  ;;  %10129 = vmatpush.bf16.msrb.mxu3 %v14912_v56  ;;  %v21064_v54 = vadd.f32 %v9889_v41, %v9877_v53 }
 0x75a   :  { %v16930_v24 = vld [vmem:[%s25576_s7 + $0x1124] sm:$0xf0] }
 0x75b   :  { %v14623_v25 = vld [vmem:[%s25576_s7 + $0x1308] sm:$0xf]  ;;  %v14368_v15 = vor.u32 %v16930_v24, %v14367_v48  ;;  %10142 = vmatpush.bf16.msra.mxu0 %v15168_v3 }
 0x75c   :  { %v16994_v60 = vld [vmem:[%s25576_s7 + $0x1324] sm:$0xf0] }
 0x75d   :  { %v14879_v46 = vld [vmem:[%s25576_s7 + $0x1508] sm:$0xf]  ;;  %v14624_v39 = vor.u32 %v16994_v60, %v14623_v25  ;;  %10104 = vmatpush.bf16.msrb.mxu1 %v14368_v15 }
 0x75e   :  { %v17058_v32 = vld [vmem:[%s25576_s7 + $0x1524] sm:$0xf0] }
 0x75f   :  { %v15135_v18 = vld [vmem:[%s25576_s7 + $0x1708] sm:$0xf]  ;;  %v14880_v4 = vor.u32 %v17058_v32, %v14879_v46  ;;  %10117 = vmatpush.bf16.msrb.mxu2 %v14624_v39  ;;  %v9865_v46 = vpop.f32.mrf.mxu2 }
 0x760   :  { %v17122_v11 = vld [vmem:[%s25576_s7 + $0x1724] sm:$0xf0] }
 0x761   :  { %v14335_v29 = vld [vmem:[%s25576_s7 + $0x10c8] sm:$0xf]  ;;  %v15136_v37 = vor.u32 %v17122_v11, %v15135_v18  ;;  %10130 = vmatpush.bf16.msrb.mxu3 %v14880_v4  ;;  %v9878_v18 = vpop.f32.mrf.mxu3 }
 0x762   :  { %v16922_v30 = vld [vmem:[%s25576_s7 + $0x10e4] sm:$0xf0] }
 0x763   :  { %v14591_v1 = vld [vmem:[%s25576_s7 + $0x12c8] sm:$0xf]  ;;  %v14336_v50 = vor.u32 %v16922_v30, %v14335_v29  ;;  %10143 = vmatpush.bf16.msra.mxu0 %v15136_v37 }
 0x764   :  { %v16986_v58 = vld [vmem:[%s25576_s7 + $0x12e4] sm:$0xf0] }
 0x765   :  { %v14847_v21 = vld [vmem:[%s25576_s7 + $0x14c8] sm:$0xf]  ;;  %v14592_v9 = vor.u32 %v16986_v58, %v14591_v1  ;;  %10105 = vmatpush.bf16.msrb.mxu1 %v14336_v50 }
 0x766   :  { %v17050_v5 = vld [vmem:[%s25576_s7 + $0x14e4] sm:$0xf0] }
 0x767   :  { %v15103_v14 = vld [vmem:[%s25576_s7 + $0x16c8] sm:$0xf]  ;;  %v14848_v20 = vor.u32 %v17050_v5, %v14847_v21  ;;  %10118 = vmatpush.bf16.msrb.mxu2 %v14592_v9 }
 0x768   :  { %v17114_v45 = vld [vmem:[%s25576_s7 + $0x16e4] sm:$0xf0] }
 0x769   :  { %v14303_v16 = vld [vmem:[%s25576_s7 + $0x1088] sm:$0xf]  ;;  %v15104_v26 = vor.u32 %v17114_v45, %v15103_v14  ;;  %10131 = vmatpush.bf16.msrb.mxu3 %v14848_v20 }
 0x76a   :  { %v16914_v55 = vld [vmem:[%s25576_s7 + $0x10a4] sm:$0xf0] }
 0x76b   :  { %v14559_v59 = vld [vmem:[%s25576_s7 + $0x1288] sm:$0xf]  ;;  %v14304_v17 = vor.u32 %v16914_v55, %v14303_v16  ;;  %10144 = vmatpush.bf16.msra.mxu0 %v15104_v26 }
 0x76c   :  { %v16978_v35 = vld [vmem:[%s25576_s7 + $0x12a4] sm:$0xf0] }
 0x76d   :  { %v14815_v49 = vld [vmem:[%s25576_s7 + $0x1488] sm:$0xf]  ;;  %v14560_v28 = vor.u32 %v16978_v35, %v14559_v59  ;;  %10106 = vmatpush.bf16.msrb.mxu1 %v14304_v17 }
 0x76e   :  { %v17042_v12 = vld [vmem:[%s25576_s7 + $0x14a4] sm:$0xf0] }
 0x76f   :  { %v15071_v34 = vld [vmem:[%s25576_s7 + $0x1688] sm:$0xf]  ;;  %v14816_v0 = vor.u32 %v17042_v12, %v14815_v49  ;;  %10119 = vmatpush.bf16.msrb.mxu2 %v14560_v28 }
 0x770   :  { %v17106_v7 = vld [vmem:[%s25576_s7 + $0x16a4] sm:$0xf0] }
 0x771   :  { %v14271_v56 = vld [vmem:[%s25576_s7 + $0x1048] sm:$0xf]  ;;  %v15072_v24 = vor.u32 %v17106_v7, %v15071_v34  ;;  %10132 = vmatpush.bf16.msrb.mxu3 %v14816_v0 }
 0x772   :  { %v16906_v13 = vld [vmem:[%s25576_s7 + $0x1064] sm:$0xf0] }
 0x773   :  { %v14527_v48 = vld [vmem:[%s25576_s7 + $0x1248] sm:$0xf]  ;;  %v14272_v32 = vor.u32 %v16906_v13, %v14271_v56  ;;  %10145 = vmatpush.bf16.msra.mxu0 %v15072_v24 }
 0x774   :  { %v16970_v25 = vld [vmem:[%s25576_s7 + $0x1264] sm:$0xf0] }
 0x775   :  { %v14783_v3 = vld [vmem:[%s25576_s7 + $0x1448] sm:$0xf]  ;;  %v14528_v39 = vor.u32 %v16970_v25, %v14527_v48  ;;  %10107 = vmatpush.bf16.msrb.mxu1 %v14272_v32 }
 0x776   :  { %v17034_v43 = vld [vmem:[%s25576_s7 + $0x1464] sm:$0xf0] }
 0x777   :  { %v15039_v41 = vld [vmem:[%s25576_s7 + $0x1648] sm:$0xf]  ;;  %v14784_v4 = vor.u32 %v17034_v43, %v14783_v3  ;;  %10120 = vmatpush.bf16.msrb.mxu2 %v14528_v39 }
 0x778   :  { %v17098_v60 = vld [vmem:[%s25576_s7 + $0x1664] sm:$0xf0] }
 0x779   :  { %v14239_v11 = vld [vmem:[%s25576_s7 + $0x1008] sm:$0xf]  ;;  %v15040_v37 = vor.u32 %v17098_v60, %v15039_v41  ;;  %10133 = vmatpush.bf16.msrb.mxu3 %v14784_v4 }
 0x77a   :  { %v16898_v15 = vld [vmem:[%s25576_s7 + $0x1024] sm:$0xf0] }
 0x77b   :  { %v14495_v29 = vld [vmem:[%s25576_s7 + $0x1208] sm:$0xf]  ;;  %v14240_v50 = vor.u32 %v16898_v15, %v14239_v11  ;;  %10146 = vmatpush.bf16.msra.mxu0 %v15040_v37 }
 0x77c   :  { %v16962_v30 = vld [vmem:[%s25576_s7 + $0x1224] sm:$0xf0] }
 0x77d   :  { %v14751_v1 = vld [vmem:[%s25576_s7 + $0x1408] sm:$0xf]  ;;  %v14496_v20 = vor.u32 %v16962_v30, %v14495_v29  ;;  %10108 = vmatpush.bf16.msrb.mxu1 %v14240_v50  ;;  %v9902_v29 = vpop.f32.mrf.mxu1 }
 0x77e   :  { %v17026_v58 = vld [vmem:[%s25576_s7 + $0x1424] sm:$0xf0] }
 0x77f   :  { %v15007_v21 = vld [vmem:[%s25576_s7 + $0x1608] sm:$0xf]  ;;  %v14752_v42 = vor.u32 %v17026_v58, %v14751_v1  ;;  %10121 = vmatpush.bf16.msrb.mxu2 %v14496_v20 }
 0x780   :  { %v17090_v5 = vld [vmem:[%s25576_s7 + $0x1624] sm:$0xf0]  ;;  %10109 = vmatmul.bf16.vlgmr.msrb.gmra.mxu1 %v19553_v8 }
 0x781   :  { %v15487_v14 = vld [vmem:[%s25576_s7 + $0x19c8] sm:$0xf]  ;;  %v15008_v59 = vor.u32 %v17090_v5, %v15007_v21  ;;  %10134 = vmatpush.bf16.msrb.mxu3 %v14752_v42  ;;  %v9903_v21 = vadd.f32 %v9902_v29, %v21064_v54  ;;  %v9941_v5 = vpop.f32.mrf.mxu0 }
 0x782   :  { %v17210_v45 = vld [vmem:[%s25576_s7 + $0x19e4] sm:$0xf0]  ;;  %10122 = vmatmul.bf16.vlgmr.msrb.gmra.mxu2 %v19555_v33 }
 0x783   :  { %v15743_v61 = vld [vmem:[%s25576_s7 + $0x1bc8] sm:$0xf]  ;;  %v15488_v26 = vor.u32 %v17210_v45, %v15487_v14  ;;  %10147 = vmatpush.bf16.msra.mxu0 %v15008_v59 }
 0x784   :  { %v17274_v40 = vld [vmem:[%s25576_s7 + $0x1be4] sm:$0xf0]  ;;  %10135 = vmatmul.bf16.vlgmr.msrb.gmra.mxu3 %v19564_v31 }
 0x785   :  { %v15999_v36 = vld [vmem:[%s25576_s7 + $0x1dc8] sm:$0xf]  ;;  %v15744_v53 = vor.u32 %v17274_v40, %v15743_v61  ;;  %10153 = vmatpush.bf16.msra.mxu1 %v15488_v26 }
 0x786   :  { %v17338_v9 = vld [vmem:[%s25576_s7 + $0x1de4] sm:$0xf0]  ;;  %10148 = vmatmul.bf16.vlgmr.msra.gmra.mxu0 %v19566_v2 }
 0x787   :  { %v16255_v16 = vld [vmem:[%s25576_s7 + $0x1fc8] sm:$0xf]  ;;  %v16000_v22 = vor.u32 %v17338_v9, %v15999_v36  ;;  %10166 = vmatpush.bf16.msra.mxu2 %v15744_v53 }
 0x788   :  { %v17402_v55 = vld [vmem:[%s25576_s7 + $0x1fe4] sm:$0xf0] }
 0x789   :  { %v15455_v35 = vld [vmem:[%s25576_s7 + $0x1988] sm:$0xf]  ;;  %v16256_v34 = vor.u32 %v17402_v55, %v16255_v16  ;;  %10179 = vmatpush.bf16.msra.mxu3 %v16000_v22 }
 0x78a   :  { %v17202_v49 = vld [vmem:[%s25576_s7 + $0x19a4] sm:$0xf0] }
 0x78b   :  { %v15711_v12 = vld [vmem:[%s25576_s7 + $0x1b88] sm:$0xf]  ;;  %v15456_v13 = vor.u32 %v17202_v49, %v15455_v35  ;;  %10192 = vmatpush.bf16.msrb.mxu0 %v16256_v34  ;;  %v9915_v49 = vpop.f32.mrf.mxu2 }
 0x78c   :  { %v17266_v7 = vld [vmem:[%s25576_s7 + $0x1ba4] sm:$0xf0]  ;;  %v9916_v34 = vadd.f32 %v9915_v49, %v9903_v21  ;;  %v16502_v49 = vld [vmem:[%s25576_s7 + $0x3cc] sm:$0xf] }
 0x78d   :  { %v15967_v17 = vld [vmem:[%s25576_s7 + $0x1d88] sm:$0xf]  ;;  %v15712_v48 = vor.u32 %v17266_v7, %v15711_v12  ;;  %10154 = vmatpush.bf16.msra.mxu1 %v15456_v13  ;;  %v9928_v7 = vpop.f32.mrf.mxu3 }
 0x78e   :  { %v17330_v28 = vld [vmem:[%s25576_s7 + $0x1da4] sm:$0xf0] }
 0x78f   :  { %v16223_v0 = vld [vmem:[%s25576_s7 + $0x1f88] sm:$0xf]  ;;  %v15968_v24 = vor.u32 %v17330_v28, %v15967_v17  ;;  %10167 = vmatpush.bf16.msra.mxu2 %v15712_v48 }
 0x790   :  { %v17394_v56 = vld [vmem:[%s25576_s7 + $0x1fa4] sm:$0xf0] }
 0x791   :  { %v15423_v25 = vld [vmem:[%s25576_s7 + $0x1948] sm:$0xf]  ;;  %v16224_v41 = vor.u32 %v17394_v56, %v16223_v0  ;;  %10180 = vmatpush.bf16.msra.mxu3 %v15968_v24  ;;  %v9904_v0 = vpop.f32.mrf.mxu1 }
 0x792   :  { %v17194_v3 = vld [vmem:[%s25576_s7 + $0x1964] sm:$0xf0] }
 0x793   :  { %v15679_v43 = vld [vmem:[%s25576_s7 + $0x1b48] sm:$0xf]  ;;  %v15424_v15 = vor.u32 %v17194_v3, %v15423_v25  ;;  %10193 = vmatpush.bf16.msrb.mxu0 %v16224_v41  ;;  %v9929_v25 = vadd.f32 %v9928_v7, %v9916_v34  ;;  %v9943_v3 = vpop.f32.mrf.mxu0  ;;  %v12673_v34 = vld [vmem:[%s25576_s7 + $0x3e8] sm:$0xf0] }
 0x794   :  { %v17258_v60 = vld [vmem:[%s25576_s7 + $0x1b64] sm:$0xf0]  ;;  %v16566_v7 = vld [vmem:[%s25576_s7 + $0x5cc] sm:$0xf] }
 0x795   :  { %v15935_v46 = vld [vmem:[%s25576_s7 + $0x1d48] sm:$0xf]  ;;  %v15680_v39 = vor.u32 %v17258_v60, %v15679_v43  ;;  %10155 = vmatpush.bf16.msra.mxu1 %v15424_v15 }
 0x796   :  { %v17322_v32 = vld [vmem:[%s25576_s7 + $0x1d64] sm:$0xf0] }
 0x797   :  { %v16191_v18 = vld [vmem:[%s25576_s7 + $0x1f48] sm:$0xf]  ;;  %v15936_v4 = vor.u32 %v17322_v32, %v15935_v46  ;;  %10168 = vmatpush.bf16.msra.mxu2 %v15680_v39 }
 0x798   :  { %v17386_v11 = vld [vmem:[%s25576_s7 + $0x1f64] sm:$0xf0] }
 0x799   :  { %v15391_v30 = vld [vmem:[%s25576_s7 + $0x1908] sm:$0xf]  ;;  %v16192_v58 = vor.u32 %v17386_v11, %v16191_v18  ;;  %10181 = vmatpush.bf16.msra.mxu3 %v15936_v4  ;;  %v21263_v11 = vadd.f32 %v9941_v5, %v9929_v25  ;;  %v12676_v25 = vor.u32 %v16502_v49, %v12673_v34  ;;  %v12833_v49 = vld [vmem:[%s25576_s7 + $0x528] sm:$0xf0] }
 0x79a   :  { %v17186_v1 = vld [vmem:[%s25576_s7 + $0x1924] sm:$0xf0] }
 0x79b   :  { %v15647_v37 = vld [vmem:[%s25576_s7 + $0x1b08] sm:$0xf]  ;;  %v15392_v40 = vor.u32 %v17186_v1, %v15391_v30  ;;  %10194 = vmatpush.bf16.msrb.mxu0 %v16192_v58 }
 0x79c   :  { %v17250_v14 = vld [vmem:[%s25576_s7 + $0x1b24] sm:$0xf0] }
 0x79d   :  { %v15903_v45 = vld [vmem:[%s25576_s7 + $0x1d08] sm:$0xf]  ;;  %v15648_v36 = vor.u32 %v17250_v14, %v15647_v37  ;;  %10156 = vmatpush.bf16.msra.mxu1 %v15392_v40 }
 0x79e   :  { %v17314_v61 = vld [vmem:[%s25576_s7 + $0x1d24] sm:$0xf0] }
 0x79f   :  { %v16159_v50 = vld [vmem:[%s25576_s7 + $0x1f08] sm:$0xf]  ;;  %v15904_v9 = vor.u32 %v17314_v61, %v15903_v45  ;;  %10169 = vmatpush.bf16.msra.mxu2 %v15648_v36  ;;  %v9917_v45 = vpop.f32.mrf.mxu2 }
 0x7a0   :  { %v17378_v54 = vld [vmem:[%s25576_s7 + $0x1f24] sm:$0xf0]  ;;  %v16550_v45 = vld [vmem:[%s25576_s7 + $0x54c] sm:$0xf] }
 0x7a1   :  { %v15359_v20 = vld [vmem:[%s25576_s7 + $0x18c8] sm:$0xf]  ;;  %v16160_v55 = vor.u32 %v17378_v54, %v16159_v50  ;;  %10182 = vmatpush.bf16.msra.mxu3 %v15904_v9  ;;  %v9930_v50 = vpop.f32.mrf.mxu3 }
 0x7a2   :  { %v17178_v42 = vld [vmem:[%s25576_s7 + $0x18e4] sm:$0xf0]  ;;  %v16614_v50 = vld [vmem:[%s25576_s7 + $0x74c] sm:$0xf] }
 0x7a3   :  { %v15615_v16 = vld [vmem:[%s25576_s7 + $0x1ac8] sm:$0xf]  ;;  %v15360_v12 = vor.u32 %v17178_v42, %v15359_v20  ;;  %10195 = vmatpush.bf16.msrb.mxu0 %v16160_v55 }
 0x7a4   :  { %v17242_v59 = vld [vmem:[%s25576_s7 + $0x1ae4] sm:$0xf0] }
 0x7a5   :  { %v15871_v26 = vld [vmem:[%s25576_s7 + $0x1cc8] sm:$0xf]  ;;  %v15616_v17 = vor.u32 %v17242_v59, %v15615_v16  ;;  %10157 = vmatpush.bf16.msra.mxu1 %v15360_v12 }
 0x7a6   :  { %v17306_v53 = vld [vmem:[%s25576_s7 + $0x1ce4] sm:$0xf0] }
 0x7a7   :  { %v16127_v22 = vld [vmem:[%s25576_s7 + $0x1ec8] sm:$0xf]  ;;  %v15872_v28 = vor.u32 %v17306_v53, %v15871_v26  ;;  %10170 = vmatpush.bf16.msra.mxu2 %v15616_v17  ;;  %v12929_v17 = vld [vmem:[%s25576_s7 + $0x5e8] sm:$0xf0] }
 0x7a8   :  { %v17370_v35 = vld [vmem:[%s25576_s7 + $0x1ee4] sm:$0xf0]  ;;  %v12932_v3 = vor.u32 %v16566_v7, %v12929_v17 }
 0x7a9   :  { %v15327_v56 = vld [vmem:[%s25576_s7 + $0x1888] sm:$0xf]  ;;  %v16128_v24 = vor.u32 %v17370_v35, %v16127_v22  ;;  %10183 = vmatpush.bf16.msra.mxu3 %v15872_v28  ;;  %v16438_v22 = vld [vmem:[%s25576_s7 + $0x1cc] sm:$0xf] }
 0x7aa   :  { %v17170_v13 = vld [vmem:[%s25576_s7 + $0x18a4] sm:$0xf0]  ;;  %v12417_v35 = vld [vmem:[%s25576_s7 + $0x1e8] sm:$0xf0] }
 0x7ab   :  { %v15583_v48 = vld [vmem:[%s25576_s7 + $0x1a88] sm:$0xf]  ;;  %v15328_v18 = vor.u32 %v17170_v13, %v15327_v56  ;;  %10196 = vmatpush.bf16.msrb.mxu0 %v16128_v24  ;;  %v16630_v56 = vld [vmem:[%s25576_s7 + $0x7cc] sm:$0xf]  ;;  %v12420_v24 = vor.u32 %v16438_v22, %v12417_v35 }
 0x7ac   :  { %v17234_v43 = vld [vmem:[%s25576_s7 + $0x1aa4] sm:$0xf0]  ;;  %v13185_v13 = vld [vmem:[%s25576_s7 + $0x7e8] sm:$0xf0] }
 0x7ad   :  { %v15839_v41 = vld [vmem:[%s25576_s7 + $0x1c88] sm:$0xf]  ;;  %v15584_v15 = vor.u32 %v17234_v43, %v15583_v48  ;;  %10158 = vmatpush.bf16.msra.mxu1 %v15328_v18  ;;  %v16430_v43 = vld [vmem:[%s25576_s7 + $0x18c] sm:$0xf] }
 0x7ae   :  { %v17298_v60 = vld [vmem:[%s25576_s7 + $0x1ca4] sm:$0xf0]  ;;  %v16558_v18 = vld [vmem:[%s25576_s7 + $0x58c] sm:$0xf] }
 0x7af   :  { %v16095_v46 = vld [vmem:[%s25576_s7 + $0x1e88] sm:$0xf]  ;;  %v15840_v39 = vor.u32 %v17298_v60, %v15839_v41  ;;  %10171 = vmatpush.bf16.msra.mxu2 %v15584_v15  ;;  %v12385_v41 = vld [vmem:[%s25576_s7 + $0x1a8] sm:$0xf0] }
 0x7b0   :  { %v17362_v32 = vld [vmem:[%s25576_s7 + $0x1ea4] sm:$0xf0]  ;;  %v16494_v60 = vld [vmem:[%s25576_s7 + $0x38c] sm:$0xf] }
 0x7b1   :  { %v15295_v4 = vld [vmem:[%s25576_s7 + $0x1848] sm:$0xf]  ;;  %v16096_v1 = vor.u32 %v17362_v32, %v16095_v46  ;;  %10184 = vmatpush.bf16.msra.mxu3 %v15840_v39  ;;  %v13188_v46 = vor.u32 %v16630_v56, %v13185_v13  ;;  %v12641_v32 = vld [vmem:[%s25576_s7 + $0x3a8] sm:$0xf0] }
 0x7b2   :  { %v17162_v29 = vld [vmem:[%s25576_s7 + $0x1864] sm:$0xf0]  ;;  %v12897_v15 = vld [vmem:[%s25576_s7 + $0x5a8] sm:$0xf0] }
 0x7b3   :  { %v15551_v30 = vld [vmem:[%s25576_s7 + $0x1a48] sm:$0xf]  ;;  %v15296_v61 = vor.u32 %v17162_v29, %v15295_v4  ;;  %10197 = vmatpush.bf16.msrb.mxu0 %v16096_v1  ;;  %v16622_v39 = vld [vmem:[%s25576_s7 + $0x78c] sm:$0xf]  ;;  %v12388_v29 = vor.u32 %v16430_v43, %v12385_v41  ;;  %v12900_v1 = vor.u32 %v16558_v18, %v12897_v15  ;;  %v9967_v41 = vpop.f32.mrf.mxu2 }
 0x7b4   :  { %v17226_v37 = vld [vmem:[%s25576_s7 + $0x1a64] sm:$0xf0]  ;;  %v13153_v4 = vld [vmem:[%s25576_s7 + $0x7a8] sm:$0xf0] }
 0x7b5   :  { %v15807_v58 = vld [vmem:[%s25576_s7 + $0x1c48] sm:$0xf]  ;;  %v15552_v36 = vor.u32 %v17226_v37, %v15551_v30  ;;  %10159 = vmatpush.bf16.msra.mxu1 %v15296_v61  ;;  %v12644_v30 = vor.u32 %v16494_v60, %v12641_v32  ;;  %v16422_v37 = vld [vmem:[%s25576_s7 + $0x14c] sm:$0xf]  ;;  %v9980_v32 = vpop.f32.mrf.mxu3 }
 0x7b6   :  { %v17290_v21 = vld [vmem:[%s25576_s7 + $0x1c64] sm:$0xf0]  ;;  %v12865_v61 = vld [vmem:[%s25576_s7 + $0x568] sm:$0xf0] }
 0x7b7   :  { %v16063_v5 = vld [vmem:[%s25576_s7 + $0x1e48] sm:$0xf]  ;;  %v15808_v9 = vor.u32 %v17290_v21, %v15807_v58  ;;  %10172 = vmatpush.bf16.msra.mxu2 %v15552_v36  ;;  %v12353_v58 = vld [vmem:[%s25576_s7 + $0x168] sm:$0xf0] }
 0x7b8   :  { %v17354_v14 = vld [vmem:[%s25576_s7 + $0x1e64] sm:$0xf0]  ;;  %v16486_v21 = vld [vmem:[%s25576_s7 + $0x34c] sm:$0xf] }
 0x7b9   :  { %v15263_v54 = vld [vmem:[%s25576_s7 + $0x1808] sm:$0xf]  ;;  %v16064_v55 = vor.u32 %v17354_v14, %v16063_v5  ;;  %10185 = vmatpush.bf16.msra.mxu3 %v15808_v9  ;;  %v13156_v5 = vor.u32 %v16622_v39, %v13153_v4  ;;  %v12609_v14 = vld [vmem:[%s25576_s7 + $0x368] sm:$0xf0]  ;;  %v12868_v9 = vor.u32 %v16550_v45, %v12865_v61 }
 0x7ba   :  { %v17154_v40 = vld [vmem:[%s25576_s7 + $0x1824] sm:$0xf0]  ;;  %v12612_v36 = vor.u32 %v16486_v21, %v12609_v14  ;;  %v12577_v22 = vld [vmem:[%s25576_s7 + $0x328] sm:$0xf0] }
 0x7bb   :  { %v15519_v20 = vld [vmem:[%s25576_s7 + $0x1a08] sm:$0xf]  ;;  %v15264_v12 = vor.u32 %v17154_v40, %v15263_v54  ;;  %10198 = vmatpush.bf16.msrb.mxu0 %v16064_v55  ;;  %v13121_v54 = vld [vmem:[%s25576_s7 + $0x768] sm:$0xf0]  ;;  %v12356_v40 = vor.u32 %v16422_v37, %v12353_v58 }
 0x7bc   :  { %v17218_v42 = vld [vmem:[%s25576_s7 + $0x1a24] sm:$0xf0]  ;;  %v16478_v55 = vld [vmem:[%s25576_s7 + $0x30c] sm:$0xf] }
 0x7bd   :  { %v15775_v16 = vld [vmem:[%s25576_s7 + $0x1c08] sm:$0xf]  ;;  %v15520_v28 = vor.u32 %v17218_v42, %v15519_v20  ;;  %10160 = vmatpush.bf16.msra.mxu1 %v15264_v12  ;;  %v9954_v20 = vpop.f32.mrf.mxu1  ;;  %v16414_v42 = vld [vmem:[%s25576_s7 + $0x10c] sm:$0xf]  ;;  %v12580_v7 = vor.u32 %v16478_v55, %v12577_v22 }
 0x7be   :  { %v17282_v59 = vld [vmem:[%s25576_s7 + $0x1c24] sm:$0xf0]  ;;  %v16542_v35 = vld [vmem:[%s25576_s7 + $0x50c] sm:$0xf] }
 0x7bf   :  { %v16031_v26 = vld [vmem:[%s25576_s7 + $0x1e08] sm:$0xf]  ;;  %v15776_v0 = vor.u32 %v17282_v59, %v15775_v16  ;;  %10173 = vmatpush.bf16.msra.mxu2 %v15520_v28  ;;  %v12321_v16 = vld [vmem:[%s25576_s7 + $0x128] sm:$0xf0]  ;;  %v13124_v59 = vor.u32 %v16614_v50, %v13121_v54  ;;  %v12836_v17 = vor.u32 %v16542_v35, %v12833_v49  ;;  %v9969_v35 = vpop.f32.mrf.mxu2 }
 0x7c0   :  { %v17346_v53 = vld [vmem:[%s25576_s7 + $0x1e24] sm:$0xf0]  ;;  %10161 = vmatmul.bf16.vlgmr.msra.gmra.mxu1 %v19767_v52  ;;  %v16606_v12 = vld [vmem:[%s25576_s7 + $0x70c] sm:$0xf]  ;;  %v12324_v34 = vor.u32 %v16414_v42, %v12321_v16 }
 0x7c1   :  { %v16032_v48 = vor.u32 %v17346_v53, %v16031_v26  ;;  %10186 = vmatpush.bf16.msra.mxu3 %v15776_v0  ;;  %10205 = vmatpush.bf16.msrb.mxu1 %v12420_v24  ;;  %v9955_v26 = vadd.f32 %v9954_v20, %v21263_v11  ;;  %v9993_v53 = vpop.f32.mrf.mxu0  ;;  %v13089_v11 = vld [vmem:[%s25576_s7 + $0x728] sm:$0xf0] }
 0x7c2   :  { %10174 = vmatmul.bf16.vlgmr.msra.gmra.mxu2 %v19769_v63  ;;  %v16406_v28 = vld [vmem:[%s25576_s7 + $0xcc] sm:$0xf]  ;;  %v13092_v13 = vor.u32 %v16606_v12, %v13089_v11  ;;  %v9982_v12 = vpop.f32.mrf.mxu3 }
 0x7c3   :  { %10199 = vmatpush.bf16.msrb.mxu0 %v16032_v48  ;;  %10218 = vmatpush.bf16.msrb.mxu2 %v12676_v25  ;;  %v12289_v0 = vld [vmem:[%s25576_s7 + $0xe8] sm:$0xf0] }
 0x7c4   :  { %10187 = vmatmul.bf16.vlgmr.msra.gmra.mxu3 %v19765_v44  ;;  %v16470_v56 = vld [vmem:[%s25576_s7 + $0x2cc] sm:$0xf]  ;;  %v12292_v60 = vor.u32 %v16406_v28, %v12289_v0 }
 0x7c5   :  { %10231 = vmatpush.bf16.msrb.mxu3 %v12932_v3  ;;  %10206 = vmatpush.bf16.msrb.mxu1 %v12388_v29  ;;  %v12545_v48 = vld [vmem:[%s25576_s7 + $0x2e8] sm:$0xf0]  ;;  %v9956_v39 = vpop.f32.mrf.mxu1 }
 0x7c6   :  { %10200 = vmatmul.bf16.vlgmr.msrb.gmra.mxu0 %v19777_v19  ;;  %v16534_v24 = vld [vmem:[%s25576_s7 + $0x4cc] sm:$0xf]  ;;  %v12548_v18 = vor.u32 %v16470_v56, %v12545_v48 }
 0x7c7   :  { %10244 = vmatpush.bf16.msra.mxu0 %v13188_v46  ;;  %10219 = vmatpush.bf16.msrb.mxu2 %v12644_v30  ;;  %v12801_v25 = vld [vmem:[%s25576_s7 + $0x4e8] sm:$0xf0]  ;;  %v9968_v46 = vadd.f32 %v9967_v41, %v9955_v26 }
 0x7c8   :  { %v16598_v3 = vld [vmem:[%s25576_s7 + $0x6cc] sm:$0xf]  ;;  %v12804_v15 = vor.u32 %v16534_v24, %v12801_v25 }
 0x7c9   :  { %10232 = vmatpush.bf16.msrb.mxu3 %v12900_v1  ;;  %10207 = vmatpush.bf16.msrb.mxu1 %v12356_v40  ;;  %v13057_v43 = vld [vmem:[%s25576_s7 + $0x6e8] sm:$0xf0]  ;;  %v9981_v37 = vadd.f32 %v9980_v32, %v9968_v46  ;;  %v9995_v58 = vpop.f32.mrf.mxu0 }
 0x7ca   :  { %v16398_v4 = vld [vmem:[%s25576_s7 + $0x8c] sm:$0xf]  ;;  %v13060_v1 = vor.u32 %v16598_v3, %v13057_v43 }
 0x7cb   :  { %10245 = vmatpush.bf16.msra.mxu0 %v13156_v5  ;;  %10220 = vmatpush.bf16.msrb.mxu2 %v12612_v36  ;;  %v12257_v29 = vld [vmem:[%s25576_s7 + $0xa8] sm:$0xf0]  ;;  %v21462_v50 = vadd.f32 %v9993_v53, %v9981_v37 }
 0x7cc   :  { %v16462_v30 = vld [vmem:[%s25576_s7 + $0x28c] sm:$0xf]  ;;  %v12260_v54 = vor.u32 %v16398_v4, %v12257_v29 }
 0x7cd   :  { %10233 = vmatpush.bf16.msrb.mxu3 %v12868_v9  ;;  %10208 = vmatpush.bf16.msrb.mxu1 %v12324_v34  ;;  %v12513_v21 = vld [vmem:[%s25576_s7 + $0x2a8] sm:$0xf0] }
 0x7ce   :  { %v16526_v5 = vld [vmem:[%s25576_s7 + $0x48c] sm:$0xf]  ;;  %v12516_v40 = vor.u32 %v16462_v30, %v12513_v21 }
 0x7cf   :  { %10246 = vmatpush.bf16.msra.mxu0 %v13124_v59  ;;  %10221 = vmatpush.bf16.msrb.mxu2 %v12580_v7  ;;  %v12769_v14 = vld [vmem:[%s25576_s7 + $0x4a8] sm:$0xf0] }
 0x7d0   :  { %v16590_v45 = vld [vmem:[%s25576_s7 + $0x68c] sm:$0xf]  ;;  %v12772_v36 = vor.u32 %v16526_v5, %v12769_v14 }
 0x7d1   :  { %10234 = vmatpush.bf16.msrb.mxu3 %v12836_v17  ;;  %v13025_v61 = vld [vmem:[%s25576_s7 + $0x6a8] sm:$0xf0]  ;;  %10209 = vmatpush.bf16.msrb.mxu1 %v12292_v60 }
 0x7d2   :  { %v16390_v9 = vld [vmem:[%s25576_s7 + $0x4c] sm:$0xf]  ;;  %v13028_v16 = vor.u32 %v16590_v45, %v13025_v61 }
 0x7d3   :  { %10247 = vmatpush.bf16.msra.mxu0 %v13092_v13  ;;  %10222 = vmatpush.bf16.msrb.mxu2 %v12548_v18  ;;  %v12225_v20 = vld [vmem:[%s25576_s7 + $0x68] sm:$0xf0] }
 0x7d4   :  { %v16454_v42 = vld [vmem:[%s25576_s7 + $0x24c] sm:$0xf]  ;;  %v12228_v49 = vor.u32 %v16390_v9, %v12225_v20 }
 0x7d5   :  { %10235 = vmatpush.bf16.msrb.mxu3 %v12804_v15  ;;  %v12481_v55 = vld [vmem:[%s25576_s7 + $0x268] sm:$0xf0]  ;;  %10210 = vmatpush.bf16.msrb.mxu1 %v12260_v54 }
 0x7d6   :  { %v16518_v59 = vld [vmem:[%s25576_s7 + $0x44c] sm:$0xf]  ;;  %v12484_v7 = vor.u32 %v16454_v42, %v12481_v55 }
 0x7d7   :  { %10248 = vmatpush.bf16.msra.mxu0 %v13060_v1  ;;  %v12737_v26 = vld [vmem:[%s25576_s7 + $0x468] sm:$0xf0]  ;;  %10223 = vmatpush.bf16.msrb.mxu2 %v12516_v40 }
 0x7d8   :  { %v16582_v53 = vld [vmem:[%s25576_s7 + $0x64c] sm:$0xf]  ;;  %v12740_v17 = vor.u32 %v16518_v59, %v12737_v26 }
 0x7d9   :  { %v12993_v22 = vld [vmem:[%s25576_s7 + $0x668] sm:$0xf0]  ;;  %10236 = vmatpush.bf16.msrb.mxu3 %v12772_v36  ;;  %10211 = vmatpush.bf16.msrb.mxu1 %v12228_v49 }
 0x7da   :  { %v16382_v11 = vld [vmem:[%s25576_s7 + $0xc] sm:$0xf]  ;;  %v12996_v13 = vor.u32 %v16582_v53, %v12993_v22 }
 0x7db   :  { %v12193_v34 = vld [vmem:[%s25576_s7 + $0x28] sm:$0xf0]  ;;  %10249 = vmatpush.bf16.msra.mxu0 %v13028_v16  ;;  %10224 = vmatpush.bf16.msrb.mxu2 %v12484_v7 }
 0x7dc   :  { %v16446_v28 = vld [vmem:[%s25576_s7 + $0x20c] sm:$0xf]  ;;  %v12196_v60 = vor.u32 %v16382_v11, %v12193_v34 }
 0x7dd   :  { %v12449_v0 = vld [vmem:[%s25576_s7 + $0x228] sm:$0xf0]  ;;  %10237 = vmatpush.bf16.msrb.mxu3 %v12740_v17 }
 0x7de   :  { %v16510_v56 = vld [vmem:[%s25576_s7 + $0x40c] sm:$0xf]  ;;  %v12452_v15 = vor.u32 %v16446_v28, %v12449_v0  ;;  %10212 = vmatpush.bf16.msrb.mxu1 %v12196_v60  ;;  %v17482_v60 = vld [vmem:[%s25579_s8] sm:$0xff] }
 0x7df   :  { %v12705_v48 = vld [vmem:[%s25576_s7 + $0x428] sm:$0xf0]  ;;  %10250 = vmatpush.bf16.msra.mxu0 %v12996_v13 }
 0x7e0   :  { %v16574_v24 = vld [vmem:[%s25576_s7 + $0x60c] sm:$0xf]  ;;  %v12708_v39 = vor.u32 %v16510_v56, %v12705_v48  ;;  %10225 = vmatpush.bf16.msrb.mxu2 %v12452_v15 }
 0x7e1   :  { %v12961_v25 = vld [vmem:[%s25576_s7 + $0x628] sm:$0xf0]  ;;  %10213 = vmatmul.bf16.vlgmr.msrb.gmra.mxu1 %v19296_v10 }
 0x7e2   :  { %v16694_v3 = vld [vmem:[%s25576_s7 + $0x9cc] sm:$0xf]  ;;  %v12964_v30 = vor.u32 %v16574_v24, %v12961_v25  ;;  %10238 = vmatpush.bf16.msrb.mxu3 %v12708_v39 }
 0x7e3   :  { %v13441_v43 = vld [vmem:[%s25576_s7 + $0x9e8] sm:$0xf0]  ;;  %10226 = vmatmul.bf16.vlgmr.msrb.gmra.mxu2 %v19298_v62 }
 0x7e4   :  { %v16758_v41 = vld [vmem:[%s25576_s7 + $0xbcc] sm:$0xf]  ;;  %v13444_v1 = vor.u32 %v16694_v3, %v13441_v43  ;;  %10251 = vmatpush.bf16.msra.mxu0 %v12964_v30  ;;  %v10006_v3 = vpop.f32.mrf.mxu1 }
 0x7e5   :  { %v13697_v46 = vld [vmem:[%s25576_s7 + $0xbe8] sm:$0xf0]  ;;  %10239 = vmatmul.bf16.vlgmr.msrb.gmra.mxu3 %v19319_v6 }
 0x7e6   :  { %v16822_v32 = vld [vmem:[%s25576_s7 + $0xdcc] sm:$0xf]  ;;  %v13700_v37 = vor.u32 %v16758_v41, %v13697_v46  ;;  %10257 = vmatpush.bf16.msra.mxu1 %v13444_v1  ;;  %v4391_v46 = vperm.slane %v17482_v60, 2 }
 0x7e7   :  { %v13953_v18 = vld [vmem:[%s25576_s7 + $0xde8] sm:$0xf0]  ;;  %10252 = vmatmul.bf16.vlgmr.msra.gmra.mxu0 %v19321_v23 }
 0x7e8   :  { %v16886_v4 = vld [vmem:[%s25576_s7 + $0xfcc] sm:$0xf]  ;;  %v13956_v58 = vor.u32 %v16822_v32, %v13953_v18  ;;  %10270 = vmatpush.bf16.msra.mxu2 %v13700_v37  ;;  %v10045_v18 = vpop.f32.mrf.mxu0 }
 0x7e9   :  { %v14209_v29 = vld [vmem:[%s25576_s7 + $0xfe8] sm:$0xf0] }
 0x7ea   :  { %v16686_v21 = vld [vmem:[%s25576_s7 + $0x98c] sm:$0xf]  ;;  %v14212_v45 = vor.u32 %v16886_v4, %v14209_v29  ;;  %10283 = vmatpush.bf16.msra.mxu3 %v13956_v58 }
 0x7eb   :  { %v13409_v5 = vld [vmem:[%s25576_s7 + $0x9a8] sm:$0xf0] }
 0x7ec   :  { %v16750_v14 = vld [vmem:[%s25576_s7 + $0xb8c] sm:$0xf]  ;;  %v13412_v20 = vor.u32 %v16686_v21, %v13409_v5  ;;  %10296 = vmatpush.bf16.msrb.mxu0 %v14212_v45 }
 0x7ed   :  { %v13665_v61 = vld [vmem:[%s25576_s7 + $0xba8] sm:$0xf0] }
 0x7ee   :  { %v16814_v54 = vld [vmem:[%s25576_s7 + $0xd8c] sm:$0xf]  ;;  %v13668_v42 = vor.u32 %v16750_v14, %v13665_v61  ;;  %10258 = vmatpush.bf16.msra.mxu1 %v13412_v20  ;;  %v10007_v61 = vadd.f32 %v10006_v3, %v4391_v46 }
 0x7ef   :  { %v13921_v40 = vld [vmem:[%s25576_s7 + $0xda8] sm:$0xf0] }
 0x7f0   :  { %v16878_v36 = vld [vmem:[%s25576_s7 + $0xf8c] sm:$0xf]  ;;  %v13924_v16 = vor.u32 %v16814_v54, %v13921_v40  ;;  %10271 = vmatpush.bf16.msra.mxu2 %v13668_v42 }
 0x7f1   :  { %v14177_v9 = vld [vmem:[%s25576_s7 + $0xfa8] sm:$0xf0] }
 0x7f2   :  { %v16678_v55 = vld [vmem:[%s25576_s7 + $0x94c] sm:$0xf]  ;;  %v14180_v53 = vor.u32 %v16878_v36, %v14177_v9  ;;  %10284 = vmatpush.bf16.msra.mxu3 %v13924_v16  ;;  %v10019_v16 = vpop.f32.mrf.mxu2 }
 0x7f3   :  { %v13377_v59 = vld [vmem:[%s25576_s7 + $0x968] sm:$0xf0] }
 0x7f4   :  { %v16742_v26 = vld [vmem:[%s25576_s7 + $0xb4c] sm:$0xf]  ;;  %v13380_v34 = vor.u32 %v16678_v55, %v13377_v59  ;;  %10297 = vmatpush.bf16.msrb.mxu0 %v14180_v53  ;;  %v10032_v55 = vpop.f32.mrf.mxu3 }
 0x7f5   :  { %v13633_v22 = vld [vmem:[%s25576_s7 + $0xb68] sm:$0xf0] }
 0x7f6   :  { %v16806_v35 = vld [vmem:[%s25576_s7 + $0xd4c] sm:$0xf]  ;;  %v13636_v7 = vor.u32 %v16742_v26, %v13633_v22  ;;  %10259 = vmatpush.bf16.msra.mxu1 %v13380_v34  ;;  %v10020_v22 = vadd.f32 %v10019_v16, %v10007_v61 }
 0x7f7   :  { %v13889_v49 = vld [vmem:[%s25576_s7 + $0xd68] sm:$0xf0] }
 0x7f8   :  { %v16870_v12 = vld [vmem:[%s25576_s7 + $0xf4c] sm:$0xf]  ;;  %v13892_v17 = vor.u32 %v16806_v35, %v13889_v49  ;;  %10272 = vmatpush.bf16.msra.mxu2 %v13636_v7  ;;  %v10008_v35 = vpop.f32.mrf.mxu1  ;;  %v10033_v34 = vadd.f32 %v10032_v55, %v10020_v22  ;;  %v10047_v7 = vpop.f32.mrf.mxu0 }
 0x7f9   :  { %v14145_v11 = vld [vmem:[%s25576_s7 + $0xf68] sm:$0xf0] }
 0x7fa   :  { %v16670_v28 = vld [vmem:[%s25576_s7 + $0x90c] sm:$0xf]  ;;  %v14148_v13 = vor.u32 %v16870_v12, %v14145_v11  ;;  %10285 = vmatpush.bf16.msra.mxu3 %v13892_v17  ;;  %v21687_v60 = vadd.f32 %v10045_v18, %v10033_v34 }
 0x7fb   :  { %v13345_v0 = vld [vmem:[%s25576_s7 + $0x928] sm:$0xf0] }
 0x7fc   :  { %v16734_v56 = vld [vmem:[%s25576_s7 + $0xb0c] sm:$0xf]  ;;  %v13348_v32 = vor.u32 %v16670_v28, %v13345_v0  ;;  %10298 = vmatpush.bf16.msrb.mxu0 %v14148_v13 }
 0x7fd   :  { %v13601_v48 = vld [vmem:[%s25576_s7 + $0xb28] sm:$0xf0] }
 0x7fe   :  { %v16798_v24 = vld [vmem:[%s25576_s7 + $0xd0c] sm:$0xf]  ;;  %v13604_v15 = vor.u32 %v16734_v56, %v13601_v48  ;;  %10260 = vmatpush.bf16.msra.mxu1 %v13348_v32 }
 0x7ff   :  { %v13857_v25 = vld [vmem:[%s25576_s7 + $0xd28] sm:$0xf0] }
 0x800   :  { %v16862_v43 = vld [vmem:[%s25576_s7 + $0xf0c] sm:$0xf]  ;;  %v13860_v39 = vor.u32 %v16798_v24, %v13857_v25  ;;  %10273 = vmatpush.bf16.msra.mxu2 %v13604_v15 }
 0x801   :  { %v14113_v41 = vld [vmem:[%s25576_s7 + $0xf28] sm:$0xf0] }
 0x802   :  { %v16662_v4 = vld [vmem:[%s25576_s7 + $0x8cc] sm:$0xf]  ;;  %v14116_v1 = vor.u32 %v16862_v43, %v14113_v41  ;;  %10286 = vmatpush.bf16.msra.mxu3 %v13860_v39 }
 0x803   :  { %v13313_v29 = vld [vmem:[%s25576_s7 + $0x8e8] sm:$0xf0] }
 0x804   :  { %v16726_v30 = vld [vmem:[%s25576_s7 + $0xacc] sm:$0xf]  ;;  %v13316_v45 = vor.u32 %v16662_v4, %v13313_v29  ;;  %10299 = vmatpush.bf16.msrb.mxu0 %v14116_v1 }
 0x805   :  { %v13569_v37 = vld [vmem:[%s25576_s7 + $0xae8] sm:$0xf0] }
 0x806   :  { %v16790_v58 = vld [vmem:[%s25576_s7 + $0xccc] sm:$0xf]  ;;  %v13572_v54 = vor.u32 %v16726_v30, %v13569_v37  ;;  %10261 = vmatpush.bf16.msra.mxu1 %v13316_v45  ;;  %v10021_v37 = vpop.f32.mrf.mxu2 }
 0x807   :  { %v13825_v21 = vld [vmem:[%s25576_s7 + $0xce8] sm:$0xf0] }
 0x808   :  { %v16854_v5 = vld [vmem:[%s25576_s7 + $0xecc] sm:$0xf]  ;;  %v13828_v40 = vor.u32 %v16790_v58, %v13825_v21  ;;  %10274 = vmatpush.bf16.msra.mxu2 %v13572_v54  ;;  %v10034_v58 = vpop.f32.mrf.mxu3 }
 0x809   :  { %v14081_v14 = vld [vmem:[%s25576_s7 + $0xee8] sm:$0xf0] }
 0x80a   :  { %v16654_v36 = vld [vmem:[%s25576_s7 + $0x88c] sm:$0xf]  ;;  %v14084_v42 = vor.u32 %v16854_v5, %v14081_v14  ;;  %10287 = vmatpush.bf16.msra.mxu3 %v13828_v40 }
 0x80b   :  { %v13281_v9 = vld [vmem:[%s25576_s7 + $0x8a8] sm:$0xf0] }
 0x80c   :  { %v16718_v20 = vld [vmem:[%s25576_s7 + $0xa8c] sm:$0xf]  ;;  %v13284_v11 = vor.u32 %v16654_v36, %v13281_v9  ;;  %10300 = vmatpush.bf16.msrb.mxu0 %v14084_v42 }
 0x80d   :  { %v13537_v59 = vld [vmem:[%s25576_s7 + $0xaa8] sm:$0xf0] }
 0x80e   :  { %v16782_v26 = vld [vmem:[%s25576_s7 + $0xc8c] sm:$0xf]  ;;  %v13540_v17 = vor.u32 %v16718_v20, %v13537_v59  ;;  %10262 = vmatpush.bf16.msra.mxu1 %v13284_v11 }
 0x80f   :  { %v13793_v53 = vld [vmem:[%s25576_s7 + $0xca8] sm:$0xf0] }
 0x810   :  { %v16846_v49 = vld [vmem:[%s25576_s7 + $0xe8c] sm:$0xf]  ;;  %v13796_v28 = vor.u32 %v16782_v26, %v13793_v53  ;;  %10275 = vmatpush.bf16.msra.mxu2 %v13540_v17 }
 0x811   :  { %v14049_v12 = vld [vmem:[%s25576_s7 + $0xea8] sm:$0xf0] }
 0x812   :  { %v16646_v0 = vld [vmem:[%s25576_s7 + $0x84c] sm:$0xf]  ;;  %v14052_v48 = vor.u32 %v16846_v49, %v14049_v12  ;;  %10288 = vmatpush.bf16.msra.mxu3 %v13796_v28 }
 0x813   :  { %v13249_v56 = vld [vmem:[%s25576_s7 + $0x868] sm:$0xf0] }
 0x814   :  { %v16710_v13 = vld [vmem:[%s25576_s7 + $0xa4c] sm:$0xf]  ;;  %v13252_v46 = vor.u32 %v16646_v0, %v13249_v56  ;;  %10301 = vmatpush.bf16.msrb.mxu0 %v14052_v48 }
 0x815   :  { %v13505_v24 = vld [vmem:[%s25576_s7 + $0xa68] sm:$0xf0] }
 0x816   :  { %v16774_v25 = vld [vmem:[%s25576_s7 + $0xc4c] sm:$0xf]  ;;  %v13508_v39 = vor.u32 %v16710_v13, %v13505_v24  ;;  %10263 = vmatpush.bf16.msra.mxu1 %v13252_v46 }
 0x817   :  { %v13761_v3 = vld [vmem:[%s25576_s7 + $0xc68] sm:$0xf0] }
 0x818   :  { %v16838_v43 = vld [vmem:[%s25576_s7 + $0xe4c] sm:$0xf]  ;;  %v13764_v4 = vor.u32 %v16774_v25, %v13761_v3  ;;  %10276 = vmatpush.bf16.msra.mxu2 %v13508_v39 }
 0x819   :  { %v14017_v41 = vld [vmem:[%s25576_s7 + $0xe68] sm:$0xf0] }
 0x81a   :  { %v16638_v32 = vld [vmem:[%s25576_s7 + $0x80c] sm:$0xf]  ;;  %v14020_v1 = vor.u32 %v16838_v43, %v14017_v41  ;;  %10289 = vmatpush.bf16.msra.mxu3 %v13764_v4 }
 0x81b   :  { %v13217_v15 = vld [vmem:[%s25576_s7 + $0x828] sm:$0xf0] }
 0x81c   :  { %v16702_v29 = vld [vmem:[%s25576_s7 + $0xa0c] sm:$0xf]  ;;  %v13220_v40 = vor.u32 %v16638_v32, %v13217_v15  ;;  %10302 = vmatpush.bf16.msrb.mxu0 %v14020_v1 }
 0x81d   :  { %v13473_v18 = vld [vmem:[%s25576_s7 + $0xa28] sm:$0xf0] }
 0x81e   :  { %v16766_v30 = vld [vmem:[%s25576_s7 + $0xc0c] sm:$0xf]  ;;  %v13476_v42 = vor.u32 %v16702_v29, %v13473_v18  ;;  %10264 = vmatpush.bf16.msra.mxu1 %v13220_v40 }
 0x81f   :  { %v13729_v21 = vld [vmem:[%s25576_s7 + $0xc28] sm:$0xf0] }
 0x820   :  { %v16830_v5 = vld [vmem:[%s25576_s7 + $0xe0c] sm:$0xf]  ;;  %v13732_v16 = vor.u32 %v16766_v30, %v13729_v21  ;;  %10277 = vmatpush.bf16.msra.mxu2 %v13476_v42 }
 0x821   :  { %v13985_v14 = vld [vmem:[%s25576_s7 + $0xe28] sm:$0xf0]  ;;  %10265 = vmatmul.bf16.vlgmr.msra.gmra.mxu1 %v19422_v51 }
 0x822   :  { %v16950_v45 = vld [vmem:[%s25576_s7 + $0x11cc] sm:$0xf]  ;;  %v13988_v26 = vor.u32 %v16830_v5, %v13985_v14  ;;  %10290 = vmatpush.bf16.msra.mxu3 %v13732_v16 }
 0x823   :  { %v14465_v61 = vld [vmem:[%s25576_s7 + $0x11e8] sm:$0xf0]  ;;  %10278 = vmatmul.bf16.vlgmr.msra.gmra.mxu2 %v19424_v38 }
 0x824   :  { %v17014_v54 = vld [vmem:[%s25576_s7 + $0x13cc] sm:$0xf]  ;;  %v14468_v53 = vor.u32 %v16950_v45, %v14465_v61  ;;  %10303 = vmatpush.bf16.msrb.mxu0 %v13988_v26  ;;  %v10058_v61 = vpop.f32.mrf.mxu1 }
 0x825   :  { %v14721_v36 = vld [vmem:[%s25576_s7 + $0x13e8] sm:$0xf0]  ;;  %10291 = vmatmul.bf16.vlgmr.msra.gmra.mxu3 %v19447_v27 }
 0x826   :  { %v17078_v9 = vld [vmem:[%s25576_s7 + $0x15cc] sm:$0xf]  ;;  %v14724_v22 = vor.u32 %v17014_v54, %v14721_v36  ;;  %10309 = vmatpush.bf16.msrb.mxu1 %v14468_v53  ;;  %v10059_v36 = vadd.f32 %v10058_v61, %v21687_v60 }
 0x827   :  { %v14977_v20 = vld [vmem:[%s25576_s7 + $0x15e8] sm:$0xf0]  ;;  %10304 = vmatmul.bf16.vlgmr.msrb.gmra.mxu0 %v19449_v47 }
 0x828   :  { %v17142_v55 = vld [vmem:[%s25576_s7 + $0x17cc] sm:$0xf]  ;;  %v14980_v35 = vor.u32 %v17078_v9, %v14977_v20  ;;  %10322 = vmatpush.bf16.msrb.mxu2 %v14724_v22  ;;  %v10097_v20 = vpop.f32.mrf.mxu0 }
 0x829   :  { %v15233_v59 = vld [vmem:[%s25576_s7 + $0x17e8] sm:$0xf0] }
 0x82a   :  { %v16942_v49 = vld [vmem:[%s25576_s7 + $0x118c] sm:$0xf]  ;;  %v15236_v34 = vor.u32 %v17142_v55, %v15233_v59  ;;  %10335 = vmatpush.bf16.msrb.mxu3 %v14980_v35 }
 0x82b   :  { %v14433_v12 = vld [vmem:[%s25576_s7 + $0x11a8] sm:$0xf0] }
 0x82c   :  { %v17006_v11 = vld [vmem:[%s25576_s7 + $0x138c] sm:$0xf]  ;;  %v14436_v13 = vor.u32 %v16942_v49, %v14433_v12  ;;  %10348 = vmatpush.bf16.msra.mxu0 %v15236_v34 }
 0x82d   :  { %v14689_v7 = vld [vmem:[%s25576_s7 + $0x13a8] sm:$0xf0] }
 0x82e   :  { %v17070_v17 = vld [vmem:[%s25576_s7 + $0x158c] sm:$0xf]  ;;  %v14692_v48 = vor.u32 %v17006_v11, %v14689_v7  ;;  %10310 = vmatpush.bf16.msrb.mxu1 %v14436_v13  ;;  %v10071_v13 = vpop.f32.mrf.mxu2 }
 0x82f   :  { %v14945_v28 = vld [vmem:[%s25576_s7 + $0x15a8] sm:$0xf0] }
 0x830   :  { %v17134_v0 = vld [vmem:[%s25576_s7 + $0x178c] sm:$0xf]  ;;  %v14948_v24 = vor.u32 %v17070_v17, %v14945_v28  ;;  %10323 = vmatpush.bf16.msrb.mxu2 %v14692_v48  ;;  %v10084_v48 = vpop.f32.mrf.mxu3 }
 0x831   :  { %v15201_v56 = vld [vmem:[%s25576_s7 + $0x17a8] sm:$0xf0] }
 0x832   :  { %v16934_v25 = vld [vmem:[%s25576_s7 + $0x114c] sm:$0xf]  ;;  %v15204_v41 = vor.u32 %v17134_v0, %v15201_v56  ;;  %10336 = vmatpush.bf16.msrb.mxu3 %v14948_v24 }
 0x833   :  { %v14401_v3 = vld [vmem:[%s25576_s7 + $0x1168] sm:$0xf0] }
 0x834   :  { %v16998_v43 = vld [vmem:[%s25576_s7 + $0x134c] sm:$0xf]  ;;  %v14404_v29 = vor.u32 %v16934_v25, %v14401_v3  ;;  %10349 = vmatpush.bf16.msra.mxu0 %v15204_v41  ;;  %v10060_v41 = vpop.f32.mrf.mxu1 }
 0x835   :  { %v14657_v46 = vld [vmem:[%s25576_s7 + $0x1368] sm:$0xf0] }
 0x836   :  { %v17062_v32 = vld [vmem:[%s25576_s7 + $0x154c] sm:$0xf]  ;;  %v14660_v18 = vor.u32 %v16998_v43, %v14657_v46  ;;  %10311 = vmatpush.bf16.msrb.mxu1 %v14404_v29  ;;  %v10072_v43 = vadd.f32 %v10071_v13, %v10059_v36 }
 0x837   :  { %v14913_v15 = vld [vmem:[%s25576_s7 + $0x1568] sm:$0xf0] }
 0x838   :  { %v17126_v39 = vld [vmem:[%s25576_s7 + $0x174c] sm:$0xf]  ;;  %v14916_v30 = vor.u32 %v17062_v32, %v14913_v15  ;;  %10324 = vmatpush.bf16.msrb.mxu2 %v14660_v18 }
 0x839   :  { %v15169_v4 = vld [vmem:[%s25576_s7 + $0x1768] sm:$0xf0] }
 0x83a   :  { %v16926_v1 = vld [vmem:[%s25576_s7 + $0x110c] sm:$0xf]  ;;  %v15172_v21 = vor.u32 %v17126_v39, %v15169_v4  ;;  %10337 = vmatpush.bf16.msrb.mxu3 %v14916_v30  ;;  %v10085_v39 = vadd.f32 %v10084_v48, %v10072_v43  ;;  %v10099_v4 = vpop.f32.mrf.mxu0 }
 0x83b   :  { %v14369_v37 = vld [vmem:[%s25576_s7 + $0x1128] sm:$0xf0] }
 0x83c   :  { %v16990_v58 = vld [vmem:[%s25576_s7 + $0x130c] sm:$0xf]  ;;  %v14372_v9 = vor.u32 %v16926_v1, %v14369_v37  ;;  %10350 = vmatpush.bf16.msra.mxu0 %v15172_v21 }
 0x83d   :  { %v14625_v5 = vld [vmem:[%s25576_s7 + $0x1328] sm:$0xf0] }
 0x83e   :  { %v17054_v14 = vld [vmem:[%s25576_s7 + $0x150c] sm:$0xf]  ;;  %v14628_v42 = vor.u32 %v16990_v58, %v14625_v5  ;;  %10312 = vmatpush.bf16.msrb.mxu1 %v14372_v9 }
 0x83f   :  { %v14881_v45 = vld [vmem:[%s25576_s7 + $0x1528] sm:$0xf0] }
 0x840   :  { %v17118_v54 = vld [vmem:[%s25576_s7 + $0x170c] sm:$0xf]  ;;  %v14884_v16 = vor.u32 %v17054_v14, %v14881_v45  ;;  %10325 = vmatpush.bf16.msrb.mxu2 %v14628_v42 }
 0x841   :  { %v15137_v40 = vld [vmem:[%s25576_s7 + $0x1728] sm:$0xf0] }
 0x842   :  { %v16918_v55 = vld [vmem:[%s25576_s7 + $0x10cc] sm:$0xf]  ;;  %v15140_v60 = vor.u32 %v17118_v54, %v15137_v40  ;;  %10338 = vmatpush.bf16.msrb.mxu3 %v14884_v16  ;;  %v21886_v54 = vadd.f32 %v10097_v20, %v10085_v39 }
 0x843   :  { %v14337_v59 = vld [vmem:[%s25576_s7 + $0x10e8] sm:$0xf0] }
 0x844   :  { %v16982_v26 = vld [vmem:[%s25576_s7 + $0x12cc] sm:$0xf]  ;;  %v14340_v11 = vor.u32 %v16918_v55, %v14337_v59  ;;  %10351 = vmatpush.bf16.msra.mxu0 %v15140_v60  ;;  %v10073_v60 = vpop.f32.mrf.mxu2 }
 0x845   :  { %v14593_v53 = vld [vmem:[%s25576_s7 + $0x12e8] sm:$0xf0] }
 0x846   :  { %v17046_v22 = vld [vmem:[%s25576_s7 + $0x14cc] sm:$0xf]  ;;  %v14596_v34 = vor.u32 %v16982_v26, %v14593_v53  ;;  %10313 = vmatpush.bf16.msrb.mxu1 %v14340_v11  ;;  %v10086_v53 = vpop.f32.mrf.mxu3 }
 0x847   :  { %v14849_v35 = vld [vmem:[%s25576_s7 + $0x14e8] sm:$0xf0] }
 0x848   :  { %v17110_v49 = vld [vmem:[%s25576_s7 + $0x16cc] sm:$0xf]  ;;  %v14852_v7 = vor.u32 %v17046_v22, %v14849_v35  ;;  %10326 = vmatpush.bf16.msrb.mxu2 %v14596_v34 }
 0x849   :  { %v15105_v12 = vld [vmem:[%s25576_s7 + $0x16e8] sm:$0xf0] }
 0x84a   :  { %v16910_v17 = vld [vmem:[%s25576_s7 + $0x108c] sm:$0xf]  ;;  %v15108_v56 = vor.u32 %v17110_v49, %v15105_v12  ;;  %10339 = vmatpush.bf16.msrb.mxu3 %v14852_v7 }
 0x84b   :  { %v14305_v28 = vld [vmem:[%s25576_s7 + $0x10a8] sm:$0xf0] }
 0x84c   :  { %v16974_v0 = vld [vmem:[%s25576_s7 + $0x128c] sm:$0xf]  ;;  %v14308_v15 = vor.u32 %v16910_v17, %v14305_v28  ;;  %10352 = vmatpush.bf16.msra.mxu0 %v15108_v56 }
 0x84d   :  { %v14561_v24 = vld [vmem:[%s25576_s7 + $0x12a8] sm:$0xf0] }
 0x84e   :  { %v17038_v25 = vld [vmem:[%s25576_s7 + $0x148c] sm:$0xf]  ;;  %v14564_v29 = vor.u32 %v16974_v0, %v14561_v24  ;;  %10314 = vmatpush.bf16.msrb.mxu1 %v14308_v15 }
 0x84f   :  { %v14817_v3 = vld [vmem:[%s25576_s7 + $0x14a8] sm:$0xf0] }
 0x850   :  { %v17102_v46 = vld [vmem:[%s25576_s7 + $0x168c] sm:$0xf]  ;;  %v14820_v18 = vor.u32 %v17038_v25, %v14817_v3  ;;  %10327 = vmatpush.bf16.msrb.mxu2 %v14564_v29 }
 0x851   :  { %v15073_v32 = vld [vmem:[%s25576_s7 + $0x16a8] sm:$0xf0] }
 0x852   :  { %v16902_v30 = vld [vmem:[%s25576_s7 + $0x104c] sm:$0xf]  ;;  %v15076_v58 = vor.u32 %v17102_v46, %v15073_v32  ;;  %10340 = vmatpush.bf16.msrb.mxu3 %v14820_v18 }
 0x853   :  { %v14273_v1 = vld [vmem:[%s25576_s7 + $0x1068] sm:$0xf0] }
 0x854   :  { %v16966_v37 = vld [vmem:[%s25576_s7 + $0x124c] sm:$0xf]  ;;  %v14276_v40 = vor.u32 %v16902_v30, %v14273_v1  ;;  %10353 = vmatpush.bf16.msra.mxu0 %v15076_v58 }
 0x855   :  { %v14529_v21 = vld [vmem:[%s25576_s7 + $0x1268] sm:$0xf0] }
 0x856   :  { %v17030_v5 = vld [vmem:[%s25576_s7 + $0x144c] sm:$0xf]  ;;  %v14532_v42 = vor.u32 %v16966_v37, %v14529_v21  ;;  %10315 = vmatpush.bf16.msrb.mxu1 %v14276_v40 }
 0x857   :  { %v14785_v14 = vld [vmem:[%s25576_s7 + $0x1468] sm:$0xf0] }
 0x858   :  { %v17094_v45 = vld [vmem:[%s25576_s7 + $0x164c] sm:$0xf]  ;;  %v14788_v16 = vor.u32 %v17030_v5, %v14785_v14  ;;  %10328 = vmatpush.bf16.msrb.mxu2 %v14532_v42 }
 0x859   :  { %v15041_v61 = vld [vmem:[%s25576_s7 + $0x1668] sm:$0xf0] }
 0x85a   :  { %v16894_v36 = vld [vmem:[%s25576_s7 + $0x100c] sm:$0xf]  ;;  %v15044_v26 = vor.u32 %v17094_v45, %v15041_v61  ;;  %10341 = vmatpush.bf16.msrb.mxu3 %v14788_v16 }
 0x85b   :  { %v14241_v9 = vld [vmem:[%s25576_s7 + $0x1028] sm:$0xf0] }
 0x85c   :  { %v16958_v55 = vld [vmem:[%s25576_s7 + $0x120c] sm:$0xf]  ;;  %v14244_v7 = vor.u32 %v16894_v36, %v14241_v9  ;;  %10354 = vmatpush.bf16.msra.mxu0 %v15044_v26 }
 0x85d   :  { %v14497_v20 = vld [vmem:[%s25576_s7 + $0x1228] sm:$0xf0] }
 0x85e   :  { %v17022_v59 = vld [vmem:[%s25576_s7 + $0x140c] sm:$0xf]  ;;  %v14500_v56 = vor.u32 %v16958_v55, %v14497_v20  ;;  %10316 = vmatpush.bf16.msrb.mxu1 %v14244_v7 }
 0x85f   :  { %v14753_v22 = vld [vmem:[%s25576_s7 + $0x1428] sm:$0xf0] }
 0x860   :  { %v17086_v35 = vld [vmem:[%s25576_s7 + $0x160c] sm:$0xf]  ;;  %v14756_v13 = vor.u32 %v17022_v59, %v14753_v22  ;;  %10329 = vmatpush.bf16.msrb.mxu2 %v14500_v56 }
 0x861   :  { %v15009_v49 = vld [vmem:[%s25576_s7 + $0x1628] sm:$0xf0]  ;;  %10317 = vmatmul.bf16.vlgmr.msrb.gmra.mxu1 %v19553_v8 }
 0x862   :  { %v17206_v12 = vld [vmem:[%s25576_s7 + $0x19cc] sm:$0xf]  ;;  %v15012_v25 = vor.u32 %v17086_v35, %v15009_v49  ;;  %10342 = vmatpush.bf16.msrb.mxu3 %v14756_v13 }
 0x863   :  { %v15489_v11 = vld [vmem:[%s25576_s7 + $0x19e8] sm:$0xf0]  ;;  %10330 = vmatmul.bf16.vlgmr.msrb.gmra.mxu2 %v19555_v33 }
 0x864   :  { %v17270_v34 = vld [vmem:[%s25576_s7 + $0x1bcc] sm:$0xf]  ;;  %v15492_v3 = vor.u32 %v17206_v12, %v15489_v11  ;;  %10355 = vmatpush.bf16.msra.mxu0 %v15012_v25  ;;  %v10110_v11 = vpop.f32.mrf.mxu1 }
 0x865   :  { %v15745_v17 = vld [vmem:[%s25576_s7 + $0x1be8] sm:$0xf0]  ;;  %10343 = vmatmul.bf16.vlgmr.msrb.gmra.mxu3 %v19564_v31 }
 0x866   :  { %v17334_v28 = vld [vmem:[%s25576_s7 + $0x1dcc] sm:$0xf]  ;;  %v15748_v43 = vor.u32 %v17270_v34, %v15745_v17  ;;  %10361 = vmatpush.bf16.msra.mxu1 %v15492_v3  ;;  %v10111_v17 = vadd.f32 %v10110_v11, %v21886_v54 }
 0x867   :  { %v16001_v0 = vld [vmem:[%s25576_s7 + $0x1de8] sm:$0xf0]  ;;  %10356 = vmatmul.bf16.vlgmr.msra.gmra.mxu0 %v19566_v2 }
 0x868   :  { %v17398_v48 = vld [vmem:[%s25576_s7 + $0x1fcc] sm:$0xf]  ;;  %v16004_v41 = vor.u32 %v17334_v28, %v16001_v0  ;;  %10374 = vmatpush.bf16.msra.mxu2 %v15748_v43  ;;  %v10149_v0 = vpop.f32.mrf.mxu0 }
 0x869   :  { %v16257_v24 = vld [vmem:[%s25576_s7 + $0x1fe8] sm:$0xf0] }
 0x86a   :  { %v17198_v46 = vld [vmem:[%s25576_s7 + $0x198c] sm:$0xf]  ;;  %v16260_v39 = vor.u32 %v17398_v48, %v16257_v24  ;;  %10387 = vmatpush.bf16.msra.mxu3 %v16004_v41 }
 0x86b   :  { %v15457_v32 = vld [vmem:[%s25576_s7 + $0x19a8] sm:$0xf0] }
 0x86c   :  { %v17262_v15 = vld [vmem:[%s25576_s7 + $0x1b8c] sm:$0xf]  ;;  %v15460_v37 = vor.u32 %v17198_v46, %v15457_v32  ;;  %10400 = vmatpush.bf16.msrb.mxu0 %v16260_v39 }
 0x86d   :  { %v15713_v4 = vld [vmem:[%s25576_s7 + $0x1ba8] sm:$0xf0] }
 0x86e   :  { %v17326_v29 = vld [vmem:[%s25576_s7 + $0x1d8c] sm:$0xf]  ;;  %v15716_v58 = vor.u32 %v17262_v15, %v15713_v4  ;;  %10362 = vmatpush.bf16.msra.mxu1 %v15460_v37  ;;  %v10123_v37 = vpop.f32.mrf.mxu2 }
 0x86f   :  { %v15969_v18 = vld [vmem:[%s25576_s7 + $0x1da8] sm:$0xf0] }
 0x870   :  { %v17390_v30 = vld [vmem:[%s25576_s7 + $0x1f8c] sm:$0xf]  ;;  %v15972_v21 = vor.u32 %v17326_v29, %v15969_v18  ;;  %10375 = vmatpush.bf16.msra.mxu2 %v15716_v58  ;;  %v10136_v58 = vpop.f32.mrf.mxu3 }
 0x871   :  { %v16225_v1 = vld [vmem:[%s25576_s7 + $0x1fa8] sm:$0xf0] }
 0x872   :  { %v17190_v5 = vld [vmem:[%s25576_s7 + $0x194c] sm:$0xf]  ;;  %v16228_v61 = vor.u32 %v17390_v30, %v16225_v1  ;;  %10388 = vmatpush.bf16.msra.mxu3 %v15972_v21 }
 0x873   :  { %v15425_v14 = vld [vmem:[%s25576_s7 + $0x1968] sm:$0xf0] }
 0x874   :  { %v17254_v45 = vld [vmem:[%s25576_s7 + $0x1b4c] sm:$0xf]  ;;  %v15428_v55 = vor.u32 %v17190_v5, %v15425_v14  ;;  %10401 = vmatpush.bf16.msrb.mxu0 %v16228_v61  ;;  %v10112_v61 = vpop.f32.mrf.mxu1 }
 0x875   :  { %v15681_v40 = vld [vmem:[%s25576_s7 + $0x1b68] sm:$0xf0] }
 0x876   :  { %v17318_v36 = vld [vmem:[%s25576_s7 + $0x1d4c] sm:$0xf]  ;;  %v15684_v20 = vor.u32 %v17254_v45, %v15681_v40  ;;  %10363 = vmatpush.bf16.msra.mxu1 %v15428_v55  ;;  %v10124_v45 = vadd.f32 %v10123_v37, %v10111_v17 }
 0x877   :  { %v15937_v9 = vld [vmem:[%s25576_s7 + $0x1d68] sm:$0xf0] }
 0x878   :  { %v17382_v42 = vld [vmem:[%s25576_s7 + $0x1f4c] sm:$0xf]  ;;  %v15940_v59 = vor.u32 %v17318_v36, %v15937_v9  ;;  %10376 = vmatpush.bf16.msra.mxu2 %v15684_v20 }
 0x879   :  { %v16193_v16 = vld [vmem:[%s25576_s7 + $0x1f68] sm:$0xf0] }
 0x87a   :  { %v17182_v26 = vld [vmem:[%s25576_s7 + $0x190c] sm:$0xf]  ;;  %v16196_v22 = vor.u32 %v17382_v42, %v16193_v16  ;;  %10389 = vmatpush.bf16.msra.mxu3 %v15940_v59  ;;  %v10137_v42 = vadd.f32 %v10136_v58, %v10124_v45  ;;  %v10151_v16 = vpop.f32.mrf.mxu0  ;;  %v13191_v58 = vld [vmem:[%s25576_s7 + $0x7d0] sm:$0xf] }
 0x87b   :  { %v15393_v60 = vld [vmem:[%s25576_s7 + $0x1928] sm:$0xf0]  ;;  %v16499_v16 = vld [vmem:[%s25576_s7 + $0x3ac] sm:$0xf0] }
 0x87c   :  { %v17246_v53 = vld [vmem:[%s25576_s7 + $0x1b0c] sm:$0xf]  ;;  %v15396_v28 = vor.u32 %v17182_v26, %v15393_v60  ;;  %10402 = vmatpush.bf16.msrb.mxu0 %v16196_v22 }
 0x87d   :  { %v15649_v35 = vld [vmem:[%s25576_s7 + $0x1b28] sm:$0xf0] }
 0x87e   :  { %v17310_v49 = vld [vmem:[%s25576_s7 + $0x1d0c] sm:$0xf]  ;;  %v15652_v56 = vor.u32 %v17246_v53, %v15649_v35  ;;  %10364 = vmatpush.bf16.msra.mxu1 %v15396_v28 }
 0x87f   :  { %v15905_v12 = vld [vmem:[%s25576_s7 + $0x1d28] sm:$0xf0] }
 0x880   :  { %v17374_v34 = vld [vmem:[%s25576_s7 + $0x1f0c] sm:$0xf]  ;;  %v15908_v13 = vor.u32 %v17310_v49, %v15905_v12  ;;  %10377 = vmatpush.bf16.msra.mxu2 %v15652_v56 }
 0x881   :  { %v16161_v7 = vld [vmem:[%s25576_s7 + $0x1f28] sm:$0xf0] }
 0x882   :  { %v17174_v48 = vld [vmem:[%s25576_s7 + $0x18cc] sm:$0xf]  ;;  %v16164_v54 = vor.u32 %v17374_v34, %v16161_v7  ;;  %10390 = vmatpush.bf16.msra.mxu3 %v15908_v13  ;;  %v22085_v34 = vadd.f32 %v10149_v0, %v10137_v42 }
 0x883   :  { %v15361_v24 = vld [vmem:[%s25576_s7 + $0x18e8] sm:$0xf0] }
 0x884   :  { %v17238_v25 = vld [vmem:[%s25576_s7 + $0x1acc] sm:$0xf]  ;;  %v15364_v15 = vor.u32 %v17174_v48, %v15361_v24  ;;  %10403 = vmatpush.bf16.msrb.mxu0 %v16164_v54  ;;  %v10125_v54 = vpop.f32.mrf.mxu2 }
 0x885   :  { %v15617_v3 = vld [vmem:[%s25576_s7 + $0x1ae8] sm:$0xf0]  ;;  %v16419_v54 = vld [vmem:[%s25576_s7 + $0x12c] sm:$0xf0] }
 0x886   :  { %v17302_v43 = vld [vmem:[%s25576_s7 + $0x1ccc] sm:$0xf]  ;;  %v15620_v39 = vor.u32 %v17238_v25, %v15617_v3  ;;  %10365 = vmatpush.bf16.msra.mxu1 %v15364_v15  ;;  %v10138_v3 = vpop.f32.mrf.mxu3  ;;  %v16443_v15 = vld [vmem:[%s25576_s7 + $0x1ec] sm:$0xf0] }
 0x887   :  { %v15873_v41 = vld [vmem:[%s25576_s7 + $0x1ce8] sm:$0xf0]  ;;  %v12583_v3 = vld [vmem:[%s25576_s7 + $0x310] sm:$0xf] }
 0x888   :  { %v17366_v46 = vld [vmem:[%s25576_s7 + $0x1ecc] sm:$0xf]  ;;  %v15876_v4 = vor.u32 %v17302_v43, %v15873_v41  ;;  %10378 = vmatpush.bf16.msra.mxu2 %v15620_v39  ;;  %v12679_v39 = vld [vmem:[%s25576_s7 + $0x3d0] sm:$0xf] }
 0x889   :  { %v16129_v32 = vld [vmem:[%s25576_s7 + $0x1ee8] sm:$0xf0] }
 0x88a   :  { %v17166_v29 = vld [vmem:[%s25576_s7 + $0x188c] sm:$0xf]  ;;  %v16132_v1 = vor.u32 %v17366_v46, %v16129_v32  ;;  %10391 = vmatpush.bf16.msra.mxu3 %v15876_v4  ;;  %v12423_v32 = vld [vmem:[%s25576_s7 + $0x1d0] sm:$0xf] }
 0x88b   :  { %v15329_v18 = vld [vmem:[%s25576_s7 + $0x18a8] sm:$0xf0] }
 0x88c   :  { %v17230_v30 = vld [vmem:[%s25576_s7 + $0x1a8c] sm:$0xf]  ;;  %v15332_v9 = vor.u32 %v17166_v29, %v15329_v18  ;;  %10404 = vmatpush.bf16.msrb.mxu0 %v16132_v1  ;;  %v16507_v29 = vld [vmem:[%s25576_s7 + $0x3ec] sm:$0xf0] }
 0x88d   :  { %v15585_v21 = vld [vmem:[%s25576_s7 + $0x1aa8] sm:$0xf0]  ;;  %v12935_v18 = vld [vmem:[%s25576_s7 + $0x5d0] sm:$0xf]  ;;  %v12680_v45 = vor.u32 %v16507_v29, %v12679_v39 }
 0x88e   :  { %v17294_v5 = vld [vmem:[%s25576_s7 + $0x1c8c] sm:$0xf]  ;;  %v15588_v55 = vor.u32 %v17230_v30, %v15585_v21  ;;  %10366 = vmatpush.bf16.msra.mxu1 %v15332_v9  ;;  %v16571_v30 = vld [vmem:[%s25576_s7 + $0x5ec] sm:$0xf0] }
 0x88f   :  { %v15841_v14 = vld [vmem:[%s25576_s7 + $0x1ca8] sm:$0xf0]  ;;  %v16635_v21 = vld [vmem:[%s25576_s7 + $0x7ec] sm:$0xf0]  ;;  %v12936_v61 = vor.u32 %v16571_v30, %v12935_v18  ;;  %v10201_v30 = vpop.f32.mrf.mxu0 }
 0x890   :  { %v17358_v40 = vld [vmem:[%s25576_s7 + $0x1e8c] sm:$0xf]  ;;  %v15844_v20 = vor.u32 %v17294_v5, %v15841_v14  ;;  %10379 = vmatpush.bf16.msra.mxu2 %v15588_v55  ;;  %v12424_v14 = vor.u32 %v16443_v15, %v12423_v32  ;;  %v12647_v9 = vld [vmem:[%s25576_s7 + $0x390] sm:$0xf]  ;;  %v13192_v42 = vor.u32 %v16635_v21, %v13191_v58  ;;  %v10162_v15 = vpop.f32.mrf.mxu1 }
 0x891   :  { %v16097_v36 = vld [vmem:[%s25576_s7 + $0x1ea8] sm:$0xf0]  ;;  %v12903_v55 = vld [vmem:[%s25576_s7 + $0x590] sm:$0xf]  ;;  %v10163_v29 = vadd.f32 %v10162_v15, %v22085_v34 }
 0x892   :  { %v17158_v59 = vld [vmem:[%s25576_s7 + $0x184c] sm:$0xf]  ;;  %v16100_v53 = vor.u32 %v17358_v40, %v16097_v36  ;;  %10392 = vmatpush.bf16.msra.mxu3 %v15844_v20  ;;  %v12391_v40 = vld [vmem:[%s25576_s7 + $0x190] sm:$0xf] }
 0x893   :  { %v15297_v26 = vld [vmem:[%s25576_s7 + $0x1868] sm:$0xf0]  ;;  %v16435_v36 = vld [vmem:[%s25576_s7 + $0x1ac] sm:$0xf0] }
 0x894   :  { %v17222_v60 = vld [vmem:[%s25576_s7 + $0x1a4c] sm:$0xf]  ;;  %v15300_v7 = vor.u32 %v17158_v59, %v15297_v26  ;;  %10405 = vmatpush.bf16.msrb.mxu0 %v16100_v53  ;;  %v16563_v20 = vld [vmem:[%s25576_s7 + $0x5ac] sm:$0xf0]  ;;  %v12648_v53 = vor.u32 %v16499_v16, %v12647_v9 }
 0x895   :  { %v15553_v22 = vld [vmem:[%s25576_s7 + $0x1a68] sm:$0xf0]  ;;  %v13159_v59 = vld [vmem:[%s25576_s7 + $0x790] sm:$0xf] }
 0x896   :  { %v17286_v35 = vld [vmem:[%s25576_s7 + $0x1c4c] sm:$0xf]  ;;  %v15556_v56 = vor.u32 %v17222_v60, %v15553_v22  ;;  %10367 = vmatpush.bf16.msra.mxu1 %v15300_v7  ;;  %v16627_v26 = vld [vmem:[%s25576_s7 + $0x7ac] sm:$0xf0]  ;;  %v12392_v60 = vor.u32 %v16435_v36, %v12391_v40  ;;  %v12904_v22 = vor.u32 %v16563_v20, %v12903_v55 }
 0x897   :  { %v15809_v49 = vld [vmem:[%s25576_s7 + $0x1c68] sm:$0xf0]  ;;  %v16491_v7 = vld [vmem:[%s25576_s7 + $0x36c] sm:$0xf0] }
 0x898   :  { %v17350_v12 = vld [vmem:[%s25576_s7 + $0x1e4c] sm:$0xf]  ;;  %v15812_v13 = vor.u32 %v17286_v35, %v15809_v49  ;;  %10380 = vmatpush.bf16.msra.mxu2 %v15556_v56  ;;  %v12359_v35 = vld [vmem:[%s25576_s7 + $0x150] sm:$0xf] }
 0x899   :  { %v16065_v11 = vld [vmem:[%s25576_s7 + $0x1e68] sm:$0xf0]  ;;  %v16427_v49 = vld [vmem:[%s25576_s7 + $0x16c] sm:$0xf0] }
 0x89a   :  { %v17150_v17 = vld [vmem:[%s25576_s7 + $0x180c] sm:$0xf]  ;;  %v16068_v25 = vor.u32 %v17350_v12, %v16065_v11  ;;  %10393 = vmatpush.bf16.msra.mxu3 %v15812_v13  ;;  %v12615_v12 = vld [vmem:[%s25576_s7 + $0x350] sm:$0xf]  ;;  %v13160_v11 = vor.u32 %v16627_v26, %v13159_v59 }
 0x89b   :  { %v15265_v28 = vld [vmem:[%s25576_s7 + $0x1828] sm:$0xf0]  ;;  %v13127_v56 = vld [vmem:[%s25576_s7 + $0x750] sm:$0xf] }
 0x89c   :  { %v17214_v48 = vld [vmem:[%s25576_s7 + $0x1a0c] sm:$0xf]  ;;  %v15268_v4 = vor.u32 %v17150_v17, %v15265_v28  ;;  %10406 = vmatpush.bf16.msrb.mxu0 %v16068_v25  ;;  %v12871_v17 = vld [vmem:[%s25576_s7 + $0x550] sm:$0xf] }
 0x89d   :  { %v15521_v0 = vld [vmem:[%s25576_s7 + $0x1a28] sm:$0xf0]  ;;  %v16555_v28 = vld [vmem:[%s25576_s7 + $0x56c] sm:$0xf0] }
 0x89e   :  { %v17278_v24 = vld [vmem:[%s25576_s7 + $0x1c0c] sm:$0xf]  ;;  %v15524_v1 = vor.u32 %v17214_v48, %v15521_v0  ;;  %10368 = vmatpush.bf16.msra.mxu1 %v15268_v4  ;;  %v16619_v13 = vld [vmem:[%s25576_s7 + $0x76c] sm:$0xf0]  ;;  %v12360_v48 = vor.u32 %v16427_v49, %v12359_v35  ;;  %v12616_v0 = vor.u32 %v16491_v7, %v12615_v12 }
 0x89f   :  { %v15777_v43 = vld [vmem:[%s25576_s7 + $0x1c28] sm:$0xf0]  ;;  %v12327_v25 = vld [vmem:[%s25576_s7 + $0x110] sm:$0xf] }
 0x8a0   :  { %v17342_v41 = vld [vmem:[%s25576_s7 + $0x1e0c] sm:$0xf]  ;;  %v15780_v37 = vor.u32 %v17278_v24, %v15777_v43  ;;  %10381 = vmatpush.bf16.msra.mxu2 %v15524_v1  ;;  %v12872_v24 = vor.u32 %v16555_v28, %v12871_v17  ;;  %v13128_v43 = vor.u32 %v16619_v13, %v13127_v56  ;;  %v16547_v32 = vld [vmem:[%s25576_s7 + $0x52c] sm:$0xf0]  ;;  %v12328_v18 = vor.u32 %v16419_v54, %v12327_v25  ;;  %v10203_v13 = vpop.f32.mrf.mxu0 }
 0x8a1   :  { %v16033_v46 = vld [vmem:[%s25576_s7 + $0x1e28] sm:$0xf0]  ;;  %10369 = vmatmul.bf16.vlgmr.msra.gmra.mxu1 %v19767_v52  ;;  %v13095_v39 = vld [vmem:[%s25576_s7 + $0x710] sm:$0xf] }
 0x8a2   :  { %v16036_v5 = vor.u32 %v17342_v41, %v16033_v46  ;;  %10394 = vmatpush.bf16.msra.mxu3 %v15780_v37  ;;  %10413 = vmatpush.bf16.msrb.mxu1 %v12424_v14  ;;  %v16483_v41 = vld [vmem:[%s25576_s7 + $0x32c] sm:$0xf0] }
 0x8a3   :  { %10382 = vmatmul.bf16.vlgmr.msra.gmra.mxu2 %v19769_v63  ;;  %v12839_v46 = vld [vmem:[%s25576_s7 + $0x510] sm:$0xf]  ;;  %v12584_v1 = vor.u32 %v16483_v41, %v12583_v3 }
 0x8a4   :  { %10407 = vmatpush.bf16.msrb.mxu0 %v16036_v5  ;;  %10426 = vmatpush.bf16.msrb.mxu2 %v12680_v45  ;;  %v16611_v4 = vld [vmem:[%s25576_s7 + $0x72c] sm:$0xf0]  ;;  %v12840_v37 = vor.u32 %v16547_v32, %v12839_v46 }
 0x8a5   :  { %10395 = vmatmul.bf16.vlgmr.msra.gmra.mxu3 %v19765_v44  ;;  %v12295_v58 = vld [vmem:[%s25576_s7 + $0xd0] sm:$0xf]  ;;  %v13096_v34 = vor.u32 %v16611_v4, %v13095_v39 }
 0x8a6   :  { %10439 = vmatpush.bf16.msrb.mxu3 %v12936_v61  ;;  %10414 = vmatpush.bf16.msrb.mxu1 %v12392_v60  ;;  %v16411_v21 = vld [vmem:[%s25576_s7 + $0xec] sm:$0xf0]  ;;  %v10175_v60 = vpop.f32.mrf.mxu2 }
 0x8a7   :  { %10408 = vmatmul.bf16.vlgmr.msrb.gmra.mxu0 %v19777_v19  ;;  %v12551_v5 = vld [vmem:[%s25576_s7 + $0x2d0] sm:$0xf]  ;;  %v12296_v9 = vor.u32 %v16411_v21, %v12295_v58  ;;  %v10176_v12 = vadd.f32 %v10175_v60, %v10163_v29 }
 0x8a8   :  { %10452 = vmatpush.bf16.msra.mxu0 %v13192_v42  ;;  %10427 = vmatpush.bf16.msrb.mxu2 %v12648_v53  ;;  %v16475_v14 = vld [vmem:[%s25576_s7 + $0x2ec] sm:$0xf0]  ;;  %v10188_v53 = vpop.f32.mrf.mxu3 }
 0x8a9   :  { %v12807_v45 = vld [vmem:[%s25576_s7 + $0x4d0] sm:$0xf]  ;;  %v12552_v42 = vor.u32 %v16475_v14, %v12551_v5  ;;  %v10189_v56 = vadd.f32 %v10188_v53, %v10176_v12 }
 0x8aa   :  { %10440 = vmatpush.bf16.msrb.mxu3 %v12904_v22  ;;  %10415 = vmatpush.bf16.msrb.mxu1 %v12360_v48  ;;  %v16539_v61 = vld [vmem:[%s25576_s7 + $0x4ec] sm:$0xf0] }
 0x8ab   :  { %v13063_v40 = vld [vmem:[%s25576_s7 + $0x6d0] sm:$0xf]  ;;  %v12808_v16 = vor.u32 %v16539_v61, %v12807_v45  ;;  %v22278_v32 = vadd.f32 %v10201_v30, %v10189_v56 }
 0x8ac   :  { %10453 = vmatpush.bf16.msra.mxu0 %v13160_v11  ;;  %10428 = vmatpush.bf16.msrb.mxu2 %v12616_v0  ;;  %v16603_v36 = vld [vmem:[%s25576_s7 + $0x6ec] sm:$0xf0]  ;;  %v10164_v11 = vpop.f32.mrf.mxu1 }
 0x8ad   :  { %v12263_v55 = vld [vmem:[%s25576_s7 + $0x90] sm:$0xf]  ;;  %v13064_v26 = vor.u32 %v16603_v36, %v13063_v40 }
 0x8ae   :  { %10441 = vmatpush.bf16.msrb.mxu3 %v12872_v24  ;;  %10416 = vmatpush.bf16.msrb.mxu1 %v12328_v18  ;;  %v16403_v20 = vld [vmem:[%s25576_s7 + $0xac] sm:$0xf0] }
 0x8af   :  { %v12519_v59 = vld [vmem:[%s25576_s7 + $0x290] sm:$0xf]  ;;  %v12264_v28 = vor.u32 %v16403_v20, %v12263_v55 }
 0x8b0   :  { %10454 = vmatpush.bf16.msra.mxu0 %v13128_v43  ;;  %10429 = vmatpush.bf16.msrb.mxu2 %v12584_v1  ;;  %v16467_v22 = vld [vmem:[%s25576_s7 + $0x2ac] sm:$0xf0]  ;;  %v10190_v14 = vpop.f32.mrf.mxu3 }
 0x8b1   :  { %v12775_v35 = vld [vmem:[%s25576_s7 + $0x490] sm:$0xf]  ;;  %v12520_v48 = vor.u32 %v16467_v22, %v12519_v59 }
 0x8b2   :  { %10442 = vmatpush.bf16.msrb.mxu3 %v12840_v37  ;;  %v16531_v49 = vld [vmem:[%s25576_s7 + $0x4ac] sm:$0xf0]  ;;  %10417 = vmatpush.bf16.msrb.mxu1 %v12296_v9 }
 0x8b3   :  { %v13031_v7 = vld [vmem:[%s25576_s7 + $0x690] sm:$0xf]  ;;  %v12776_v0 = vor.u32 %v16531_v49, %v12775_v35 }
 0x8b4   :  { %10455 = vmatpush.bf16.msra.mxu0 %v13096_v34  ;;  %v16595_v17 = vld [vmem:[%s25576_s7 + $0x6ac] sm:$0xf0]  ;;  %10430 = vmatpush.bf16.msrb.mxu2 %v12552_v42  ;;  %v10177_v34 = vpop.f32.mrf.mxu2 }
 0x8b5   :  { %v12231_v24 = vld [vmem:[%s25576_s7 + $0x50] sm:$0xf]  ;;  %v13032_v3 = vor.u32 %v16595_v17, %v13031_v7 }
 0x8b6   :  { %10443 = vmatpush.bf16.msrb.mxu3 %v12808_v16  ;;  %v16395_v25 = vld [vmem:[%s25576_s7 + $0x6c] sm:$0xf0]  ;;  %10418 = vmatpush.bf16.msrb.mxu1 %v12264_v28 }
 0x8b7   :  { %v12487_v54 = vld [vmem:[%s25576_s7 + $0x250] sm:$0xf]  ;;  %v12232_v4 = vor.u32 %v16395_v25, %v12231_v24 }
 0x8b8   :  { %10456 = vmatpush.bf16.msra.mxu0 %v13064_v26  ;;  %v16459_v43 = vld [vmem:[%s25576_s7 + $0x26c] sm:$0xf0]  ;;  %10431 = vmatpush.bf16.msrb.mxu2 %v12520_v48 }
 0x8b9   :  { %v12743_v41 = vld [vmem:[%s25576_s7 + $0x450] sm:$0xf]  ;;  %v12488_v30 = vor.u32 %v16459_v43, %v12487_v54 }
 0x8ba   :  { %v16523_v46 = vld [vmem:[%s25576_s7 + $0x46c] sm:$0xf0]  ;;  %10444 = vmatpush.bf16.msrb.mxu3 %v12776_v0  ;;  %10419 = vmatpush.bf16.msrb.mxu1 %v12232_v4 }
 0x8bb   :  { %v12999_v15 = vld [vmem:[%s25576_s7 + $0x650] sm:$0xf]  ;;  %v12744_v1 = vor.u32 %v16523_v46, %v12743_v41 }
 0x8bc   :  { %v16587_v39 = vld [vmem:[%s25576_s7 + $0x66c] sm:$0xf0]  ;;  %10457 = vmatpush.bf16.msra.mxu0 %v13032_v3  ;;  %10432 = vmatpush.bf16.msrb.mxu2 %v12488_v30 }
 0x8bd   :  { %v12199_v29 = vld [vmem:[%s25576_s7 + $0x10] sm:$0xf]  ;;  %v13000_v5 = vor.u32 %v16587_v39, %v12999_v15 }
 0x8be   :  { %v16387_v18 = vld [vmem:[%s25576_s7 + $0x2c] sm:$0xf0]  ;;  %10445 = vmatpush.bf16.msrb.mxu3 %v12744_v1 }
 0x8bf   :  { %v12455_v37 = vld [vmem:[%s25576_s7 + $0x210] sm:$0xf]  ;;  %v12200_v16 = vor.u32 %v16387_v18, %v12199_v29 }
 0x8c0   :  { %v16451_v58 = vld [vmem:[%s25576_s7 + $0x22c] sm:$0xf0]  ;;  %10458 = vmatpush.bf16.msra.mxu0 %v13000_v5 }
 0x8c1   :  { %v12711_v21 = vld [vmem:[%s25576_s7 + $0x410] sm:$0xf]  ;;  %v12456_v26 = vor.u32 %v16451_v58, %v12455_v37  ;;  %10420 = vmatpush.bf16.msrb.mxu1 %v12200_v16 }
 0x8c2   :  { %v16515_v45 = vld [vmem:[%s25576_s7 + $0x42c] sm:$0xf0] }
 0x8c3   :  { %v12967_v61 = vld [vmem:[%s25576_s7 + $0x610] sm:$0xf]  ;;  %v12712_v60 = vor.u32 %v16515_v45, %v12711_v21  ;;  %10433 = vmatpush.bf16.msrb.mxu2 %v12456_v26  ;;  %v10253_v26 = vpop.f32.mrf.mxu0 }
 0x8c4   :  { %v16579_v40 = vld [vmem:[%s25576_s7 + $0x62c] sm:$0xf0]  ;;  %10421 = vmatmul.bf16.vlgmr.msrb.gmra.mxu1 %v19296_v10 }
 0x8c5   :  { %v13447_v36 = vld [vmem:[%s25576_s7 + $0x9d0] sm:$0xf]  ;;  %v12968_v35 = vor.u32 %v16579_v40, %v12967_v61  ;;  %10446 = vmatpush.bf16.msrb.mxu3 %v12712_v60 }
 0x8c6   :  { %v16699_v9 = vld [vmem:[%s25576_s7 + $0x9ec] sm:$0xf0]  ;;  %10434 = vmatmul.bf16.vlgmr.msrb.gmra.mxu2 %v19298_v62 }
 0x8c7   :  { %v13703_v42 = vld [vmem:[%s25576_s7 + $0xbd0] sm:$0xf]  ;;  %v13448_v49 = vor.u32 %v16699_v9, %v13447_v36  ;;  %10459 = vmatpush.bf16.msra.mxu0 %v12968_v35  ;;  %v10214_v9 = vpop.f32.mrf.mxu1 }
 0x8c8   :  { %v16763_v55 = vld [vmem:[%s25576_s7 + $0xbec] sm:$0xf0]  ;;  %10447 = vmatmul.bf16.vlgmr.msrb.gmra.mxu3 %v19319_v6 }
 0x8c9   :  { %v13959_v20 = vld [vmem:[%s25576_s7 + $0xdd0] sm:$0xf]  ;;  %v13704_v12 = vor.u32 %v16763_v55, %v13703_v42  ;;  %10465 = vmatpush.bf16.msra.mxu1 %v13448_v49  ;;  %v17483_v55 = vld [vmem:[%s25579_s8] sm:$0xff] }
 0x8ca   :  { %v16827_v59 = vld [vmem:[%s25576_s7 + $0xdec] sm:$0xf0]  ;;  %10460 = vmatmul.bf16.vlgmr.msra.gmra.mxu0 %v19321_v23 }
 0x8cb   :  { %v14215_v53 = vld [vmem:[%s25576_s7 + $0xfd0] sm:$0xf]  ;;  %v13960_v11 = vor.u32 %v16827_v59, %v13959_v20  ;;  %10478 = vmatpush.bf16.msra.mxu2 %v13704_v12  ;;  %v4392_v20 = vperm.slane %v17483_v55, 3 }
 0x8cc   :  { %v16891_v22 = vld [vmem:[%s25576_s7 + $0xfec] sm:$0xf0] }
 0x8cd   :  { %v13415_v7 = vld [vmem:[%s25576_s7 + $0x990] sm:$0xf]  ;;  %v14216_v56 = vor.u32 %v16891_v22, %v14215_v53  ;;  %10491 = vmatpush.bf16.msra.mxu3 %v13960_v11 }
 0x8ce   :  { %v16691_v17 = vld [vmem:[%s25576_s7 + $0x9ac] sm:$0xf0] }
 0x8cf   :  { %v13671_v28 = vld [vmem:[%s25576_s7 + $0xb90] sm:$0xf]  ;;  %v13416_v54 = vor.u32 %v16691_v17, %v13415_v7  ;;  %10504 = vmatpush.bf16.msrb.mxu0 %v14216_v56 }
 0x8d0   :  { %v16755_v13 = vld [vmem:[%s25576_s7 + $0xbac] sm:$0xf0] }
 0x8d1   :  { %v13927_v48 = vld [vmem:[%s25576_s7 + $0xd90] sm:$0xf]  ;;  %v13672_v3 = vor.u32 %v16755_v13, %v13671_v28  ;;  %10466 = vmatpush.bf16.msra.mxu1 %v13416_v54 }
 0x8d2   :  { %v16819_v0 = vld [vmem:[%s25576_s7 + $0xdac] sm:$0xf0] }
 0x8d3   :  { %v14183_v24 = vld [vmem:[%s25576_s7 + $0xf90] sm:$0xf]  ;;  %v13928_v43 = vor.u32 %v16819_v0, %v13927_v48  ;;  %10479 = vmatpush.bf16.msra.mxu2 %v13672_v3  ;;  %v10215_v48 = vadd.f32 %v10214_v9, %v4392_v20 }
 0x8d4   :  { %v16883_v25 = vld [vmem:[%s25576_s7 + $0xfac] sm:$0xf0] }
 0x8d5   :  { %v13383_v41 = vld [vmem:[%s25576_s7 + $0x950] sm:$0xf]  ;;  %v14184_v39 = vor.u32 %v16883_v25, %v14183_v24  ;;  %10492 = vmatpush.bf16.msra.mxu3 %v13928_v43 }
 0x8d6   :  { %v16683_v46 = vld [vmem:[%s25576_s7 + $0x96c] sm:$0xf0] }
 0x8d7   :  { %v13639_v15 = vld [vmem:[%s25576_s7 + $0xb50] sm:$0xf]  ;;  %v13384_v37 = vor.u32 %v16683_v46, %v13383_v41  ;;  %10505 = vmatpush.bf16.msrb.mxu0 %v14184_v39  ;;  %v10227_v41 = vpop.f32.mrf.mxu2  ;;  %v10240_v46 = vpop.f32.mrf.mxu3 }
 0x8d8   :  { %v16747_v4 = vld [vmem:[%s25576_s7 + $0xb6c] sm:$0xf0] }
 0x8d9   :  { %v13895_v29 = vld [vmem:[%s25576_s7 + $0xd50] sm:$0xf]  ;;  %v13640_v58 = vor.u32 %v16747_v4, %v13639_v15  ;;  %10467 = vmatpush.bf16.msra.mxu1 %v13384_v37 }
 0x8da   :  { %v16811_v18 = vld [vmem:[%s25576_s7 + $0xd6c] sm:$0xf0] }
 0x8db   :  { %v14151_v30 = vld [vmem:[%s25576_s7 + $0xf50] sm:$0xf]  ;;  %v13896_v21 = vor.u32 %v16811_v18, %v13895_v29  ;;  %10480 = vmatpush.bf16.msra.mxu2 %v13640_v58  ;;  %v10228_v29 = vadd.f32 %v10227_v41, %v10215_v48  ;;  %v10216_v18 = vpop.f32.mrf.mxu1 }
 0x8dc   :  { %v16875_v1 = vld [vmem:[%s25576_s7 + $0xf6c] sm:$0xf0] }
 0x8dd   :  { %v13351_v5 = vld [vmem:[%s25576_s7 + $0x910] sm:$0xf]  ;;  %v14152_v45 = vor.u32 %v16875_v1, %v14151_v30  ;;  %10493 = vmatpush.bf16.msra.mxu3 %v13896_v21  ;;  %v10241_v58 = vadd.f32 %v10240_v46, %v10228_v29  ;;  %v10255_v21 = vpop.f32.mrf.mxu0 }
 0x8de   :  { %v16675_v34 = vld [vmem:[%s25576_s7 + $0x92c] sm:$0xf0] }
 0x8df   :  { %v13607_v14 = vld [vmem:[%s25576_s7 + $0xb10] sm:$0xf]  ;;  %v13352_v59 = vor.u32 %v16675_v34, %v13351_v5  ;;  %10506 = vmatpush.bf16.msrb.mxu0 %v14152_v45  ;;  %v22485_v20 = vadd.f32 %v10253_v26, %v10241_v58 }
 0x8e0   :  { %v16739_v61 = vld [vmem:[%s25576_s7 + $0xb2c] sm:$0xf0] }
 0x8e1   :  { %v13863_v40 = vld [vmem:[%s25576_s7 + $0xd10] sm:$0xf]  ;;  %v13608_v60 = vor.u32 %v16739_v61, %v13607_v14  ;;  %10468 = vmatpush.bf16.msra.mxu1 %v13352_v59 }
 0x8e2   :  { %v16803_v36 = vld [vmem:[%s25576_s7 + $0xd2c] sm:$0xf0] }
 0x8e3   :  { %v14119_v42 = vld [vmem:[%s25576_s7 + $0xf10] sm:$0xf]  ;;  %v13864_v53 = vor.u32 %v16803_v36, %v13863_v40  ;;  %10481 = vmatpush.bf16.msra.mxu2 %v13608_v60 }
 0x8e4   :  { %v16867_v16 = vld [vmem:[%s25576_s7 + $0xf2c] sm:$0xf0] }
 0x8e5   :  { %v13319_v22 = vld [vmem:[%s25576_s7 + $0x8d0] sm:$0xf]  ;;  %v14120_v12 = vor.u32 %v16867_v16, %v14119_v42  ;;  %10494 = vmatpush.bf16.msra.mxu3 %v13864_v53 }
 0x8e6   :  { %v16667_v35 = vld [vmem:[%s25576_s7 + $0x8ec] sm:$0xf0] }
 0x8e7   :  { %v13575_v49 = vld [vmem:[%s25576_s7 + $0xad0] sm:$0xf]  ;;  %v13320_v13 = vor.u32 %v16667_v35, %v13319_v22  ;;  %10507 = vmatpush.bf16.msrb.mxu0 %v14120_v12 }
 0x8e8   :  { %v16731_v11 = vld [vmem:[%s25576_s7 + $0xaec] sm:$0xf0] }
 0x8e9   :  { %v13831_v7 = vld [vmem:[%s25576_s7 + $0xcd0] sm:$0xf]  ;;  %v13576_v0 = vor.u32 %v16731_v11, %v13575_v49  ;;  %10469 = vmatpush.bf16.msra.mxu1 %v13320_v13 }
 0x8ea   :  { %v16795_v17 = vld [vmem:[%s25576_s7 + $0xcec] sm:$0xf0] }
 0x8eb   :  { %v14087_v28 = vld [vmem:[%s25576_s7 + $0xed0] sm:$0xf]  ;;  %v13832_v24 = vor.u32 %v16795_v17, %v13831_v7  ;;  %10482 = vmatpush.bf16.msra.mxu2 %v13576_v0  ;;  %v10229_v7 = vpop.f32.mrf.mxu2  ;;  %v10242_v17 = vpop.f32.mrf.mxu3 }
 0x8ec   :  { %v16859_v56 = vld [vmem:[%s25576_s7 + $0xeec] sm:$0xf0] }
 0x8ed   :  { %v13287_v25 = vld [vmem:[%s25576_s7 + $0x890] sm:$0xf]  ;;  %v14088_v43 = vor.u32 %v16859_v56, %v14087_v28  ;;  %10495 = vmatpush.bf16.msra.mxu3 %v13832_v24 }
 0x8ee   :  { %v16659_v54 = vld [vmem:[%s25576_s7 + $0x8ac] sm:$0xf0] }
 0x8ef   :  { %v13543_v3 = vld [vmem:[%s25576_s7 + $0xa90] sm:$0xf]  ;;  %v13288_v37 = vor.u32 %v16659_v54, %v13287_v25  ;;  %10508 = vmatpush.bf16.msrb.mxu0 %v14088_v43 }
 0x8f0   :  { %v16723_v15 = vld [vmem:[%s25576_s7 + $0xaac] sm:$0xf0] }
 0x8f1   :  { %v13799_v39 = vld [vmem:[%s25576_s7 + $0xc90] sm:$0xf]  ;;  %v13544_v5 = vor.u32 %v16723_v15, %v13543_v3  ;;  %10470 = vmatpush.bf16.msra.mxu1 %v13288_v37 }
 0x8f2   :  { %v16787_v4 = vld [vmem:[%s25576_s7 + $0xcac] sm:$0xf0] }
 0x8f3   :  { %v14055_v30 = vld [vmem:[%s25576_s7 + $0xe90] sm:$0xf]  ;;  %v13800_v34 = vor.u32 %v16787_v4, %v13799_v39  ;;  %10483 = vmatpush.bf16.msra.mxu2 %v13544_v5 }
 0x8f4   :  { %v16851_v1 = vld [vmem:[%s25576_s7 + $0xeac] sm:$0xf0] }
 0x8f5   :  { %v13255_v14 = vld [vmem:[%s25576_s7 + $0x850] sm:$0xf]  ;;  %v14056_v40 = vor.u32 %v16851_v1, %v14055_v30  ;;  %10496 = vmatpush.bf16.msra.mxu3 %v13800_v34 }
 0x8f6   :  { %v16651_v45 = vld [vmem:[%s25576_s7 + $0x86c] sm:$0xf0] }
 0x8f7   :  { %v13511_v61 = vld [vmem:[%s25576_s7 + $0xa50] sm:$0xf]  ;;  %v13256_v59 = vor.u32 %v16651_v45, %v13255_v14  ;;  %10509 = vmatpush.bf16.msrb.mxu0 %v14056_v40 }
 0x8f8   :  { %v16715_v36 = vld [vmem:[%s25576_s7 + $0xa6c] sm:$0xf0] }
 0x8f9   :  { %v13767_v9 = vld [vmem:[%s25576_s7 + $0xc50] sm:$0xf]  ;;  %v13512_v22 = vor.u32 %v16715_v36, %v13511_v61  ;;  %10471 = vmatpush.bf16.msra.mxu1 %v13256_v59 }
 0x8fa   :  { %v16779_v42 = vld [vmem:[%s25576_s7 + $0xc6c] sm:$0xf0] }
 0x8fb   :  { %v14023_v16 = vld [vmem:[%s25576_s7 + $0xe50] sm:$0xf]  ;;  %v13768_v35 = vor.u32 %v16779_v42, %v13767_v9  ;;  %10484 = vmatpush.bf16.msra.mxu2 %v13512_v22 }
 0x8fc   :  { %v16843_v55 = vld [vmem:[%s25576_s7 + $0xe6c] sm:$0xf0] }
 0x8fd   :  { %v13223_v60 = vld [vmem:[%s25576_s7 + $0x810] sm:$0xf]  ;;  %v14024_v11 = vor.u32 %v16843_v55, %v14023_v16  ;;  %10497 = vmatpush.bf16.msra.mxu3 %v13768_v35 }
 0x8fe   :  { %v16643_v53 = vld [vmem:[%s25576_s7 + $0x82c] sm:$0xf0] }
 0x8ff   :  { %v13479_v49 = vld [vmem:[%s25576_s7 + $0xa10] sm:$0xf]  ;;  %v13224_v25 = vor.u32 %v16643_v53, %v13223_v60  ;;  %10510 = vmatpush.bf16.msrb.mxu0 %v14024_v11 }
 0x900   :  { %v16707_v26 = vld [vmem:[%s25576_s7 + $0xa2c] sm:$0xf0] }
 0x901   :  { %v13735_v12 = vld [vmem:[%s25576_s7 + $0xc10] sm:$0xf]  ;;  %v13480_v41 = vor.u32 %v16707_v26, %v13479_v49  ;;  %10472 = vmatpush.bf16.msra.mxu1 %v13224_v25 }
 0x902   :  { %v16771_v28 = vld [vmem:[%s25576_s7 + $0xc2c] sm:$0xf0] }
 0x903   :  { %v13991_v56 = vld [vmem:[%s25576_s7 + $0xe10] sm:$0xf]  ;;  %v13736_v46 = vor.u32 %v16771_v28, %v13735_v12  ;;  %10485 = vmatpush.bf16.msra.mxu2 %v13480_v41  ;;  %v10305_v41 = vpop.f32.mrf.mxu0 }
 0x904   :  { %v16835_v13 = vld [vmem:[%s25576_s7 + $0xe2c] sm:$0xf0]  ;;  %10473 = vmatmul.bf16.vlgmr.msra.gmra.mxu1 %v19422_v51 }
 0x905   :  { %v14471_v48 = vld [vmem:[%s25576_s7 + $0x11d0] sm:$0xf]  ;;  %v13992_v4 = vor.u32 %v16835_v13, %v13991_v56  ;;  %10498 = vmatpush.bf16.msra.mxu3 %v13736_v46 }
 0x906   :  { %v16955_v0 = vld [vmem:[%s25576_s7 + $0x11ec] sm:$0xf0]  ;;  %10486 = vmatmul.bf16.vlgmr.msra.gmra.mxu2 %v19424_v38 }
 0x907   :  { %v14727_v24 = vld [vmem:[%s25576_s7 + $0x13d0] sm:$0xf]  ;;  %v14472_v29 = vor.u32 %v16955_v0, %v14471_v48  ;;  %10511 = vmatpush.bf16.msrb.mxu0 %v13992_v4 }
 0x908   :  { %v17019_v54 = vld [vmem:[%s25576_s7 + $0x13ec] sm:$0xf0]  ;;  %10499 = vmatmul.bf16.vlgmr.msra.gmra.mxu3 %v19447_v27 }
 0x909   :  { %v14983_v3 = vld [vmem:[%s25576_s7 + $0x15d0] sm:$0xf]  ;;  %v14728_v18 = vor.u32 %v17019_v54, %v14727_v24  ;;  %10517 = vmatpush.bf16.msrb.mxu1 %v14472_v29  ;;  %v10266_v24 = vpop.f32.mrf.mxu1 }
 0x90a   :  { %v17083_v43 = vld [vmem:[%s25576_s7 + $0x15ec] sm:$0xf0]  ;;  %10512 = vmatmul.bf16.vlgmr.msrb.gmra.mxu0 %v19449_v47 }
 0x90b   :  { %v15239_v15 = vld [vmem:[%s25576_s7 + $0x17d0] sm:$0xf]  ;;  %v14984_v30 = vor.u32 %v17083_v43, %v14983_v3  ;;  %10530 = vmatpush.bf16.msrb.mxu2 %v14728_v18  ;;  %v10267_v3 = vadd.f32 %v10266_v24, %v22485_v20 }
 0x90c   :  { %v17147_v39 = vld [vmem:[%s25576_s7 + $0x17ec] sm:$0xf0] }
 0x90d   :  { %v14439_v1 = vld [vmem:[%s25576_s7 + $0x1190] sm:$0xf]  ;;  %v15240_v21 = vor.u32 %v17147_v39, %v15239_v15  ;;  %10543 = vmatpush.bf16.msrb.mxu3 %v14984_v30 }
 0x90e   :  { %v16947_v37 = vld [vmem:[%s25576_s7 + $0x11ac] sm:$0xf0] }
 0x90f   :  { %v14695_v58 = vld [vmem:[%s25576_s7 + $0x1390] sm:$0xf]  ;;  %v14440_v40 = vor.u32 %v16947_v37, %v14439_v1  ;;  %10556 = vmatpush.bf16.msra.mxu0 %v15240_v21 }
 0x910   :  { %v17011_v5 = vld [vmem:[%s25576_s7 + $0x13ac] sm:$0xf0] }
 0x911   :  { %v14951_v34 = vld [vmem:[%s25576_s7 + $0x1590] sm:$0xf]  ;;  %v14696_v36 = vor.u32 %v17011_v5, %v14695_v58  ;;  %10518 = vmatpush.bf16.msrb.mxu1 %v14440_v40 }
 0x912   :  { %v17075_v14 = vld [vmem:[%s25576_s7 + $0x15ac] sm:$0xf0] }
 0x913   :  { %v15207_v45 = vld [vmem:[%s25576_s7 + $0x1790] sm:$0xf]  ;;  %v14952_v9 = vor.u32 %v17075_v14, %v14951_v34  ;;  %10531 = vmatpush.bf16.msrb.mxu2 %v14696_v36  ;;  %v10279_v36 = vpop.f32.mrf.mxu2 }
 0x914   :  { %v17139_v61 = vld [vmem:[%s25576_s7 + $0x17ac] sm:$0xf0] }
 0x915   :  { %v14407_v42 = vld [vmem:[%s25576_s7 + $0x1150] sm:$0xf]  ;;  %v15208_v59 = vor.u32 %v17139_v61, %v15207_v45  ;;  %10544 = vmatpush.bf16.msrb.mxu3 %v14952_v9  ;;  %v10292_v9 = vpop.f32.mrf.mxu3 }
 0x916   :  { %v16939_v16 = vld [vmem:[%s25576_s7 + $0x116c] sm:$0xf0] }
 0x917   :  { %v14663_v55 = vld [vmem:[%s25576_s7 + $0x1350] sm:$0xf]  ;;  %v14408_v26 = vor.u32 %v16939_v16, %v14407_v42  ;;  %10557 = vmatpush.bf16.msra.mxu0 %v15208_v59  ;;  %v10280_v59 = vadd.f32 %v10279_v36, %v10267_v3 }
 0x918   :  { %v17003_v60 = vld [vmem:[%s25576_s7 + $0x136c] sm:$0xf0] }
 0x919   :  { %v14919_v53 = vld [vmem:[%s25576_s7 + $0x1550] sm:$0xf]  ;;  %v14664_v12 = vor.u32 %v17003_v60, %v14663_v55  ;;  %10519 = vmatpush.bf16.msrb.mxu1 %v14408_v26  ;;  %v10268_v60 = vpop.f32.mrf.mxu1  ;;  %v10307_v26 = vpop.f32.mrf.mxu0 }
 0x91a   :  { %v17067_v22 = vld [vmem:[%s25576_s7 + $0x156c] sm:$0xf0] }
 0x91b   :  { %v15175_v35 = vld [vmem:[%s25576_s7 + $0x1750] sm:$0xf]  ;;  %v14920_v11 = vor.u32 %v17067_v22, %v14919_v53  ;;  %10532 = vmatpush.bf16.msrb.mxu2 %v14664_v12 }
 0x91c   :  { %v17131_v49 = vld [vmem:[%s25576_s7 + $0x176c] sm:$0xf0] }
 0x91d   :  { %v14375_v7 = vld [vmem:[%s25576_s7 + $0x1110] sm:$0xf]  ;;  %v15176_v56 = vor.u32 %v17131_v49, %v15175_v35  ;;  %10545 = vmatpush.bf16.msrb.mxu3 %v14920_v11  ;;  %v10293_v49 = vadd.f32 %v10292_v9, %v10280_v59 }
 0x91e   :  { %v16931_v17 = vld [vmem:[%s25576_s7 + $0x112c] sm:$0xf0] }
 0x91f   :  { %v14631_v28 = vld [vmem:[%s25576_s7 + $0x1310] sm:$0xf]  ;;  %v14376_v43 = vor.u32 %v16931_v17, %v14375_v7  ;;  %10558 = vmatpush.bf16.msra.mxu0 %v15176_v56 }
 0x920   :  { %v16995_v13 = vld [vmem:[%s25576_s7 + $0x132c] sm:$0xf0] }
 0x921   :  { %v14887_v48 = vld [vmem:[%s25576_s7 + $0x1510] sm:$0xf]  ;;  %v14632_v46 = vor.u32 %v16995_v13, %v14631_v28  ;;  %10520 = vmatpush.bf16.msrb.mxu1 %v14376_v43 }
 0x922   :  { %v17059_v0 = vld [vmem:[%s25576_s7 + $0x152c] sm:$0xf0] }
 0x923   :  { %v15143_v25 = vld [vmem:[%s25576_s7 + $0x1710] sm:$0xf]  ;;  %v14888_v15 = vor.u32 %v17059_v0, %v14887_v48  ;;  %10533 = vmatpush.bf16.msrb.mxu2 %v14632_v46 }
 0x924   :  { %v17123_v54 = vld [vmem:[%s25576_s7 + $0x172c] sm:$0xf0] }
 0x925   :  { %v14343_v39 = vld [vmem:[%s25576_s7 + $0x10d0] sm:$0xf]  ;;  %v15144_v20 = vor.u32 %v17123_v54, %v15143_v25  ;;  %10546 = vmatpush.bf16.msrb.mxu3 %v14888_v15  ;;  %v22684_v54 = vadd.f32 %v10305_v41, %v10293_v49 }
 0x926   :  { %v16923_v4 = vld [vmem:[%s25576_s7 + $0x10ec] sm:$0xf0] }
 0x927   :  { %v14599_v29 = vld [vmem:[%s25576_s7 + $0x12d0] sm:$0xf]  ;;  %v14344_v21 = vor.u32 %v16923_v4, %v14343_v39  ;;  %10559 = vmatpush.bf16.msra.mxu0 %v15144_v20 }
 0x928   :  { %v16987_v18 = vld [vmem:[%s25576_s7 + $0x12ec] sm:$0xf0] }
 0x929   :  { %v14855_v30 = vld [vmem:[%s25576_s7 + $0x14d0] sm:$0xf]  ;;  %v14600_v5 = vor.u32 %v16987_v18, %v14599_v29  ;;  %10521 = vmatpush.bf16.msrb.mxu1 %v14344_v21  ;;  %v10281_v18 = vpop.f32.mrf.mxu2 }
 0x92a   :  { %v17051_v1 = vld [vmem:[%s25576_s7 + $0x14ec] sm:$0xf0] }
 0x92b   :  { %v15111_v37 = vld [vmem:[%s25576_s7 + $0x16d0] sm:$0xf]  ;;  %v14856_v34 = vor.u32 %v17051_v1, %v14855_v30  ;;  %10534 = vmatpush.bf16.msrb.mxu2 %v14600_v5  ;;  %v10294_v30 = vpop.f32.mrf.mxu3 }
 0x92c   :  { %v17115_v58 = vld [vmem:[%s25576_s7 + $0x16ec] sm:$0xf0] }
 0x92d   :  { %v14311_v14 = vld [vmem:[%s25576_s7 + $0x1090] sm:$0xf]  ;;  %v15112_v40 = vor.u32 %v17115_v58, %v15111_v37  ;;  %10547 = vmatpush.bf16.msrb.mxu3 %v14856_v34 }
 0x92e   :  { %v16915_v45 = vld [vmem:[%s25576_s7 + $0x10ac] sm:$0xf0] }
 0x92f   :  { %v14567_v61 = vld [vmem:[%s25576_s7 + $0x1290] sm:$0xf]  ;;  %v14312_v35 = vor.u32 %v16915_v45, %v14311_v14  ;;  %10560 = vmatpush.bf16.msra.mxu0 %v15112_v40 }
 0x930   :  { %v16979_v42 = vld [vmem:[%s25576_s7 + $0x12ac] sm:$0xf0] }
 0x931   :  { %v14823_v16 = vld [vmem:[%s25576_s7 + $0x1490] sm:$0xf]  ;;  %v14568_v12 = vor.u32 %v16979_v42, %v14567_v61  ;;  %10522 = vmatpush.bf16.msrb.mxu1 %v14312_v35 }
 0x932   :  { %v17043_v55 = vld [vmem:[%s25576_s7 + $0x14ac] sm:$0xf0] }
 0x933   :  { %v15079_v53 = vld [vmem:[%s25576_s7 + $0x1690] sm:$0xf]  ;;  %v14824_v11 = vor.u32 %v17043_v55, %v14823_v16  ;;  %10535 = vmatpush.bf16.msrb.mxu2 %v14568_v12 }
 0x934   :  { %v17107_v22 = vld [vmem:[%s25576_s7 + $0x16ac] sm:$0xf0] }
 0x935   :  { %v14279_v7 = vld [vmem:[%s25576_s7 + $0x1050] sm:$0xf]  ;;  %v15080_v56 = vor.u32 %v17107_v22, %v15079_v53  ;;  %10548 = vmatpush.bf16.msrb.mxu3 %v14824_v11 }
 0x936   :  { %v16907_v17 = vld [vmem:[%s25576_s7 + $0x106c] sm:$0xf0] }
 0x937   :  { %v14535_v28 = vld [vmem:[%s25576_s7 + $0x1250] sm:$0xf]  ;;  %v14280_v3 = vor.u32 %v16907_v17, %v14279_v7  ;;  %10561 = vmatpush.bf16.msra.mxu0 %v15080_v56 }
 0x938   :  { %v16971_v13 = vld [vmem:[%s25576_s7 + $0x126c] sm:$0xf0] }
 0x939   :  { %v14791_v48 = vld [vmem:[%s25576_s7 + $0x1450] sm:$0xf]  ;;  %v14536_v15 = vor.u32 %v16971_v13, %v14535_v28  ;;  %10523 = vmatpush.bf16.msrb.mxu1 %v14280_v3 }
 0x93a   :  { %v17035_v0 = vld [vmem:[%s25576_s7 + $0x146c] sm:$0xf0] }
 0x93b   :  { %v15047_v24 = vld [vmem:[%s25576_s7 + $0x1650] sm:$0xf]  ;;  %v14792_v39 = vor.u32 %v17035_v0, %v14791_v48  ;;  %10536 = vmatpush.bf16.msrb.mxu2 %v14536_v15 }
 0x93c   :  { %v17099_v25 = vld [vmem:[%s25576_s7 + $0x166c] sm:$0xf0] }
 0x93d   :  { %v14247_v43 = vld [vmem:[%s25576_s7 + $0x1010] sm:$0xf]  ;;  %v15048_v20 = vor.u32 %v17099_v25, %v15047_v24  ;;  %10549 = vmatpush.bf16.msrb.mxu3 %v14792_v39 }
 0x93e   :  { %v16899_v46 = vld [vmem:[%s25576_s7 + $0x102c] sm:$0xf0] }
 0x93f   :  { %v14503_v4 = vld [vmem:[%s25576_s7 + $0x1210] sm:$0xf]  ;;  %v14248_v14 = vor.u32 %v16899_v46, %v14247_v43  ;;  %10562 = vmatpush.bf16.msra.mxu0 %v15048_v20 }
 0x940   :  { %v16963_v41 = vld [vmem:[%s25576_s7 + $0x122c] sm:$0xf0] }
 0x941   :  { %v14759_v29 = vld [vmem:[%s25576_s7 + $0x1410] sm:$0xf]  ;;  %v14504_v36 = vor.u32 %v16963_v41, %v14503_v4  ;;  %10524 = vmatpush.bf16.msrb.mxu1 %v14248_v14 }
 0x942   :  { %v17027_v1 = vld [vmem:[%s25576_s7 + $0x142c] sm:$0xf0] }
 0x943   :  { %v15015_v37 = vld [vmem:[%s25576_s7 + $0x1610] sm:$0xf]  ;;  %v14760_v9 = vor.u32 %v17027_v1, %v14759_v29  ;;  %10537 = vmatpush.bf16.msrb.mxu2 %v14504_v36  ;;  %v10357_v36 = vpop.f32.mrf.mxu0 }
 0x944   :  { %v17091_v58 = vld [vmem:[%s25576_s7 + $0x162c] sm:$0xf0]  ;;  %10525 = vmatmul.bf16.vlgmr.msrb.gmra.mxu1 %v19553_v8 }
 0x945   :  { %v15495_v21 = vld [vmem:[%s25576_s7 + $0x19d0] sm:$0xf]  ;;  %v15016_v55 = vor.u32 %v17091_v58, %v15015_v37  ;;  %10550 = vmatpush.bf16.msrb.mxu3 %v14760_v9 }
 0x946   :  { %v17211_v5 = vld [vmem:[%s25576_s7 + $0x19ec] sm:$0xf0]  ;;  %10538 = vmatmul.bf16.vlgmr.msrb.gmra.mxu2 %v19555_v33 }
 0x947   :  { %v15751_v34 = vld [vmem:[%s25576_s7 + $0x1bd0] sm:$0xf]  ;;  %v15496_v59 = vor.u32 %v17211_v5, %v15495_v21  ;;  %10563 = vmatpush.bf16.msra.mxu0 %v15016_v55 }
 0x948   :  { %v17275_v45 = vld [vmem:[%s25576_s7 + $0x1bec] sm:$0xf0]  ;;  %10551 = vmatmul.bf16.vlgmr.msrb.gmra.mxu3 %v19564_v31 }
 0x949   :  { %v16007_v61 = vld [vmem:[%s25576_s7 + $0x1dd0] sm:$0xf]  ;;  %v15752_v60 = vor.u32 %v17275_v45, %v15751_v34  ;;  %10569 = vmatpush.bf16.msra.mxu1 %v15496_v59  ;;  %v10318_v34 = vpop.f32.mrf.mxu1 }
 0x94a   :  { %v17339_v40 = vld [vmem:[%s25576_s7 + $0x1dec] sm:$0xf0]  ;;  %10564 = vmatmul.bf16.vlgmr.msra.gmra.mxu0 %v19566_v2 }
 0x94b   :  { %v16263_v42 = vld [vmem:[%s25576_s7 + $0x1fd0] sm:$0xf]  ;;  %v16008_v53 = vor.u32 %v17339_v40, %v16007_v61  ;;  %10582 = vmatpush.bf16.msra.mxu2 %v15752_v60  ;;  %v10319_v61 = vadd.f32 %v10318_v34, %v22684_v54 }
 0x94c   :  { %v17403_v16 = vld [vmem:[%s25576_s7 + $0x1fec] sm:$0xf0] }
 0x94d   :  { %v15463_v22 = vld [vmem:[%s25576_s7 + $0x1990] sm:$0xf]  ;;  %v16264_v26 = vor.u32 %v17403_v16, %v16263_v42  ;;  %10595 = vmatpush.bf16.msra.mxu3 %v16008_v53 }
 0x94e   :  { %v17203_v35 = vld [vmem:[%s25576_s7 + $0x19ac] sm:$0xf0] }
 0x94f   :  { %v15719_v49 = vld [vmem:[%s25576_s7 + $0x1b90] sm:$0xf]  ;;  %v15464_v56 = vor.u32 %v17203_v35, %v15463_v22  ;;  %10608 = vmatpush.bf16.msrb.mxu0 %v16264_v26 }
 0x950   :  { %v17267_v12 = vld [vmem:[%s25576_s7 + $0x1bac] sm:$0xf0] }
 0x951   :  { %v15975_v11 = vld [vmem:[%s25576_s7 + $0x1d90] sm:$0xf]  ;;  %v15720_v13 = vor.u32 %v17267_v12, %v15719_v49  ;;  %10570 = vmatpush.bf16.msra.mxu1 %v15464_v56 }
 0x952   :  { %v17331_v7 = vld [vmem:[%s25576_s7 + $0x1dac] sm:$0xf0] }
 0x953   :  { %v16231_v17 = vld [vmem:[%s25576_s7 + $0x1f90] sm:$0xf]  ;;  %v15976_v48 = vor.u32 %v17331_v7, %v15975_v11  ;;  %10583 = vmatpush.bf16.msra.mxu2 %v15720_v13  ;;  %v10331_v13 = vpop.f32.mrf.mxu2 }
 0x954   :  { %v17395_v28 = vld [vmem:[%s25576_s7 + $0x1fac] sm:$0xf0] }
 0x955   :  { %v15431_v0 = vld [vmem:[%s25576_s7 + $0x1950] sm:$0xf]  ;;  %v16232_v3 = vor.u32 %v17395_v28, %v16231_v17  ;;  %10596 = vmatpush.bf16.msra.mxu3 %v15976_v48  ;;  %v10344_v48 = vpop.f32.mrf.mxu3 }
 0x956   :  { %v17195_v24 = vld [vmem:[%s25576_s7 + $0x196c] sm:$0xf0] }
 0x957   :  { %v15687_v25 = vld [vmem:[%s25576_s7 + $0x1b50] sm:$0xf]  ;;  %v15432_v41 = vor.u32 %v17195_v24, %v15431_v0  ;;  %10609 = vmatpush.bf16.msrb.mxu0 %v16232_v3  ;;  %v10332_v3 = vadd.f32 %v10331_v13, %v10319_v61 }
 0x958   :  { %v17259_v43 = vld [vmem:[%s25576_s7 + $0x1b6c] sm:$0xf0] }
 0x959   :  { %v15943_v46 = vld [vmem:[%s25576_s7 + $0x1d50] sm:$0xf]  ;;  %v15688_v29 = vor.u32 %v17259_v43, %v15687_v25  ;;  %10571 = vmatpush.bf16.msra.mxu1 %v15432_v41  ;;  %v10320_v43 = vpop.f32.mrf.mxu1  ;;  %v10359_v41 = vpop.f32.mrf.mxu0 }
 0x95a   :  { %v17323_v15 = vld [vmem:[%s25576_s7 + $0x1d6c] sm:$0xf0] }
 0x95b   :  { %v16199_v39 = vld [vmem:[%s25576_s7 + $0x1f50] sm:$0xf]  ;;  %v15944_v20 = vor.u32 %v17323_v15, %v15943_v46  ;;  %10584 = vmatpush.bf16.msra.mxu2 %v15688_v29 }
 0x95c   :  { %v17387_v4 = vld [vmem:[%s25576_s7 + $0x1f6c] sm:$0xf0] }
 0x95d   :  { %v15399_v18 = vld [vmem:[%s25576_s7 + $0x1910] sm:$0xf]  ;;  %v16200_v37 = vor.u32 %v17387_v4, %v16199_v39  ;;  %10597 = vmatpush.bf16.msra.mxu3 %v15944_v20  ;;  %v10345_v4 = vadd.f32 %v10344_v48, %v10332_v3 }
 0x95e   :  { %v17187_v30 = vld [vmem:[%s25576_s7 + $0x192c] sm:$0xf0] }
 0x95f   :  { %v15655_v1 = vld [vmem:[%s25576_s7 + $0x1b10] sm:$0xf]  ;;  %v15400_v40 = vor.u32 %v17187_v30, %v15399_v18  ;;  %10610 = vmatpush.bf16.msrb.mxu0 %v16200_v37 }
 0x960   :  { %v17251_v58 = vld [vmem:[%s25576_s7 + $0x1b2c] sm:$0xf0] }
 0x961   :  { %v15911_v21 = vld [vmem:[%s25576_s7 + $0x1d10] sm:$0xf]  ;;  %v15656_v9 = vor.u32 %v17251_v58, %v15655_v1  ;;  %10572 = vmatpush.bf16.msra.mxu1 %v15400_v40 }
 0x962   :  { %v17315_v5 = vld [vmem:[%s25576_s7 + $0x1d2c] sm:$0xf0] }
 0x963   :  { %v16167_v14 = vld [vmem:[%s25576_s7 + $0x1f10] sm:$0xf]  ;;  %v15912_v42 = vor.u32 %v17315_v5, %v15911_v21  ;;  %10585 = vmatpush.bf16.msra.mxu2 %v15656_v9 }
 0x964   :  { %v17379_v45 = vld [vmem:[%s25576_s7 + $0x1f2c] sm:$0xf0] }
 0x965   :  { %v15367_v16 = vld [vmem:[%s25576_s7 + $0x18d0] sm:$0xf]  ;;  %v16168_v54 = vor.u32 %v17379_v45, %v16167_v14  ;;  %10598 = vmatpush.bf16.msra.mxu3 %v15912_v42  ;;  %v22883_v45 = vadd.f32 %v10357_v36, %v10345_v4  ;;  %v16495_v4 = vld [vmem:[%s25576_s7 + $0x394] sm:$0xf] }
 0x966   :  { %v17179_v55 = vld [vmem:[%s25576_s7 + $0x18ec] sm:$0xf0] }
 0x967   :  { %v15623_v59 = vld [vmem:[%s25576_s7 + $0x1ad0] sm:$0xf]  ;;  %v15368_v26 = vor.u32 %v17179_v55, %v15367_v16  ;;  %10611 = vmatpush.bf16.msrb.mxu0 %v16168_v54 }
 0x968   :  { %v17243_v60 = vld [vmem:[%s25576_s7 + $0x1aec] sm:$0xf0] }
 0x969   :  { %v15879_v53 = vld [vmem:[%s25576_s7 + $0x1cd0] sm:$0xf]  ;;  %v15624_v12 = vor.u32 %v17243_v60, %v15623_v59  ;;  %10573 = vmatpush.bf16.msra.mxu1 %v15368_v26  ;;  %v10333_v60 = vpop.f32.mrf.mxu2  ;;  %v16439_v26 = vld [vmem:[%s25576_s7 + $0x1d4] sm:$0xf] }
 0x96a   :  { %v17307_v22 = vld [vmem:[%s25576_s7 + $0x1cec] sm:$0xf0]  ;;  %v16415_v60 = vld [vmem:[%s25576_s7 + $0x114] sm:$0xf] }
 0x96b   :  { %v16135_v35 = vld [vmem:[%s25576_s7 + $0x1ed0] sm:$0xf]  ;;  %v15880_v11 = vor.u32 %v17307_v22, %v15879_v53  ;;  %10586 = vmatpush.bf16.msra.mxu2 %v15624_v12  ;;  %v10346_v53 = vpop.f32.mrf.mxu3  ;;  %v12425_v12 = vld [vmem:[%s25576_s7 + $0x1f0] sm:$0xf0] }
 0x96c   :  { %v17371_v49 = vld [vmem:[%s25576_s7 + $0x1eec] sm:$0xf0]  ;;  %v12428_v3 = vor.u32 %v16439_v26, %v12425_v12  ;;  %v12329_v53 = vld [vmem:[%s25576_s7 + $0x130] sm:$0xf0] }
 0x96d   :  { %v15335_v7 = vld [vmem:[%s25576_s7 + $0x1890] sm:$0xf]  ;;  %v16136_v56 = vor.u32 %v17371_v49, %v16135_v35  ;;  %10599 = vmatpush.bf16.msra.mxu3 %v15880_v11  ;;  %v16503_v11 = vld [vmem:[%s25576_s7 + $0x3d4] sm:$0xf] }
 0x96e   :  { %v17171_v17 = vld [vmem:[%s25576_s7 + $0x18ac] sm:$0xf0]  ;;  %v16543_v26 = vld [vmem:[%s25576_s7 + $0x514] sm:$0xf] }
 0x96f   :  { %v15591_v28 = vld [vmem:[%s25576_s7 + $0x1a90] sm:$0xf]  ;;  %v15336_v39 = vor.u32 %v17171_v17, %v15335_v7  ;;  %10612 = vmatpush.bf16.msrb.mxu0 %v16136_v56  ;;  %v12681_v17 = vld [vmem:[%s25576_s7 + $0x3f0] sm:$0xf0] }
 0x970   :  { %v17235_v0 = vld [vmem:[%s25576_s7 + $0x1aac] sm:$0xf0]  ;;  %v12937_v56 = vld [vmem:[%s25576_s7 + $0x5f0] sm:$0xf0]  ;;  %v12684_v43 = vor.u32 %v16503_v11, %v12681_v17  ;;  %v10370_v11 = vpop.f32.mrf.mxu1 }
 0x971   :  { %v15847_v24 = vld [vmem:[%s25576_s7 + $0x1c90] sm:$0xf]  ;;  %v15592_v29 = vor.u32 %v17235_v0, %v15591_v28  ;;  %10574 = vmatpush.bf16.msra.mxu1 %v15336_v39  ;;  %v16567_v28 = vld [vmem:[%s25576_s7 + $0x5d4] sm:$0xf] }
 0x972   :  { %v17299_v25 = vld [vmem:[%s25576_s7 + $0x1cac] sm:$0xf0]  ;;  %v16631_v0 = vld [vmem:[%s25576_s7 + $0x7d4] sm:$0xf] }
 0x973   :  { %v16103_v46 = vld [vmem:[%s25576_s7 + $0x1e90] sm:$0xf]  ;;  %v15848_v20 = vor.u32 %v17299_v25, %v15847_v24  ;;  %10587 = vmatpush.bf16.msra.mxu2 %v15592_v29  ;;  %v13193_v24 = vld [vmem:[%s25576_s7 + $0x7f0] sm:$0xf0] }
 0x974   :  { %v17363_v15 = vld [vmem:[%s25576_s7 + $0x1eac] sm:$0xf0]  ;;  %v12393_v39 = vld [vmem:[%s25576_s7 + $0x1b0] sm:$0xf0]  ;;  %v13196_v41 = vor.u32 %v16631_v0, %v13193_v24 }
 0x975   :  { %v15303_v18 = vld [vmem:[%s25576_s7 + $0x1850] sm:$0xf]  ;;  %v16104_v37 = vor.u32 %v17363_v15, %v16103_v46  ;;  %10600 = vmatpush.bf16.msra.mxu3 %v15848_v20  ;;  %v12940_v46 = vor.u32 %v16567_v28, %v12937_v56  ;;  %v16431_v15 = vld [vmem:[%s25576_s7 + $0x194] sm:$0xf]  ;;  %v10371_v28 = vadd.f32 %v10370_v11, %v22883_v45  ;;  %v12332_v56 = vor.u32 %v16415_v60, %v12329_v53 }
 0x976   :  { %v17163_v30 = vld [vmem:[%s25576_s7 + $0x186c] sm:$0xf0]  ;;  %v12649_v29 = vld [vmem:[%s25576_s7 + $0x3b0] sm:$0xf0] }
 0x977   :  { %v15559_v1 = vld [vmem:[%s25576_s7 + $0x1a50] sm:$0xf]  ;;  %v15304_v61 = vor.u32 %v17163_v30, %v15303_v18  ;;  %10613 = vmatpush.bf16.msrb.mxu0 %v16104_v37  ;;  %v16559_v20 = vld [vmem:[%s25576_s7 + $0x594] sm:$0xf]  ;;  %v12396_v37 = vor.u32 %v16431_v15, %v12393_v39 }
 0x978   :  { %v17227_v58 = vld [vmem:[%s25576_s7 + $0x1a6c] sm:$0xf0]  ;;  %v12905_v18 = vld [vmem:[%s25576_s7 + $0x5b0] sm:$0xf0] }
 0x979   :  { %v15815_v21 = vld [vmem:[%s25576_s7 + $0x1c50] sm:$0xf]  ;;  %v15560_v42 = vor.u32 %v17227_v58, %v15559_v1  ;;  %10575 = vmatpush.bf16.msra.mxu1 %v15304_v61  ;;  %v16623_v30 = vld [vmem:[%s25576_s7 + $0x794] sm:$0xf]  ;;  %v12652_v58 = vor.u32 %v16495_v4, %v12649_v29 }
 0x97a   :  { %v17291_v5 = vld [vmem:[%s25576_s7 + $0x1c6c] sm:$0xf0]  ;;  %v13161_v1 = vld [vmem:[%s25576_s7 + $0x7b0] sm:$0xf0] }
 0x97b   :  { %v16071_v34 = vld [vmem:[%s25576_s7 + $0x1e50] sm:$0xf]  ;;  %v15816_v16 = vor.u32 %v17291_v5, %v15815_v21  ;;  %10588 = vmatpush.bf16.msra.mxu2 %v15560_v42  ;;  %v12908_v21 = vor.u32 %v16559_v20, %v12905_v18  ;;  %v16423_v5 = vld [vmem:[%s25576_s7 + $0x154] sm:$0xf]  ;;  %v13164_v61 = vor.u32 %v16623_v30, %v13161_v1 }
 0x97c   :  { %v17355_v14 = vld [vmem:[%s25576_s7 + $0x1e6c] sm:$0xf0]  ;;  %v12873_v42 = vld [vmem:[%s25576_s7 + $0x570] sm:$0xf0] }
 0x97d   :  { %v15271_v40 = vld [vmem:[%s25576_s7 + $0x1810] sm:$0xf]  ;;  %v16072_v54 = vor.u32 %v17355_v14, %v16071_v34  ;;  %10601 = vmatpush.bf16.msra.mxu3 %v15816_v16  ;;  %v12361_v34 = vld [vmem:[%s25576_s7 + $0x170] sm:$0xf0] }
 0x97e   :  { %v17155_v9 = vld [vmem:[%s25576_s7 + $0x182c] sm:$0xf0]  ;;  %v16487_v14 = vld [vmem:[%s25576_s7 + $0x354] sm:$0xf] }
 0x97f   :  { %v15527_v55 = vld [vmem:[%s25576_s7 + $0x1a10] sm:$0xf]  ;;  %v15272_v7 = vor.u32 %v17155_v9, %v15271_v40  ;;  %10614 = vmatpush.bf16.msrb.mxu0 %v16072_v54  ;;  %v12617_v40 = vld [vmem:[%s25576_s7 + $0x370] sm:$0xf0] }
 0x980   :  { %v17219_v36 = vld [vmem:[%s25576_s7 + $0x1a2c] sm:$0xf0]  ;;  %v16551_v9 = vld [vmem:[%s25576_s7 + $0x554] sm:$0xf] }
 0x981   :  { %v15783_v59 = vld [vmem:[%s25576_s7 + $0x1c10] sm:$0xf]  ;;  %v15528_v13 = vor.u32 %v17219_v36, %v15527_v55  ;;  %10576 = vmatpush.bf16.msra.mxu1 %v15272_v7  ;;  %v16615_v16 = vld [vmem:[%s25576_s7 + $0x754] sm:$0xf]  ;;  %v12364_v36 = vor.u32 %v16423_v5, %v12361_v34  ;;  %v12876_v54 = vor.u32 %v16551_v9, %v12873_v42 }
 0x982   :  { %v17283_v22 = vld [vmem:[%s25576_s7 + $0x1c2c] sm:$0xf0]  ;;  %v13129_v55 = vld [vmem:[%s25576_s7 + $0x770] sm:$0xf0] }
 0x983   :  { %v16039_v35 = vld [vmem:[%s25576_s7 + $0x1e10] sm:$0xf]  ;;  %v15784_v48 = vor.u32 %v17283_v22, %v15783_v59  ;;  %10589 = vmatpush.bf16.msra.mxu2 %v15528_v13  ;;  %v12620_v59 = vor.u32 %v16487_v14, %v12617_v40  ;;  %v16479_v22 = vld [vmem:[%s25576_s7 + $0x314] sm:$0xf]  ;;  %v10409_v13 = vpop.f32.mrf.mxu0  ;;  %v10372_v40 = vpop.f32.mrf.mxu1 }
 0x984   :  { %v17347_v49 = vld [vmem:[%s25576_s7 + $0x1e2c] sm:$0xf0]  ;;  %10577 = vmatmul.bf16.vlgmr.msra.gmra.mxu1 %v19767_v52  ;;  %v12841_v12 = vld [vmem:[%s25576_s7 + $0x530] sm:$0xf0] }
 0x985   :  { %v16040_v25 = vor.u32 %v17347_v49, %v16039_v35  ;;  %10602 = vmatpush.bf16.msra.mxu3 %v15784_v48  ;;  %10621 = vmatpush.bf16.msrb.mxu1 %v12428_v3  ;;  %v13132_v35 = vor.u32 %v16615_v16, %v13129_v55  ;;  %v12585_v49 = vld [vmem:[%s25576_s7 + $0x330] sm:$0xf0]  ;;  %v12844_v0 = vor.u32 %v16543_v26, %v12841_v12 }
 0x986   :  { %10590 = vmatmul.bf16.vlgmr.msra.gmra.mxu2 %v19769_v63  ;;  %v16607_v7 = vld [vmem:[%s25576_s7 + $0x714] sm:$0xf]  ;;  %v12588_v48 = vor.u32 %v16479_v22, %v12585_v49 }
 0x987   :  { %10615 = vmatpush.bf16.msrb.mxu0 %v16040_v25  ;;  %10634 = vmatpush.bf16.msrb.mxu2 %v12684_v43  ;;  %v13097_v17 = vld [vmem:[%s25576_s7 + $0x730] sm:$0xf0] }
 0x988   :  { %10603 = vmatmul.bf16.vlgmr.msra.gmra.mxu3 %v19765_v44  ;;  %v16407_v24 = vld [vmem:[%s25576_s7 + $0xd4] sm:$0xf]  ;;  %v13100_v45 = vor.u32 %v16607_v7, %v13097_v17 }
 0x989   :  { %10647 = vmatpush.bf16.msrb.mxu3 %v12940_v46  ;;  %10622 = vmatpush.bf16.msrb.mxu1 %v12396_v37  ;;  %v12297_v25 = vld [vmem:[%s25576_s7 + $0xf0] sm:$0xf0] }
 0x98a   :  { %10616 = vmatmul.bf16.vlgmr.msrb.gmra.mxu0 %v19777_v19  ;;  %v16471_v3 = vld [vmem:[%s25576_s7 + $0x2d4] sm:$0xf] }
 0x98b   :  { %10660 = vmatpush.bf16.msra.mxu0 %v13196_v41  ;;  %10635 = vmatpush.bf16.msrb.mxu2 %v12652_v58  ;;  %v12553_v43 = vld [vmem:[%s25576_s7 + $0x2f0] sm:$0xf0]  ;;  %v12300_v41 = vor.u32 %v16407_v24, %v12297_v25  ;;  %v10383_v58 = vpop.f32.mrf.mxu2 }
 0x98c   :  { %v16535_v46 = vld [vmem:[%s25576_s7 + $0x4d4] sm:$0xf]  ;;  %v12556_v29 = vor.u32 %v16471_v3, %v12553_v43 }
 0x98d   :  { %10648 = vmatpush.bf16.msrb.mxu3 %v12908_v21  ;;  %10623 = vmatpush.bf16.msrb.mxu1 %v12364_v36  ;;  %v12809_v15 = vld [vmem:[%s25576_s7 + $0x4f0] sm:$0xf0]  ;;  %v10396_v21 = vpop.f32.mrf.mxu3  ;;  %v10411_v36 = vpop.f32.mrf.mxu0 }
 0x98e   :  { %v16599_v39 = vld [vmem:[%s25576_s7 + $0x6d4] sm:$0xf]  ;;  %v12812_v20 = vor.u32 %v16535_v46, %v12809_v15 }
 0x98f   :  { %10661 = vmatpush.bf16.msra.mxu0 %v13164_v61  ;;  %10636 = vmatpush.bf16.msrb.mxu2 %v12620_v59  ;;  %v13065_v4 = vld [vmem:[%s25576_s7 + $0x6f0] sm:$0xf0]  ;;  %v10384_v61 = vadd.f32 %v10383_v58, %v10371_v28 }
 0x990   :  { %v16399_v18 = vld [vmem:[%s25576_s7 + $0x94] sm:$0xf]  ;;  %v13068_v37 = vor.u32 %v16599_v39, %v13065_v4 }
 0x991   :  { %10649 = vmatpush.bf16.msrb.mxu3 %v12876_v54  ;;  %10624 = vmatpush.bf16.msrb.mxu1 %v12332_v56  ;;  %v12265_v30 = vld [vmem:[%s25576_s7 + $0xb0] sm:$0xf0]  ;;  %v10397_v55 = vadd.f32 %v10396_v21, %v10384_v61 }
 0x992   :  { %v16463_v1 = vld [vmem:[%s25576_s7 + $0x294] sm:$0xf]  ;;  %v12268_v16 = vor.u32 %v16399_v18, %v12265_v30 }
 0x993   :  { %10662 = vmatpush.bf16.msra.mxu0 %v13132_v35  ;;  %10637 = vmatpush.bf16.msrb.mxu2 %v12588_v48  ;;  %v12521_v5 = vld [vmem:[%s25576_s7 + $0x2b0] sm:$0xf0]  ;;  %v23076_v11 = vadd.f32 %v10409_v13, %v10397_v55  ;;  %v10385_v43 = vpop.f32.mrf.mxu2 }
 0x994   :  { %v16527_v34 = vld [vmem:[%s25576_s7 + $0x494] sm:$0xf]  ;;  %v12524_v59 = vor.u32 %v16463_v1, %v12521_v5 }
 0x995   :  { %10650 = vmatpush.bf16.msrb.mxu3 %v12844_v0  ;;  %v12777_v14 = vld [vmem:[%s25576_s7 + $0x4b0] sm:$0xf0]  ;;  %10625 = vmatpush.bf16.msrb.mxu1 %v12300_v41  ;;  %v10398_v46 = vpop.f32.mrf.mxu3 }
 0x996   :  { %v16591_v9 = vld [vmem:[%s25576_s7 + $0x694] sm:$0xf]  ;;  %v12780_v54 = vor.u32 %v16527_v34, %v12777_v14 }
 0x997   :  { %10663 = vmatpush.bf16.msra.mxu0 %v13100_v45  ;;  %v13033_v42 = vld [vmem:[%s25576_s7 + $0x6b0] sm:$0xf0]  ;;  %10638 = vmatpush.bf16.msrb.mxu2 %v12556_v29 }
 0x998   :  { %v16391_v60 = vld [vmem:[%s25576_s7 + $0x54] sm:$0xf]  ;;  %v13036_v35 = vor.u32 %v16591_v9, %v13033_v42 }
 0x999   :  { %10651 = vmatpush.bf16.msrb.mxu3 %v12812_v20  ;;  %v12233_v53 = vld [vmem:[%s25576_s7 + $0x70] sm:$0xf0]  ;;  %10626 = vmatpush.bf16.msrb.mxu1 %v12268_v16 }
 0x99a   :  { %v16455_v22 = vld [vmem:[%s25576_s7 + $0x254] sm:$0xf]  ;;  %v12236_v28 = vor.u32 %v16391_v60, %v12233_v53 }
 0x99b   :  { %10664 = vmatpush.bf16.msra.mxu0 %v13068_v37  ;;  %v12489_v49 = vld [vmem:[%s25576_s7 + $0x270] sm:$0xf0]  ;;  %10639 = vmatpush.bf16.msrb.mxu2 %v12524_v59 }
 0x99c   :  { %v16519_v26 = vld [vmem:[%s25576_s7 + $0x454] sm:$0xf]  ;;  %v12492_v13 = vor.u32 %v16455_v22, %v12489_v49 }
 0x99d   :  { %v12745_v12 = vld [vmem:[%s25576_s7 + $0x470] sm:$0xf0]  ;;  %10652 = vmatpush.bf16.msrb.mxu3 %v12780_v54  ;;  %10627 = vmatpush.bf16.msrb.mxu1 %v12236_v28 }
 0x99e   :  { %v16583_v7 = vld [vmem:[%s25576_s7 + $0x654] sm:$0xf]  ;;  %v12748_v0 = vor.u32 %v16519_v26, %v12745_v12 }
 0x99f   :  { %v13001_v17 = vld [vmem:[%s25576_s7 + $0x670] sm:$0xf0]  ;;  %10665 = vmatpush.bf16.msra.mxu0 %v13036_v35  ;;  %10640 = vmatpush.bf16.msrb.mxu2 %v12492_v13 }
 0x9a0   :  { %v16383_v56 = vld [vmem:[%s25576_s7 + $0x14] sm:$0xf]  ;;  %v13004_v45 = vor.u32 %v16583_v7, %v13001_v17 }
 0x9a1   :  { %v12201_v48 = vld [vmem:[%s25576_s7 + $0x30] sm:$0xf0]  ;;  %10653 = vmatpush.bf16.msrb.mxu3 %v12748_v0 }
 0x9a2   :  { %v16447_v24 = vld [vmem:[%s25576_s7 + $0x214] sm:$0xf]  ;;  %v12204_v18 = vor.u32 %v16383_v56, %v12201_v48 }
 0x9a3   :  { %v12457_v25 = vld [vmem:[%s25576_s7 + $0x230] sm:$0xf0]  ;;  %10666 = vmatpush.bf16.msra.mxu0 %v13004_v45 }
 0x9a4   :  { %v16511_v3 = vld [vmem:[%s25576_s7 + $0x414] sm:$0xf]  ;;  %v12460_v58 = vor.u32 %v16447_v24, %v12457_v25  ;;  %10628 = vmatpush.bf16.msrb.mxu1 %v12204_v18 }
 0x9a5   :  { %v12713_v15 = vld [vmem:[%s25576_s7 + $0x430] sm:$0xf0] }
 0x9a6   :  { %v16575_v39 = vld [vmem:[%s25576_s7 + $0x614] sm:$0xf]  ;;  %v12716_v21 = vor.u32 %v16511_v3, %v12713_v15  ;;  %10641 = vmatpush.bf16.msrb.mxu2 %v12460_v58 }
 0x9a7   :  { %v12969_v4 = vld [vmem:[%s25576_s7 + $0x630] sm:$0xf0]  ;;  %10629 = vmatmul.bf16.vlgmr.msrb.gmra.mxu1 %v19296_v10 }
 0x9a8   :  { %v16695_v41 = vld [vmem:[%s25576_s7 + $0x9d4] sm:$0xf]  ;;  %v12972_v14 = vor.u32 %v16575_v39, %v12969_v4  ;;  %10654 = vmatpush.bf16.msrb.mxu3 %v12716_v21  ;;  %v10461_v21 = vpop.f32.mrf.mxu0 }
 0x9a9   :  { %v13449_v29 = vld [vmem:[%s25576_s7 + $0x9f0] sm:$0xf0]  ;;  %10642 = vmatmul.bf16.vlgmr.msrb.gmra.mxu2 %v19298_v62 }
 0x9aa   :  { %v16759_v20 = vld [vmem:[%s25576_s7 + $0xbd4] sm:$0xf]  ;;  %v13452_v61 = vor.u32 %v16695_v41, %v13449_v29  ;;  %10667 = vmatpush.bf16.msra.mxu0 %v12972_v14 }
 0x9ab   :  { %v13705_v30 = vld [vmem:[%s25576_s7 + $0xbf0] sm:$0xf0]  ;;  %10655 = vmatmul.bf16.vlgmr.msrb.gmra.mxu3 %v19319_v6 }
 0x9ac   :  { %v16823_v1 = vld [vmem:[%s25576_s7 + $0xdd4] sm:$0xf]  ;;  %v13708_v40 = vor.u32 %v16759_v20, %v13705_v30  ;;  %10673 = vmatpush.bf16.msra.mxu1 %v13452_v61  ;;  %v10422_v20 = vpop.f32.mrf.mxu1 }
 0x9ad   :  { %v13961_v37 = vld [vmem:[%s25576_s7 + $0xdf0] sm:$0xf0]  ;;  %10668 = vmatmul.bf16.vlgmr.msra.gmra.mxu0 %v19321_v23 }
 0x9ae   :  { %v16887_v5 = vld [vmem:[%s25576_s7 + $0xfd4] sm:$0xf]  ;;  %v13964_v9 = vor.u32 %v16823_v1, %v13961_v37  ;;  %10686 = vmatpush.bf16.msra.mxu2 %v13708_v40  ;;  %v17484_v1 = vld [vmem:[%s25579_s8] sm:$0xff] }
 0x9af   :  { %v14217_v34 = vld [vmem:[%s25576_s7 + $0xff0] sm:$0xf0]  ;;  %v4393_v37 = vperm.slane %v17484_v1, 4 }
 0x9b0   :  { %v16687_v42 = vld [vmem:[%s25576_s7 + $0x994] sm:$0xf]  ;;  %v14220_v36 = vor.u32 %v16887_v5, %v14217_v34  ;;  %10699 = vmatpush.bf16.msra.mxu3 %v13964_v9 }
 0x9b1   :  { %v13417_v16 = vld [vmem:[%s25576_s7 + $0x9b0] sm:$0xf0] }
 0x9b2   :  { %v16751_v55 = vld [vmem:[%s25576_s7 + $0xb94] sm:$0xf]  ;;  %v13420_v35 = vor.u32 %v16687_v42, %v13417_v16  ;;  %10712 = vmatpush.bf16.msrb.mxu0 %v14220_v36 }
 0x9b3   :  { %v13673_v59 = vld [vmem:[%s25576_s7 + $0xbb0] sm:$0xf0] }
 0x9b4   :  { %v16815_v54 = vld [vmem:[%s25576_s7 + $0xd94] sm:$0xf]  ;;  %v13676_v49 = vor.u32 %v16751_v55, %v13673_v59  ;;  %10674 = vmatpush.bf16.msra.mxu1 %v13420_v35 }
 0x9b5   :  { %v13929_v60 = vld [vmem:[%s25576_s7 + $0xdb0] sm:$0xf0] }
 0x9b6   :  { %v16879_v53 = vld [vmem:[%s25576_s7 + $0xf94] sm:$0xf]  ;;  %v13932_v26 = vor.u32 %v16815_v54, %v13929_v60  ;;  %10687 = vmatpush.bf16.msra.mxu2 %v13676_v49  ;;  %v10423_v60 = vadd.f32 %v10422_v20, %v4393_v37 }
 0x9b7   :  { %v14185_v22 = vld [vmem:[%s25576_s7 + $0xfb0] sm:$0xf0] }
 0x9b8   :  { %v16679_v12 = vld [vmem:[%s25576_s7 + $0x954] sm:$0xf]  ;;  %v14188_v28 = vor.u32 %v16879_v53, %v14185_v22  ;;  %10700 = vmatpush.bf16.msra.mxu3 %v13932_v26 }
 0x9b9   :  { %v13385_v7 = vld [vmem:[%s25576_s7 + $0x970] sm:$0xf0] }
 0x9ba   :  { %v16743_v17 = vld [vmem:[%s25576_s7 + $0xb54] sm:$0xf]  ;;  %v13388_v25 = vor.u32 %v16679_v12, %v13385_v7  ;;  %10713 = vmatpush.bf16.msrb.mxu0 %v14188_v28  ;;  %v10435_v7 = vpop.f32.mrf.mxu2 }
 0x9bb   :  { %v13641_v56 = vld [vmem:[%s25576_s7 + $0xb70] sm:$0xf0] }
 0x9bc   :  { %v16807_v48 = vld [vmem:[%s25576_s7 + $0xd54] sm:$0xf]  ;;  %v13644_v3 = vor.u32 %v16743_v17, %v13641_v56  ;;  %10675 = vmatpush.bf16.msra.mxu1 %v13388_v25  ;;  %v10448_v17 = vpop.f32.mrf.mxu3 }
 0x9bd   :  { %v13897_v13 = vld [vmem:[%s25576_s7 + $0xd70] sm:$0xf0] }
 0x9be   :  { %v16871_v0 = vld [vmem:[%s25576_s7 + $0xf54] sm:$0xf]  ;;  %v13900_v45 = vor.u32 %v16807_v48, %v13897_v13  ;;  %10688 = vmatpush.bf16.msra.mxu2 %v13644_v3  ;;  %v10436_v13 = vadd.f32 %v10435_v7, %v10423_v60 }
 0x9bf   :  { %v14153_v24 = vld [vmem:[%s25576_s7 + $0xf70] sm:$0xf0] }
 0x9c0   :  { %v16671_v43 = vld [vmem:[%s25576_s7 + $0x914] sm:$0xf]  ;;  %v14156_v39 = vor.u32 %v16871_v0, %v14153_v24  ;;  %10701 = vmatpush.bf16.msra.mxu3 %v13900_v45  ;;  %v10424_v0 = vpop.f32.mrf.mxu1  ;;  %v10449_v45 = vadd.f32 %v10448_v17, %v10436_v13 }
 0x9c1   :  { %v13353_v46 = vld [vmem:[%s25576_s7 + $0x930] sm:$0xf0] }
 0x9c2   :  { %v16735_v15 = vld [vmem:[%s25576_s7 + $0xb14] sm:$0xf]  ;;  %v13356_v58 = vor.u32 %v16671_v43, %v13353_v46  ;;  %10714 = vmatpush.bf16.msrb.mxu0 %v14156_v39  ;;  %v10463_v43 = vpop.f32.mrf.mxu0 }
 0x9c3   :  { %v13609_v4 = vld [vmem:[%s25576_s7 + $0xb30] sm:$0xf0] }
 0x9c4   :  { %v16799_v41 = vld [vmem:[%s25576_s7 + $0xd14] sm:$0xf]  ;;  %v13612_v5 = vor.u32 %v16735_v15, %v13609_v4  ;;  %10676 = vmatpush.bf16.msra.mxu1 %v13356_v58  ;;  %v23283_v58 = vadd.f32 %v10461_v21, %v10449_v45 }
 0x9c5   :  { %v13865_v29 = vld [vmem:[%s25576_s7 + $0xd30] sm:$0xf0] }
 0x9c6   :  { %v16863_v18 = vld [vmem:[%s25576_s7 + $0xf14] sm:$0xf]  ;;  %v13868_v34 = vor.u32 %v16799_v41, %v13865_v29  ;;  %10689 = vmatpush.bf16.msra.mxu2 %v13612_v5 }
 0x9c7   :  { %v14121_v30 = vld [vmem:[%s25576_s7 + $0xf30] sm:$0xf0] }
 0x9c8   :  { %v16663_v14 = vld [vmem:[%s25576_s7 + $0x8d4] sm:$0xf]  ;;  %v14124_v9 = vor.u32 %v16863_v18, %v14121_v30  ;;  %10702 = vmatpush.bf16.msra.mxu3 %v13868_v34 }
 0x9c9   :  { %v13321_v61 = vld [vmem:[%s25576_s7 + $0x8f0] sm:$0xf0] }
 0x9ca   :  { %v16727_v40 = vld [vmem:[%s25576_s7 + $0xad4] sm:$0xf]  ;;  %v13324_v54 = vor.u32 %v16663_v14, %v13321_v61  ;;  %10715 = vmatpush.bf16.msrb.mxu0 %v14124_v9 }
 0x9cb   :  { %v13577_v42 = vld [vmem:[%s25576_s7 + $0xaf0] sm:$0xf0] }
 0x9cc   :  { %v16791_v16 = vld [vmem:[%s25576_s7 + $0xcd4] sm:$0xf]  ;;  %v13580_v53 = vor.u32 %v16727_v40, %v13577_v42  ;;  %10677 = vmatpush.bf16.msra.mxu1 %v13324_v54 }
 0x9cd   :  { %v13833_v55 = vld [vmem:[%s25576_s7 + $0xcf0] sm:$0xf0] }
 0x9ce   :  { %v16855_v36 = vld [vmem:[%s25576_s7 + $0xed4] sm:$0xf]  ;;  %v13836_v22 = vor.u32 %v16791_v16, %v13833_v55  ;;  %10690 = vmatpush.bf16.msra.mxu2 %v13580_v53  ;;  %v10437_v55 = vpop.f32.mrf.mxu2 }
 0x9cf   :  { %v14089_v59 = vld [vmem:[%s25576_s7 + $0xef0] sm:$0xf0] }
 0x9d0   :  { %v16655_v35 = vld [vmem:[%s25576_s7 + $0x894] sm:$0xf]  ;;  %v14092_v12 = vor.u32 %v16855_v36, %v14089_v59  ;;  %10703 = vmatpush.bf16.msra.mxu3 %v13836_v22  ;;  %v10450_v36 = vpop.f32.mrf.mxu3 }
 0x9d1   :  { %v13289_v49 = vld [vmem:[%s25576_s7 + $0x8b0] sm:$0xf0] }
 0x9d2   :  { %v16719_v26 = vld [vmem:[%s25576_s7 + $0xa94] sm:$0xf]  ;;  %v13292_v3 = vor.u32 %v16655_v35, %v13289_v49  ;;  %10716 = vmatpush.bf16.msrb.mxu0 %v14092_v12 }
 0x9d3   :  { %v13545_v28 = vld [vmem:[%s25576_s7 + $0xab0] sm:$0xf0] }
 0x9d4   :  { %v16783_v56 = vld [vmem:[%s25576_s7 + $0xc94] sm:$0xf]  ;;  %v13548_v46 = vor.u32 %v16719_v26, %v13545_v28  ;;  %10678 = vmatpush.bf16.msra.mxu1 %v13292_v3 }
 0x9d5   :  { %v13801_v48 = vld [vmem:[%s25576_s7 + $0xcb0] sm:$0xf0] }
 0x9d6   :  { %v16847_v24 = vld [vmem:[%s25576_s7 + $0xe94] sm:$0xf]  ;;  %v13804_v15 = vor.u32 %v16783_v56, %v13801_v48  ;;  %10691 = vmatpush.bf16.msra.mxu2 %v13548_v46 }
 0x9d7   :  { %v14057_v25 = vld [vmem:[%s25576_s7 + $0xeb0] sm:$0xf0] }
 0x9d8   :  { %v16647_v39 = vld [vmem:[%s25576_s7 + $0x854] sm:$0xf]  ;;  %v14060_v29 = vor.u32 %v16847_v24, %v14057_v25  ;;  %10704 = vmatpush.bf16.msra.mxu3 %v13804_v15 }
 0x9d9   :  { %v13257_v4 = vld [vmem:[%s25576_s7 + $0x870] sm:$0xf0] }
 0x9da   :  { %v16711_v41 = vld [vmem:[%s25576_s7 + $0xa54] sm:$0xf]  ;;  %v13260_v5 = vor.u32 %v16647_v39, %v13257_v4  ;;  %10717 = vmatpush.bf16.msrb.mxu0 %v14060_v29 }
 0x9db   :  { %v13513_v20 = vld [vmem:[%s25576_s7 + $0xa70] sm:$0xf0] }
 0x9dc   :  { %v16775_v18 = vld [vmem:[%s25576_s7 + $0xc54] sm:$0xf]  ;;  %v13516_v61 = vor.u32 %v16711_v41, %v13513_v20  ;;  %10679 = vmatpush.bf16.msra.mxu1 %v13260_v5 }
 0x9dd   :  { %v13769_v30 = vld [vmem:[%s25576_s7 + $0xc70] sm:$0xf0] }
 0x9de   :  { %v16839_v1 = vld [vmem:[%s25576_s7 + $0xe54] sm:$0xf]  ;;  %v13772_v40 = vor.u32 %v16775_v18, %v13769_v30  ;;  %10692 = vmatpush.bf16.msra.mxu2 %v13516_v61 }
 0x9df   :  { %v14025_v37 = vld [vmem:[%s25576_s7 + $0xe70] sm:$0xf0] }
 0x9e0   :  { %v16639_v34 = vld [vmem:[%s25576_s7 + $0x814] sm:$0xf]  ;;  %v14028_v16 = vor.u32 %v16839_v1, %v14025_v37  ;;  %10705 = vmatpush.bf16.msra.mxu3 %v13772_v40 }
 0x9e1   :  { %v13225_v14 = vld [vmem:[%s25576_s7 + $0x830] sm:$0xf0] }
 0x9e2   :  { %v16703_v9 = vld [vmem:[%s25576_s7 + $0xa14] sm:$0xf]  ;;  %v13228_v49 = vor.u32 %v16639_v34, %v13225_v14  ;;  %10718 = vmatpush.bf16.msrb.mxu0 %v14028_v16 }
 0x9e3   :  { %v13481_v21 = vld [vmem:[%s25576_s7 + $0xa30] sm:$0xf0] }
 0x9e4   :  { %v16767_v42 = vld [vmem:[%s25576_s7 + $0xc14] sm:$0xf]  ;;  %v13484_v17 = vor.u32 %v16703_v9, %v13481_v21  ;;  %10680 = vmatpush.bf16.msra.mxu1 %v13228_v49  ;;  %v10474_v49 = vpop.f32.mrf.mxu1 }
 0x9e5   :  { %v13737_v59 = vld [vmem:[%s25576_s7 + $0xc30] sm:$0xf0] }
 0x9e6   :  { %v16831_v54 = vld [vmem:[%s25576_s7 + $0xe14] sm:$0xf]  ;;  %v13740_v28 = vor.u32 %v16767_v42, %v13737_v59  ;;  %10693 = vmatpush.bf16.msra.mxu2 %v13484_v17 }
 0x9e7   :  { %v13993_v60 = vld [vmem:[%s25576_s7 + $0xe30] sm:$0xf0]  ;;  %10681 = vmatmul.bf16.vlgmr.msra.gmra.mxu1 %v19422_v51 }
 0x9e8   :  { %v16951_v53 = vld [vmem:[%s25576_s7 + $0x11d4] sm:$0xf]  ;;  %v13996_v13 = vor.u32 %v16831_v54, %v13993_v60  ;;  %10706 = vmatpush.bf16.msra.mxu3 %v13740_v28  ;;  %v10513_v28 = vpop.f32.mrf.mxu0 }
 0x9e9   :  { %v14473_v22 = vld [vmem:[%s25576_s7 + $0x11f0] sm:$0xf0]  ;;  %10694 = vmatmul.bf16.vlgmr.msra.gmra.mxu2 %v19424_v38 }
 0x9ea   :  { %v17015_v35 = vld [vmem:[%s25576_s7 + $0x13d4] sm:$0xf]  ;;  %v14476_v0 = vor.u32 %v16951_v53, %v14473_v22  ;;  %10719 = vmatpush.bf16.msrb.mxu0 %v13996_v13 }
 0x9eb   :  { %v14729_v26 = vld [vmem:[%s25576_s7 + $0x13f0] sm:$0xf0]  ;;  %10707 = vmatmul.bf16.vlgmr.msra.gmra.mxu3 %v19447_v27 }
 0x9ec   :  { %v17079_v12 = vld [vmem:[%s25576_s7 + $0x15d4] sm:$0xf]  ;;  %v14732_v24 = vor.u32 %v17015_v35, %v14729_v26  ;;  %10725 = vmatpush.bf16.msrb.mxu1 %v14476_v0 }
 0x9ed   :  { %v14985_v7 = vld [vmem:[%s25576_s7 + $0x15f0] sm:$0xf0]  ;;  %10720 = vmatmul.bf16.vlgmr.msrb.gmra.mxu0 %v19449_v47 }
 0x9ee   :  { %v17143_v56 = vld [vmem:[%s25576_s7 + $0x17d4] sm:$0xf]  ;;  %v14988_v25 = vor.u32 %v17079_v12, %v14985_v7  ;;  %10738 = vmatpush.bf16.msrb.mxu2 %v14732_v24  ;;  %v10475_v7 = vadd.f32 %v10474_v49, %v23283_v58 }
 0x9ef   :  { %v15241_v48 = vld [vmem:[%s25576_s7 + $0x17f0] sm:$0xf0] }
 0x9f0   :  { %v16943_v3 = vld [vmem:[%s25576_s7 + $0x1194] sm:$0xf]  ;;  %v15244_v46 = vor.u32 %v17143_v56, %v15241_v48  ;;  %10751 = vmatpush.bf16.msrb.mxu3 %v14988_v25 }
 0x9f1   :  { %v14441_v45 = vld [vmem:[%s25576_s7 + $0x11b0] sm:$0xf0] }
 0x9f2   :  { %v17007_v43 = vld [vmem:[%s25576_s7 + $0x1394] sm:$0xf]  ;;  %v14444_v20 = vor.u32 %v16943_v3, %v14441_v45  ;;  %10764 = vmatpush.bf16.msra.mxu0 %v15244_v46 }
 0x9f3   :  { %v14697_v15 = vld [vmem:[%s25576_s7 + $0x13b0] sm:$0xf0] }
 0x9f4   :  { %v17071_v39 = vld [vmem:[%s25576_s7 + $0x1594] sm:$0xf]  ;;  %v14700_v18 = vor.u32 %v17007_v43, %v14697_v15  ;;  %10726 = vmatpush.bf16.msrb.mxu1 %v14444_v20 }
 0x9f5   :  { %v14953_v4 = vld [vmem:[%s25576_s7 + $0x15b0] sm:$0xf0] }
 0x9f6   :  { %v17135_v41 = vld [vmem:[%s25576_s7 + $0x1794] sm:$0xf]  ;;  %v14956_v30 = vor.u32 %v17071_v39, %v14953_v4  ;;  %10739 = vmatpush.bf16.msrb.mxu2 %v14700_v18 }
 0x9f7   :  { %v15209_v29 = vld [vmem:[%s25576_s7 + $0x17b0] sm:$0xf0] }
 0x9f8   :  { %v16935_v1 = vld [vmem:[%s25576_s7 + $0x1154] sm:$0xf]  ;;  %v15212_v34 = vor.u32 %v17135_v41, %v15209_v29  ;;  %10752 = vmatpush.bf16.msrb.mxu3 %v14956_v30  ;;  %v10487_v30 = vpop.f32.mrf.mxu2 }
 0x9f9   :  { %v14409_v37 = vld [vmem:[%s25576_s7 + $0x1170] sm:$0xf0] }
 0x9fa   :  { %v16999_v5 = vld [vmem:[%s25576_s7 + $0x1354] sm:$0xf]  ;;  %v14412_v42 = vor.u32 %v16935_v1, %v14409_v37  ;;  %10765 = vmatpush.bf16.msra.mxu0 %v15212_v34  ;;  %v10500_v1 = vpop.f32.mrf.mxu3 }
 0x9fb   :  { %v14665_v14 = vld [vmem:[%s25576_s7 + $0x1370] sm:$0xf0] }
 0x9fc   :  { %v17063_v61 = vld [vmem:[%s25576_s7 + $0x1554] sm:$0xf]  ;;  %v14668_v16 = vor.u32 %v16999_v5, %v14665_v14  ;;  %10727 = vmatpush.bf16.msrb.mxu1 %v14412_v42  ;;  %v10488_v14 = vadd.f32 %v10487_v30, %v10475_v7 }
 0x9fd   :  { %v14921_v40 = vld [vmem:[%s25576_s7 + $0x1570] sm:$0xf0] }
 0x9fe   :  { %v17127_v9 = vld [vmem:[%s25576_s7 + $0x1754] sm:$0xf]  ;;  %v14924_v55 = vor.u32 %v17063_v61, %v14921_v40  ;;  %10740 = vmatpush.bf16.msrb.mxu2 %v14668_v16  ;;  %v10476_v61 = vpop.f32.mrf.mxu1  ;;  %v10501_v42 = vadd.f32 %v10500_v1, %v10488_v14  ;;  %v10515_v16 = vpop.f32.mrf.mxu0 }
 0x9ff   :  { %v15177_v21 = vld [vmem:[%s25576_s7 + $0x1770] sm:$0xf0] }
 0xa00   :  { %v16927_v36 = vld [vmem:[%s25576_s7 + $0x1114] sm:$0xf]  ;;  %v15180_v60 = vor.u32 %v17127_v9, %v15177_v21  ;;  %10753 = vmatpush.bf16.msrb.mxu3 %v14924_v55  ;;  %v23482_v7 = vadd.f32 %v10513_v28, %v10501_v42 }
 0xa01   :  { %v14377_v59 = vld [vmem:[%s25576_s7 + $0x1130] sm:$0xf0] }
 0xa02   :  { %v16991_v54 = vld [vmem:[%s25576_s7 + $0x1314] sm:$0xf]  ;;  %v14380_v17 = vor.u32 %v16927_v36, %v14377_v59  ;;  %10766 = vmatpush.bf16.msra.mxu0 %v15180_v60 }
 0xa03   :  { %v14633_v53 = vld [vmem:[%s25576_s7 + $0x1330] sm:$0xf0] }
 0xa04   :  { %v17055_v22 = vld [vmem:[%s25576_s7 + $0x1514] sm:$0xf]  ;;  %v14636_v56 = vor.u32 %v16991_v54, %v14633_v53  ;;  %10728 = vmatpush.bf16.msrb.mxu1 %v14380_v17 }
 0xa05   :  { %v14889_v35 = vld [vmem:[%s25576_s7 + $0x1530] sm:$0xf0] }
 0xa06   :  { %v17119_v26 = vld [vmem:[%s25576_s7 + $0x1714] sm:$0xf]  ;;  %v14892_v48 = vor.u32 %v17055_v22, %v14889_v35  ;;  %10741 = vmatpush.bf16.msrb.mxu2 %v14636_v56 }
 0xa07   :  { %v15145_v12 = vld [vmem:[%s25576_s7 + $0x1730] sm:$0xf0] }
 0xa08   :  { %v16919_v13 = vld [vmem:[%s25576_s7 + $0x10d4] sm:$0xf]  ;;  %v15148_v58 = vor.u32 %v17119_v26, %v15145_v12  ;;  %10754 = vmatpush.bf16.msrb.mxu3 %v14892_v48 }
 0xa09   :  { %v14345_v0 = vld [vmem:[%s25576_s7 + $0x10f0] sm:$0xf0] }
 0xa0a   :  { %v16983_v24 = vld [vmem:[%s25576_s7 + $0x12d4] sm:$0xf]  ;;  %v14348_v15 = vor.u32 %v16919_v13, %v14345_v0  ;;  %10767 = vmatpush.bf16.msra.mxu0 %v15148_v58 }
 0xa0b   :  { %v14601_v25 = vld [vmem:[%s25576_s7 + $0x12f0] sm:$0xf0] }
 0xa0c   :  { %v17047_v3 = vld [vmem:[%s25576_s7 + $0x14d4] sm:$0xf]  ;;  %v14604_v39 = vor.u32 %v16983_v24, %v14601_v25  ;;  %10729 = vmatpush.bf16.msrb.mxu1 %v14348_v15 }
 0xa0d   :  { %v14857_v45 = vld [vmem:[%s25576_s7 + $0x14f0] sm:$0xf0] }
 0xa0e   :  { %v17111_v43 = vld [vmem:[%s25576_s7 + $0x16d4] sm:$0xf]  ;;  %v14860_v4 = vor.u32 %v17047_v3, %v14857_v45  ;;  %10742 = vmatpush.bf16.msrb.mxu2 %v14604_v39  ;;  %v10489_v3 = vpop.f32.mrf.mxu2  ;;  %v10502_v45 = vpop.f32.mrf.mxu3 }
 0xa0f   :  { %v15113_v46 = vld [vmem:[%s25576_s7 + $0x16f0] sm:$0xf0] }
 0xa10   :  { %v16911_v41 = vld [vmem:[%s25576_s7 + $0x1094] sm:$0xf]  ;;  %v15116_v18 = vor.u32 %v17111_v43, %v15113_v46  ;;  %10755 = vmatpush.bf16.msrb.mxu3 %v14860_v4 }
 0xa11   :  { %v14313_v29 = vld [vmem:[%s25576_s7 + $0x10b0] sm:$0xf0] }
 0xa12   :  { %v16975_v20 = vld [vmem:[%s25576_s7 + $0x1294] sm:$0xf]  ;;  %v14316_v21 = vor.u32 %v16911_v41, %v14313_v29  ;;  %10768 = vmatpush.bf16.msra.mxu0 %v15116_v18 }
 0xa13   :  { %v14569_v37 = vld [vmem:[%s25576_s7 + $0x12b0] sm:$0xf0] }
 0xa14   :  { %v17039_v5 = vld [vmem:[%s25576_s7 + $0x1494] sm:$0xf]  ;;  %v14572_v55 = vor.u32 %v16975_v20, %v14569_v37  ;;  %10730 = vmatpush.bf16.msrb.mxu1 %v14316_v21 }
 0xa15   :  { %v14825_v34 = vld [vmem:[%s25576_s7 + $0x14b0] sm:$0xf0] }
 0xa16   :  { %v17103_v40 = vld [vmem:[%s25576_s7 + $0x1694] sm:$0xf]  ;;  %v14828_v36 = vor.u32 %v17039_v5, %v14825_v34  ;;  %10743 = vmatpush.bf16.msrb.mxu2 %v14572_v55 }
 0xa17   :  { %v15081_v9 = vld [vmem:[%s25576_s7 + $0x16b0] sm:$0xf0] }
 0xa18   :  { %v16903_v59 = vld [vmem:[%s25576_s7 + $0x1054] sm:$0xf]  ;;  %v15084_v53 = vor.u32 %v17103_v40, %v15081_v9  ;;  %10756 = vmatpush.bf16.msrb.mxu3 %v14828_v36 }
 0xa19   :  { %v14281_v54 = vld [vmem:[%s25576_s7 + $0x1070] sm:$0xf0] }
 0xa1a   :  { %v16967_v60 = vld [vmem:[%s25576_s7 + $0x1254] sm:$0xf]  ;;  %v14284_v17 = vor.u32 %v16903_v59, %v14281_v54  ;;  %10769 = vmatpush.bf16.msra.mxu0 %v15084_v53 }
 0xa1b   :  { %v14537_v22 = vld [vmem:[%s25576_s7 + $0x1270] sm:$0xf0] }
 0xa1c   :  { %v17031_v35 = vld [vmem:[%s25576_s7 + $0x1454] sm:$0xf]  ;;  %v14540_v13 = vor.u32 %v16967_v60, %v14537_v22  ;;  %10731 = vmatpush.bf16.msrb.mxu1 %v14284_v17 }
 0xa1d   :  { %v14793_v49 = vld [vmem:[%s25576_s7 + $0x1470] sm:$0xf0] }
 0xa1e   :  { %v17095_v26 = vld [vmem:[%s25576_s7 + $0x1654] sm:$0xf]  ;;  %v14796_v0 = vor.u32 %v17031_v35, %v14793_v49  ;;  %10744 = vmatpush.bf16.msrb.mxu2 %v14540_v13 }
 0xa1f   :  { %v15049_v12 = vld [vmem:[%s25576_s7 + $0x1670] sm:$0xf0] }
 0xa20   :  { %v16895_v56 = vld [vmem:[%s25576_s7 + $0x1014] sm:$0xf]  ;;  %v15052_v25 = vor.u32 %v17095_v26, %v15049_v12  ;;  %10757 = vmatpush.bf16.msrb.mxu3 %v14796_v0 }
 0xa21   :  { %v14249_v48 = vld [vmem:[%s25576_s7 + $0x1030] sm:$0xf0] }
 0xa22   :  { %v16959_v24 = vld [vmem:[%s25576_s7 + $0x1214] sm:$0xf]  ;;  %v14252_v29 = vor.u32 %v16895_v56, %v14249_v48  ;;  %10770 = vmatpush.bf16.msra.mxu0 %v15052_v25 }
 0xa23   :  { %v14505_v28 = vld [vmem:[%s25576_s7 + $0x1230] sm:$0xf0] }
 0xa24   :  { %v17023_v58 = vld [vmem:[%s25576_s7 + $0x1414] sm:$0xf]  ;;  %v14508_v1 = vor.u32 %v16959_v24, %v14505_v28  ;;  %10732 = vmatpush.bf16.msrb.mxu1 %v14252_v29  ;;  %v10526_v29 = vpop.f32.mrf.mxu1 }
 0xa25   :  { %v14761_v43 = vld [vmem:[%s25576_s7 + $0x1430] sm:$0xf0] }
 0xa26   :  { %v17087_v46 = vld [vmem:[%s25576_s7 + $0x1614] sm:$0xf]  ;;  %v14764_v37 = vor.u32 %v17023_v58, %v14761_v43  ;;  %10745 = vmatpush.bf16.msrb.mxu2 %v14508_v1 }
 0xa27   :  { %v15017_v15 = vld [vmem:[%s25576_s7 + $0x1630] sm:$0xf0]  ;;  %10733 = vmatmul.bf16.vlgmr.msrb.gmra.mxu1 %v19553_v8 }
 0xa28   :  { %v17207_v39 = vld [vmem:[%s25576_s7 + $0x19d4] sm:$0xf]  ;;  %v15020_v14 = vor.u32 %v17087_v46, %v15017_v15  ;;  %10758 = vmatpush.bf16.msrb.mxu3 %v14764_v37  ;;  %v10565_v37 = vpop.f32.mrf.mxu0 }
 0xa29   :  { %v15497_v4 = vld [vmem:[%s25576_s7 + $0x19f0] sm:$0xf0]  ;;  %10746 = vmatmul.bf16.vlgmr.msrb.gmra.mxu2 %v19555_v33 }
 0xa2a   :  { %v17271_v41 = vld [vmem:[%s25576_s7 + $0x1bd4] sm:$0xf]  ;;  %v15500_v61 = vor.u32 %v17207_v39, %v15497_v4  ;;  %10771 = vmatpush.bf16.msra.mxu0 %v15020_v14 }
 0xa2b   :  { %v15753_v20 = vld [vmem:[%s25576_s7 + $0x1bf0] sm:$0xf0]  ;;  %10759 = vmatmul.bf16.vlgmr.msrb.gmra.mxu3 %v19564_v31 }
 0xa2c   :  { %v17335_v18 = vld [vmem:[%s25576_s7 + $0x1dd4] sm:$0xf]  ;;  %v15756_v40 = vor.u32 %v17271_v41, %v15753_v20  ;;  %10777 = vmatpush.bf16.msra.mxu1 %v15500_v61 }
 0xa2d   :  { %v16009_v30 = vld [vmem:[%s25576_s7 + $0x1df0] sm:$0xf0]  ;;  %10772 = vmatmul.bf16.vlgmr.msra.gmra.mxu0 %v19566_v2 }
 0xa2e   :  { %v17399_v5 = vld [vmem:[%s25576_s7 + $0x1fd4] sm:$0xf]  ;;  %v16012_v9 = vor.u32 %v17335_v18, %v16009_v30  ;;  %10790 = vmatpush.bf16.msra.mxu2 %v15756_v40  ;;  %v10527_v30 = vadd.f32 %v10526_v29, %v23482_v7 }
 0xa2f   :  { %v16265_v34 = vld [vmem:[%s25576_s7 + $0x1ff0] sm:$0xf0] }
 0xa30   :  { %v17199_v21 = vld [vmem:[%s25576_s7 + $0x1994] sm:$0xf]  ;;  %v16268_v55 = vor.u32 %v17399_v5, %v16265_v34  ;;  %10803 = vmatpush.bf16.msra.mxu3 %v16012_v9 }
 0xa31   :  { %v15465_v42 = vld [vmem:[%s25576_s7 + $0x19b0] sm:$0xf0] }
 0xa32   :  { %v17263_v16 = vld [vmem:[%s25576_s7 + $0x1b94] sm:$0xf]  ;;  %v15468_v22 = vor.u32 %v17199_v21, %v15465_v42  ;;  %10816 = vmatpush.bf16.msrb.mxu0 %v16268_v55 }
 0xa33   :  { %v15721_v36 = vld [vmem:[%s25576_s7 + $0x1bb0] sm:$0xf0] }
 0xa34   :  { %v17327_v59 = vld [vmem:[%s25576_s7 + $0x1d94] sm:$0xf]  ;;  %v15724_v35 = vor.u32 %v17263_v16, %v15721_v36  ;;  %10778 = vmatpush.bf16.msra.mxu1 %v15468_v22 }
 0xa35   :  { %v15977_v54 = vld [vmem:[%s25576_s7 + $0x1db0] sm:$0xf0] }
 0xa36   :  { %v17391_v60 = vld [vmem:[%s25576_s7 + $0x1f94] sm:$0xf]  ;;  %v15980_v49 = vor.u32 %v17327_v59, %v15977_v54  ;;  %10791 = vmatpush.bf16.msra.mxu2 %v15724_v35 }
 0xa37   :  { %v16233_v53 = vld [vmem:[%s25576_s7 + $0x1fb0] sm:$0xf0] }
 0xa38   :  { %v17191_v26 = vld [vmem:[%s25576_s7 + $0x1954] sm:$0xf]  ;;  %v16236_v56 = vor.u32 %v17391_v60, %v16233_v53  ;;  %10804 = vmatpush.bf16.msra.mxu3 %v15980_v49  ;;  %v10539_v49 = vpop.f32.mrf.mxu2 }
 0xa39   :  { %v15433_v12 = vld [vmem:[%s25576_s7 + $0x1970] sm:$0xf0] }
 0xa3a   :  { %v17255_v17 = vld [vmem:[%s25576_s7 + $0x1b54] sm:$0xf]  ;;  %v15436_v58 = vor.u32 %v17191_v26, %v15433_v12  ;;  %10817 = vmatpush.bf16.msrb.mxu0 %v16236_v56  ;;  %v10552_v26 = vpop.f32.mrf.mxu3 }
 0xa3b   :  { %v15689_v48 = vld [vmem:[%s25576_s7 + $0x1b70] sm:$0xf0] }
 0xa3c   :  { %v17319_v13 = vld [vmem:[%s25576_s7 + $0x1d54] sm:$0xf]  ;;  %v15692_v25 = vor.u32 %v17255_v17, %v15689_v48  ;;  %10779 = vmatpush.bf16.msra.mxu1 %v15436_v58  ;;  %v10540_v48 = vadd.f32 %v10539_v49, %v10527_v30  ;;  %v16572_v49 = vld [vmem:[%s25576_s7 + $0x5f4] sm:$0xf0] }
 0xa3d   :  { %v15945_v0 = vld [vmem:[%s25576_s7 + $0x1d70] sm:$0xf0] }
 0xa3e   :  { %v17383_v24 = vld [vmem:[%s25576_s7 + $0x1f54] sm:$0xf]  ;;  %v15948_v3 = vor.u32 %v17319_v13, %v15945_v0  ;;  %10792 = vmatpush.bf16.msra.mxu2 %v15692_v25  ;;  %v10528_v13 = vpop.f32.mrf.mxu1  ;;  %v10553_v58 = vadd.f32 %v10552_v26, %v10540_v48  ;;  %v10567_v25 = vpop.f32.mrf.mxu0 }
 0xa3f   :  { %v16201_v28 = vld [vmem:[%s25576_s7 + $0x1f70] sm:$0xf0]  ;;  %v12655_v25 = vld [vmem:[%s25576_s7 + $0x398] sm:$0xf] }
 0xa40   :  { %v17183_v45 = vld [vmem:[%s25576_s7 + $0x1914] sm:$0xf]  ;;  %v16204_v15 = vor.u32 %v17383_v24, %v16201_v28  ;;  %10805 = vmatpush.bf16.msra.mxu3 %v15948_v3  ;;  %v23681_v30 = vadd.f32 %v10565_v37, %v10553_v58  ;;  %v16436_v58 = vld [vmem:[%s25576_s7 + $0x1b4] sm:$0xf0] }
 0xa41   :  { %v15401_v43 = vld [vmem:[%s25576_s7 + $0x1930] sm:$0xf0] }
 0xa42   :  { %v17247_v46 = vld [vmem:[%s25576_s7 + $0x1b14] sm:$0xf]  ;;  %v15404_v1 = vor.u32 %v17183_v45, %v15401_v43  ;;  %10818 = vmatpush.bf16.msrb.mxu0 %v16204_v15 }
 0xa43   :  { %v15657_v39 = vld [vmem:[%s25576_s7 + $0x1b30] sm:$0xf0] }
 0xa44   :  { %v17311_v4 = vld [vmem:[%s25576_s7 + $0x1d14] sm:$0xf]  ;;  %v15660_v5 = vor.u32 %v17247_v46, %v15657_v39  ;;  %10780 = vmatpush.bf16.msra.mxu1 %v15404_v1 }
 0xa45   :  { %v15913_v41 = vld [vmem:[%s25576_s7 + $0x1d30] sm:$0xf0] }
 0xa46   :  { %v17375_v20 = vld [vmem:[%s25576_s7 + $0x1f14] sm:$0xf]  ;;  %v15916_v34 = vor.u32 %v17311_v4, %v15913_v41  ;;  %10793 = vmatpush.bf16.msra.mxu2 %v15660_v5 }
 0xa47   :  { %v16169_v18 = vld [vmem:[%s25576_s7 + $0x1f30] sm:$0xf0] }
 0xa48   :  { %v17175_v14 = vld [vmem:[%s25576_s7 + $0x18d4] sm:$0xf]  ;;  %v16172_v7 = vor.u32 %v17375_v20, %v16169_v18  ;;  %10806 = vmatpush.bf16.msra.mxu3 %v15916_v34 }
 0xa49   :  { %v15369_v61 = vld [vmem:[%s25576_s7 + $0x18f0] sm:$0xf0] }
 0xa4a   :  { %v17239_v40 = vld [vmem:[%s25576_s7 + $0x1ad4] sm:$0xf]  ;;  %v15372_v36 = vor.u32 %v17175_v14, %v15369_v61  ;;  %10819 = vmatpush.bf16.msrb.mxu0 %v16172_v7 }
 0xa4b   :  { %v15625_v9 = vld [vmem:[%s25576_s7 + $0x1af0] sm:$0xf0] }
 0xa4c   :  { %v17303_v21 = vld [vmem:[%s25576_s7 + $0x1cd4] sm:$0xf]  ;;  %v15628_v59 = vor.u32 %v17239_v40, %v15625_v9  ;;  %10781 = vmatpush.bf16.msra.mxu1 %v15372_v36 }
 0xa4d   :  { %v15881_v42 = vld [vmem:[%s25576_s7 + $0x1cf0] sm:$0xf0] }
 0xa4e   :  { %v17367_v16 = vld [vmem:[%s25576_s7 + $0x1ed4] sm:$0xf]  ;;  %v15884_v54 = vor.u32 %v17303_v21, %v15881_v42  ;;  %10794 = vmatpush.bf16.msra.mxu2 %v15628_v59  ;;  %v10541_v21 = vpop.f32.mrf.mxu2  ;;  %v10554_v42 = vpop.f32.mrf.mxu3  ;;  %v12431_v59 = vld [vmem:[%s25576_s7 + $0x1d8] sm:$0xf] }
 0xa4f   :  { %v16137_v55 = vld [vmem:[%s25576_s7 + $0x1ef0] sm:$0xf0]  ;;  %v12335_v42 = vld [vmem:[%s25576_s7 + $0x118] sm:$0xf] }
 0xa50   :  { %v17167_v60 = vld [vmem:[%s25576_s7 + $0x1894] sm:$0xf]  ;;  %v16140_v35 = vor.u32 %v17367_v16, %v16137_v55  ;;  %10807 = vmatpush.bf16.msra.mxu3 %v15884_v54  ;;  %v16444_v54 = vld [vmem:[%s25576_s7 + $0x1f4] sm:$0xf0] }
 0xa51   :  { %v15337_v53 = vld [vmem:[%s25576_s7 + $0x18b0] sm:$0xf0]  ;;  %v12432_v13 = vor.u32 %v16444_v54, %v12431_v59  ;;  %v16484_v59 = vld [vmem:[%s25576_s7 + $0x334] sm:$0xf0] }
 0xa52   :  { %v17231_v22 = vld [vmem:[%s25576_s7 + $0x1a94] sm:$0xf]  ;;  %v15340_v28 = vor.u32 %v17167_v60, %v15337_v53  ;;  %10820 = vmatpush.bf16.msrb.mxu0 %v16140_v35  ;;  %v12687_v60 = vld [vmem:[%s25576_s7 + $0x3d8] sm:$0xf] }
 0xa53   :  { %v15593_v12 = vld [vmem:[%s25576_s7 + $0x1ab0] sm:$0xf0]  ;;  %v12943_v35 = vld [vmem:[%s25576_s7 + $0x5d8] sm:$0xf] }
 0xa54   :  { %v17295_v17 = vld [vmem:[%s25576_s7 + $0x1c94] sm:$0xf]  ;;  %v15596_v3 = vor.u32 %v17231_v22, %v15593_v12  ;;  %10782 = vmatpush.bf16.msra.mxu1 %v15340_v28  ;;  %v16508_v22 = vld [vmem:[%s25576_s7 + $0x3f4] sm:$0xf0] }
 0xa55   :  { %v15849_v56 = vld [vmem:[%s25576_s7 + $0x1cb0] sm:$0xf0]  ;;  %v12399_v28 = vld [vmem:[%s25576_s7 + $0x198] sm:$0xf] }
 0xa56   :  { %v17359_v0 = vld [vmem:[%s25576_s7 + $0x1e94] sm:$0xf]  ;;  %v15852_v45 = vor.u32 %v17295_v17, %v15849_v56  ;;  %10795 = vmatpush.bf16.msra.mxu2 %v15596_v3  ;;  %v13199_v17 = vld [vmem:[%s25576_s7 + $0x7d8] sm:$0xf] }
 0xa57   :  { %v16105_v24 = vld [vmem:[%s25576_s7 + $0x1eb0] sm:$0xf0]  ;;  %v16636_v56 = vld [vmem:[%s25576_s7 + $0x7f4] sm:$0xf0] }
 0xa58   :  { %v17159_v43 = vld [vmem:[%s25576_s7 + $0x1854] sm:$0xf]  ;;  %v16108_v39 = vor.u32 %v17359_v0, %v16105_v24  ;;  %10808 = vmatpush.bf16.msra.mxu3 %v15852_v45  ;;  %v12688_v0 = vor.u32 %v16508_v22, %v12687_v60  ;;  %v12944_v24 = vor.u32 %v16572_v49, %v12943_v35  ;;  %v13200_v3 = vor.u32 %v16636_v56, %v13199_v17  ;;  %v16500_v45 = vld [vmem:[%s25576_s7 + $0x3b4] sm:$0xf0] }
 0xa59   :  { %v15305_v46 = vld [vmem:[%s25576_s7 + $0x1870] sm:$0xf0]  ;;  %v12847_v54 = vld [vmem:[%s25576_s7 + $0x518] sm:$0xf] }
 0xa5a   :  { %v17223_v15 = vld [vmem:[%s25576_s7 + $0x1a54] sm:$0xf]  ;;  %v15308_v1 = vor.u32 %v17159_v43, %v15305_v46  ;;  %10821 = vmatpush.bf16.msrb.mxu0 %v16108_v39  ;;  %v12911_v43 = vld [vmem:[%s25576_s7 + $0x598] sm:$0xf] }
 0xa5b   :  { %v15561_v4 = vld [vmem:[%s25576_s7 + $0x1a70] sm:$0xf0]  ;;  %v16564_v46 = vld [vmem:[%s25576_s7 + $0x5b4] sm:$0xf0] }
 0xa5c   :  { %v17287_v41 = vld [vmem:[%s25576_s7 + $0x1c54] sm:$0xf]  ;;  %v15564_v14 = vor.u32 %v17223_v15, %v15561_v4  ;;  %10783 = vmatpush.bf16.msra.mxu1 %v15308_v1  ;;  %v13167_v15 = vld [vmem:[%s25576_s7 + $0x798] sm:$0xf]  ;;  %v12400_v4 = vor.u32 %v16436_v58, %v12399_v28 }
 0xa5d   :  { %v15817_v29 = vld [vmem:[%s25576_s7 + $0x1c70] sm:$0xf0]  ;;  %v16628_v39 = vld [vmem:[%s25576_s7 + $0x7b4] sm:$0xf0] }
 0xa5e   :  { %v17351_v20 = vld [vmem:[%s25576_s7 + $0x1e54] sm:$0xf]  ;;  %v15820_v61 = vor.u32 %v17287_v41, %v15817_v29  ;;  %10796 = vmatpush.bf16.msra.mxu2 %v15564_v14  ;;  %v12656_v41 = vor.u32 %v16500_v45, %v12655_v25  ;;  %v12912_v29 = vor.u32 %v16564_v46, %v12911_v43  ;;  %v12623_v1 = vld [vmem:[%s25576_s7 + $0x358] sm:$0xf] }
 0xa5f   :  { %v16073_v18 = vld [vmem:[%s25576_s7 + $0x1e70] sm:$0xf0]  ;;  %v12879_v14 = vld [vmem:[%s25576_s7 + $0x558] sm:$0xf] }
 0xa60   :  { %v17151_v5 = vld [vmem:[%s25576_s7 + $0x1814] sm:$0xf]  ;;  %v16076_v9 = vor.u32 %v17351_v20, %v16073_v18  ;;  %10809 = vmatpush.bf16.msra.mxu3 %v15820_v61  ;;  %v12367_v20 = vld [vmem:[%s25576_s7 + $0x158] sm:$0xf] }
 0xa61   :  { %v15273_v34 = vld [vmem:[%s25576_s7 + $0x1830] sm:$0xf0]  ;;  %v16428_v18 = vld [vmem:[%s25576_s7 + $0x174] sm:$0xf0] }
 0xa62   :  { %v17215_v40 = vld [vmem:[%s25576_s7 + $0x1a14] sm:$0xf]  ;;  %v15276_v53 = vor.u32 %v17151_v5, %v15273_v34  ;;  %10822 = vmatpush.bf16.msrb.mxu0 %v16076_v9  ;;  %v13168_v5 = vor.u32 %v16628_v39, %v13167_v15  ;;  %v16492_v34 = vld [vmem:[%s25576_s7 + $0x374] sm:$0xf0] }
 0xa63   :  { %v15529_v37 = vld [vmem:[%s25576_s7 + $0x1a30] sm:$0xf0]  ;;  %v16556_v61 = vld [vmem:[%s25576_s7 + $0x574] sm:$0xf0]  ;;  %v12624_v9 = vor.u32 %v16492_v34, %v12623_v1 }
 0xa64   :  { %v17279_v7 = vld [vmem:[%s25576_s7 + $0x1c14] sm:$0xf]  ;;  %v15532_v26 = vor.u32 %v17215_v40, %v15529_v37  ;;  %10784 = vmatpush.bf16.msra.mxu1 %v15276_v53  ;;  %v13135_v40 = vld [vmem:[%s25576_s7 + $0x758] sm:$0xf]  ;;  %v12880_v21 = vor.u32 %v16556_v61, %v12879_v14  ;;  %v10578_v53 = vpop.f32.mrf.mxu1 }
 0xa65   :  { %v15785_v16 = vld [vmem:[%s25576_s7 + $0x1c30] sm:$0xf0]  ;;  %v16620_v37 = vld [vmem:[%s25576_s7 + $0x774] sm:$0xf0]  ;;  %v10579_v49 = vadd.f32 %v10578_v53, %v23681_v30 }
 0xa66   :  { %v17343_v55 = vld [vmem:[%s25576_s7 + $0x1e14] sm:$0xf]  ;;  %v15788_v12 = vor.u32 %v17279_v7, %v15785_v16  ;;  %10797 = vmatpush.bf16.msra.mxu2 %v15532_v26  ;;  %v12368_v7 = vor.u32 %v16428_v18, %v12367_v20  ;;  %v16420_v16 = vld [vmem:[%s25576_s7 + $0x134] sm:$0xf0]  ;;  %v10604_v20 = vpop.f32.mrf.mxu3 }
 0xa67   :  { %v16041_v36 = vld [vmem:[%s25576_s7 + $0x1e30] sm:$0xf0]  ;;  %10785 = vmatmul.bf16.vlgmr.msra.gmra.mxu1 %v19767_v52  ;;  %v16548_v60 = vld [vmem:[%s25576_s7 + $0x534] sm:$0xf0]  ;;  %v12336_v26 = vor.u32 %v16420_v16, %v12335_v42 }
 0xa68   :  { %v16044_v48 = vor.u32 %v17343_v55, %v16041_v36  ;;  %10810 = vmatpush.bf16.msra.mxu3 %v15788_v12  ;;  %10829 = vmatpush.bf16.msrb.mxu1 %v12432_v13  ;;  %v12591_v55 = vld [vmem:[%s25576_s7 + $0x318] sm:$0xf]  ;;  %v13136_v36 = vor.u32 %v16620_v37, %v13135_v40  ;;  %v10617_v12 = vpop.f32.mrf.mxu0  ;;  %v12848_v56 = vor.u32 %v16548_v60, %v12847_v54 }
 0xa69   :  { %10798 = vmatmul.bf16.vlgmr.msra.gmra.mxu2 %v19769_v63  ;;  %v13103_v22 = vld [vmem:[%s25576_s7 + $0x718] sm:$0xf]  ;;  %v12592_v17 = vor.u32 %v16484_v59, %v12591_v55 }
 0xa6a   :  { %10823 = vmatpush.bf16.msrb.mxu0 %v16044_v48  ;;  %10842 = vmatpush.bf16.msrb.mxu2 %v12688_v0  ;;  %v16612_v35 = vld [vmem:[%s25576_s7 + $0x734] sm:$0xf0] }
 0xa6b   :  { %10811 = vmatmul.bf16.vlgmr.msra.gmra.mxu3 %v19765_v44  ;;  %v12303_v48 = vld [vmem:[%s25576_s7 + $0xd8] sm:$0xf]  ;;  %v13104_v30 = vor.u32 %v16612_v35, %v13103_v22 }
 0xa6c   :  { %10855 = vmatpush.bf16.msrb.mxu3 %v12944_v24  ;;  %10830 = vmatpush.bf16.msrb.mxu1 %v12400_v4  ;;  %v16412_v13 = vld [vmem:[%s25576_s7 + $0xf4] sm:$0xf0]  ;;  %v10580_v14 = vpop.f32.mrf.mxu1 }
 0xa6d   :  { %10824 = vmatmul.bf16.vlgmr.msrb.gmra.mxu0 %v19777_v19  ;;  %v12559_v0 = vld [vmem:[%s25576_s7 + $0x2d8] sm:$0xf]  ;;  %v12304_v45 = vor.u32 %v16412_v13, %v12303_v48 }
 0xa6e   :  { %10868 = vmatpush.bf16.msra.mxu0 %v13200_v3  ;;  %10843 = vmatpush.bf16.msrb.mxu2 %v12656_v41  ;;  %v16476_v24 = vld [vmem:[%s25576_s7 + $0x2f4] sm:$0xf0] }
 0xa6f   :  { %v12815_v28 = vld [vmem:[%s25576_s7 + $0x4d8] sm:$0xf]  ;;  %v12560_v43 = vor.u32 %v16476_v24, %v12559_v0 }
 0xa70   :  { %10856 = vmatpush.bf16.msrb.mxu3 %v12912_v29  ;;  %10831 = vmatpush.bf16.msrb.mxu1 %v12368_v7  ;;  %v16540_v58 = vld [vmem:[%s25576_s7 + $0x4f4] sm:$0xf0]  ;;  %v10591_v29 = vpop.f32.mrf.mxu2 }
 0xa71   :  { %v13071_v25 = vld [vmem:[%s25576_s7 + $0x6d8] sm:$0xf]  ;;  %v12816_v46 = vor.u32 %v16540_v58, %v12815_v28  ;;  %v10592_v34 = vadd.f32 %v10591_v29, %v10579_v49  ;;  %v10606_v58 = vpop.f32.mrf.mxu3 }
 0xa72   :  { %10869 = vmatpush.bf16.msra.mxu0 %v13168_v5  ;;  %10844 = vmatpush.bf16.msrb.mxu2 %v12624_v9  ;;  %v16604_v3 = vld [vmem:[%s25576_s7 + $0x6f4] sm:$0xf0]  ;;  %v10619_v9 = vpop.f32.mrf.mxu0 }
 0xa73   :  { %v12271_v15 = vld [vmem:[%s25576_s7 + $0x98] sm:$0xf]  ;;  %v13072_v41 = vor.u32 %v16604_v3, %v13071_v25  ;;  %v10605_v7 = vadd.f32 %v10604_v20, %v10592_v34 }
 0xa74   :  { %10857 = vmatpush.bf16.msrb.mxu3 %v12880_v21  ;;  %10832 = vmatpush.bf16.msrb.mxu1 %v12336_v26  ;;  %v16404_v39 = vld [vmem:[%s25576_s7 + $0xb4] sm:$0xf0] }
 0xa75   :  { %v12527_v4 = vld [vmem:[%s25576_s7 + $0x298] sm:$0xf]  ;;  %v12272_v37 = vor.u32 %v16404_v39, %v12271_v15  ;;  %v23874_v22 = vadd.f32 %v10617_v12, %v10605_v7 }
 0xa76   :  { %10870 = vmatpush.bf16.msra.mxu0 %v13136_v36  ;;  %10845 = vmatpush.bf16.msrb.mxu2 %v12592_v17  ;;  %v16468_v18 = vld [vmem:[%s25576_s7 + $0x2b4] sm:$0xf0] }
 0xa77   :  { %v12783_v1 = vld [vmem:[%s25576_s7 + $0x498] sm:$0xf]  ;;  %v12528_v21 = vor.u32 %v16468_v18, %v12527_v4 }
 0xa78   :  { %10858 = vmatpush.bf16.msrb.mxu3 %v12848_v56  ;;  %v16532_v5 = vld [vmem:[%s25576_s7 + $0x4b4] sm:$0xf0]  ;;  %10833 = vmatpush.bf16.msrb.mxu1 %v12304_v45  ;;  %v10593_v28 = vpop.f32.mrf.mxu2 }
 0xa79   :  { %v13039_v61 = vld [vmem:[%s25576_s7 + $0x698] sm:$0xf]  ;;  %v12784_v42 = vor.u32 %v16532_v5, %v12783_v1 }
 0xa7a   :  { %10871 = vmatpush.bf16.msra.mxu0 %v13104_v30  ;;  %v16596_v40 = vld [vmem:[%s25576_s7 + $0x6b4] sm:$0xf0]  ;;  %10846 = vmatpush.bf16.msrb.mxu2 %v12560_v43 }
 0xa7b   :  { %v12239_v16 = vld [vmem:[%s25576_s7 + $0x58] sm:$0xf]  ;;  %v13040_v59 = vor.u32 %v16596_v40, %v13039_v61 }
 0xa7c   :  { %10859 = vmatpush.bf16.msrb.mxu3 %v12816_v46  ;;  %v16396_v55 = vld [vmem:[%s25576_s7 + $0x74] sm:$0xf0]  ;;  %10834 = vmatpush.bf16.msrb.mxu1 %v12272_v37 }
 0xa7d   :  { %v12495_v36 = vld [vmem:[%s25576_s7 + $0x258] sm:$0xf]  ;;  %v12240_v26 = vor.u32 %v16396_v55, %v12239_v16 }
 0xa7e   :  { %10872 = vmatpush.bf16.msra.mxu0 %v13072_v41  ;;  %v16460_v54 = vld [vmem:[%s25576_s7 + $0x274] sm:$0xf0]  ;;  %10847 = vmatpush.bf16.msrb.mxu2 %v12528_v21 }
 0xa7f   :  { %v12751_v60 = vld [vmem:[%s25576_s7 + $0x458] sm:$0xf]  ;;  %v12496_v12 = vor.u32 %v16460_v54, %v12495_v36 }
 0xa80   :  { %v16524_v53 = vld [vmem:[%s25576_s7 + $0x474] sm:$0xf0]  ;;  %10860 = vmatpush.bf16.msrb.mxu3 %v12784_v42  ;;  %10835 = vmatpush.bf16.msrb.mxu1 %v12240_v26 }
 0xa81   :  { %v13007_v35 = vld [vmem:[%s25576_s7 + $0x658] sm:$0xf]  ;;  %v12752_v48 = vor.u32 %v16524_v53, %v12751_v60 }
 0xa82   :  { %v16588_v49 = vld [vmem:[%s25576_s7 + $0x674] sm:$0xf0]  ;;  %10873 = vmatpush.bf16.msra.mxu0 %v13040_v59  ;;  %10848 = vmatpush.bf16.msrb.mxu2 %v12496_v12 }
 0xa83   :  { %v12207_v17 = vld [vmem:[%s25576_s7 + $0x18] sm:$0xf]  ;;  %v13008_v24 = vor.u32 %v16588_v49, %v13007_v35 }
 0xa84   :  { %v16388_v56 = vld [vmem:[%s25576_s7 + $0x34] sm:$0xf0]  ;;  %10861 = vmatpush.bf16.msrb.mxu3 %v12752_v48 }
 0xa85   :  { %v12463_v13 = vld [vmem:[%s25576_s7 + $0x218] sm:$0xf]  ;;  %v12208_v39 = vor.u32 %v16388_v56, %v12207_v17 }
 0xa86   :  { %v16452_v0 = vld [vmem:[%s25576_s7 + $0x234] sm:$0xf0]  ;;  %10874 = vmatpush.bf16.msra.mxu0 %v13008_v24 }
 0xa87   :  { %v12719_v30 = vld [vmem:[%s25576_s7 + $0x418] sm:$0xf]  ;;  %v12464_v20 = vor.u32 %v16452_v0, %v12463_v13  ;;  %10836 = vmatpush.bf16.msrb.mxu1 %v12208_v39  ;;  %v10630_v39 = vpop.f32.mrf.mxu1 }
 0xa88   :  { %v16516_v25 = vld [vmem:[%s25576_s7 + $0x434] sm:$0xf0] }
 0xa89   :  { %v12975_v3 = vld [vmem:[%s25576_s7 + $0x618] sm:$0xf]  ;;  %v12720_v18 = vor.u32 %v16516_v25, %v12719_v30  ;;  %10849 = vmatpush.bf16.msrb.mxu2 %v12464_v20 }
 0xa8a   :  { %v16580_v45 = vld [vmem:[%s25576_s7 + $0x634] sm:$0xf0]  ;;  %10837 = vmatmul.bf16.vlgmr.msrb.gmra.mxu1 %v19296_v10 }
 0xa8b   :  { %v13455_v43 = vld [vmem:[%s25576_s7 + $0x9d8] sm:$0xf]  ;;  %v12976_v34 = vor.u32 %v16580_v45, %v12975_v3  ;;  %10862 = vmatpush.bf16.msrb.mxu3 %v12720_v18 }
 0xa8c   :  { %v16700_v46 = vld [vmem:[%s25576_s7 + $0x9f4] sm:$0xf0]  ;;  %10850 = vmatmul.bf16.vlgmr.msrb.gmra.mxu2 %v19298_v62 }
 0xa8d   :  { %v13711_v15 = vld [vmem:[%s25576_s7 + $0xbd8] sm:$0xf]  ;;  %v13456_v14 = vor.u32 %v16700_v46, %v13455_v43  ;;  %10875 = vmatpush.bf16.msra.mxu0 %v12976_v34 }
 0xa8e   :  { %v16764_v4 = vld [vmem:[%s25576_s7 + $0xbf4] sm:$0xf0]  ;;  %10863 = vmatmul.bf16.vlgmr.msrb.gmra.mxu3 %v19319_v6 }
 0xa8f   :  { %v13967_v41 = vld [vmem:[%s25576_s7 + $0xdd8] sm:$0xf]  ;;  %v13712_v61 = vor.u32 %v16764_v4, %v13711_v15  ;;  %10881 = vmatpush.bf16.msra.mxu1 %v13456_v14 }
 0xa90   :  { %v16828_v29 = vld [vmem:[%s25576_s7 + $0xdf4] sm:$0xf0]  ;;  %10876 = vmatmul.bf16.vlgmr.msra.gmra.mxu0 %v19321_v23 }
 0xa91   :  { %v14223_v1 = vld [vmem:[%s25576_s7 + $0xfd8] sm:$0xf]  ;;  %v13968_v40 = vor.u32 %v16828_v29, %v13967_v41  ;;  %10894 = vmatpush.bf16.msra.mxu2 %v13712_v61  ;;  %v17485_v29 = vld [vmem:[%s25579_s8] sm:$0xff] }
 0xa92   :  { %v16892_v5 = vld [vmem:[%s25576_s7 + $0xff4] sm:$0xf0]  ;;  %v4394_v20 = vperm.slane %v17485_v29, 5 }
 0xa93   :  { %v13423_v37 = vld [vmem:[%s25576_s7 + $0x998] sm:$0xf]  ;;  %v14224_v21 = vor.u32 %v16892_v5, %v14223_v1  ;;  %10907 = vmatpush.bf16.msra.mxu3 %v13968_v40  ;;  %v10669_v1 = vpop.f32.mrf.mxu0 }
 0xa94   :  { %v16692_v7 = vld [vmem:[%s25576_s7 + $0x9b4] sm:$0xf0] }
 0xa95   :  { %v13679_v9 = vld [vmem:[%s25576_s7 + $0xb98] sm:$0xf]  ;;  %v13424_v54 = vor.u32 %v16692_v7, %v13423_v37  ;;  %10920 = vmatpush.bf16.msrb.mxu0 %v14224_v21 }
 0xa96   :  { %v16756_v42 = vld [vmem:[%s25576_s7 + $0xbb4] sm:$0xf0] }
 0xa97   :  { %v13935_v16 = vld [vmem:[%s25576_s7 + $0xd98] sm:$0xf]  ;;  %v13680_v60 = vor.u32 %v16756_v42, %v13679_v9  ;;  %10882 = vmatpush.bf16.msra.mxu1 %v13424_v54 }
 0xa98   :  { %v16820_v55 = vld [vmem:[%s25576_s7 + $0xdb4] sm:$0xf0] }
 0xa99   :  { %v14191_v36 = vld [vmem:[%s25576_s7 + $0xf98] sm:$0xf]  ;;  %v13936_v53 = vor.u32 %v16820_v55, %v13935_v16  ;;  %10895 = vmatpush.bf16.msra.mxu2 %v13680_v60 }
 0xa9a   :  { %v16884_v59 = vld [vmem:[%s25576_s7 + $0xfb4] sm:$0xf0] }
 0xa9b   :  { %v13391_v35 = vld [vmem:[%s25576_s7 + $0x958] sm:$0xf]  ;;  %v14192_v17 = vor.u32 %v16884_v59, %v14191_v36  ;;  %10908 = vmatpush.bf16.msra.mxu3 %v13936_v53  ;;  %v10631_v36 = vadd.f32 %v10630_v39, %v4394_v20 }
 0xa9c   :  { %v16684_v49 = vld [vmem:[%s25576_s7 + $0x974] sm:$0xf0] }
 0xa9d   :  { %v13647_v26 = vld [vmem:[%s25576_s7 + $0xb58] sm:$0xf]  ;;  %v13392_v30 = vor.u32 %v16684_v49, %v13391_v35  ;;  %10921 = vmatpush.bf16.msrb.mxu0 %v14192_v17  ;;  %v10656_v17 = vpop.f32.mrf.mxu3 }
 0xa9e   :  { %v16748_v56 = vld [vmem:[%s25576_s7 + $0xb74] sm:$0xf0] }
 0xa9f   :  { %v13903_v12 = vld [vmem:[%s25576_s7 + $0xd58] sm:$0xf]  ;;  %v13648_v24 = vor.u32 %v16748_v56, %v13647_v26  ;;  %10883 = vmatpush.bf16.msra.mxu1 %v13392_v30  ;;  %v10643_v26 = vpop.f32.mrf.mxu2 }
 0xaa0   :  { %v16812_v48 = vld [vmem:[%s25576_s7 + $0xd74] sm:$0xf0] }
 0xaa1   :  { %v14159_v13 = vld [vmem:[%s25576_s7 + $0xf58] sm:$0xf]  ;;  %v13904_v28 = vor.u32 %v16812_v48, %v13903_v12  ;;  %10896 = vmatpush.bf16.msra.mxu2 %v13648_v24 }
 0xaa2   :  { %v16876_v0 = vld [vmem:[%s25576_s7 + $0xf74] sm:$0xf0] }
 0xaa3   :  { %v13359_v58 = vld [vmem:[%s25576_s7 + $0x918] sm:$0xf]  ;;  %v14160_v45 = vor.u32 %v16876_v0, %v14159_v13  ;;  %10909 = vmatpush.bf16.msra.mxu3 %v13904_v28  ;;  %v10644_v13 = vadd.f32 %v10643_v26, %v10631_v36  ;;  %v10632_v0 = vpop.f32.mrf.mxu1 }
 0xaa4   :  { %v16676_v25 = vld [vmem:[%s25576_s7 + $0x934] sm:$0xf0] }
 0xaa5   :  { %v13615_v3 = vld [vmem:[%s25576_s7 + $0xb18] sm:$0xf]  ;;  %v13360_v18 = vor.u32 %v16676_v25, %v13359_v58  ;;  %10922 = vmatpush.bf16.msrb.mxu0 %v14160_v45  ;;  %v10657_v58 = vadd.f32 %v10656_v17, %v10644_v13  ;;  %v10671_v25 = vpop.f32.mrf.mxu0 }
 0xaa6   :  { %v16740_v43 = vld [vmem:[%s25576_s7 + $0xb34] sm:$0xf0] }
 0xaa7   :  { %v13871_v46 = vld [vmem:[%s25576_s7 + $0xd18] sm:$0xf]  ;;  %v13616_v5 = vor.u32 %v16740_v43, %v13615_v3  ;;  %10884 = vmatpush.bf16.msra.mxu1 %v13360_v18 }
 0xaa8   :  { %v16804_v15 = vld [vmem:[%s25576_s7 + $0xd34] sm:$0xf0] }
 0xaa9   :  { %v14127_v4 = vld [vmem:[%s25576_s7 + $0xf18] sm:$0xf]  ;;  %v13872_v34 = vor.u32 %v16804_v15, %v13871_v46  ;;  %10897 = vmatpush.bf16.msra.mxu2 %v13616_v5  ;;  %v24081_v5 = vadd.f32 %v10669_v1, %v10657_v58 }
 0xaaa   :  { %v16868_v41 = vld [vmem:[%s25576_s7 + $0xf34] sm:$0xf0] }
 0xaab   :  { %v13327_v14 = vld [vmem:[%s25576_s7 + $0x8d8] sm:$0xf]  ;;  %v14128_v37 = vor.u32 %v16868_v41, %v14127_v4  ;;  %10910 = vmatpush.bf16.msra.mxu3 %v13872_v34 }
 0xaac   :  { %v16668_v61 = vld [vmem:[%s25576_s7 + $0x8f4] sm:$0xf0] }
 0xaad   :  { %v13583_v40 = vld [vmem:[%s25576_s7 + $0xad8] sm:$0xf]  ;;  %v13328_v55 = vor.u32 %v16668_v61, %v13327_v14  ;;  %10923 = vmatpush.bf16.msrb.mxu0 %v14128_v37 }
 0xaae   :  { %v16732_v7 = vld [vmem:[%s25576_s7 + $0xaf4] sm:$0xf0] }
 0xaaf   :  { %v13839_v9 = vld [vmem:[%s25576_s7 + $0xcd8] sm:$0xf]  ;;  %v13584_v59 = vor.u32 %v16732_v7, %v13583_v40  ;;  %10885 = vmatpush.bf16.msra.mxu1 %v13328_v55 }
 0xab0   :  { %v16796_v21 = vld [vmem:[%s25576_s7 + $0xcf4] sm:$0xf0] }
 0xab1   :  { %v14095_v42 = vld [vmem:[%s25576_s7 + $0xed8] sm:$0xf]  ;;  %v13840_v54 = vor.u32 %v16796_v21, %v13839_v9  ;;  %10898 = vmatpush.bf16.msra.mxu2 %v13584_v59 }
 0xab2   :  { %v16860_v16 = vld [vmem:[%s25576_s7 + $0xef4] sm:$0xf0] }
 0xab3   :  { %v13295_v60 = vld [vmem:[%s25576_s7 + $0x898] sm:$0xf]  ;;  %v14096_v49 = vor.u32 %v16860_v16, %v14095_v42  ;;  %10911 = vmatpush.bf16.msra.mxu3 %v13840_v54  ;;  %v10645_v42 = vpop.f32.mrf.mxu2  ;;  %v10658_v16 = vpop.f32.mrf.mxu3 }
 0xab4   :  { %v16660_v53 = vld [vmem:[%s25576_s7 + $0x8b4] sm:$0xf0] }
 0xab5   :  { %v13551_v35 = vld [vmem:[%s25576_s7 + $0xa98] sm:$0xf]  ;;  %v13296_v28 = vor.u32 %v16660_v53, %v13295_v60  ;;  %10924 = vmatpush.bf16.msrb.mxu0 %v14096_v49 }
 0xab6   :  { %v16724_v56 = vld [vmem:[%s25576_s7 + $0xab4] sm:$0xf0] }
 0xab7   :  { %v13807_v12 = vld [vmem:[%s25576_s7 + $0xc98] sm:$0xf]  ;;  %v13552_v3 = vor.u32 %v16724_v56, %v13551_v35  ;;  %10886 = vmatpush.bf16.msra.mxu1 %v13296_v28 }
 0xab8   :  { %v16788_v48 = vld [vmem:[%s25576_s7 + $0xcb4] sm:$0xf0] }
 0xab9   :  { %v14063_v30 = vld [vmem:[%s25576_s7 + $0xe98] sm:$0xf]  ;;  %v13808_v45 = vor.u32 %v16788_v48, %v13807_v12  ;;  %10899 = vmatpush.bf16.msra.mxu2 %v13552_v3 }
 0xaba   :  { %v16852_v24 = vld [vmem:[%s25576_s7 + $0xeb4] sm:$0xf0] }
 0xabb   :  { %v13263_v43 = vld [vmem:[%s25576_s7 + $0x858] sm:$0xf]  ;;  %v14064_v39 = vor.u32 %v16852_v24, %v14063_v30  ;;  %10912 = vmatpush.bf16.msra.mxu3 %v13808_v45 }
 0xabc   :  { %v16652_v46 = vld [vmem:[%s25576_s7 + $0x874] sm:$0xf0] }
 0xabd   :  { %v13519_v15 = vld [vmem:[%s25576_s7 + $0xa58] sm:$0xf]  ;;  %v13264_v34 = vor.u32 %v16652_v46, %v13263_v43  ;;  %10925 = vmatpush.bf16.msrb.mxu0 %v14064_v39 }
 0xabe   :  { %v16716_v4 = vld [vmem:[%s25576_s7 + $0xa74] sm:$0xf0] }
 0xabf   :  { %v13775_v41 = vld [vmem:[%s25576_s7 + $0xc58] sm:$0xf]  ;;  %v13520_v40 = vor.u32 %v16716_v4, %v13519_v15  ;;  %10887 = vmatpush.bf16.msra.mxu1 %v13264_v34 }
 0xac0   :  { %v16780_v29 = vld [vmem:[%s25576_s7 + $0xc74] sm:$0xf0] }
 0xac1   :  { %v14031_v20 = vld [vmem:[%s25576_s7 + $0xe58] sm:$0xf]  ;;  %v13776_v37 = vor.u32 %v16780_v29, %v13775_v41  ;;  %10900 = vmatpush.bf16.msra.mxu2 %v13520_v40 }
 0xac2   :  { %v16844_v18 = vld [vmem:[%s25576_s7 + $0xe74] sm:$0xf0] }
 0xac3   :  { %v13231_v14 = vld [vmem:[%s25576_s7 + $0x818] sm:$0xf]  ;;  %v14032_v21 = vor.u32 %v16844_v18, %v14031_v20  ;;  %10913 = vmatpush.bf16.msra.mxu3 %v13776_v37 }
 0xac4   :  { %v16644_v61 = vld [vmem:[%s25576_s7 + $0x834] sm:$0xf0] }
 0xac5   :  { %v13487_v7 = vld [vmem:[%s25576_s7 + $0xa18] sm:$0xf]  ;;  %v13232_v35 = vor.u32 %v16644_v61, %v13231_v14  ;;  %10926 = vmatpush.bf16.msrb.mxu0 %v14032_v21 }
 0xac6   :  { %v16708_v1 = vld [vmem:[%s25576_s7 + $0xa34] sm:$0xf0] }
 0xac7   :  { %v13743_v9 = vld [vmem:[%s25576_s7 + $0xc18] sm:$0xf]  ;;  %v13488_v56 = vor.u32 %v16708_v1, %v13487_v7  ;;  %10888 = vmatpush.bf16.msra.mxu1 %v13232_v35 }
 0xac8   :  { %v16772_v55 = vld [vmem:[%s25576_s7 + $0xc34] sm:$0xf0] }
 0xac9   :  { %v13999_v36 = vld [vmem:[%s25576_s7 + $0xe18] sm:$0xf]  ;;  %v13744_v12 = vor.u32 %v16772_v55, %v13743_v9  ;;  %10901 = vmatpush.bf16.msra.mxu2 %v13488_v56 }
 0xaca   :  { %v16836_v59 = vld [vmem:[%s25576_s7 + $0xe34] sm:$0xf0]  ;;  %10889 = vmatmul.bf16.vlgmr.msra.gmra.mxu1 %v19422_v51 }
 0xacb   :  { %v14479_v54 = vld [vmem:[%s25576_s7 + $0x11d8] sm:$0xf]  ;;  %v14000_v0 = vor.u32 %v16836_v59, %v13999_v36  ;;  %10914 = vmatpush.bf16.msra.mxu3 %v13744_v12 }
 0xacc   :  { %v16956_v60 = vld [vmem:[%s25576_s7 + $0x11f4] sm:$0xf0]  ;;  %10902 = vmatmul.bf16.vlgmr.msra.gmra.mxu2 %v19424_v38 }
 0xacd   :  { %v14735_v53 = vld [vmem:[%s25576_s7 + $0x13d8] sm:$0xf]  ;;  %v14480_v30 = vor.u32 %v16956_v60, %v14479_v54  ;;  %10927 = vmatpush.bf16.msrb.mxu0 %v14000_v0 }
 0xace   :  { %v17020_v49 = vld [vmem:[%s25576_s7 + $0x13f4] sm:$0xf0]  ;;  %10915 = vmatmul.bf16.vlgmr.msra.gmra.mxu3 %v19447_v27 }
 0xacf   :  { %v14991_v26 = vld [vmem:[%s25576_s7 + $0x15d8] sm:$0xf]  ;;  %v14736_v24 = vor.u32 %v17020_v49, %v14735_v53  ;;  %10933 = vmatpush.bf16.msrb.mxu1 %v14480_v30  ;;  %v10682_v49 = vpop.f32.mrf.mxu1 }
 0xad0   :  { %v17084_v17 = vld [vmem:[%s25576_s7 + $0x15f4] sm:$0xf0]  ;;  %10928 = vmatmul.bf16.vlgmr.msrb.gmra.mxu0 %v19449_v47  ;;  %v10683_v56 = vadd.f32 %v10682_v49, %v24081_v5 }
 0xad1   :  { %v15247_v48 = vld [vmem:[%s25576_s7 + $0x17d8] sm:$0xf]  ;;  %v14992_v28 = vor.u32 %v17084_v17, %v14991_v26  ;;  %10946 = vmatpush.bf16.msrb.mxu2 %v14736_v24 }
 0xad2   :  { %v17148_v13 = vld [vmem:[%s25576_s7 + $0x17f4] sm:$0xf0] }
 0xad3   :  { %v14447_v58 = vld [vmem:[%s25576_s7 + $0x1198] sm:$0xf]  ;;  %v15248_v45 = vor.u32 %v17148_v13, %v15247_v48  ;;  %10959 = vmatpush.bf16.msrb.mxu3 %v14992_v28  ;;  %v10721_v48 = vpop.f32.mrf.mxu0 }
 0xad4   :  { %v16948_v25 = vld [vmem:[%s25576_s7 + $0x11b4] sm:$0xf0] }
 0xad5   :  { %v14703_v3 = vld [vmem:[%s25576_s7 + $0x1398] sm:$0xf]  ;;  %v14448_v41 = vor.u32 %v16948_v25, %v14447_v58  ;;  %10972 = vmatpush.bf16.msra.mxu0 %v15248_v45 }
 0xad6   :  { %v17012_v43 = vld [vmem:[%s25576_s7 + $0x13b4] sm:$0xf0] }
 0xad7   :  { %v14959_v46 = vld [vmem:[%s25576_s7 + $0x1598] sm:$0xf]  ;;  %v14704_v29 = vor.u32 %v17012_v43, %v14703_v3  ;;  %10934 = vmatpush.bf16.msrb.mxu1 %v14448_v41 }
 0xad8   :  { %v17076_v15 = vld [vmem:[%s25576_s7 + $0x15b4] sm:$0xf0] }
 0xad9   :  { %v15215_v39 = vld [vmem:[%s25576_s7 + $0x1798] sm:$0xf]  ;;  %v14960_v20 = vor.u32 %v17076_v15, %v14959_v46  ;;  %10947 = vmatpush.bf16.msrb.mxu2 %v14704_v29 }
 0xada   :  { %v17140_v4 = vld [vmem:[%s25576_s7 + $0x17b4] sm:$0xf0] }
 0xadb   :  { %v14415_v18 = vld [vmem:[%s25576_s7 + $0x1158] sm:$0xf]  ;;  %v15216_v61 = vor.u32 %v17140_v4, %v15215_v39  ;;  %10960 = vmatpush.bf16.msrb.mxu3 %v14960_v20 }
 0xadc   :  { %v16940_v34 = vld [vmem:[%s25576_s7 + $0x1174] sm:$0xf0] }
 0xadd   :  { %v14671_v14 = vld [vmem:[%s25576_s7 + $0x1358] sm:$0xf]  ;;  %v14416_v21 = vor.u32 %v16940_v34, %v14415_v18  ;;  %10973 = vmatpush.bf16.msra.mxu0 %v15216_v61  ;;  %v10695_v18 = vpop.f32.mrf.mxu2  ;;  %v10708_v34 = vpop.f32.mrf.mxu3 }
 0xade   :  { %v17004_v40 = vld [vmem:[%s25576_s7 + $0x1374] sm:$0xf0] }
 0xadf   :  { %v14927_v37 = vld [vmem:[%s25576_s7 + $0x1558] sm:$0xf]  ;;  %v14672_v42 = vor.u32 %v17004_v40, %v14671_v14  ;;  %10935 = vmatpush.bf16.msrb.mxu1 %v14416_v21 }
 0xae0   :  { %v17068_v7 = vld [vmem:[%s25576_s7 + $0x1574] sm:$0xf0] }
 0xae1   :  { %v15183_v1 = vld [vmem:[%s25576_s7 + $0x1758] sm:$0xf]  ;;  %v14928_v16 = vor.u32 %v17068_v7, %v14927_v37  ;;  %10948 = vmatpush.bf16.msrb.mxu2 %v14672_v42  ;;  %v10696_v37 = vadd.f32 %v10695_v18, %v10683_v56  ;;  %v10684_v7 = vpop.f32.mrf.mxu1 }
 0xae2   :  { %v17132_v9 = vld [vmem:[%s25576_s7 + $0x1774] sm:$0xf0] }
 0xae3   :  { %v14383_v55 = vld [vmem:[%s25576_s7 + $0x1118] sm:$0xf]  ;;  %v15184_v54 = vor.u32 %v17132_v9, %v15183_v1  ;;  %10961 = vmatpush.bf16.msrb.mxu3 %v14928_v16  ;;  %v10709_v42 = vadd.f32 %v10708_v34, %v10696_v37  ;;  %v10723_v16 = vpop.f32.mrf.mxu0 }
 0xae4   :  { %v16932_v36 = vld [vmem:[%s25576_s7 + $0x1134] sm:$0xf0] }
 0xae5   :  { %v14639_v59 = vld [vmem:[%s25576_s7 + $0x1318] sm:$0xf]  ;;  %v14384_v12 = vor.u32 %v16932_v36, %v14383_v55  ;;  %10974 = vmatpush.bf16.msra.mxu0 %v15184_v54 }
 0xae6   :  { %v16996_v60 = vld [vmem:[%s25576_s7 + $0x1334] sm:$0xf0] }
 0xae7   :  { %v14895_v53 = vld [vmem:[%s25576_s7 + $0x1518] sm:$0xf]  ;;  %v14640_v13 = vor.u32 %v16996_v60, %v14639_v59  ;;  %10936 = vmatpush.bf16.msrb.mxu1 %v14384_v12  ;;  %v24280_v12 = vadd.f32 %v10721_v48, %v10709_v42 }
 0xae8   :  { %v17060_v35 = vld [vmem:[%s25576_s7 + $0x1534] sm:$0xf0] }
 0xae9   :  { %v15151_v26 = vld [vmem:[%s25576_s7 + $0x1718] sm:$0xf]  ;;  %v14896_v0 = vor.u32 %v17060_v35, %v14895_v53  ;;  %10949 = vmatpush.bf16.msrb.mxu2 %v14640_v13 }
 0xaea   :  { %v17124_v17 = vld [vmem:[%s25576_s7 + $0x1734] sm:$0xf0] }
 0xaeb   :  { %v14351_v30 = vld [vmem:[%s25576_s7 + $0x10d8] sm:$0xf]  ;;  %v15152_v5 = vor.u32 %v17124_v17, %v15151_v26  ;;  %10962 = vmatpush.bf16.msrb.mxu3 %v14896_v0 }
 0xaec   :  { %v16924_v24 = vld [vmem:[%s25576_s7 + $0x10f4] sm:$0xf0] }
 0xaed   :  { %v14607_v28 = vld [vmem:[%s25576_s7 + $0x12d8] sm:$0xf]  ;;  %v14352_v46 = vor.u32 %v16924_v24, %v14351_v30  ;;  %10975 = vmatpush.bf16.msra.mxu0 %v15152_v5 }
 0xaee   :  { %v16988_v58 = vld [vmem:[%s25576_s7 + $0x12f4] sm:$0xf0] }
 0xaef   :  { %v14863_v25 = vld [vmem:[%s25576_s7 + $0x14d8] sm:$0xf]  ;;  %v14608_v15 = vor.u32 %v16988_v58, %v14607_v28  ;;  %10937 = vmatpush.bf16.msrb.mxu1 %v14352_v46 }
 0xaf0   :  { %v17052_v3 = vld [vmem:[%s25576_s7 + $0x14f4] sm:$0xf0] }
 0xaf1   :  { %v15119_v45 = vld [vmem:[%s25576_s7 + $0x16d8] sm:$0xf]  ;;  %v14864_v39 = vor.u32 %v17052_v3, %v14863_v25  ;;  %10950 = vmatpush.bf16.msrb.mxu2 %v14608_v15  ;;  %v10697_v3 = vpop.f32.mrf.mxu2 }
 0xaf2   :  { %v17116_v43 = vld [vmem:[%s25576_s7 + $0x16f4] sm:$0xf0] }
 0xaf3   :  { %v14319_v4 = vld [vmem:[%s25576_s7 + $0x1098] sm:$0xf]  ;;  %v15120_v20 = vor.u32 %v17116_v43, %v15119_v45  ;;  %10963 = vmatpush.bf16.msrb.mxu3 %v14864_v39  ;;  %v10710_v45 = vpop.f32.mrf.mxu3 }
 0xaf4   :  { %v16916_v41 = vld [vmem:[%s25576_s7 + $0x10b4] sm:$0xf0] }
 0xaf5   :  { %v14575_v29 = vld [vmem:[%s25576_s7 + $0x1298] sm:$0xf]  ;;  %v14320_v21 = vor.u32 %v16916_v41, %v14319_v4  ;;  %10976 = vmatpush.bf16.msra.mxu0 %v15120_v20 }
 0xaf6   :  { %v16980_v14 = vld [vmem:[%s25576_s7 + $0x12b4] sm:$0xf0] }
 0xaf7   :  { %v14831_v61 = vld [vmem:[%s25576_s7 + $0x1498] sm:$0xf]  ;;  %v14576_v55 = vor.u32 %v16980_v14, %v14575_v29  ;;  %10938 = vmatpush.bf16.msrb.mxu1 %v14320_v21 }
 0xaf8   :  { %v17044_v40 = vld [vmem:[%s25576_s7 + $0x14b4] sm:$0xf0] }
 0xaf9   :  { %v15087_v1 = vld [vmem:[%s25576_s7 + $0x1698] sm:$0xf]  ;;  %v14832_v36 = vor.u32 %v17044_v40, %v14831_v61  ;;  %10951 = vmatpush.bf16.msrb.mxu2 %v14576_v55 }
 0xafa   :  { %v17108_v9 = vld [vmem:[%s25576_s7 + $0x16b4] sm:$0xf0] }
 0xafb   :  { %v14287_v59 = vld [vmem:[%s25576_s7 + $0x1058] sm:$0xf]  ;;  %v15088_v53 = vor.u32 %v17108_v9, %v15087_v1  ;;  %10964 = vmatpush.bf16.msrb.mxu3 %v14832_v36 }
 0xafc   :  { %v16908_v54 = vld [vmem:[%s25576_s7 + $0x1074] sm:$0xf0] }
 0xafd   :  { %v14543_v60 = vld [vmem:[%s25576_s7 + $0x1258] sm:$0xf]  ;;  %v14288_v13 = vor.u32 %v16908_v54, %v14287_v59  ;;  %10977 = vmatpush.bf16.msra.mxu0 %v15088_v53 }
 0xafe   :  { %v16972_v35 = vld [vmem:[%s25576_s7 + $0x1274] sm:$0xf0] }
 0xaff   :  { %v14799_v49 = vld [vmem:[%s25576_s7 + $0x1458] sm:$0xf]  ;;  %v14544_v24 = vor.u32 %v16972_v35, %v14543_v60  ;;  %10939 = vmatpush.bf16.msrb.mxu1 %v14288_v13 }
 0xb00   :  { %v17036_v26 = vld [vmem:[%s25576_s7 + $0x1474] sm:$0xf0] }
 0xb01   :  { %v15055_v17 = vld [vmem:[%s25576_s7 + $0x1658] sm:$0xf]  ;;  %v14800_v28 = vor.u32 %v17036_v26, %v14799_v49  ;;  %10952 = vmatpush.bf16.msrb.mxu2 %v14544_v24 }
 0xb02   :  { %v17100_v56 = vld [vmem:[%s25576_s7 + $0x1674] sm:$0xf0] }
 0xb03   :  { %v14255_v0 = vld [vmem:[%s25576_s7 + $0x1018] sm:$0xf]  ;;  %v15056_v25 = vor.u32 %v17100_v56, %v15055_v17  ;;  %10965 = vmatpush.bf16.msrb.mxu3 %v14800_v28 }
 0xb04   :  { %v16900_v30 = vld [vmem:[%s25576_s7 + $0x1034] sm:$0xf0] }
 0xb05   :  { %v14511_v5 = vld [vmem:[%s25576_s7 + $0x1218] sm:$0xf]  ;;  %v14256_v29 = vor.u32 %v16900_v30, %v14255_v0  ;;  %10978 = vmatpush.bf16.msra.mxu0 %v15056_v25 }
 0xb06   :  { %v16964_v48 = vld [vmem:[%s25576_s7 + $0x1234] sm:$0xf0] }
 0xb07   :  { %v14767_v58 = vld [vmem:[%s25576_s7 + $0x1418] sm:$0xf]  ;;  %v14512_v14 = vor.u32 %v16964_v48, %v14511_v5  ;;  %10940 = vmatpush.bf16.msrb.mxu1 %v14256_v29 }
 0xb08   :  { %v17028_v43 = vld [vmem:[%s25576_s7 + $0x1434] sm:$0xf0] }
 0xb09   :  { %v15023_v46 = vld [vmem:[%s25576_s7 + $0x1618] sm:$0xf]  ;;  %v14768_v61 = vor.u32 %v17028_v43, %v14767_v58  ;;  %10953 = vmatpush.bf16.msrb.mxu2 %v14512_v14 }
 0xb0a   :  { %v17092_v15 = vld [vmem:[%s25576_s7 + $0x1634] sm:$0xf0]  ;;  %10941 = vmatmul.bf16.vlgmr.msrb.gmra.mxu1 %v19553_v8 }
 0xb0b   :  { %v15503_v39 = vld [vmem:[%s25576_s7 + $0x19d8] sm:$0xf]  ;;  %v15024_v7 = vor.u32 %v17092_v15, %v15023_v46  ;;  %10966 = vmatpush.bf16.msrb.mxu3 %v14768_v61 }
 0xb0c   :  { %v17212_v4 = vld [vmem:[%s25576_s7 + $0x19f4] sm:$0xf0]  ;;  %10954 = vmatmul.bf16.vlgmr.msrb.gmra.mxu2 %v19555_v33 }
 0xb0d   :  { %v15759_v41 = vld [vmem:[%s25576_s7 + $0x1bd8] sm:$0xf]  ;;  %v15504_v1 = vor.u32 %v17212_v4, %v15503_v39  ;;  %10979 = vmatpush.bf16.msra.mxu0 %v15024_v7 }
 0xb0e   :  { %v17276_v20 = vld [vmem:[%s25576_s7 + $0x1bf4] sm:$0xf0]  ;;  %10967 = vmatmul.bf16.vlgmr.msrb.gmra.mxu3 %v19564_v31 }
 0xb0f   :  { %v16015_v18 = vld [vmem:[%s25576_s7 + $0x1dd8] sm:$0xf]  ;;  %v15760_v9 = vor.u32 %v17276_v20, %v15759_v41  ;;  %10985 = vmatpush.bf16.msra.mxu1 %v15504_v1  ;;  %v10734_v20 = vpop.f32.mrf.mxu1 }
 0xb10   :  { %v17340_v34 = vld [vmem:[%s25576_s7 + $0x1df4] sm:$0xf0]  ;;  %10980 = vmatmul.bf16.vlgmr.msra.gmra.mxu0 %v19566_v2  ;;  %v10735_v14 = vadd.f32 %v10734_v20, %v24280_v12 }
 0xb11   :  { %v16271_v40 = vld [vmem:[%s25576_s7 + $0x1fd8] sm:$0xf]  ;;  %v16016_v21 = vor.u32 %v17340_v34, %v16015_v18  ;;  %10998 = vmatpush.bf16.msra.mxu2 %v15760_v9 }
 0xb12   :  { %v17404_v37 = vld [vmem:[%s25576_s7 + $0x1ff4] sm:$0xf0] }
 0xb13   :  { %v15471_v42 = vld [vmem:[%s25576_s7 + $0x1998] sm:$0xf]  ;;  %v16272_v36 = vor.u32 %v17404_v37, %v16271_v40  ;;  %11011 = vmatpush.bf16.msra.mxu3 %v16016_v21  ;;  %v10773_v40 = vpop.f32.mrf.mxu0 }
 0xb14   :  { %v17204_v16 = vld [vmem:[%s25576_s7 + $0x19b4] sm:$0xf0] }
 0xb15   :  { %v15727_v55 = vld [vmem:[%s25576_s7 + $0x1b98] sm:$0xf]  ;;  %v15472_v49 = vor.u32 %v17204_v16, %v15471_v42  ;;  %11024 = vmatpush.bf16.msrb.mxu0 %v16272_v36 }
 0xb16   :  { %v17268_v59 = vld [vmem:[%s25576_s7 + $0x1bb4] sm:$0xf0] }
 0xb17   :  { %v15983_v54 = vld [vmem:[%s25576_s7 + $0x1d98] sm:$0xf]  ;;  %v15728_v26 = vor.u32 %v17268_v59, %v15727_v55  ;;  %10986 = vmatpush.bf16.msra.mxu1 %v15472_v49 }
 0xb18   :  { %v17332_v60 = vld [vmem:[%s25576_s7 + $0x1db4] sm:$0xf0] }
 0xb19   :  { %v16239_v53 = vld [vmem:[%s25576_s7 + $0x1f98] sm:$0xf]  ;;  %v15984_v17 = vor.u32 %v17332_v60, %v15983_v54  ;;  %10999 = vmatpush.bf16.msra.mxu2 %v15728_v26 }
 0xb1a   :  { %v17396_v35 = vld [vmem:[%s25576_s7 + $0x1fb4] sm:$0xf0] }
 0xb1b   :  { %v15439_v56 = vld [vmem:[%s25576_s7 + $0x1958] sm:$0xf]  ;;  %v16240_v30 = vor.u32 %v17396_v35, %v16239_v53  ;;  %11012 = vmatpush.bf16.msra.mxu3 %v15984_v17 }
 0xb1c   :  { %v17196_v13 = vld [vmem:[%s25576_s7 + $0x1974] sm:$0xf0] }
 0xb1d   :  { %v15695_v0 = vld [vmem:[%s25576_s7 + $0x1b58] sm:$0xf]  ;;  %v15440_v25 = vor.u32 %v17196_v13, %v15439_v56  ;;  %11025 = vmatpush.bf16.msrb.mxu0 %v16240_v30  ;;  %v10747_v56 = vpop.f32.mrf.mxu2  ;;  %v10760_v13 = vpop.f32.mrf.mxu3 }
 0xb1e   :  { %v17260_v24 = vld [vmem:[%s25576_s7 + $0x1b74] sm:$0xf0] }
 0xb1f   :  { %v15951_v28 = vld [vmem:[%s25576_s7 + $0x1d58] sm:$0xf]  ;;  %v15696_v3 = vor.u32 %v17260_v24, %v15695_v0  ;;  %10987 = vmatpush.bf16.msra.mxu1 %v15440_v25 }
 0xb20   :  { %v17324_v5 = vld [vmem:[%s25576_s7 + $0x1d74] sm:$0xf0] }
 0xb21   :  { %v16207_v48 = vld [vmem:[%s25576_s7 + $0x1f58] sm:$0xf]  ;;  %v15952_v45 = vor.u32 %v17324_v5, %v15951_v28  ;;  %11000 = vmatpush.bf16.msra.mxu2 %v15696_v3  ;;  %v10748_v28 = vadd.f32 %v10747_v56, %v10735_v14  ;;  %v10736_v5 = vpop.f32.mrf.mxu1  ;;  %v16568_v56 = vld [vmem:[%s25576_s7 + $0x5dc] sm:$0xf] }
 0xb22   :  { %v17388_v58 = vld [vmem:[%s25576_s7 + $0x1f74] sm:$0xf0] }
 0xb23   :  { %v15407_v43 = vld [vmem:[%s25576_s7 + $0x1918] sm:$0xf]  ;;  %v16208_v39 = vor.u32 %v17388_v58, %v16207_v48  ;;  %11013 = vmatpush.bf16.msra.mxu3 %v15952_v45  ;;  %v10761_v3 = vadd.f32 %v10760_v13, %v10748_v28  ;;  %v10775_v45 = vpop.f32.mrf.mxu0  ;;  %v12945_v13 = vld [vmem:[%s25576_s7 + $0x5f8] sm:$0xf0] }
 0xb24   :  { %v17188_v46 = vld [vmem:[%s25576_s7 + $0x1934] sm:$0xf0]  ;;  %v13201_v28 = vld [vmem:[%s25576_s7 + $0x7f8] sm:$0xf0] }
 0xb25   :  { %v15663_v15 = vld [vmem:[%s25576_s7 + $0x1b18] sm:$0xf]  ;;  %v15408_v61 = vor.u32 %v17188_v46, %v15407_v43  ;;  %11026 = vmatpush.bf16.msrb.mxu0 %v16208_v39  ;;  %v12401_v45 = vld [vmem:[%s25576_s7 + $0x1b8] sm:$0xf0] }
 0xb26   :  { %v17252_v4 = vld [vmem:[%s25576_s7 + $0x1b34] sm:$0xf0] }
 0xb27   :  { %v15919_v41 = vld [vmem:[%s25576_s7 + $0x1d18] sm:$0xf]  ;;  %v15664_v37 = vor.u32 %v17252_v4, %v15663_v15  ;;  %10988 = vmatpush.bf16.msra.mxu1 %v15408_v61  ;;  %v24479_v61 = vadd.f32 %v10773_v40, %v10761_v3  ;;  %v16432_v3 = vld [vmem:[%s25576_s7 + $0x19c] sm:$0xf] }
 0xb28   :  { %v17316_v29 = vld [vmem:[%s25576_s7 + $0x1d34] sm:$0xf0] }
 0xb29   :  { %v16175_v18 = vld [vmem:[%s25576_s7 + $0x1f18] sm:$0xf]  ;;  %v15920_v7 = vor.u32 %v17316_v29, %v15919_v41  ;;  %11001 = vmatpush.bf16.msra.mxu2 %v15664_v37 }
 0xb2a   :  { %v17380_v34 = vld [vmem:[%s25576_s7 + $0x1f34] sm:$0xf0] }
 0xb2b   :  { %v15375_v1 = vld [vmem:[%s25576_s7 + $0x18d8] sm:$0xf]  ;;  %v16176_v12 = vor.u32 %v17380_v34, %v16175_v18  ;;  %11014 = vmatpush.bf16.msra.mxu3 %v15920_v7 }
 0xb2c   :  { %v17180_v9 = vld [vmem:[%s25576_s7 + $0x18f4] sm:$0xf0] }
 0xb2d   :  { %v15631_v21 = vld [vmem:[%s25576_s7 + $0x1ad8] sm:$0xf]  ;;  %v15376_v54 = vor.u32 %v17180_v9, %v15375_v1  ;;  %11027 = vmatpush.bf16.msrb.mxu0 %v16176_v12 }
 0xb2e   :  { %v17244_v42 = vld [vmem:[%s25576_s7 + $0x1af4] sm:$0xf0] }
 0xb2f   :  { %v15887_v16 = vld [vmem:[%s25576_s7 + $0x1cd8] sm:$0xf]  ;;  %v15632_v60 = vor.u32 %v17244_v42, %v15631_v21  ;;  %10989 = vmatpush.bf16.msra.mxu1 %v15376_v54 }
 0xb30   :  { %v17308_v55 = vld [vmem:[%s25576_s7 + $0x1cf4] sm:$0xf0] }
 0xb31   :  { %v16143_v36 = vld [vmem:[%s25576_s7 + $0x1ed8] sm:$0xf]  ;;  %v15888_v53 = vor.u32 %v17308_v55, %v15887_v16  ;;  %11002 = vmatpush.bf16.msra.mxu2 %v15632_v60  ;;  %v10749_v55 = vpop.f32.mrf.mxu2 }
 0xb32   :  { %v17372_v59 = vld [vmem:[%s25576_s7 + $0x1ef4] sm:$0xf0] }
 0xb33   :  { %v15343_v35 = vld [vmem:[%s25576_s7 + $0x1898] sm:$0xf]  ;;  %v16144_v17 = vor.u32 %v17372_v59, %v16143_v36  ;;  %11015 = vmatpush.bf16.msra.mxu3 %v15888_v53  ;;  %v10762_v36 = vpop.f32.mrf.mxu3  ;;  %v16440_v53 = vld [vmem:[%s25576_s7 + $0x1dc] sm:$0xf] }
 0xb34   :  { %v17172_v49 = vld [vmem:[%s25576_s7 + $0x18b4] sm:$0xf0] }
 0xb35   :  { %v15599_v26 = vld [vmem:[%s25576_s7 + $0x1a98] sm:$0xf]  ;;  %v15344_v25 = vor.u32 %v17172_v49, %v15343_v35  ;;  %11028 = vmatpush.bf16.msrb.mxu0 %v16144_v17  ;;  %v12433_v35 = vld [vmem:[%s25576_s7 + $0x1f8] sm:$0xf0] }
 0xb36   :  { %v17236_v0 = vld [vmem:[%s25576_s7 + $0x1ab4] sm:$0xf0]  ;;  %v16504_v49 = vld [vmem:[%s25576_s7 + $0x3dc] sm:$0xf] }
 0xb37   :  { %v15855_v30 = vld [vmem:[%s25576_s7 + $0x1c98] sm:$0xf]  ;;  %v15600_v43 = vor.u32 %v17236_v0, %v15599_v26  ;;  %10990 = vmatpush.bf16.msra.mxu1 %v15344_v25  ;;  %v12689_v17 = vld [vmem:[%s25576_s7 + $0x3f8] sm:$0xf0]  ;;  %v12948_v25 = vor.u32 %v16568_v56, %v12945_v13 }
 0xb38   :  { %v17300_v24 = vld [vmem:[%s25576_s7 + $0x1cb4] sm:$0xf0]  ;;  %v16608_v56 = vld [vmem:[%s25576_s7 + $0x71c] sm:$0xf] }
 0xb39   :  { %v16111_v48 = vld [vmem:[%s25576_s7 + $0x1e98] sm:$0xf]  ;;  %v15856_v46 = vor.u32 %v17300_v24, %v15855_v30  ;;  %11003 = vmatpush.bf16.msra.mxu2 %v15600_v43  ;;  %v16632_v24 = vld [vmem:[%s25576_s7 + $0x7dc] sm:$0xf] }
 0xb3a   :  { %v17364_v58 = vld [vmem:[%s25576_s7 + $0x1eb4] sm:$0xf0]  ;;  %v16496_v43 = vld [vmem:[%s25576_s7 + $0x39c] sm:$0xf] }
 0xb3b   :  { %v15311_v15 = vld [vmem:[%s25576_s7 + $0x1858] sm:$0xf]  ;;  %v16112_v41 = vor.u32 %v17364_v58, %v16111_v48  ;;  %11016 = vmatpush.bf16.msra.mxu3 %v15856_v46  ;;  %v12436_v48 = vor.u32 %v16440_v53, %v12433_v35  ;;  %v12692_v58 = vor.u32 %v16504_v49, %v12689_v17  ;;  %v13204_v46 = vor.u32 %v16632_v24, %v13201_v28  ;;  %v12593_v35 = vld [vmem:[%s25576_s7 + $0x338] sm:$0xf0]  ;;  %v10786_v17 = vpop.f32.mrf.mxu1  ;;  %v10825_v24 = vpop.f32.mrf.mxu0 }
 0xb3c   :  { %v17164_v39 = vld [vmem:[%s25576_s7 + $0x1874] sm:$0xf0]  ;;  %v16544_v49 = vld [vmem:[%s25576_s7 + $0x51c] sm:$0xf] }
 0xb3d   :  { %v15567_v4 = vld [vmem:[%s25576_s7 + $0x1a58] sm:$0xf]  ;;  %v15312_v37 = vor.u32 %v17164_v39, %v15311_v15  ;;  %11029 = vmatpush.bf16.msrb.mxu0 %v16112_v41  ;;  %v12657_v15 = vld [vmem:[%s25576_s7 + $0x3b8] sm:$0xf0] }
 0xb3e   :  { %v17228_v29 = vld [vmem:[%s25576_s7 + $0x1a74] sm:$0xf0]  ;;  %v16560_v39 = vld [vmem:[%s25576_s7 + $0x59c] sm:$0xf] }
 0xb3f   :  { %v15823_v20 = vld [vmem:[%s25576_s7 + $0x1c58] sm:$0xf]  ;;  %v15568_v9 = vor.u32 %v17228_v29, %v15567_v4  ;;  %10991 = vmatpush.bf16.msra.mxu1 %v15312_v37  ;;  %v12913_v4 = vld [vmem:[%s25576_s7 + $0x5b8] sm:$0xf0] }
 0xb40   :  { %v17292_v18 = vld [vmem:[%s25576_s7 + $0x1c74] sm:$0xf0]  ;;  %v16624_v41 = vld [vmem:[%s25576_s7 + $0x79c] sm:$0xf] }
 0xb41   :  { %v16079_v34 = vld [vmem:[%s25576_s7 + $0x1e58] sm:$0xf]  ;;  %v15824_v21 = vor.u32 %v17292_v18, %v15823_v20  ;;  %11004 = vmatpush.bf16.msra.mxu2 %v15568_v9  ;;  %v13169_v29 = vld [vmem:[%s25576_s7 + $0x7b8] sm:$0xf0]  ;;  %v12404_v20 = vor.u32 %v16432_v3, %v12401_v45  ;;  %v12660_v18 = vor.u32 %v16496_v43, %v12657_v15 }
 0xb42   :  { %v17356_v14 = vld [vmem:[%s25576_s7 + $0x1e74] sm:$0xf0]  ;;  %v12369_v37 = vld [vmem:[%s25576_s7 + $0x178] sm:$0xf0] }
 0xb43   :  { %v15279_v7 = vld [vmem:[%s25576_s7 + $0x1818] sm:$0xf]  ;;  %v16080_v16 = vor.u32 %v17356_v14, %v16079_v34  ;;  %11017 = vmatpush.bf16.msra.mxu3 %v15824_v21  ;;  %v12916_v34 = vor.u32 %v16560_v39, %v12913_v4  ;;  %v16424_v14 = vld [vmem:[%s25576_s7 + $0x15c] sm:$0xf] }
 0xb44   :  { %v17156_v1 = vld [vmem:[%s25576_s7 + $0x1834] sm:$0xf0]  ;;  %v12625_v9 = vld [vmem:[%s25576_s7 + $0x378] sm:$0xf0] }
 0xb45   :  { %v15535_v12 = vld [vmem:[%s25576_s7 + $0x1a18] sm:$0xf]  ;;  %v15280_v26 = vor.u32 %v17156_v1, %v15279_v7  ;;  %11030 = vmatpush.bf16.msrb.mxu0 %v16080_v16  ;;  %v16488_v7 = vld [vmem:[%s25576_s7 + $0x35c] sm:$0xf]  ;;  %v13172_v1 = vor.u32 %v16624_v41, %v13169_v29  ;;  %v12372_v16 = vor.u32 %v16424_v14, %v12369_v37  ;;  %v10799_v14 = vpop.f32.mrf.mxu2  ;;  %v10812_v37 = vpop.f32.mrf.mxu3 }
 0xb46   :  { %v17220_v40 = vld [vmem:[%s25576_s7 + $0x1a34] sm:$0xf0]  ;;  %v16552_v21 = vld [vmem:[%s25576_s7 + $0x55c] sm:$0xf]  ;;  %v12628_v55 = vor.u32 %v16488_v7, %v12625_v9 }
 0xb47   :  { %v15791_v42 = vld [vmem:[%s25576_s7 + $0x1c18] sm:$0xf]  ;;  %v15536_v0 = vor.u32 %v17220_v40, %v15535_v12  ;;  %10992 = vmatpush.bf16.msra.mxu1 %v15280_v26  ;;  %v12881_v12 = vld [vmem:[%s25576_s7 + $0x578] sm:$0xf0] }
 0xb48   :  { %v17284_v59 = vld [vmem:[%s25576_s7 + $0x1c34] sm:$0xf0]  ;;  %v16616_v40 = vld [vmem:[%s25576_s7 + $0x75c] sm:$0xf]  ;;  %v12884_v36 = vor.u32 %v16552_v21, %v12881_v12  ;;  %v10788_v12 = vpop.f32.mrf.mxu1 }
 0xb49   :  { %v16047_v54 = vld [vmem:[%s25576_s7 + $0x1e18] sm:$0xf]  ;;  %v15792_v30 = vor.u32 %v17284_v59, %v15791_v42  ;;  %11005 = vmatpush.bf16.msra.mxu2 %v15536_v0  ;;  %v13137_v42 = vld [vmem:[%s25576_s7 + $0x778] sm:$0xf0]  ;;  %v10787_v0 = vadd.f32 %v10786_v17, %v24479_v61 }
 0xb4a   :  { %v17348_v60 = vld [vmem:[%s25576_s7 + $0x1e34] sm:$0xf0]  ;;  %10993 = vmatmul.bf16.vlgmr.msra.gmra.mxu1 %v19767_v52  ;;  %v16416_v59 = vld [vmem:[%s25576_s7 + $0x11c] sm:$0xf]  ;;  %v13140_v53 = vor.u32 %v16616_v40, %v13137_v42 }
 0xb4b   :  { %v16048_v5 = vor.u32 %v17348_v60, %v16047_v54  ;;  %11018 = vmatpush.bf16.msra.mxu3 %v15792_v30  ;;  %11037 = vmatpush.bf16.msrb.mxu1 %v12436_v48  ;;  %v12337_v54 = vld [vmem:[%s25576_s7 + $0x138] sm:$0xf0]  ;;  %v10800_v21 = vadd.f32 %v10799_v14, %v10787_v0 }
 0xb4c   :  { %11006 = vmatmul.bf16.vlgmr.msra.gmra.mxu2 %v19769_v63  ;;  %v16480_v60 = vld [vmem:[%s25576_s7 + $0x31c] sm:$0xf]  ;;  %v12340_v30 = vor.u32 %v16416_v59, %v12337_v54 }
 0xb4d   :  { %11031 = vmatpush.bf16.msrb.mxu0 %v16048_v5  ;;  %11050 = vmatpush.bf16.msrb.mxu2 %v12692_v58  ;;  %v12849_v26 = vld [vmem:[%s25576_s7 + $0x538] sm:$0xf0]  ;;  %v12596_v28 = vor.u32 %v16480_v60, %v12593_v35 }
 0xb4e   :  { %11019 = vmatmul.bf16.vlgmr.msra.gmra.mxu3 %v19765_v44  ;;  %v13105_v13 = vld [vmem:[%s25576_s7 + $0x738] sm:$0xf0]  ;;  %v12852_v5 = vor.u32 %v16544_v49, %v12849_v26 }
 0xb4f   :  { %11063 = vmatpush.bf16.msrb.mxu3 %v12948_v25  ;;  %11038 = vmatpush.bf16.msrb.mxu1 %v12404_v20  ;;  %v16408_v48 = vld [vmem:[%s25576_s7 + $0xdc] sm:$0xf]  ;;  %v13108_v61 = vor.u32 %v16608_v56, %v13105_v13 }
 0xb50   :  { %11032 = vmatmul.bf16.vlgmr.msrb.gmra.mxu0 %v19777_v19  ;;  %v12305_v58 = vld [vmem:[%s25576_s7 + $0xf8] sm:$0xf0] }
 0xb51   :  { %11076 = vmatpush.bf16.msra.mxu0 %v13204_v46  ;;  %11051 = vmatpush.bf16.msrb.mxu2 %v12660_v18  ;;  %v16472_v25 = vld [vmem:[%s25576_s7 + $0x2dc] sm:$0xf]  ;;  %v12308_v39 = vor.u32 %v16408_v48, %v12305_v58 }
 0xb52   :  { %v12561_v3 = vld [vmem:[%s25576_s7 + $0x2f8] sm:$0xf0] }
 0xb53   :  { %11064 = vmatpush.bf16.msrb.mxu3 %v12916_v34  ;;  %11039 = vmatpush.bf16.msrb.mxu1 %v12372_v16  ;;  %v16536_v45 = vld [vmem:[%s25576_s7 + $0x4dc] sm:$0xf]  ;;  %v12564_v4 = vor.u32 %v16472_v25, %v12561_v3 }
 0xb54   :  { %v12817_v43 = vld [vmem:[%s25576_s7 + $0x4f8] sm:$0xf0] }
 0xb55   :  { %11077 = vmatpush.bf16.msra.mxu0 %v13172_v1  ;;  %11052 = vmatpush.bf16.msrb.mxu2 %v12628_v55  ;;  %v16600_v46 = vld [vmem:[%s25576_s7 + $0x6dc] sm:$0xf]  ;;  %v12820_v41 = vor.u32 %v16536_v45, %v12817_v43  ;;  %v10813_v55 = vadd.f32 %v10812_v37, %v10800_v21  ;;  %v10801_v43 = vpop.f32.mrf.mxu2 }
 0xb56   :  { %v13073_v15 = vld [vmem:[%s25576_s7 + $0x6f8] sm:$0xf0] }
 0xb57   :  { %11065 = vmatpush.bf16.msrb.mxu3 %v12884_v36  ;;  %11040 = vmatpush.bf16.msrb.mxu1 %v12340_v30  ;;  %v16400_v29 = vld [vmem:[%s25576_s7 + $0x9c] sm:$0xf]  ;;  %v13076_v34 = vor.u32 %v16600_v46, %v13073_v15  ;;  %v10827_v36 = vpop.f32.mrf.mxu0  ;;  %v24672_v13 = vadd.f32 %v10825_v24, %v10813_v55  ;;  %v10814_v46 = vpop.f32.mrf.mxu3 }
 0xb58   :  { %v12273_v20 = vld [vmem:[%s25576_s7 + $0xb8] sm:$0xf0] }
 0xb59   :  { %11078 = vmatpush.bf16.msra.mxu0 %v13140_v53  ;;  %11053 = vmatpush.bf16.msrb.mxu2 %v12596_v28  ;;  %v16464_v18 = vld [vmem:[%s25576_s7 + $0x29c] sm:$0xf]  ;;  %v12276_v16 = vor.u32 %v16400_v29, %v12273_v20 }
 0xb5a   :  { %v12529_v7 = vld [vmem:[%s25576_s7 + $0x2b8] sm:$0xf0] }
 0xb5b   :  { %11066 = vmatpush.bf16.msrb.mxu3 %v12852_v5  ;;  %v16528_v1 = vld [vmem:[%s25576_s7 + $0x49c] sm:$0xf]  ;;  %11041 = vmatpush.bf16.msrb.mxu1 %v12308_v39  ;;  %v12532_v59 = vor.u32 %v16464_v18, %v12529_v7 }
 0xb5c   :  { %v12785_v9 = vld [vmem:[%s25576_s7 + $0x4b8] sm:$0xf0] }
 0xb5d   :  { %11079 = vmatpush.bf16.msra.mxu0 %v13108_v61  ;;  %v16592_v40 = vld [vmem:[%s25576_s7 + $0x69c] sm:$0xf]  ;;  %11054 = vmatpush.bf16.msrb.mxu2 %v12564_v4  ;;  %v12788_v54 = vor.u32 %v16528_v1, %v12785_v9 }
 0xb5e   :  { %v13041_v42 = vld [vmem:[%s25576_s7 + $0x6b8] sm:$0xf0] }
 0xb5f   :  { %11067 = vmatpush.bf16.msrb.mxu3 %v12820_v41  ;;  %v16392_v60 = vld [vmem:[%s25576_s7 + $0x5c] sm:$0xf]  ;;  %v13044_v49 = vor.u32 %v16592_v40, %v13041_v42  ;;  %11042 = vmatpush.bf16.msrb.mxu1 %v12276_v16 }
 0xb60   :  { %v12241_v53 = vld [vmem:[%s25576_s7 + $0x78] sm:$0xf0] }
 0xb61   :  { %v16456_v35 = vld [vmem:[%s25576_s7 + $0x25c] sm:$0xf]  ;;  %11080 = vmatpush.bf16.msra.mxu0 %v13076_v34  ;;  %v12244_v28 = vor.u32 %v16392_v60, %v12241_v53  ;;  %11055 = vmatpush.bf16.msrb.mxu2 %v12532_v59 }
 0xb62   :  { %v12497_v26 = vld [vmem:[%s25576_s7 + $0x278] sm:$0xf0] }
 0xb63   :  { %v16520_v17 = vld [vmem:[%s25576_s7 + $0x45c] sm:$0xf]  ;;  %11068 = vmatpush.bf16.msrb.mxu3 %v12788_v54  ;;  %v12500_v24 = vor.u32 %v16456_v35, %v12497_v26  ;;  %11043 = vmatpush.bf16.msrb.mxu1 %v12244_v28 }
 0xb64   :  { %v12753_v56 = vld [vmem:[%s25576_s7 + $0x478] sm:$0xf0] }
 0xb65   :  { %v16584_v0 = vld [vmem:[%s25576_s7 + $0x65c] sm:$0xf]  ;;  %v12756_v58 = vor.u32 %v16520_v17, %v12753_v56  ;;  %11081 = vmatpush.bf16.msra.mxu0 %v13044_v49  ;;  %11056 = vmatpush.bf16.msrb.mxu2 %v12500_v24 }
 0xb66   :  { %v13009_v30 = vld [vmem:[%s25576_s7 + $0x678] sm:$0xf0] }
 0xb67   :  { %v16384_v5 = vld [vmem:[%s25576_s7 + $0x1c] sm:$0xf]  ;;  %v13012_v45 = vor.u32 %v16584_v0, %v13009_v30  ;;  %11069 = vmatpush.bf16.msrb.mxu3 %v12756_v58 }
 0xb68   :  { %v12209_v48 = vld [vmem:[%s25576_s7 + $0x38] sm:$0xf0] }
 0xb69   :  { %v16448_v25 = vld [vmem:[%s25576_s7 + $0x21c] sm:$0xf]  ;;  %v12212_v18 = vor.u32 %v16384_v5, %v12209_v48  ;;  %11082 = vmatpush.bf16.msra.mxu0 %v13012_v45 }
 0xb6a   :  { %v12465_v61 = vld [vmem:[%s25576_s7 + $0x238] sm:$0xf0] }
 0xb6b   :  { %v16512_v3 = vld [vmem:[%s25576_s7 + $0x41c] sm:$0xf]  ;;  %v12468_v7 = vor.u32 %v16448_v25, %v12465_v61  ;;  %11044 = vmatpush.bf16.msrb.mxu1 %v12212_v18  ;;  %v24807_v18 = vld [vmem:[%s25579_s8] sm:$0xff] }
 0xb6c   :  { %v12721_v15 = vld [vmem:[%s25576_s7 + $0x438] sm:$0xf0] }
 0xb6d   :  { %v16576_v39 = vld [vmem:[%s25576_s7 + $0x61c] sm:$0xf]  ;;  %v12724_v1 = vor.u32 %v16512_v3, %v12721_v15  ;;  %11057 = vmatpush.bf16.msrb.mxu2 %v12468_v7 }
 0xb6e   :  { %v12977_v4 = vld [vmem:[%s25576_s7 + $0x638] sm:$0xf0]  ;;  %11045 = vmatmul.bf16.vlgmr.msrb.gmra.mxu1 %v19296_v10 }
 0xb6f   :  { %v16696_v41 = vld [vmem:[%s25576_s7 + $0x9dc] sm:$0xf]  ;;  %v12980_v12 = vor.u32 %v16576_v39, %v12977_v4  ;;  %11070 = vmatpush.bf16.msrb.mxu3 %v12724_v1 }
 0xb70   :  { %v13457_v29 = vld [vmem:[%s25576_s7 + $0x9f8] sm:$0xf0]  ;;  %11058 = vmatmul.bf16.vlgmr.msrb.gmra.mxu2 %v19298_v62 }
 0xb71   :  { %v16760_v20 = vld [vmem:[%s25576_s7 + $0xbdc] sm:$0xf]  ;;  %v13460_v40 = vor.u32 %v16696_v41, %v13457_v29  ;;  %11083 = vmatpush.bf16.msra.mxu0 %v12980_v12  ;;  %v10838_v41 = vpop.f32.mrf.mxu1 }
 0xb72   :  { %v13713_v34 = vld [vmem:[%s25576_s7 + $0xbf8] sm:$0xf0]  ;;  %11071 = vmatmul.bf16.vlgmr.msrb.gmra.mxu3 %v19319_v6 }
 0xb73   :  { %v16824_v14 = vld [vmem:[%s25576_s7 + $0xddc] sm:$0xf]  ;;  %v13716_v42 = vor.u32 %v16760_v20, %v13713_v34  ;;  %11089 = vmatpush.bf16.msra.mxu1 %v13460_v40  ;;  %v4395_v34 = vperm.slane %v24807_v18, 6 }
 0xb74   :  { %v13969_v37 = vld [vmem:[%s25576_s7 + $0xdf8] sm:$0xf0]  ;;  %11084 = vmatmul.bf16.vlgmr.msra.gmra.mxu0 %v19321_v23 }
 0xb75   :  { %v16888_v9 = vld [vmem:[%s25576_s7 + $0xfdc] sm:$0xf]  ;;  %v13972_v16 = vor.u32 %v16824_v14, %v13969_v37  ;;  %11102 = vmatpush.bf16.msra.mxu2 %v13716_v42  ;;  %v10877_v37 = vpop.f32.mrf.mxu0 }
 0xb76   :  { %v14225_v21 = vld [vmem:[%s25576_s7 + $0xff8] sm:$0xf0] }
 0xb77   :  { %v16688_v55 = vld [vmem:[%s25576_s7 + $0x99c] sm:$0xf]  ;;  %v14228_v54 = vor.u32 %v16888_v9, %v14225_v21  ;;  %11115 = vmatpush.bf16.msra.mxu3 %v13972_v16 }
 0xb78   :  { %v13425_v36 = vld [vmem:[%s25576_s7 + $0x9b8] sm:$0xf0] }
 0xb79   :  { %v16752_v59 = vld [vmem:[%s25576_s7 + $0xb9c] sm:$0xf]  ;;  %v13428_v17 = vor.u32 %v16688_v55, %v13425_v36  ;;  %11128 = vmatpush.bf16.msrb.mxu0 %v14228_v54 }
 0xb7a   :  { %v13681_v60 = vld [vmem:[%s25576_s7 + $0xbb8] sm:$0xf0] }
 0xb7b   :  { %v16816_v53 = vld [vmem:[%s25576_s7 + $0xd9c] sm:$0xf]  ;;  %v13684_v56 = vor.u32 %v16752_v59, %v13681_v60  ;;  %11090 = vmatpush.bf16.msra.mxu1 %v13428_v17  ;;  %v10839_v60 = vadd.f32 %v10838_v41, %v4395_v34 }
 0xb7c   :  { %v13937_v35 = vld [vmem:[%s25576_s7 + $0xdb8] sm:$0xf0] }
 0xb7d   :  { %v16880_v49 = vld [vmem:[%s25576_s7 + $0xf9c] sm:$0xf]  ;;  %v13940_v0 = vor.u32 %v16816_v53, %v13937_v35  ;;  %11103 = vmatpush.bf16.msra.mxu2 %v13684_v56 }
 0xb7e   :  { %v14193_v26 = vld [vmem:[%s25576_s7 + $0xfb8] sm:$0xf0] }
 0xb7f   :  { %v16680_v30 = vld [vmem:[%s25576_s7 + $0x95c] sm:$0xf]  ;;  %v14196_v48 = vor.u32 %v16880_v49, %v14193_v26  ;;  %11116 = vmatpush.bf16.msra.mxu3 %v13940_v0  ;;  %v10851_v0 = vpop.f32.mrf.mxu2 }
 0xb80   :  { %v13393_v28 = vld [vmem:[%s25576_s7 + $0x978] sm:$0xf0] }
 0xb81   :  { %v16744_v5 = vld [vmem:[%s25576_s7 + $0xb5c] sm:$0xf]  ;;  %v13396_v3 = vor.u32 %v16680_v30, %v13393_v28  ;;  %11129 = vmatpush.bf16.msrb.mxu0 %v14196_v48  ;;  %v10864_v30 = vpop.f32.mrf.mxu3 }
 0xb82   :  { %v13649_v24 = vld [vmem:[%s25576_s7 + $0xb78] sm:$0xf0] }
 0xb83   :  { %v16808_v58 = vld [vmem:[%s25576_s7 + $0xd5c] sm:$0xf]  ;;  %v13652_v45 = vor.u32 %v16744_v5, %v13649_v24  ;;  %11091 = vmatpush.bf16.msra.mxu1 %v13396_v3  ;;  %v10852_v24 = vadd.f32 %v10851_v0, %v10839_v60 }
 0xb84   :  { %v13905_v25 = vld [vmem:[%s25576_s7 + $0xd78] sm:$0xf0] }
 0xb85   :  { %v16872_v10 = vld [vmem:[%s25576_s7 + $0xf5c] sm:$0xf]  ;;  %v13908_v43 = vor.u32 %v16808_v58, %v13905_v25  ;;  %11104 = vmatpush.bf16.msra.mxu2 %v13652_v45  ;;  %v10840_v58 = vpop.f32.mrf.mxu1  ;;  %v10865_v3 = vadd.f32 %v10864_v30, %v10852_v24  ;;  %v10879_v45 = vpop.f32.mrf.mxu0 }
 0xb86   :  { %v14161_v61 = vld [vmem:[%s25576_s7 + $0xf78] sm:$0xf0] }
 0xb87   :  { %v16672_v62 = vld [vmem:[%s25576_s7 + $0x91c] sm:$0xf]  ;;  %v14164_v23 = vor.u32 %v16872_v10, %v14161_v61  ;;  %11117 = vmatpush.bf16.msra.mxu3 %v13908_v43  ;;  %v24882_v34 = vadd.f32 %v10877_v37, %v10865_v3 }
 0xb88   :  { %v13361_v6 = vld [vmem:[%s25576_s7 + $0x938] sm:$0xf0] }
 0xb89   :  { %v16736_v46 = vld [vmem:[%s25576_s7 + $0xb1c] sm:$0xf]  ;;  %v13364_v14 = vor.u32 %v16672_v62, %v13361_v6  ;;  %11130 = vmatpush.bf16.msrb.mxu0 %v14164_v23 }
 0xb8a   :  { %v13617_v15 = vld [vmem:[%s25576_s7 + $0xb38] sm:$0xf0] }
 0xb8b   :  { %v16800_v39 = vld [vmem:[%s25576_s7 + $0xd1c] sm:$0xf]  ;;  %v13620_v7 = vor.u32 %v16736_v46, %v13617_v15  ;;  %11092 = vmatpush.bf16.msra.mxu1 %v13364_v14 }
 0xb8c   :  { %v13873_v4 = vld [vmem:[%s25576_s7 + $0xd38] sm:$0xf0] }
 0xb8d   :  { %v16864_v29 = vld [vmem:[%s25576_s7 + $0xf1c] sm:$0xf]  ;;  %v13876_v1 = vor.u32 %v16800_v39, %v13873_v4  ;;  %11105 = vmatpush.bf16.msra.mxu2 %v13620_v7 }
 0xb8e   :  { %v14129_v20 = vld [vmem:[%s25576_s7 + $0xf38] sm:$0xf0] }
 0xb8f   :  { %v16664_v9 = vld [vmem:[%s25576_s7 + $0x8dc] sm:$0xf]  ;;  %v14132_v40 = vor.u32 %v16864_v29, %v14129_v20  ;;  %11118 = vmatpush.bf16.msra.mxu3 %v13876_v1 }
 0xb90   :  { %v13329_v21 = vld [vmem:[%s25576_s7 + $0x8f8] sm:$0xf0] }
 0xb91   :  { %v16728_v12 = vld [vmem:[%s25576_s7 + $0xadc] sm:$0xf]  ;;  %v13332_v54 = vor.u32 %v16664_v9, %v13329_v21  ;;  %11131 = vmatpush.bf16.msrb.mxu0 %v14132_v40 }
 0xb92   :  { %v13585_v42 = vld [vmem:[%s25576_s7 + $0xaf8] sm:$0xf0] }
 0xb93   :  { %v16792_v16 = vld [vmem:[%s25576_s7 + $0xcdc] sm:$0xf]  ;;  %v13588_v53 = vor.u32 %v16728_v12, %v13585_v42  ;;  %11093 = vmatpush.bf16.msra.mxu1 %v13332_v54 }
 0xb94   :  { %v13841_v55 = vld [vmem:[%s25576_s7 + $0xcf8] sm:$0xf0] }
 0xb95   :  { %v16856_v36 = vld [vmem:[%s25576_s7 + $0xedc] sm:$0xf]  ;;  %v13844_v35 = vor.u32 %v16792_v16, %v13841_v55  ;;  %11106 = vmatpush.bf16.msra.mxu2 %v13588_v53  ;;  %v10853_v16 = vpop.f32.mrf.mxu2  ;;  %v10866_v55 = vpop.f32.mrf.mxu3 }
 0xb96   :  { %v14097_v59 = vld [vmem:[%s25576_s7 + $0xef8] sm:$0xf0] }
 0xb97   :  { %v16656_v49 = vld [vmem:[%s25576_s7 + $0x89c] sm:$0xf]  ;;  %v14100_v56 = vor.u32 %v16856_v36, %v14097_v59  ;;  %11119 = vmatpush.bf16.msra.mxu3 %v13844_v35 }
 0xb98   :  { %v13297_v26 = vld [vmem:[%s25576_s7 + $0x8b8] sm:$0xf0] }
 0xb99   :  { %v16720_v17 = vld [vmem:[%s25576_s7 + $0xa9c] sm:$0xf]  ;;  %v13300_v61 = vor.u32 %v16656_v49, %v13297_v26  ;;  %11132 = vmatpush.bf16.msrb.mxu0 %v14100_v56 }
 0xb9a   :  { %v13553_v28 = vld [vmem:[%s25576_s7 + $0xab8] sm:$0xf0] }
 0xb9b   :  { %v16784_v5 = vld [vmem:[%s25576_s7 + $0xc9c] sm:$0xf]  ;;  %v13556_v43 = vor.u32 %v16720_v17, %v13553_v28  ;;  %11094 = vmatpush.bf16.msra.mxu1 %v13300_v61 }
 0xb9c   :  { %v13809_v48 = vld [vmem:[%s25576_s7 + $0xcb8] sm:$0xf0] }
 0xb9d   :  { %v16848_v25 = vld [vmem:[%s25576_s7 + $0xe9c] sm:$0xf]  ;;  %v13812_v62 = vor.u32 %v16784_v5, %v13809_v48  ;;  %11107 = vmatpush.bf16.msra.mxu2 %v13556_v43 }
 0xb9e   :  { %v14065_v10 = vld [vmem:[%s25576_s7 + $0xeb8] sm:$0xf0] }
 0xb9f   :  { %v16648_v6 = vld [vmem:[%s25576_s7 + $0x85c] sm:$0xf]  ;;  %v14068_v15 = vor.u32 %v16848_v25, %v14065_v10  ;;  %11120 = vmatpush.bf16.msra.mxu3 %v13812_v62 }
 0xba0   :  { %v13265_v46 = vld [vmem:[%s25576_s7 + $0x878] sm:$0xf0] }
 0xba1   :  { %v16712_v23 = vld [vmem:[%s25576_s7 + $0xa5c] sm:$0xf]  ;;  %v13268_v14 = vor.u32 %v16648_v6, %v13265_v46  ;;  %11133 = vmatpush.bf16.msrb.mxu0 %v14068_v15 }
 0xba2   :  { %v13521_v39 = vld [vmem:[%s25576_s7 + $0xa78] sm:$0xf0] }
 0xba3   :  { %v16776_v4 = vld [vmem:[%s25576_s7 + $0xc5c] sm:$0xf]  ;;  %v13524_v9 = vor.u32 %v16712_v23, %v13521_v39  ;;  %11095 = vmatpush.bf16.msra.mxu1 %v13268_v14 }
 0xba4   :  { %v13777_v41 = vld [vmem:[%s25576_s7 + $0xc78] sm:$0xf0] }
 0xba5   :  { %v16840_v29 = vld [vmem:[%s25576_s7 + $0xe5c] sm:$0xf]  ;;  %v13780_v21 = vor.u32 %v16776_v4, %v13777_v41  ;;  %11108 = vmatpush.bf16.msra.mxu2 %v13524_v9 }
 0xba6   :  { %v14033_v20 = vld [vmem:[%s25576_s7 + $0xe78] sm:$0xf0] }
 0xba7   :  { %v16640_v7 = vld [vmem:[%s25576_s7 + $0x81c] sm:$0xf]  ;;  %v14036_v42 = vor.u32 %v16840_v29, %v14033_v20  ;;  %11121 = vmatpush.bf16.msra.mxu3 %v13780_v21 }
 0xba8   :  { %v13233_v1 = vld [vmem:[%s25576_s7 + $0x838] sm:$0xf0] }
 0xba9   :  { %v16704_v12 = vld [vmem:[%s25576_s7 + $0xa1c] sm:$0xf]  ;;  %v13236_v49 = vor.u32 %v16640_v7, %v13233_v1  ;;  %11134 = vmatpush.bf16.msrb.mxu0 %v14036_v42 }
 0xbaa   :  { %v13489_v37 = vld [vmem:[%s25576_s7 + $0xa38] sm:$0xf0] }
 0xbab   :  { %v16768_v40 = vld [vmem:[%s25576_s7 + $0xc1c] sm:$0xf]  ;;  %v13492_v0 = vor.u32 %v16704_v12, %v13489_v37  ;;  %11096 = vmatpush.bf16.msra.mxu1 %v13236_v49  ;;  %v10929_v49 = vpop.f32.mrf.mxu0 }
 0xbac   :  { %v13745_v36 = vld [vmem:[%s25576_s7 + $0xc38] sm:$0xf0] }
 0xbad   :  { %v16832_v59 = vld [vmem:[%s25576_s7 + $0xe1c] sm:$0xf]  ;;  %v13748_v30 = vor.u32 %v16768_v40, %v13745_v36  ;;  %11109 = vmatpush.bf16.msra.mxu2 %v13492_v0 }
 0xbae   :  { %v14001_v54 = vld [vmem:[%s25576_s7 + $0xe38] sm:$0xf0]  ;;  %11097 = vmatmul.bf16.vlgmr.msra.gmra.mxu1 %v19422_v51 }
 0xbaf   :  { %v16952_v60 = vld [vmem:[%s25576_s7 + $0x11dc] sm:$0xf]  ;;  %v14004_v48 = vor.u32 %v16832_v59, %v14001_v54  ;;  %11122 = vmatpush.bf16.msra.mxu3 %v13748_v30  ;;  %v10890_v59 = vpop.f32.mrf.mxu1 }
 0xbb0   :  { %v14481_v53 = vld [vmem:[%s25576_s7 + $0x11f8] sm:$0xf0]  ;;  %11110 = vmatmul.bf16.vlgmr.msra.gmra.mxu2 %v19424_v38 }
 0xbb1   :  { %v17016_v35 = vld [vmem:[%s25576_s7 + $0x13dc] sm:$0xf]  ;;  %v14484_v24 = vor.u32 %v16952_v60, %v14481_v53  ;;  %11135 = vmatpush.bf16.msrb.mxu0 %v14004_v48  ;;  %v10891_v53 = vadd.f32 %v10890_v59, %v24882_v34 }
 0xbb2   :  { %v14737_v26 = vld [vmem:[%s25576_s7 + $0x13f8] sm:$0xf0]  ;;  %11123 = vmatmul.bf16.vlgmr.msra.gmra.mxu3 %v19447_v27 }
 0xbb3   :  { %v17080_v17 = vld [vmem:[%s25576_s7 + $0x15dc] sm:$0xf]  ;;  %v14740_v58 = vor.u32 %v17016_v35, %v14737_v26  ;;  %11141 = vmatpush.bf16.msrb.mxu1 %v14484_v24 }
 0xbb4   :  { %v14993_v56 = vld [vmem:[%s25576_s7 + $0x15f8] sm:$0xf0]  ;;  %11136 = vmatmul.bf16.vlgmr.msrb.gmra.mxu0 %v19449_v47 }
 0xbb5   :  { %v17144_v28 = vld [vmem:[%s25576_s7 + $0x17dc] sm:$0xf]  ;;  %v14996_v25 = vor.u32 %v17080_v17, %v14993_v56  ;;  %11154 = vmatpush.bf16.msrb.mxu2 %v14740_v58 }
 0xbb6   :  { %v15249_v5 = vld [vmem:[%s25576_s7 + $0x17f8] sm:$0xf0] }
 0xbb7   :  { %v16944_v10 = vld [vmem:[%s25576_s7 + $0x119c] sm:$0xf]  ;;  %v15252_v45 = vor.u32 %v17144_v28, %v15249_v5  ;;  %11167 = vmatpush.bf16.msrb.mxu3 %v14996_v25 }
 0xbb8   :  { %v14449_v61 = vld [vmem:[%s25576_s7 + $0x11b8] sm:$0xf0] }
 0xbb9   :  { %v17008_v3 = vld [vmem:[%s25576_s7 + $0x139c] sm:$0xf]  ;;  %v14452_v15 = vor.u32 %v16944_v10, %v14449_v61  ;;  %11180 = vmatpush.bf16.msra.mxu0 %v15252_v45 }
 0xbba   :  { %v14705_v43 = vld [vmem:[%s25576_s7 + $0x13b8] sm:$0xf0] }
 0xbbb   :  { %v17072_v62 = vld [vmem:[%s25576_s7 + $0x159c] sm:$0xf]  ;;  %v14708_v39 = vor.u32 %v17008_v3, %v14705_v43  ;;  %11142 = vmatpush.bf16.msrb.mxu1 %v14452_v15 }
 0xbbc   :  { %v14961_v6 = vld [vmem:[%s25576_s7 + $0x15b8] sm:$0xf0] }
 0xbbd   :  { %v17136_v46 = vld [vmem:[%s25576_s7 + $0x179c] sm:$0xf]  ;;  %v14964_v4 = vor.u32 %v17072_v62, %v14961_v6  ;;  %11155 = vmatpush.bf16.msrb.mxu2 %v14708_v39  ;;  %v10903_v6 = vpop.f32.mrf.mxu2 }
 0xbbe   :  { %v15217_v23 = vld [vmem:[%s25576_s7 + $0x17b8] sm:$0xf0] }
 0xbbf   :  { %v16936_v41 = vld [vmem:[%s25576_s7 + $0x115c] sm:$0xf]  ;;  %v15220_v14 = vor.u32 %v17136_v46, %v15217_v23  ;;  %11168 = vmatpush.bf16.msrb.mxu3 %v14964_v4  ;;  %v10916_v46 = vpop.f32.mrf.mxu3  ;;  %v10904_v4 = vadd.f32 %v10903_v6, %v10891_v53 }
 0xbc0   :  { %v14417_v29 = vld [vmem:[%s25576_s7 + $0x1178] sm:$0xf0] }
 0xbc1   :  { %v17000_v20 = vld [vmem:[%s25576_s7 + $0x135c] sm:$0xf]  ;;  %v14420_v12 = vor.u32 %v16936_v41, %v14417_v29  ;;  %11181 = vmatpush.bf16.msra.mxu0 %v15220_v14  ;;  %v10892_v41 = vpop.f32.mrf.mxu1 }
 0xbc2   :  { %v14673_v7 = vld [vmem:[%s25576_s7 + $0x1378] sm:$0xf0] }
 0xbc3   :  { %v17064_v1 = vld [vmem:[%s25576_s7 + $0x155c] sm:$0xf]  ;;  %v14676_v37 = vor.u32 %v17000_v20, %v14673_v7  ;;  %11143 = vmatpush.bf16.msrb.mxu1 %v14420_v12  ;;  %v10917_v7 = vadd.f32 %v10916_v46, %v10904_v4 }
 0xbc4   :  { %v14929_v9 = vld [vmem:[%s25576_s7 + $0x1578] sm:$0xf0] }
 0xbc5   :  { %v17128_v51 = vld [vmem:[%s25576_s7 + $0x175c] sm:$0xf]  ;;  %v14932_v40 = vor.u32 %v17064_v1, %v14929_v9  ;;  %11156 = vmatpush.bf16.msrb.mxu2 %v14676_v37  ;;  %v10931_v1 = vpop.f32.mrf.mxu0 }
 0xbc6   :  { %v15185_v21 = vld [vmem:[%s25576_s7 + $0x1778] sm:$0xf0] }
 0xbc7   :  { %v16928_v38 = vld [vmem:[%s25576_s7 + $0x111c] sm:$0xf]  ;;  %v15188_v47 = vor.u32 %v17128_v51, %v15185_v21  ;;  %11169 = vmatpush.bf16.msrb.mxu3 %v14932_v40 }
 0xbc8   :  { %v14385_v27 = vld [vmem:[%s25576_s7 + $0x1138] sm:$0xf0] }
 0xbc9   :  { %v16992_v42 = vld [vmem:[%s25576_s7 + $0x131c] sm:$0xf]  ;;  %v14388_v35 = vor.u32 %v16928_v38, %v14385_v27  ;;  %11182 = vmatpush.bf16.msra.mxu0 %v15188_v47 }
 0xbca   :  { %v14641_v16 = vld [vmem:[%s25576_s7 + $0x1338] sm:$0xf0] }
 0xbcb   :  { %v17056_v55 = vld [vmem:[%s25576_s7 + $0x151c] sm:$0xf]  ;;  %v14644_v26 = vor.u32 %v16992_v42, %v14641_v16  ;;  %11144 = vmatpush.bf16.msrb.mxu1 %v14388_v35 }
 0xbcc   :  { %v14897_v36 = vld [vmem:[%s25576_s7 + $0x1538] sm:$0xf0] }
 0xbcd   :  { %v17120_v54 = vld [vmem:[%s25576_s7 + $0x171c] sm:$0xf]  ;;  %v14900_v17 = vor.u32 %v17056_v55, %v14897_v36  ;;  %11157 = vmatpush.bf16.msrb.mxu2 %v14644_v26  ;;  %v25081_v55 = vadd.f32 %v10929_v49, %v10917_v7 }
 0xbce   :  { %v15153_v60 = vld [vmem:[%s25576_s7 + $0x1738] sm:$0xf0] }
 0xbcf   :  { %v16920_v56 = vld [vmem:[%s25576_s7 + $0x10dc] sm:$0xf]  ;;  %v15156_v34 = vor.u32 %v17120_v54, %v15153_v60  ;;  %11170 = vmatpush.bf16.msrb.mxu3 %v14900_v17 }
 0xbd0   :  { %v14353_v0 = vld [vmem:[%s25576_s7 + $0x10f8] sm:$0xf0] }
 0xbd1   :  { %v16984_v30 = vld [vmem:[%s25576_s7 + $0x12dc] sm:$0xf]  ;;  %v14356_v25 = vor.u32 %v16920_v56, %v14353_v0  ;;  %11183 = vmatpush.bf16.msra.mxu0 %v15156_v34  ;;  %v10905_v56 = vpop.f32.mrf.mxu2  ;;  %v10918_v0 = vpop.f32.mrf.mxu3 }
 0xbd2   :  { %v14609_v28 = vld [vmem:[%s25576_s7 + $0x12f8] sm:$0xf0] }
 0xbd3   :  { %v17048_v5 = vld [vmem:[%s25576_s7 + $0x14dc] sm:$0xf]  ;;  %v14612_v10 = vor.u32 %v16984_v30, %v14609_v28  ;;  %11145 = vmatpush.bf16.msrb.mxu1 %v14356_v25 }
 0xbd4   :  { %v14865_v48 = vld [vmem:[%s25576_s7 + $0x14f8] sm:$0xf0] }
 0xbd5   :  { %v17112_v24 = vld [vmem:[%s25576_s7 + $0x16dc] sm:$0xf]  ;;  %v14868_v61 = vor.u32 %v17048_v5, %v14865_v48  ;;  %11158 = vmatpush.bf16.msrb.mxu2 %v14612_v10 }
 0xbd6   :  { %v15121_v58 = vld [vmem:[%s25576_s7 + $0x16f8] sm:$0xf0] }
 0xbd7   :  { %v16912_v3 = vld [vmem:[%s25576_s7 + $0x109c] sm:$0xf]  ;;  %v15124_v62 = vor.u32 %v17112_v24, %v15121_v58  ;;  %11171 = vmatpush.bf16.msrb.mxu3 %v14868_v61 }
 0xbd8   :  { %v14321_v45 = vld [vmem:[%s25576_s7 + $0x10b8] sm:$0xf0] }
 0xbd9   :  { %v16976_v43 = vld [vmem:[%s25576_s7 + $0x129c] sm:$0xf]  ;;  %v14324_v14 = vor.u32 %v16912_v3, %v14321_v45  ;;  %11184 = vmatpush.bf16.msra.mxu0 %v15124_v62 }
 0xbda   :  { %v14577_v23 = vld [vmem:[%s25576_s7 + $0x12b8] sm:$0xf0] }
 0xbdb   :  { %v17040_v15 = vld [vmem:[%s25576_s7 + $0x149c] sm:$0xf]  ;;  %v14580_v9 = vor.u32 %v16976_v43, %v14577_v23  ;;  %11146 = vmatpush.bf16.msrb.mxu1 %v14324_v14 }
 0xbdc   :  { %v14833_v39 = vld [vmem:[%s25576_s7 + $0x14b8] sm:$0xf0] }
 0xbdd   :  { %v17104_v29 = vld [vmem:[%s25576_s7 + $0x169c] sm:$0xf]  ;;  %v14836_v51 = vor.u32 %v17040_v15, %v14833_v39  ;;  %11159 = vmatpush.bf16.msrb.mxu2 %v14580_v9 }
 0xbde   :  { %v15089_v20 = vld [vmem:[%s25576_s7 + $0x16b8] sm:$0xf0] }
 0xbdf   :  { %v16904_v21 = vld [vmem:[%s25576_s7 + $0x105c] sm:$0xf]  ;;  %v15092_v40 = vor.u32 %v17104_v29, %v15089_v20  ;;  %11172 = vmatpush.bf16.msrb.mxu3 %v14836_v51 }
 0xbe0   :  { %v14289_v12 = vld [vmem:[%s25576_s7 + $0x1078] sm:$0xf0] }
 0xbe1   :  { %v16968_v37 = vld [vmem:[%s25576_s7 + $0x125c] sm:$0xf]  ;;  %v14292_v36 = vor.u32 %v16904_v21, %v14289_v12  ;;  %11185 = vmatpush.bf16.msra.mxu0 %v15092_v40 }
 0xbe2   :  { %v14545_v38 = vld [vmem:[%s25576_s7 + $0x1278] sm:$0xf0] }
 0xbe3   :  { %v17032_v27 = vld [vmem:[%s25576_s7 + $0x145c] sm:$0xf]  ;;  %v14548_v60 = vor.u32 %v16968_v37, %v14545_v38  ;;  %11147 = vmatpush.bf16.msrb.mxu1 %v14292_v36 }
 0xbe4   :  { %v14801_v42 = vld [vmem:[%s25576_s7 + $0x1478] sm:$0xf0] }
 0xbe5   :  { %v17096_v47 = vld [vmem:[%s25576_s7 + $0x165c] sm:$0xf]  ;;  %v14804_v53 = vor.u32 %v17032_v27, %v14801_v42  ;;  %11160 = vmatpush.bf16.msrb.mxu2 %v14548_v60 }
 0xbe6   :  { %v15057_v16 = vld [vmem:[%s25576_s7 + $0x1678] sm:$0xf0] }
 0xbe7   :  { %v16896_v59 = vld [vmem:[%s25576_s7 + $0x101c] sm:$0xf]  ;;  %v15060_v17 = vor.u32 %v17096_v47, %v15057_v16  ;;  %11173 = vmatpush.bf16.msrb.mxu3 %v14804_v53 }
 0xbe8   :  { %v14257_v54 = vld [vmem:[%s25576_s7 + $0x1038] sm:$0xf0] }
 0xbe9   :  { %v16960_v35 = vld [vmem:[%s25576_s7 + $0x121c] sm:$0xf]  ;;  %v14260_v58 = vor.u32 %v16896_v59, %v14257_v54  ;;  %11186 = vmatpush.bf16.msra.mxu0 %v15060_v17  ;;  %v10942_v17 = vpop.f32.mrf.mxu1 }
 0xbea   :  { %v14513_v49 = vld [vmem:[%s25576_s7 + $0x1238] sm:$0xf0] }
 0xbeb   :  { %v17024_v26 = vld [vmem:[%s25576_s7 + $0x141c] sm:$0xf]  ;;  %v14516_v3 = vor.u32 %v16960_v35, %v14513_v49  ;;  %11148 = vmatpush.bf16.msrb.mxu1 %v14260_v58 }
 0xbec   :  { %v14769_v30 = vld [vmem:[%s25576_s7 + $0x1438] sm:$0xf0] }
 0xbed   :  { %v17088_v34 = vld [vmem:[%s25576_s7 + $0x161c] sm:$0xf]  ;;  %v14772_v45 = vor.u32 %v17024_v26, %v14769_v30  ;;  %11161 = vmatpush.bf16.msrb.mxu2 %v14516_v3  ;;  %v10943_v30 = vadd.f32 %v10942_v17, %v25081_v55 }
 0xbee   :  { %v15025_v28 = vld [vmem:[%s25576_s7 + $0x1638] sm:$0xf0]  ;;  %11149 = vmatmul.bf16.vlgmr.msrb.gmra.mxu1 %v19553_v8 }
 0xbef   :  { %v17208_v5 = vld [vmem:[%s25576_s7 + $0x19dc] sm:$0xf]  ;;  %v15028_v6 = vor.u32 %v17088_v34, %v15025_v28  ;;  %11174 = vmatpush.bf16.msrb.mxu3 %v14772_v45  ;;  %v10981_v28 = vpop.f32.mrf.mxu0 }
 0xbf0   :  { %v15505_v48 = vld [vmem:[%s25576_s7 + $0x19f8] sm:$0xf0]  ;;  %11162 = vmatmul.bf16.vlgmr.msrb.gmra.mxu2 %v19555_v33 }
 0xbf1   :  { %v17272_v24 = vld [vmem:[%s25576_s7 + $0x1bdc] sm:$0xf]  ;;  %v15508_v46 = vor.u32 %v17208_v5, %v15505_v48  ;;  %11187 = vmatpush.bf16.msra.mxu0 %v15028_v6 }
 0xbf2   :  { %v15761_v25 = vld [vmem:[%s25576_s7 + $0x1bf8] sm:$0xf0]  ;;  %11175 = vmatmul.bf16.vlgmr.msrb.gmra.mxu3 %v19564_v31 }
 0xbf3   :  { %v17336_v10 = vld [vmem:[%s25576_s7 + $0x1ddc] sm:$0xf]  ;;  %v15764_v23 = vor.u32 %v17272_v24, %v15761_v25  ;;  %11193 = vmatpush.bf16.msra.mxu1 %v15508_v46 }
 0xbf4   :  { %v16017_v61 = vld [vmem:[%s25576_s7 + $0x1df8] sm:$0xf0]  ;;  %11188 = vmatmul.bf16.vlgmr.msra.gmra.mxu0 %v19566_v2 }
 0xbf5   :  { %v17400_v43 = vld [vmem:[%s25576_s7 + $0x1fdc] sm:$0xf]  ;;  %v16020_v15 = vor.u32 %v17336_v10, %v16017_v61  ;;  %11206 = vmatpush.bf16.msra.mxu2 %v15764_v23 }
 0xbf6   :  { %v16273_v62 = vld [vmem:[%s25576_s7 + $0x1ff8] sm:$0xf0] }
 0xbf7   :  { %v17200_v39 = vld [vmem:[%s25576_s7 + $0x199c] sm:$0xf]  ;;  %v16276_v29 = vor.u32 %v17400_v43, %v16273_v62  ;;  %11219 = vmatpush.bf16.msra.mxu3 %v16020_v15 }
 0xbf8   :  { %v15473_v4 = vld [vmem:[%s25576_s7 + $0x19b8] sm:$0xf0] }
 0xbf9   :  { %v17264_v41 = vld [vmem:[%s25576_s7 + $0x1b9c] sm:$0xf]  ;;  %v15476_v51 = vor.u32 %v17200_v39, %v15473_v4  ;;  %11232 = vmatpush.bf16.msrb.mxu0 %v16276_v29  ;;  %v10968_v29 = vpop.f32.mrf.mxu3 }
 0xbfa   :  { %v15729_v20 = vld [vmem:[%s25576_s7 + $0x1bb8] sm:$0xf0] }
 0xbfb   :  { %v17328_v14 = vld [vmem:[%s25576_s7 + $0x1d9c] sm:$0xf]  ;;  %v15732_v21 = vor.u32 %v17264_v41, %v15729_v20  ;;  %11194 = vmatpush.bf16.msra.mxu1 %v15476_v51  ;;  %v10955_v41 = vpop.f32.mrf.mxu2 }
 0xbfc   :  { %v15985_v7 = vld [vmem:[%s25576_s7 + $0x1db8] sm:$0xf0] }
 0xbfd   :  { %v17392_v1 = vld [vmem:[%s25576_s7 + $0x1f9c] sm:$0xf]  ;;  %v15988_v12 = vor.u32 %v17328_v14, %v15985_v7  ;;  %11207 = vmatpush.bf16.msra.mxu2 %v15732_v21 }
 0xbfe   :  { %v16241_v9 = vld [vmem:[%s25576_s7 + $0x1fb8] sm:$0xf0] }
 0xbff   :  { %v17192_v37 = vld [vmem:[%s25576_s7 + $0x195c] sm:$0xf]  ;;  %v16244_v27 = vor.u32 %v17392_v1, %v16241_v9  ;;  %11220 = vmatpush.bf16.msra.mxu3 %v15988_v12  ;;  %v10956_v1 = vadd.f32 %v10955_v41, %v10943_v30  ;;  %v10944_v9 = vpop.f32.mrf.mxu1 }
 0xc00   :  { %v15441_v40 = vld [vmem:[%s25576_s7 + $0x1978] sm:$0xf0] }
 0xc01   :  { %v17256_v38 = vld [vmem:[%s25576_s7 + $0x1b5c] sm:$0xf]  ;;  %v15444_v59 = vor.u32 %v17192_v37, %v15441_v40  ;;  %11233 = vmatpush.bf16.msrb.mxu0 %v16244_v27  ;;  %v10969_v37 = vadd.f32 %v10968_v29, %v10956_v1  ;;  %v10983_v40 = vpop.f32.mrf.mxu0  ;;  %v10970_v30 = vpop.f32.mrf.mxu3 }
 0xc02   :  { %v15697_v42 = vld [vmem:[%s25576_s7 + $0x1b78] sm:$0xf0] }
 0xc03   :  { %v17320_v47 = vld [vmem:[%s25576_s7 + $0x1d5c] sm:$0xf]  ;;  %v15700_v54 = vor.u32 %v17256_v38, %v15697_v42  ;;  %11195 = vmatpush.bf16.msra.mxu1 %v15444_v59 }
 0xc04   :  { %v15953_v16 = vld [vmem:[%s25576_s7 + $0x1d78] sm:$0xf0] }
 0xc05   :  { %v17384_v8 = vld [vmem:[%s25576_s7 + $0x1f5c] sm:$0xf]  ;;  %v15956_v60 = vor.u32 %v17320_v47, %v15953_v16  ;;  %11208 = vmatpush.bf16.msra.mxu2 %v15700_v54 }
 0xc06   :  { %v16209_v36 = vld [vmem:[%s25576_s7 + $0x1f78] sm:$0xf0] }
 0xc07   :  { %v17184_v33 = vld [vmem:[%s25576_s7 + $0x191c] sm:$0xf]  ;;  %v16212_v2 = vor.u32 %v17384_v8, %v16209_v36  ;;  %11221 = vmatpush.bf16.msra.mxu3 %v15956_v60 }
 0xc08   :  { %v15409_v31 = vld [vmem:[%s25576_s7 + $0x1938] sm:$0xf0] }
 0xc09   :  { %v17248_v53 = vld [vmem:[%s25576_s7 + $0x1b1c] sm:$0xf]  ;;  %v15412_v34 = vor.u32 %v17184_v33, %v15409_v31  ;;  %11234 = vmatpush.bf16.msrb.mxu0 %v16212_v2  ;;  %v10982_v31 = vadd.f32 %v10981_v28, %v10969_v37 }
 0xc0a   :  { %v15665_v35 = vld [vmem:[%s25576_s7 + $0x1b38] sm:$0xf0] }
 0xc0b   :  { %v17312_v49 = vld [vmem:[%s25576_s7 + $0x1d1c] sm:$0xf]  ;;  %v15668_v5 = vor.u32 %v17248_v53, %v15665_v35  ;;  %11196 = vmatpush.bf16.msra.mxu1 %v15412_v34 }
 0xc0c   :  { %v15921_v26 = vld [vmem:[%s25576_s7 + $0x1d38] sm:$0xf0] }
 0xc0d   :  { %v17376_v56 = vld [vmem:[%s25576_s7 + $0x1f1c] sm:$0xf]  ;;  %v15924_v48 = vor.u32 %v17312_v49, %v15921_v26  ;;  %11209 = vmatpush.bf16.msra.mxu2 %v15668_v5 }
 0xc0e   :  { %v16177_v0 = vld [vmem:[%s25576_s7 + $0x1f38] sm:$0xf0] }
 0xc0f   :  { %v17176_v24 = vld [vmem:[%s25576_s7 + $0x18dc] sm:$0xf]  ;;  %v16180_v55 = vor.u32 %v17376_v56, %v16177_v0  ;;  %11222 = vmatpush.bf16.msra.mxu3 %v15924_v48  ;;  %v10957_v0 = vpop.f32.mrf.mxu2 }
 0xc10   :  { %v15377_v58 = vld [vmem:[%s25576_s7 + $0x18f8] sm:$0xf0] }
 0xc11   :  { %v17240_v25 = vld [vmem:[%s25576_s7 + $0x1adc] sm:$0xf]  ;;  %v15380_v62 = vor.u32 %v17176_v24, %v15377_v58  ;;  %11235 = vmatpush.bf16.msrb.mxu0 %v16180_v55 }
 0xc12   :  { %v15633_v10 = vld [vmem:[%s25576_s7 + $0x1af8] sm:$0xf0] }
 0xc13   :  { %v17304_v61 = vld [vmem:[%s25576_s7 + $0x1cdc] sm:$0xf]  ;;  %v15636_v6 = vor.u32 %v17240_v25, %v15633_v10  ;;  %11197 = vmatpush.bf16.msra.mxu1 %v15380_v62  ;;  %v11020_v62 = vpop.f32.mrf.mxu3 }
 0xc14   :  { %v15889_v3 = vld [vmem:[%s25576_s7 + $0x1cf8] sm:$0xf0] }
 0xc15   :  { %v17368_v45 = vld [vmem:[%s25576_s7 + $0x1edc] sm:$0xf]  ;;  %v15892_v46 = vor.u32 %v17304_v61, %v15889_v3  ;;  %11210 = vmatpush.bf16.msra.mxu2 %v15636_v6  ;;  %v10994_v61 = vpop.f32.mrf.mxu1 }
 0xc16   :  { %v16145_v43 = vld [vmem:[%s25576_s7 + $0x1ef8] sm:$0xf0]  ;;  %v10995_v3 = vadd.f32 %v10994_v61, %v10982_v31  ;;  %v11275_v31 = vrot.slane %v24672_v13, 4 }
 0xc17   :  { %v17168_v23 = vld [vmem:[%s25576_s7 + $0x189c] sm:$0xf]  ;;  %v16148_v4 = vor.u32 %v17368_v45, %v16145_v43  ;;  %11223 = vmatpush.bf16.msra.mxu3 %v15892_v46  ;;  %v11033_v45 = vpop.f32.mrf.mxu0  ;;  %v11007_v43 = vpop.f32.mrf.mxu2 }
 0xc18   :  { %v15345_v15 = vld [vmem:[%s25576_s7 + $0x18b8] sm:$0xf0]  ;;  %v11008_v6 = vadd.f32 %v11007_v43, %v10995_v3  ;;  %v11276_v0 = vadd.f32 %v11275_v31, %v24672_v13 }
 0xc19   :  { %v17232_v39 = vld [vmem:[%s25576_s7 + $0x1a9c] sm:$0xf]  ;;  %v15348_v12 = vor.u32 %v17168_v23, %v15345_v15  ;;  %11236 = vmatpush.bf16.msrb.mxu0 %v16148_v4 }
 0xc1a   :  { %v15601_v20 = vld [vmem:[%s25576_s7 + $0x1ab8] sm:$0xf0]  ;;  %v11021_v23 = vadd.f32 %v11020_v62, %v11008_v6 }
 0xc1b   :  { %v17296_v14 = vld [vmem:[%s25576_s7 + $0x1c9c] sm:$0xf]  ;;  %v15604_v38 = vor.u32 %v17232_v39, %v15601_v20  ;;  %11198 = vmatpush.bf16.msra.mxu1 %v15348_v12  ;;  %v11022_v41 = vpop.f32.mrf.mxu3 }
 0xc1c   :  { %v15857_v7 = vld [vmem:[%s25576_s7 + $0x1cb8] sm:$0xf0]  ;;  %v25308_v39 = vadd.f32 %v11033_v45, %v11021_v23 }
 0xc1d   :  { %v17360_v51 = vld [vmem:[%s25576_s7 + $0x1e9c] sm:$0xf]  ;;  %v15860_v27 = vor.u32 %v17296_v14, %v15857_v7  ;;  %11211 = vmatpush.bf16.msra.mxu2 %v15604_v38  ;;  %v10996_v46 = vpop.f32.mrf.mxu1 }
 0xc1e   :  { %v16113_v21 = vld [vmem:[%s25576_s7 + $0x1eb8] sm:$0xf0] }
 0xc1f   :  { %v17160_v42 = vld [vmem:[%s25576_s7 + $0x185c] sm:$0xf]  ;;  %v16116_v8 = vor.u32 %v17360_v51, %v16113_v21  ;;  %11224 = vmatpush.bf16.msra.mxu3 %v15860_v27  ;;  %v11035_v15 = vpop.f32.mrf.mxu0  ;;  %v11009_v4 = vpop.f32.mrf.mxu2 }
 0xc20   :  { %v15313_v47 = vld [vmem:[%s25576_s7 + $0x1878] sm:$0xf0] }
 0xc21   :  { %v17224_v16 = vld [vmem:[%s25576_s7 + $0x1a5c] sm:$0xf]  ;;  %v15316_v53 = vor.u32 %v17160_v42, %v15313_v47  ;;  %11237 = vmatpush.bf16.msrb.mxu0 %v16116_v8  ;;  %v17490_v8 = vmov 8.0  }
 0xc22   :  { %v15569_v36 = vld [vmem:[%s25576_s7 + $0x1a78] sm:$0xf0]  ;;  %17463 = vrcp.f32 %v17490_v8 }
 0xc23   :  { %v17288_v59 = vld [vmem:[%s25576_s7 + $0x1c5c] sm:$0xf]  ;;  %v15572_v2 = vor.u32 %v17224_v16, %v15569_v36  ;;  %11199 = vmatpush.bf16.msra.mxu1 %v15316_v53  ;;  %v11263_v36 = vrot.slane %v23076_v11, 4 }
 0xc24   :  { %v15825_v54 = vld [vmem:[%s25576_s7 + $0x1c78] sm:$0xf0] }
 0xc25   :  { %v17352_v60 = vld [vmem:[%s25576_s7 + $0x1e5c] sm:$0xf]  ;;  %v15828_v35 = vor.u32 %v17288_v59, %v15825_v54  ;;  %11212 = vmatpush.bf16.msra.mxu2 %v15572_v2  ;;  %v11257_v59 = vrot.slane %v22278_v32, 4  ;;  %v11251_v54 = vrot.slane %v21462_v50, 4  ;;  %v11269_v2 = vrot.slane %v23874_v22, 4 }
 0xc26   :  { %v16081_v33 = vld [vmem:[%s25576_s7 + $0x1e78] sm:$0xf0] }
 0xc27   :  { %v17152_v49 = vld [vmem:[%s25576_s7 + $0x181c] sm:$0xf]  ;;  %v16084_v56 = vor.u32 %v17352_v60, %v16081_v33  ;;  %11225 = vmatpush.bf16.msra.mxu3 %v15828_v35  ;;  %v11085_v29 = vpop.f32.mrf.mxu0  ;;  %v11059_v20 = vpop.f32.mrf.mxu2  ;;  %v11264_v33 = vadd.f32 %v11263_v36, %v23076_v11  ;;  %v11258_v53 = vadd.f32 %v11257_v59, %v22278_v32  ;;  %v11281_v35 = vrot.slane %v25308_v39, 4 }
 0xc28   :  { %v15281_v26 = vld [vmem:[%s25576_s7 + $0x1838] sm:$0xf0]  ;;  %v17464_v60 = vpop.eup %17463 }
 0xc29   :  { %v17216_v17 = vld [vmem:[%s25576_s7 + $0x1a1c] sm:$0xf]  ;;  %v15284_v58 = vor.u32 %v17152_v49, %v15281_v26  ;;  %11238 = vmatpush.bf16.msrb.mxu0 %v16084_v56  ;;  %v11245_v49 = vrot.slane %v20642_v57, 4  ;;  %v11294_v26 = vmul.f32 8.0, %v17464_v60  ;;  %v11265_v56 = vrot.slane %v11264_v33, 2 }
 0xc2a   :  { %v15537_v34 = vld [vmem:[%s25576_s7 + $0x1a38] sm:$0xf0]  ;;  %v11259_v30 = vrot.slane %v11258_v53, 2  ;;  %vm11298_vm6 = vweird.f32 %v17464_v60 }
 0xc2b   :  { %v17280_v28 = vld [vmem:[%s25576_s7 + $0x1c1c] sm:$0xf]  ;;  %v15540_v25 = vor.u32 %v17216_v17, %v15537_v34  ;;  %11200 = vmatpush.bf16.msra.mxu1 %v15284_v58  ;;  %v11252_v17 = vadd.f32 %v11251_v54, %v21462_v50  ;;  %v11270_v34 = vadd.f32 %v11269_v2, %v23874_v22 }
 0xc2c   :  { %v15793_v5 = vld [vmem:[%s25576_s7 + $0x1c38] sm:$0xf0] }
 0xc2d   :  { %v17344_v48 = vld [vmem:[%s25576_s7 + $0x1e1c] sm:$0xf]  ;;  %v15796_v55 = vor.u32 %v17280_v28, %v15793_v5  ;;  %11213 = vmatpush.bf16.msra.mxu2 %v15540_v25  ;;  %v11282_v28 = vadd.f32 %v11281_v35, %v25308_v39  ;;  %v11246_v5 = vadd.f32 %v11245_v49, %v20642_v57  ;;  %v11266_v25 = vadd.f32 %v11265_v56, %v11264_v33 }
 0xc2e   :  { %v16049_v24 = vld [vmem:[%s25576_s7 + $0x1e38] sm:$0xf0]  ;;  %11201 = vmatmul.bf16.vlgmr.msra.gmra.mxu1 %v19767_v52  ;;  %v11046_v52 = vpop.f32.mrf.mxu1  ;;  %v11271_v61 = vrot.slane %v11270_v34, 2 }
 0xc2f   :  { %v16052_v10 = vor.u32 %v17344_v48, %v16049_v24  ;;  %11226 = vmatpush.bf16.msra.mxu3 %v15796_v55  ;;  %v11087_v9 = vpop.f32.mrf.mxu0  ;;  %v11061_v21 = vpop.f32.mrf.mxu2  ;;  %v11295_v48 = vsub.f32 1.0, %v11294_v26  ;;  %v11253_v24 = vrot.slane %v11252_v17, 2  ;;  %v11277_v55 = vrot.slane %v11276_v0, 2 }
 0xc30   :  { %11214 = vmatmul.bf16.vlgmr.msra.gmra.mxu2 %v19769_v63  ;;  %v4396_v63 = vperm.slane %v24807_v18, 7  ;;  %v11283_v45 = vrot.slane %v11282_v28, 2  ;;  %v11247_v43 = vrot.slane %v11246_v5, 2  ;;  %v11267_v46 = vrot.slane %v11266_v25, 1 }
 0xc31   :  { %11239 = vmatpush.bf16.msrb.mxu0 %v16052_v10  ;;  %v11260_v10 = vadd.f32 %v11259_v30, %v11258_v53  ;;  %v11296_v62 = vmul.f32 %v17464_v60, %v11295_v48  ;;  %v11254_v6 = vadd.f32 %v11253_v24, %v11252_v17  ;;  %v11278_v23 = vadd.f32 %v11277_v55, %v11276_v0 }
 0xc32   :  { %11227 = vmatmul.bf16.vlgmr.msra.gmra.mxu3 %v19765_v44  ;;  %v11047_v44 = vadd.f32 %v11046_v52, %v4396_v63  ;;  %v11272_v4 = vadd.f32 %v11271_v61, %v11270_v34  ;;  %v11284_v41 = vadd.f32 %v11283_v45, %v11282_v28 }
 0xc33   :  { %v11261_v15 = vrot.slane %v11260_v10, 1 }
 0xc34   :  { %11240 = vmatmul.bf16.vlgmr.msrb.gmra.mxu0 %v19777_v19  ;;  %v11072_v19 = vpop.f32.mrf.mxu3  ;;  %v11060_v14 = vadd.f32 %v11059_v20, %v11047_v44  ;;  %v11297_v44 = vadd.f32 %v17464_v60, %v11296_v62  ;;  %v11255_v20 = vrot.slane %v11254_v6, 1  ;;  %v11273_v9 = vrot.slane %v11272_v4, 1 }
 0xc36   :  { %v11048_v7 = vpop.f32.mrf.mxu1  ;;  %v11073_v1 = vadd.f32 %v11072_v19, %v11060_v14  ;;  %v11268_v14 = vadd.f32 %v11267_v46, %v11266_v25  ;;  %v11274_v33 = vadd.f32 %v11273_v9, %v11272_v4 }
 0xc37   :  { %v25311_v40 = vpop.f32.mrf.mxu0  ;;  %v11111_v38 = vpop.f32.mrf.mxu2  ;;  %v11279_v7 = vrot.slane %v11278_v23, 1 }
 0xc38   :  { %v11086_v51 = vadd.f32 %v11085_v29, %v11073_v1  ;;  %v11248_v29 = vadd.f32 %v11247_v43, %v11246_v5  ;;  %v11262_v1 = vadd.f32 %v11261_v15, %v11260_v10 }
 0xc39   :  { %v11280_v36 = vadd.f32 %v11279_v7, %v11278_v23 }
 0xc3c   :  { %v11074_v12 = vpop.f32.mrf.mxu3 }
 0xc3d   :  { %v11285_v12 = vrot.slane %v11284_v41, 1 }
 0xc3e   :  { %v11098_v37 = vpop.f32.mrf.mxu1 }
 0xc3f   :  { %v11139_v47 = vpop.f32.mrf.mxu0  ;;  %v11113_v18 = vpop.f32.mrf.mxu2  ;;  %v11286_v31 = vadd.f32 %v11285_v12, %v11284_v41 }
 0xc40   :  { %v11249_v47 = vrot.slane %v11248_v29, 1  ;;  %v25331_v18 = vsel %vm11298_vm6, %v17464_v60, %v11297_v44 }
 0xc41   :  { %v25334_v8 = vmul.f32 %v25331_v18, %v11268_v14  ;;  %v25337_v54 = vmul.f32 %v25331_v18, %v11262_v1  ;;  %v25351_v26 = vmul.f32 %v25331_v18, %v11274_v33  ;;  %v25354_v17 = vmul.f32 %v25331_v18, %v11286_v31 }
 0xc42   :  { %v11250_v35 = vadd.f32 %v11249_v47, %v11248_v29 }
 0xc43   :  { %v11312_v5 = vsub.f32 %v23874_v22, %v25351_v26  ;;  %v11314_v48 = vsub.f32 %v25308_v39, %v25354_v17 }
 0xc44   :  { %v25313_v27 = vpop.f32.mrf.mxu3  ;;  %v25357_v56 = vmul.f32 %v25331_v18, %v11250_v35 }
 0xc45   :  { %v11320_v62 = vmul.f32 %v11312_v5, %v11312_v5 }
 0xc46   :  { %v11100_v42 = vpop.f32.mrf.mxu1  ;;  %v11308_v25 = vsub.f32 %v20642_v57, %v25357_v56 }
 0xc47   :  { %v11099_v42 = vadd.f32 %v11098_v37, %v11086_v51  ;;  %v11311_v51 = vsub.f32 %v23076_v11, %v25334_v8  ;;  %v25345_v37 = vmul.f32 %v25331_v18, %v11280_v36  ;;  %v11348_v44 = vrot.slane %v11320_v62, 4 }
 0xc48   :  { %v11316_v46 = vmul.f32 %v11308_v25, %v11308_v25 }
 0xc49   :  { %v11112_v59 = vadd.f32 %v11111_v38, %v11099_v42  ;;  %v11310_v38 = vsub.f32 %v22278_v32, %v25337_v54  ;;  %v11319_v30 = vmul.f32 %v11311_v51, %v11311_v51  ;;  %v11313_v34 = vsub.f32 %v24672_v13, %v25345_v37 }
 0xc4b   :  { %v11125_v60 = vadd.f32 %v25313_v27, %v11112_v59  ;;  %v11318_v28 = vmul.f32 %v11310_v38, %v11310_v38  ;;  %v11342_v10 = vrot.slane %v11319_v30, 4  ;;  %v11321_v61 = vmul.f32 %v11313_v34, %v11313_v34 }
 0xc4c   :  { %v11126_v16 = vpop.f32.mrf.mxu3 }
 0xc4d   :  { %v11256_v16 = vadd.f32 %v11255_v20, %v11254_v6  ;;  %v11138_v27 = vadd.f32 %v25311_v40, %v11125_v60  ;;  %v11336_v43 = vrot.slane %v11318_v28, 4  ;;  %v11322_v6 = vmul.f32 %v11314_v48, %v11314_v48 }
 0xc4e   :  { %v11343_v23 = vadd.f32 %v11342_v10, %v11319_v30  ;;  %v11354_v15 = vrot.slane %v11321_v61, 4 }
 0xc4f   :  { %v25340_v49 = vmul.f32 %v25331_v18, %v11256_v16  ;;  %v11337_v29 = vadd.f32 %v11336_v43, %v11318_v28  ;;  %v11360_v20 = vrot.slane %v11322_v6, 4 }
 0xc50   :  { %v11344_v7 = vrot.slane %v11343_v23, 2  ;;  %v11355_v1 = vadd.f32 %v11354_v15, %v11321_v61 }
 0xc51   :  { %v11309_v0 = vsub.f32 %v21462_v50, %v25340_v49  ;;  %v11361_v12 = vadd.f32 %v11360_v20, %v11322_v6 }
 0xc52   :  { %v11356_v33 = vrot.slane %v11355_v1, 2 }
 0xc53   :  { %v11317_v55 = vmul.f32 %v11309_v0, %v11309_v0  ;;  %v11362_v51 = vrot.slane %v11361_v12, 2 }
 0xc54   :  { %v11357_v34 = vadd.f32 %v11356_v33, %v11355_v1 }
 0xc55   :  { %v11330_v40 = vrot.slane %v11317_v55, 4  ;;  %v11363_v48 = vadd.f32 %v11362_v51, %v11361_v12 }
 0xc56   :  { %v11358_v43 = vrot.slane %v11357_v34, 1 }
 0xc57   :  { %v11331_v14 = vadd.f32 %v11330_v40, %v11317_v55  ;;  %v11364_v40 = vrot.slane %v11363_v48, 1 }
 0xc59   :  { %v11332_v16 = vrot.slane %v11331_v14, 2 }
 0xc5b   :  { %v11333_v30 = vadd.f32 %v11332_v16, %v11331_v14 }
 0xc5d   :  { %v11334_v55 = vrot.slane %v11333_v30, 1 }
 0xc6b   :  { %v11150_v58 = vpop.f32.mrf.mxu1 }
 0xc6c   :  { %v11151_v24 = vadd.f32 %v11150_v58, %v11138_v27 }
 0xc71   :  { %v25329_v3 = vpop.f32.mrf.mxu0 }
 0xc73   :  { %v11163_v52 = vpop.f32.mrf.mxu2  ;;  %v11152_v19 = vpop.f32.mrf.mxu1 }
 0xc74   :  { %v11164_v45 = vadd.f32 %v11163_v52, %v11151_v24  ;;  %v11324_v19 = vrot.slane %v11316_v46, 4  ;;  %v11338_v52 = vrot.slane %v11337_v29, 2 }
 0xc75   :  { %v11176_v63 = vpop.f32.mrf.mxu3 }
 0xc76   :  { %v11177_v4 = vadd.f32 %v11176_v63, %v11164_v45  ;;  %v11325_v47 = vadd.f32 %v11324_v19, %v11316_v46  ;;  %v11345_v63 = vadd.f32 %v11344_v7, %v11343_v23  ;;  %v11365_v19 = vadd.f32 %v11364_v40, %v11363_v48 }
 0xc78   :  { %v11190_v9 = vadd.f32 %v25329_v3, %v11177_v4  ;;  %v11326_v0 = vrot.slane %v11325_v47, 2  ;;  %v11346_v3 = vrot.slane %v11345_v63, 1  ;;  %v11335_v4 = vadd.f32 %v11334_v55, %v11333_v30 }
 0xc79   :  { %v11191_v21 = vpop.f32.mrf.mxu0 }
 0xc7a   :  { %v11349_v21 = vadd.f32 %v11348_v44, %v11320_v62  ;;  %v11327_v25 = vadd.f32 %v11326_v0, %v11325_v47  ;;  %v11347_v45 = vadd.f32 %v11346_v3, %v11345_v63  ;;  %v11373_v1 = vmul.f32 %v11335_v4, %v25331_v18 }
 0xc7b   :  { %v11165_v53 = vpop.f32.mrf.mxu2  ;;  %v11378_v47 = vmul.f32 %v11365_v19, %v25331_v18 }
 0xc7c   :  { %v11350_v35 = vrot.slane %v11349_v21, 2  ;;  %v11328_v15 = vrot.slane %v11327_v25, 1 }
 0xc7d   :  { %v11178_v2 = vpop.f32.mrf.mxu3 }
 0xc7e   :  { %v11339_v2 = vadd.f32 %v11338_v52, %v11337_v29  ;;  %v11351_v5 = vadd.f32 %v11350_v35, %v11349_v21  ;;  %v11359_v29 = vadd.f32 %v11358_v43, %v11357_v34  ;;  %v11329_v7 = vadd.f32 %v11328_v15, %v11327_v25 }
 0xc80   :  { %v11340_v28 = vrot.slane %v11339_v2, 1  ;;  %v11352_v46 = vrot.slane %v11351_v5, 1  ;;  %v11377_v52 = vmul.f32 %v11359_v29, %v25331_v18 }
 0xc82   :  { %v11341_v6 = vadd.f32 %v11340_v28, %v11339_v2  ;;  %v25392_v63 = vadd.f32 1e-05, %v11377_v52 }
 0xc84   :  { %v11374_v20 = vmul.f32 %v11341_v6, %v25331_v18  ;;  %vm11445_vm2 = vweird.f32 %v25392_v63 }
 0xc86   :  { %v25381_v12 = vadd.f32 1e-05, %v11374_v20 }
 0xc88   :  { %vm11415_vm11 = vweird.f32 %v25381_v12 }
 0xcab   :  { %v11202_v41 = vpop.f32.mrf.mxu1 }
 0xcac   :  { %v11203_v42 = vadd.f32 %v11202_v41, %v11190_v9  ;;  %v11375_v41 = vmul.f32 %v11347_v45, %v25331_v18 }
 0xcae   :  { %v25378_v9 = vadd.f32 1e-05, %v11375_v41 }
 0xcb0   :  { %17465 = vrsqrt.f32 %v25378_v9  ;;  %vm11425_vm9 = vweird.f32 %v25378_v9 }
 0xcb1   :  { %v11241_v58 = vpop.f32.mrf.mxu0  ;;  %17467 = vrsqrt.f32 %v25381_v12 }
 0xcb3   :  { %v11215_v36 = vpop.f32.mrf.mxu2  ;;  %v11204_v53 = vpop.f32.mrf.mxu1 }
 0xcb4   :  { %v11216_v31 = vadd.f32 %v11215_v36, %v11203_v42  ;;  %v11372_v36 = vmul.f32 %v11329_v7, %v25331_v18  ;;  %v25399_v53 = vadd.f32 1e-05, %v11378_v47 }
 0xcb5   :  { %v11228_v59 = vpop.f32.mrf.mxu3 }
 0xcb6   :  { %v11229_v60 = vadd.f32 %v11228_v59, %v11216_v31  ;;  %v25389_v59 = vadd.f32 1e-05, %v11373_v1  ;;  %v25401_v35 = vadd.f32 1e-05, %v11372_v36 }
 0xcb8   :  { %v25371_v27 = vadd.f32 %v11241_v58, %v11229_v60  ;;  %v11353_v58 = vadd.f32 %v11352_v46, %v11351_v5  ;;  %17469 = vrsqrt.f32 %v25389_v59  ;;  %v25406_v60 = vpop.eup %17465  ;;  %vm11405_vm15 = vweird.f32 %v25389_v59 }
 0xcb9   :  { %v11243_v38 = vpop.f32.mrf.mxu0  ;;  %17471 = vrsqrt.f32 %v25392_v63  ;;  %v25409_v0 = vpop.eup %17467  ;;  %v11420_v34 = vmul.f32 %v25406_v60, %v25378_v9  ;;  %vm11426_vm7 = vweird.f32 %v25406_v60  ;;  %vm11395_vm4 = vweird.f32 %v25401_v35 }
 0xcba   :  { %v11287_v24 = vrot.slane %v25371_v27, 4  ;;  %v11376_v42 = vmul.f32 %v11353_v58, %v25331_v18  ;;  %v11410_v5 = vmul.f32 %v25409_v0, %v25381_v12  ;;  %vm11416_vm8 = vweird.f32 %v25409_v0  ;;  %vm25452_vm12 = vmor %vm11425_vm9, %vm11426_vm7 }
 0xcbb   :  { %v11217_v10 = vpop.f32.mrf.mxu2  ;;  %v11421_v45 = vmul.f32 %v25406_v60, %v11420_v34  ;;  %vm25456_vm13 = vmor %vm11415_vm11, %vm11416_vm8  ;;  %vm11455_vm8 = vweird.f32 %v25399_v53 }
 0xcbc   :  { %v11288_v62 = vadd.f32 %v11287_v24, %v25371_v27  ;;  %v25397_v31 = vadd.f32 1e-05, %v11376_v42 }
 0xcbd   :  { %v11230_v61 = vpop.f32.mrf.mxu3  ;;  %v11422_v41 = vmul.f32 0.5, %v11421_v45 }
 0xcbe   :  { %v11289_v23 = vrot.slane %v11288_v62, 2  ;;  %17473 = vrsqrt.f32 %v25397_v31  ;;  %v25412_v3 = vpop.eup %17469  ;;  %vm11435_vm5 = vweird.f32 %v25397_v31 }
 0xcbf   :  { %17475 = vrsqrt.f32 %v25399_v53  ;;  %v25416_v28 = vpop.eup %17471  ;;  %v11400_v55 = vmul.f32 %v25412_v3, %v25389_v59  ;;  %v11423_v1 = vsub.f32 1.5, %v11422_v41  ;;  %vm11406_vm10 = vweird.f32 %v25412_v3 }
 0xcc0   :  { %v11290_v44 = vadd.f32 %v11289_v23, %v11288_v62  ;;  %17477 = vrsqrt.f32 %v25401_v35  ;;  %v11440_v43 = vmul.f32 %v25416_v28, %v25392_v63  ;;  %v11411_v62 = vmul.f32 %v25409_v0, %v11410_v5  ;;  %vm25471_vm1 = vmor %vm11405_vm15, %vm11406_vm10 }
 0xcc1   :  { %v11401_v15 = vmul.f32 %v25412_v3, %v11400_v55  ;;  %vm11446_vm14 = vweird.f32 %v25416_v28  ;;  %vm11484_vm15 = vcmask 1040384  }
 0xcc2   :  { %v11291_v14 = vrot.slane %v11290_v44, 1  ;;  %v11441_v29 = vmul.f32 %v25416_v28, %v11440_v43  ;;  %vm25485_vm6 = vmor %vm11445_vm2, %vm11446_vm14  ;;  %vm11492_vm2 = vcmask 1046534  }
 0xcc3   :  { %v11402_v7 = vmul.f32 0.5, %v11401_v15 }
 0xcc4   :  { %v11292_v21 = vadd.f32 %v11291_v14, %v11290_v44  ;;  %v25420_v24 = vpop.eup %17473  ;;  %v11412_v44 = vmul.f32 0.5, %v11411_v62  ;;  %v11442_v52 = vmul.f32 0.5, %v11441_v29 }
 0xcc5   :  { %v25422_v25 = vpop.eup %17475  ;;  %v11430_v6 = vmul.f32 %v25420_v24, %v25397_v31  ;;  %vm11436_vm0 = vweird.f32 %v25420_v24 }
 0xcc6   :  { %v25386_v16 = vmul.f32 %v25331_v18, %v11292_v21  ;;  %v25426_v61 = vpop.eup %17477  ;;  %v11450_v40 = vmul.f32 %v25422_v25, %v25399_v53  ;;  %v11413_v21 = vsub.f32 1.5, %v11412_v44  ;;  %vm11456_vm3 = vweird.f32 %v25422_v25  ;;  %vm25489_vm7 = vmor %vm11435_vm5, %vm11436_vm0 }
 0xcc7   :  { %v11390_v23 = vmul.f32 %v25426_v61, %v25401_v35  ;;  %v11431_v20 = vmul.f32 %v25420_v24, %v11430_v6  ;;  %vm11396_vm10 = vweird.f32 %v25426_v61  ;;  %vm25501_vm11 = vmor %vm11455_vm8, %vm11456_vm3  ;;  %vm11488_vm0 = vcmask 1041408  }
 0xcc8   :  { %v11315_v33 = vsub.f32 %v25371_v27, %v25386_v16  ;;  %v11451_v19 = vmul.f32 %v25422_v25, %v11450_v40  ;;  %vm11397_vm3 = vmor %vm11395_vm4, %vm11396_vm10  ;;  %vm11494_vm5 = vcmask 1045508  }
 0xcc9   :  { %v11391_v14 = vmul.f32 %v25426_v61, %v11390_v23  ;;  %v11432_v42 = vmul.f32 0.5, %v11431_v20 }
 0xcca   :  { %v11323_v2 = vmul.f32 %v11315_v33, %v11315_v33  ;;  %v11452_v47 = vmul.f32 0.5, %v11451_v19  ;;  %v11424_v33 = vmul.f32 %v25406_v60, %v11423_v1  ;;  %v11380_v1 = vld [vmem:[%s25580_s9] sm:$0xff] }
 0xccb   :  { %v11392_v36 = vmul.f32 0.5, %v11391_v14 }
 0xccc   :  { %v11366_v51 = vrot.slane %v11323_v2, 4  ;;  %v11453_v34 = vsub.f32 1.5, %v11452_v47  ;;  %v11428_v9 = vsel %vm25452_vm12, %v25406_v60, %v11424_v33  ;;  %vm11486_vm12 = vcmask 1042434  }
 0xcce   :  { %v11367_v38 = vadd.f32 %v11366_v51, %v11323_v2  ;;  %v11443_v2 = vsub.f32 1.5, %v11442_v52  ;;  %v11454_v60 = vmul.f32 %v25422_v25, %v11453_v34 }
 0xcd0   :  { %v11368_v30 = vrot.slane %v11367_v38, 2  ;;  %v11444_v43 = vmul.f32 %v25416_v28, %v11443_v2  ;;  %v11458_v53 = vsel %vm25501_vm11, %v25422_v25, %v11454_v60 }
 0xcd2   :  { %v11369_v48 = vadd.f32 %v11368_v30, %v11367_v38  ;;  %v11414_v38 = vmul.f32 %v25409_v0, %v11413_v21  ;;  %v11433_v30 = vsub.f32 1.5, %v11432_v42  ;;  %v11448_v15 = vsel %vm25485_vm6, %v25416_v28, %v11444_v43 }
 0xcd3   :  { %v11481_v20 = vrot.slane %v11448_v15, 3  ;;  %vm11496_vm6 = vcmask 1043456  }
 0xcd4   :  { %v11370_v10 = vrot.slane %v11369_v48, 1  ;;  %v11418_v12 = vsel %vm25456_vm13, %v25409_v0, %v11414_v38  ;;  %v11434_v6 = vmul.f32 %v25420_v24, %v11433_v30  ;;  %v11479_v0 = vrot.slane %v11428_v9, 5 }
 0xcd6   :  { %v11371_v46 = vadd.f32 %v11370_v10, %v11369_v48  ;;  %v11393_v48 = vsub.f32 1.5, %v11392_v36  ;;  %v11438_v28 = vsel %vm25489_vm7, %v25420_v24, %v11434_v6 }
 0xcd7   :  { %v11480_v24 = vrot.slane %v11438_v28, 4 }
 0xcd8   :  { %v11379_v4 = vmul.f32 %v11371_v46, %v25331_v18  ;;  %v11403_v18 = vsub.f32 1.5, %v11402_v7  ;;  %v11394_v31 = vmul.f32 %v25426_v61, %v11393_v48  ;;  %v11482_v7 = vrot.slane %v11458_v53, 2 }
 0xcda   :  { %v11388_v58 = vadd.f32 1e-05, %v11379_v4  ;;  %v11404_v55 = vmul.f32 %v25412_v3, %v11403_v18  ;;  %v11478_v4 = vrot.slane %v11418_v12, 6 }
 0xcdc   :  { %17479 = vrsqrt.f32 %v11388_v58  ;;  %v11408_v59 = vsel %vm25471_vm1, %v25412_v3, %v11404_v55  ;;  %vm11465_vm13 = vweird.f32 %v11388_v58  ;;  %v11487_v14 = vsel %vm11486_vm12, %v11478_v4, %v11479_v0 }
 0xcdd   :  { %v11477_v44 = vrot.slane %v11408_v59, 7  ;;  %vm11490_vm1 = vcmask 1044484  }
 0xcde   :  { %v11491_v21 = vsel %vm11490_vm1, %v11480_v24, %v11481_v20 }
 0xce2   :  { %v17480_v51 = vpop.eup %17479 }
 0xce3   :  { %v11460_v5 = vmul.f32 %v17480_v51, %v11388_v58  ;;  %vm11466_vm9 = vweird.f32 %v17480_v51  ;;  %v11398_v58 = vsel %vm11397_vm3, %v25426_v61, %v11394_v31 }
 0xce4   :  { %vm11467_vm14 = vmor %vm11465_vm13, %vm11466_vm9  ;;  %v11485_v52 = vsel %vm11484_vm15, %v11398_v58, %v11477_v44 }
 0xce5   :  { %v11461_v62 = vmul.f32 %v17480_v51, %v11460_v5  ;;  %v11489_v35 = vsel %vm11488_vm0, %v11485_v52, %v11487_v14  ;;  %v11607_v14 = vld [vmem:[%s25583_s11] sm:$0xff] }
 0xce7   :  { %v11462_v40 = vmul.f32 0.5, %v11461_v62 }
 0xce9   :  { %v11463_v3 = vsub.f32 1.5, %v11462_v40 }
 0xceb   :  { %v11464_v29 = vmul.f32 %v17480_v51, %v11463_v3 }
 0xced   :  { %v11468_v19 = vsel %vm11467_vm14, %v17480_v51, %v11464_v29  ;;  %vm11647_vm14 = vcmask 7168  }
 0xcee   :  { %v11483_v25 = vrot.slane %v11468_v19, 1 }
 0xcf0   :  { %v11493_v42 = vsel %vm11492_vm2, %v11482_v7, %v11483_v25 }
 0xcf1   :  { %v11495_v47 = vsel %vm11494_vm5, %v11491_v21, %v11493_v42  ;;  %v11609_v21 = vperm.slane %v11607_v14, 0  ;;  %v11610_v42 = vperm.slane %v11607_v14, 1 }
 0xcf2   :  { %v11497_v36 = vsel %vm11496_vm6, %v11489_v35, %v11495_v47 }
 0xcf3   :  { %v25526_v18 = vmul.f32 %v11497_v36, %v11380_v1 }
 0xcf5   :  { %v11502_v61 = vperm.slane %v25526_v18, 1  ;;  %v11503_v33 = vperm.slane %v25526_v18, 2  ;;  %v11504_v2 = vperm.slane %v25526_v18, 3  ;;  %v11505_v51 = vperm.slane %v25526_v18, 4 }
 0xcf6   :  { %v11506_v38 = vperm.slane %v25526_v18, 5  ;;  %v11507_v30 = vperm.slane %v25526_v18, 6  ;;  %v11508_v34 = vperm.slane %v25526_v18, 7  ;;  %v11501_v5 = vperm.slane %v25526_v18, 0 }
 0xcf7   :  { %v11527_v55 = vmul.f32 %v11502_v61, %v25340_v49  ;;  %v11528_v10 = vmul.f32 %v11503_v33, %v25337_v54  ;;  %v11529_v45 = vmul.f32 %v11504_v2, %v25334_v8  ;;  %v11530_v9 = vmul.f32 %v11505_v51, %v25351_v26  ;;  %v11525_v26 = vld [vmem:[%s25582_s10] sm:$0xff] }
 0xcf8   :  { %v11524_v48 = vmul.f32 %v11508_v34, %v25371_v27  ;;  %v11531_v43 = vmul.f32 %v11506_v38, %v25345_v37  ;;  %v11532_v62 = vmul.f32 %v11507_v30, %v25354_v17  ;;  %v11533_v12 = vmul.f32 %v11508_v34, %v25386_v16 }
 0xcf9   :  { %v11526_v6 = vmul.f32 %v11501_v5, %v25357_v56  ;;  %v11542_v46 = vrot.slane %v11527_v55, 7  ;;  %v11543_v60 = vrot.slane %v11528_v10, 6  ;;  %v11544_v40 = vrot.slane %v11529_v45, 5 }
 0xcfa   :  { %v11545_v27 = vrot.slane %v11530_v9, 4  ;;  %v11546_v59 = vrot.slane %v11531_v43, 3  ;;  %v11547_v49 = vrot.slane %v11532_v62, 2  ;;  %v11548_v0 = vrot.slane %v11533_v12, 1 }
 0xcfb   :  { %v11549_v54 = vsel %vm11484_vm15, %v11526_v6, %v11542_v46  ;;  %v11550_v8 = vsel %vm11486_vm12, %v11543_v60, %v11544_v40  ;;  %v18_v37 = vstv %s25581_s12  ;;  %v11517_v3 = vmul.f32 %v11501_v5, %v20642_v57 }
 0xcfc   :  { %v11551_v17 = vsel %vm11488_vm0, %v11549_v54, %v11550_v8  ;;  %v11552_v56 = vsel %vm11490_vm1, %v11545_v27, %v11546_v59  ;;  %v11553_v16 = vsel %vm11492_vm2, %v11547_v49, %v11548_v0  ;;  %19 = vst [vmem:[#allocation3] sm:$0x1] %v18_v37  ;;  %v11518_v31 = vmul.f32 %v11502_v61, %v21462_v50 }
 0xcfd   :  { %v11554_v23 = vsel %vm11494_vm5, %v11552_v56, %v11553_v16  ;;  %v11519_v4 = vmul.f32 %v11503_v33, %v22278_v32  ;;  %v11520_v44 = vmul.f32 %v11504_v2, %v23076_v11  ;;  %v11521_v57 = vmul.f32 %v11505_v51, %v23874_v22 }
 0xcfe   :  { %v11555_v63 = vsel %vm11496_vm6, %v11551_v17, %v11554_v23  ;;  %v11522_v1 = vmul.f32 %v11506_v38, %v24672_v13  ;;  %v11523_v18 = vmul.f32 %v11507_v30, %v25308_v39  ;;  %v11611_v51 = vperm.slane %v11607_v14, 2 }
 0xcff   :  { %v11557_v15 = vsub.f32 %v11525_v26, %v11555_v63  ;;  %v11612_v5 = vperm.slane %v11607_v14, 3  ;;  %v11613_v9 = vperm.slane %v11607_v14, 4  ;;  %v11614_v12 = vperm.slane %v11607_v14, 5 }
 0xd00   :  { %v11615_v27 = vperm.slane %v11607_v14, 6  ;;  %v11616_v54 = vperm.slane %v11607_v14, 7 }
 0xd01   :  { %v11559_v41 = vperm.slane %v11557_v15, 0  ;;  %v11560_v28 = vperm.slane %v11557_v15, 1  ;;  %v11561_v53 = vperm.slane %v11557_v15, 2  ;;  %v11562_v29 = vperm.slane %v11557_v15, 3 }
 0xd02   :  { %v11563_v20 = vperm.slane %v11557_v15, 4  ;;  %v11566_v19 = vperm.slane %v11557_v15, 7  ;;  %v11564_v50 = vperm.slane %v11557_v15, 5  ;;  %v11565_v52 = vperm.slane %v11557_v15, 6 }
 0xd03   :  { %v11575_v24 = vadd.f32 %v11559_v41, %v11517_v3  ;;  %v11576_v7 = vadd.f32 %v11560_v28, %v11518_v31  ;;  %v11577_v25 = vadd.f32 %v11561_v53, %v11519_v4  ;;  %v11578_v58 = vadd.f32 %v11562_v29, %v11520_v44  ;;  %v17458_v15 = vld [vmem:[#allocation3] ss:$0 sm:$0xff] }
 0xd04   :  { %v11582_v32 = vadd.f32 %v11566_v19, %v11524_v48  ;;  %v11579_v11 = vadd.f32 %v11563_v20, %v11521_v57  ;;  %v11580_v61 = vadd.f32 %v11564_v50, %v11522_v1  ;;  %v11581_v34 = vadd.f32 %v11565_v52, %v11523_v18 }
 0xd05   :  { %vm11583_vm4 = vcmp.ge.f32.partialorder %v11575_v24, 0.0  ;;  %vm11584_vm7 = vcmp.ge.f32.partialorder %v11576_v7, 0.0  ;;  %vm11585_vm8 = vcmp.ge.f32.partialorder %v11577_v25, 0.0  ;;  %v11591_v35 = vmul.f32 0.2, %v11575_v24 }
 0xd06   :  { %v11592_v47 = vmul.f32 0.2, %v11576_v7  ;;  %v11593_v36 = vmul.f32 0.2, %v11577_v25  ;;  %v11594_v33 = vmul.f32 0.2, %v11578_v58 }
 0xd07   :  { %vm11586_vm9 = vcmp.ge.f32.partialorder %v11578_v58, 0.0  ;;  %v11599_v22 = vsel %vm11583_vm4, %v11575_v24, %v11591_v35  ;;  %v11595_v13 = vmul.f32 0.2, %v11579_v11  ;;  %vm11587_vm10 = vcmp.ge.f32.partialorder %v11579_v11, 0.0 }
 0xd08   :  { %v11600_v2 = vsel %vm11584_vm7, %v11576_v7, %v11592_v47  ;;  %v11601_v38 = vsel %vm11585_vm8, %v11577_v25, %v11593_v36  ;;  %v11625_v48 = vmul.f32 %v11609_v21, %v11599_v22  ;;  %v11596_v10 = vmul.f32 0.2, %v11580_v61 }
 0xd09   :  { %v11626_v55 = vmul.f32 %v11610_v42, %v11600_v2  ;;  %v11602_v45 = vsel %vm11586_vm9, %v11578_v58, %v11594_v33  ;;  %vm11588_vm11 = vcmp.ge.f32.partialorder %v11580_v61, 0.0  ;;  %v11627_v43 = vmul.f32 %v11611_v51, %v11601_v38 }
 0xd0a   :  { %v11597_v39 = vmul.f32 0.2, %v11581_v34  ;;  %v11603_v30 = vsel %vm11587_vm10, %v11579_v11, %v11595_v13  ;;  %vm11589_vm12 = vcmp.ge.f32.partialorder %v11581_v34, 0.0  ;;  %v11628_v6 = vmul.f32 %v11612_v5, %v11602_v45 }
 0xd0b   :  { %v11633_v62 = vadd.f32 %v11626_v55, %v11625_v48  ;;  %v11598_v60 = vmul.f32 0.2, %v11582_v32  ;;  %v11604_v40 = vsel %vm11588_vm11, %v11580_v61, %v11596_v10  ;;  %vm11590_vm13 = vcmp.ge.f32.partialorder %v11582_v32, 0.0 }
 0xd0c   :  { %v11629_v59 = vmul.f32 %v11613_v9, %v11603_v30  ;;  %v11605_v0 = vsel %vm11589_vm12, %v11581_v34, %v11597_v39  ;;  %v11630_v8 = vmul.f32 %v11614_v12, %v11604_v40 }
 0xd0d   :  { %v11634_v46 = vadd.f32 %v11633_v62, %v11627_v43  ;;  %v11606_v26 = vsel %vm11590_vm13, %v11582_v32, %v11598_v60  ;;  %v11631_v17 = vmul.f32 %v11615_v27, %v11605_v0 }
 0xd0e   :  { %v11632_v16 = vmul.f32 %v11616_v54, %v11606_v26 }
 0xd0f   :  { %v11635_v49 = vadd.f32 %v11634_v46, %v11628_v6 }
 0xd11   :  { %v11636_v37 = vadd.f32 %v11635_v49, %v11629_v59 }
 0xd13   :  { %v11637_v56 = vadd.f32 %v11636_v37, %v11630_v8 }
 0xd15   :  { %v11638_v23 = vadd.f32 %v11637_v56, %v11631_v17 }
 0xd17   :  { %v11639_v63 = vadd.f32 %v11638_v23, %v11632_v16 }
 0xd19   :  { %11640 = vadd.xlane.f32.xlu0 %v11639_v63 }
 0xd8c   :  { %v11641_v3 = vpop.xlane.xlu0 %11640 }
 0xd8d   :  { %v11646_v31 = vadd.f32 %v17458_v15, %v11641_v3 }
 0xd8f   :  { %11648 = vst.msk [vmem:[%s25584_s13] sm:$0xff] %vm11647_vm14, %v11646_v31 }

</bundles_post_ra>
